<compile_context>
chip_gen: v5e
topology: v5e:2x2
jax: 0.10.0
libtpu: 0.0.40
codegen_flags: <defaults>
</compile_context>

<pallas_src>
import jax
import jax.numpy as jnp
from jax import lax
from jax.experimental import pallas as pl
from jax.experimental.pallas import tpu as pltpu


def _round_up(x, m):
    return ((x + m - 1) // m) * m


# ------------------- Pallas tiled matmul (hot path of every conv) ----------
def _matmul_kernel(a_ref, b_ref, o_ref):
    @pl.when(pl.program_id(2) == 0)
    def _():
        o_ref[...] = jnp.zeros_like(o_ref)

    o_ref[...] += jnp.dot(a_ref[...], b_ref[...],
                          preferred_element_type=jnp.float32)


def pallas_matmul(a, b):
    """a: (M, K), b: (K, N) -> (M, N) f32. bf16 MXU operands, f32 accumulate."""
    M, K = a.shape
    K2, N = b.shape
    assert K == K2
    tm = min(256, _round_up(M, 16))      # bf16 sublane packing -> multiple of 16
    tn = min(256, _round_up(N, 128))
    tk = min(256, _round_up(K, 128))
    Mp, Kp, Np = _round_up(M, tm), _round_up(K, tk), _round_up(N, tn)
    a_p = jnp.pad(a.astype(jnp.bfloat16), ((0, Mp - M), (0, Kp - K)))
    b_p = jnp.pad(b.astype(jnp.bfloat16), ((0, Kp - K), (0, Np - N)))
    out = pl.pallas_call(
        _matmul_kernel,
        out_shape=jax.ShapeDtypeStruct((Mp, Np), jnp.float32),
        grid=(Mp // tm, Np // tn, Kp // tk),
        in_specs=[pl.BlockSpec((tm, tk), lambda i, j, k: (i, k)),
                  pl.BlockSpec((tk, tn), lambda i, j, k: (k, j))],
        out_specs=pl.BlockSpec((tm, tn), lambda i, j, k: (i, j)),
        compiler_params=pltpu.CompilerParams(
            dimension_semantics=("parallel", "parallel", "arbitrary")),
    )(a_p, b_p)
    return out[:M, :N]


# ------------------- Pallas "lift" kernel: softmax(D) x feature(C) ---------
def _make_lift_kernel(D, C):
    def lift_kernel(x_ref, o_ref):
        x = x_ref[...]                               # (tp, D+C)
        logits = x[:, :D]
        m = jnp.max(logits, axis=1, keepdims=True)
        e = jnp.exp(logits - m)
        depth = e / jnp.sum(e, axis=1, keepdims=True)
        feat = x[:, D:]                              # (tp, C)
        # lane-dense (tp, D*C) output: column d*C + c = depth[:, d] * feat[:, c]
        parts = [depth[:, d:d + 1] * feat for d in range(D)]
        o_ref[...] = jnp.concatenate(parts, axis=1)
    return lift_kernel


def pallas_lift(rows, D, C):
    P, DC = rows.shape
    assert DC == D + C
    tp = min(256, _round_up(P, 8))
    Pp = _round_up(P, tp)
    rows_p = jnp.pad(rows, ((0, Pp - P), (0, 0)))
    out = pl.pallas_call(
        _make_lift_kernel(D, C),
        out_shape=jax.ShapeDtypeStruct((Pp, D * C), jnp.float32),
        grid=(Pp // tp,),
        in_specs=[pl.BlockSpec((tp, DC), lambda i: (i, 0))],
        out_specs=pl.BlockSpec((tp, D * C), lambda i: (i, 0)),
        compiler_params=pltpu.CompilerParams(
            dimension_semantics=("parallel",)),
    )(rows_p)
    return out[:P]                                   # (P, D*C)


# ------------------- Pallas "splat" kernel: voxel scatter-add --------------
def _scatter_kernel(idx_ref, feat_ref, o_ref):
    # one-hot bf16 MXU matmul scatter-add:  o[r, :] += sum_i [idx_i == r] * feat_i
    @pl.when(pl.program_id(1) == 0)
    def _():
        o_ref[...] = jnp.zeros_like(o_ref)

    tr = o_ref.shape[0]
    tp = idx_ref.shape[0]
    local = idx_ref[...] - pl.program_id(0) * tr              # (tp, 1)
    cols = lax.broadcasted_iota(jnp.int32, (tp, tr), 1)
    onehot = (cols == local).astype(jnp.bfloat16)             # (tp, tr)
    o_ref[...] += lax.dot_general(
        onehot, feat_ref[...],
        dimension_numbers=(((0,), (0,)), ((), ())),
        preferred_element_type=jnp.float32)                   # (tr, Cp)


def pallas_scatter_add(flat_idx, feats, n_rows):
    Npts, C = feats.shape
    Cp = _round_up(C, 128)
    tp = min(256, _round_up(Npts, 16))
    Pp = _round_up(Npts, tp)
    tr = min(512, _round_up(n_rows, 128))
    Rp = _round_up(n_rows, tr)
    feats_p = jnp.pad(feats.astype(jnp.bfloat16), ((0, Pp - Npts), (0, Cp - C)))
    idx_p = jnp.pad(flat_idx.astype(jnp.int32), (0, Pp - Npts),
                    constant_values=-1).reshape(Pp, 1)        # pad idx -1 -> no row hit
    out = pl.pallas_call(
        _scatter_kernel,
        out_shape=jax.ShapeDtypeStruct((Rp, Cp), jnp.float32),
        grid=(Rp // tr, Pp // tp),
        in_specs=[pl.BlockSpec((tp, 1), lambda j, i: (i, 0)),
                  pl.BlockSpec((tp, Cp), lambda j, i: (i, 0))],
        out_specs=pl.BlockSpec((tr, Cp), lambda j, i: (j, 0)),
        compiler_params=pltpu.CompilerParams(
            dimension_semantics=("parallel", "arbitrary")),
    )(idx_p, feats_p)
    return out[:n_rows, :C]


# ------------------- JAX glue: conv / bn / upsample / blocks (NHWC) --------
def im2col(x, kh, kw, stride, pad):
    """x NHWC -> (B, oh, ow, kh*kw*C) patches (layout (i*kw+j)*C + c)."""
    if pad:
        x = jnp.pad(x, ((0, 0), (pad, pad), (pad, pad), (0, 0)))
    B, Hp, Wp, C = x.shape
    oh = (Hp - kh) // stride + 1
    ow = (Wp - kw) // stride + 1
    cols = []
    for i in range(kh):
        for j in range(kw):
            cols.append(x[:, i:i + stride * oh:stride, j:j + stride * ow:stride, :])
    patches = jnp.concatenate(cols, axis=3)
    return patches, oh, ow


def conv2d(x, w, stride=1, pad=0, bias=None):
    """x: NHWC, w: (Cout, Cin, kh, kw) torch layout -> NHWC output."""
    cout, cin, kh, kw = w.shape
    patches, oh, ow = im2col(x, kh, kw, stride, pad)
    B = x.shape[0]
    A = patches.reshape(B * oh * ow, kh * kw * cin)
    Wm = w.transpose(2, 3, 1, 0).reshape(kh * kw * cin, cout)   # (i,j,cin) rows
    y = pallas_matmul(A, Wm).reshape(B, oh, ow, cout)
    if bias is not None:
        y = y + bias
    return y


def batchnorm(x, p, eps=1e-5):
    # eval-mode BN with init running stats (mean=0, var=1)
    scale = p['g'] / jnp.sqrt(1.0 + eps)
    return x * scale + p['b']


def relu(x):
    return jnp.maximum(x, 0.0)


def swish(x):
    return x * jax.nn.sigmoid(x)


def upsample_bilinear_ac(x, scale):
    """nn.Upsample(mode='bilinear', align_corners=True) on NHWC."""
    B, H, W, C = x.shape
    oh, ow = H * scale, W * scale

    def coords(n_in, n_out):
        if n_out == 1 or n_in == 1:
            return jnp.zeros((n_out,), jnp.float32)
        return jnp.arange(n_out, dtype=jnp.float32) * (n_in - 1) / (n_out - 1)

    ys, xs = coords(H, oh), coords(W, ow)
    y0 = jnp.floor(ys).astype(jnp.int32)
    x0 = jnp.floor(xs).astype(jnp.int32)
    y1 = jnp.minimum(y0 + 1, H - 1)
    x1 = jnp.minimum(x0 + 1, W - 1)
    wy = (ys - y0)[None, :, None, None]
    wx = (xs - x0)[None, None, :, None]
    g00 = x[:, y0][:, :, x0]
    g01 = x[:, y0][:, :, x1]
    g10 = x[:, y1][:, :, x0]
    g11 = x[:, y1][:, :, x1]
    top = g00 * (1 - wx) + g01 * wx
    bot = g10 * (1 - wx) + g11 * wx
    return top * (1 - wy) + bot * wy


def basic_block(x, p, stride):
    out = relu(batchnorm(conv2d(x, p['w1'], stride, 1), p['bn1']))
    out = batchnorm(conv2d(out, p['w2'], 1, 1), p['bn2'])
    idt = batchnorm(conv2d(x, p['wd'], stride, 0), p['bnd']) if 'wd' in p else x
    return relu(out + idt)


def up_block(x1, x2, p, scale):
    x1 = upsample_bilinear_ac(x1, scale)
    x = jnp.concatenate([x2, x1], axis=-1)
    x = relu(batchnorm(conv2d(x, p['w1'], 1, 1), p['bn1']))
    x = relu(batchnorm(conv2d(x, p['w2'], 1, 1), p['bn2']))
    return x


# ------------------- CamEncode / BevEncode ---------------------------------
def cam_encode(p, x_nchw, D, camC):
    # TODO(synk): EfficientNet-b0 pretrained trunk has no in-script equivalent;
    # replaced by a deterministic strided-conv stack producing the reduction_4
    # (112ch, /16) and reduction_5 (320ch, /32) endpoints used by Up(320+112,512).
    x = x_nchw.transpose(0, 2, 3, 1)                                 # -> NHWC
    h = swish(batchnorm(conv2d(x, p['t1'], 2, 1), p['bn_t1']))
    h = swish(batchnorm(conv2d(h, p['t2'], 2, 1), p['bn_t2']))
    h = swish(batchnorm(conv2d(h, p['t3'], 2, 1), p['bn_t3']))
    r4 = swish(batchnorm(conv2d(h, p['t4'], 2, 1), p['bn_t4']))
    r5 = swish(batchnorm(conv2d(r4, p['t5'], 2, 1), p['bn_t5']))
    feat = up_block(r5, r4, p['up1'], scale=2)                       # (BN, fH, fW, 512)
    xdn = conv2d(feat, p['depthnet_w'], 1, 0, bias=p['depthnet_b'])  # (BN, fH, fW, D+C)
    BN, fH, fW, DC = xdn.shape
    rows = xdn.reshape(BN * fH * fW, DC)
    lifted = pallas_lift(rows, D, camC)                              # (P, D*C)
    return lifted.reshape(BN, fH, fW, D, camC), fH, fW


def get_cam_feats(p, x, D, camC):
    B, N, Ci, imH, imW = x.shape
    lifted, fH, fW = cam_encode(p, x.reshape(B * N, Ci, imH, imW), D, camC)
    return lifted.reshape(B, N, fH, fW, D, camC).transpose(0, 1, 4, 2, 3, 5)  # (B,N,D,fH,fW,C)


def bev_encode(p, x):
    h = relu(batchnorm(conv2d(x, p['conv1'], 2, 3), p['bn1']))
    x1 = basic_block(basic_block(h, p['l1b1'], 1), p['l1b2'], 1)
    h = basic_block(basic_block(x1, p['l2b1'], 2), p['l2b2'], 1)
    h = basic_block(basic_block(h, p['l3b1'], 2), p['l3b2'], 1)
    h = up_block(h, x1, p['up1'], scale=4)
    h = upsample_bilinear_ac(h, 2)
    h = relu(batchnorm(conv2d(h, p['up2_w1'], 1, 1), p['up2_bn1']))
    h = conv2d(h, p['up2_w2'], 1, 0, bias=p['up2_b2'])
    return h.transpose(0, 3, 1, 2)                                   # back to NCHW


# ------------------- LiftSplatShoot geometry / pooling ---------------------
def gen_dx_bx(xbound, ybound, zbound):
    dx = jnp.array([r[2] for r in (xbound, ybound, zbound)], jnp.float32)
    bx = jnp.array([r[0] + r[2] / 2.0 for r in (xbound, ybound, zbound)], jnp.float32)
    nx = tuple(int((r[1] - r[0]) / r[2]) for r in (xbound, ybound, zbound))
    return dx, bx, nx


def create_frustum(grid_conf, final_dim, downsample):
    ogfH, ogfW = final_dim
    fH, fW = ogfH // downsample, ogfW // downsample
    d0, d1, dd = grid_conf['dbound']
    ds = jnp.arange(d0, d1, dd, dtype=jnp.float32)
    D = ds.shape[0]
    ds = jnp.broadcast_to(ds[:, None, None], (D, fH, fW))
    xs = jnp.broadcast_to(jnp.linspace(0.0, ogfW - 1, fW, dtype=jnp.float32)[None, None, :],
                          (D, fH, fW))
    ys = jnp.broadcast_to(jnp.linspace(0.0, ogfH - 1, fH, dtype=jnp.float32)[None, :, None],
                          (D, fH, fW))
    return jnp.stack([xs, ys, ds], axis=-1)          # (D, fH, fW, 3)


def get_geometry(frustum, rots, trans, intrins, post_rots, post_trans):
    points = frustum[None, None] - post_trans[:, :, None, None, None, :]
    points = jnp.einsum('bnij,bndhwj->bndhwi', jnp.linalg.inv(post_rots), points)
    points = jnp.concatenate([points[..., :2] * points[..., 2:3], points[..., 2:3]], axis=-1)
    combine = jnp.einsum('bnij,bnjk->bnik', rots, jnp.linalg.inv(intrins))
    points = jnp.einsum('bnij,bndhwj->bndhwi', combine, points) + trans[:, :, None, None, None, :]
    return points                                    # (B, N, D, fH, fW, 3)


def voxel_pooling(geom, x, dx, bx, nx):
    B, N, D, H, W, C = x.shape
    Nprime = B * N * D * H * W
    feats = x.reshape(Nprime, C)
    g = ((geom - (bx - dx / 2.0)) / dx).astype(jnp.int32)   # trunc-toward-zero == torch .long()
    g = g.reshape(Nprime, 3)
    batch_ix = jnp.repeat(jnp.arange(B, dtype=jnp.int32), Nprime // B)
    kept = ((g[:, 0] >= 0) & (g[:, 0] < nx[0]) &
            (g[:, 1] >= 0) & (g[:, 1] < nx[1]) &
            (g[:, 2] >= 0) & (g[:, 2] < nx[2]))
    nvox = B * nx[2] * nx[0] * nx[1]
    flat = (batch_ix * (nx[2] * nx[0] * nx[1]) + g[:, 2] * (nx[0] * nx[1])
            + g[:, 0] * nx[1] + g[:, 1])
    flat = jnp.where(kept, flat, nvox).astype(jnp.int32)    # dropped points -> trash row
    # QuickCumsum (sort + segment-sum + scatter) == per-voxel scatter-add of features
    pooled = pallas_scatter_add(flat, feats, nvox + 1)[:nvox]
    vox = pooled.reshape(B, nx[2], nx[0], nx[1], C)         # (B, Z, X, Y, C)
    # NHWC BEV slab with channel ordering z*C + c (== torch cat of unbind(dim=2))
    return vox.transpose(0, 2, 3, 1, 4).reshape(B, nx[0], nx[1], nx[2] * C)


# ------------------- deterministic parameter init --------------------------
def init_params(key, D, camC, outC):
    kit = iter(jax.random.split(key, 128))

    def cw(cout, cin, k):
        fan = cin * k * k
        return jax.random.normal(next(kit), (cout, cin, k, k), jnp.float32) / jnp.sqrt(float(fan))

    def bnp(c):
        return {'g': jnp.ones((c,), jnp.float32), 'b': jnp.zeros((c,), jnp.float32)}

    def block(cout, cin, stride):
        p = {'w1': cw(cout, cin, 3), 'bn1': bnp(cout),
             'w2': cw(cout, cout, 3), 'bn2': bnp(cout)}
        if stride != 1 or cin != cout:
            p['wd'] = cw(cout, cin, 1)
            p['bnd'] = bnp(cout)
        return p

    def up(cout, cin):
        return {'w1': cw(cout, cin, 3), 'bn1': bnp(cout),
                'w2': cw(cout, cout, 3), 'bn2': bnp(cout)}

    return {
        'cam': {
            't1': cw(32, 3, 3), 'bn_t1': bnp(32),
            't2': cw(24, 32, 3), 'bn_t2': bnp(24),
            't3': cw(40, 24, 3), 'bn_t3': bnp(40),
            't4': cw(112, 40, 3), 'bn_t4': bnp(112),
            't5': cw(320, 112, 3), 'bn_t5': bnp(320),
            'up1': up(512, 320 + 112),
            'depthnet_w': cw(D + camC, 512, 1),
            'depthnet_b': jnp.zeros((D + camC,), jnp.float32),
        },
        'bev': {
            'conv1': cw(64, camC, 7), 'bn1': bnp(64),
            'l1b1': block(64, 64, 1), 'l1b2': block(64, 64, 1),
            'l2b1': block(128, 64, 2), 'l2b2': block(128, 128, 1),
            'l3b1': block(256, 128, 2), 'l3b2': block(256, 256, 1),
            'up1': up(256, 64 + 256),
            'up2_w1': cw(128, 256, 3), 'up2_bn1': bnp(128),
            'up2_w2': cw(outC, 128, 1),
            'up2_b2': jnp.zeros((outC,), jnp.float32),
        },
    }


# ------------------- main ---------------------------------------------------
if __name__ == "__main__":
    key = jax.random.PRNGKey(0)
    B, N = 1, 2
    final_dim = (32, 64)          # (ogfH, ogfW), multiples of downsample=16
    downsample = 16
    camC = 64
    outC = 1
    grid_conf = dict(xbound=[-4.0, 4.0, 1.0], ybound=[-4.0, 4.0, 1.0],
                     zbound=[-10.0, 10.0, 20.0], dbound=[1.0, 5.0, 1.0])

    dx, bx, nx = gen_dx_bx(grid_conf['xbound'], grid_conf['ybound'], grid_conf['zbound'])
    frustum = create_frustum(grid_conf, final_dim, downsample)
    D = frustum.shape[0]

    kx, kp = jax.random.split(key)
    params = init_params(kp, D, camC, outC)

    imgs = 0.1 * jax.random.normal(kx, (B, N, 3, final_dim[0], final_dim[1]), jnp.float32)
    rots = jnp.broadcast_to(jnp.eye(3, dtype=jnp.float32), (B, N, 3, 3))
    trans = jnp.zeros((B, N, 3), jnp.float32)
    intrins = jnp.broadcast_to(
        jnp.array([[64.0, 0.0, 32.0], [0.0, 64.0, 16.0], [0.0, 0.0, 1.0]], jnp.float32),
        (B, N, 3, 3))
    post_rots = jnp.broadcast_to(jnp.eye(3, dtype=jnp.float32), (B, N, 3, 3))
    post_trans = jnp.zeros((B, N, 3), jnp.float32)

    @jax.jit
    def run(params, x, rots, trans, intrins, post_rots, post_trans):
        geom = get_geometry(frustum, rots, trans, intrins, post_rots, post_trans)
        camfeats = get_cam_feats(params['cam'], x, D, camC)
        bev = voxel_pooling(geom, camfeats, dx, bx, nx)
        return bev_encode(params['bev'], bev)

    out = run(params, imgs, rots, trans, intrins, post_rots, post_trans)
    out = jax.block_until_ready(out)
    assert out.shape == (B, outC, nx[0], nx[1]), out.shape
    assert bool(jnp.all(jnp.isfinite(out)))
    print("KERNEL_OK")
</pallas_src>

<mosaic_0001>
module attributes {stable_mosaic.version = 11 : i64} {
  func.func @_matmul_kernel(%arg0: i32, %arg1: i32, %arg2: i32, %arg3: memref<256x128xbf16, #tpu.memory_space<vmem>>, %arg4: memref<128x128xbf16, #tpu.memory_space<vmem>>, %arg5: memref<256x128xf32, #tpu.memory_space<vmem>>) attributes {dimension_semantics = [#tpu.dimension_semantics<parallel>, #tpu.dimension_semantics<parallel>, #tpu.dimension_semantics<arbitrary>], iteration_bounds = array<i64: 4, 1, 1>, scalar_prefetch = 0 : i64, scratch_operands = 0 : i64, tpu.core_type = #tpu.core_type<tc>, window_params = [{transform_indices = @transform_0, window_bounds = array<i64: 256, 128>}, {transform_indices = @transform_1, window_bounds = array<i64: 128, 128>}, {transform_indices = @transform_2, window_bounds = array<i64: 256, 128>}]} {
    %c0_i32 = arith.constant 0 : i32
    %0 = arith.cmpi eq, %arg2, %c0_i32 : i32
    %1 = arith.extui %0 : i1 to i32
    %c0_i32_0 = arith.constant 0 : i32
    %2 = arith.cmpi ne, %1, %c0_i32_0 : i32
    scf.if %2 {
      %cst_8 = arith.constant 0.000000e+00 : f32
      %9 = vector.broadcast %cst_8 : f32 to vector<256x128xf32>
      %c0_9 = arith.constant 0 : index
      %c0_10 = arith.constant 0 : index
      %10 = vector.load %arg5[%c0_9, %c0_10] : memref<256x128xf32, #tpu.memory_space<vmem>>, vector<256x128xf32>
      tpu.vector_store %arg5[%c0_9, %c0_10], %9 {strides = array<i32>} : memref<256x128xf32, #tpu.memory_space<vmem>>, vector<256x128xf32>,
    } else {
    }
    %c0 = arith.constant 0 : index
    %c0_1 = arith.constant 0 : index
    %3 = vector.load %arg5[%c0, %c0_1] : memref<256x128xf32, #tpu.memory_space<vmem>>, vector<256x128xf32>
    %c0_2 = arith.constant 0 : index
    %c0_3 = arith.constant 0 : index
    %4 = vector.load %arg3[%c0_2, %c0_3] : memref<256x128xbf16, #tpu.memory_space<vmem>>, vector<256x128xbf16>
    %c0_4 = arith.constant 0 : index
    %c0_5 = arith.constant 0 : index
    %5 = vector.load %arg4[%c0_4, %c0_5] : memref<128x128xbf16, #tpu.memory_space<vmem>>, vector<128x128xbf16>
    %cst = arith.constant dense<0.000000e+00> : vector<256x128xf32>
    %6 = tpu.matmul %4, %5, %cst {dimension_numbers = #tpu.dot_dimension_numbers<[1], [0], [0], [1], [0, 0, 1, 1], [], []>} : vector<256x128xbf16>, vector<128x128xbf16>, vector<256x128xf32> -> vector<256x128xf32>
    %7 = arith.addf %3, %6 : vector<256x128xf32>
    %c0_6 = arith.constant 0 : index
    %c0_7 = arith.constant 0 : index
    %8 = vector.load %arg5[%c0_6, %c0_7] : memref<256x128xf32, #tpu.memory_space<vmem>>, vector<256x128xf32>
    tpu.vector_store %arg5[%c0_6, %c0_7], %7 {strides = array<i32>} : memref<256x128xf32, #tpu.memory_space<vmem>>, vector<256x128xf32>,
    return
  }
  func.func @transform_0(%arg0: i32, %arg1: i32, %arg2: i32) -> (i32, i32) {
    %c0_i32 = arith.constant 0 : i32
    return %arg0, %arg2 : i32, i32
  }
  func.func @transform_1(%arg0: i32, %arg1: i32, %arg2: i32) -> (i32, i32) {
    %c0_i32 = arith.constant 0 : i32
    return %arg2, %arg1 : i32, i32
  }
  func.func @transform_2(%arg0: i32, %arg1: i32, %arg2: i32) -> (i32, i32) {
    %c0_i32 = arith.constant 0 : i32
    return %arg0, %arg1 : i32, i32
  }
}

module attributes {stable_mosaic.version = 11 : i64} {
  func.func @_matmul_kernel(%arg0: i32, %arg1: i32, %arg2: i32, %arg3: memref<256x256xbf16, #tpu.memory_space<vmem>>, %arg4: memref<256x128xbf16, #tpu.memory_space<vmem>>, %arg5: memref<256x128xf32, #tpu.memory_space<vmem>>) attributes {dimension_semantics = [#tpu.dimension_semantics<parallel>, #tpu.dimension_semantics<parallel>, #tpu.dimension_semantics<arbitrary>], iteration_bounds = array<i64: 1, 1, 2>, scalar_prefetch = 0 : i64, scratch_operands = 0 : i64, tpu.core_type = #tpu.core_type<tc>, window_params = [{transform_indices = @transform_0, window_bounds = array<i64: 256, 256>}, {transform_indices = @transform_1, window_bounds = array<i64: 256, 128>}, {transform_indices = @transform_2, window_bounds = array<i64: 256, 128>}]} {
    %c0_i32 = arith.constant 0 : i32
    %0 = arith.cmpi eq, %arg2, %c0_i32 : i32
    %1 = arith.extui %0 : i1 to i32
    %c0_i32_0 = arith.constant 0 : i32
    %2 = arith.cmpi ne, %1, %c0_i32_0 : i32
    scf.if %2 {
      %cst_8 = arith.constant 0.000000e+00 : f32
      %9 = vector.broadcast %cst_8 : f32 to vector<256x128xf32>
      %c0_9 = arith.constant 0 : index
      %c0_10 = arith.constant 0 : index
      %10 = vector.load %arg5[%c0_9, %c0_10] : memref<256x128xf32, #tpu.memory_space<vmem>>, vector<256x128xf32>
      tpu.vector_store %arg5[%c0_9, %c0_10], %9 {strides = array<i32>} : memref<256x128xf32, #tpu.memory_space<vmem>>, vector<256x128xf32>,
    } else {
    }
    %c0 = arith.constant 0 : index
    %c0_1 = arith.constant 0 : index
    %3 = vector.load %arg5[%c0, %c0_1] : memref<256x128xf32, #tpu.memory_space<vmem>>, vector<256x128xf32>
    %c0_2 = arith.constant 0 : index
    %c0_3 = arith.constant 0 : index
    %4 = vector.load %arg3[%c0_2, %c0_3] : memref<256x256xbf16, #tpu.memory_space<vmem>>, vector<256x256xbf16>
    %c0_4 = arith.constant 0 : index
    %c0_5 = arith.constant 0 : index
    %5 = vector.load %arg4[%c0_4, %c0_5] : memref<256x128xbf16, #tpu.memory_space<vmem>>, vector<256x128xbf16>
    %cst = arith.constant dense<0.000000e+00> : vector<256x128xf32>
    %6 = tpu.matmul %4, %5, %cst {dimension_numbers = #tpu.dot_dimension_numbers<[1], [0], [0], [1], [0, 0, 1, 1], [], []>} : vector<256x256xbf16>, vector<256x128xbf16>, vector<256x128xf32> -> vector<256x128xf32>
    %7 = arith.addf %3, %6 : vector<256x128xf32>
    %c0_6 = arith.constant 0 : index
    %c0_7 = arith.constant 0 : index
    %8 = vector.load %arg5[%c0_6, %c0_7] : memref<256x128xf32, #tpu.memory_space<vmem>>, vector<256x128xf32>
    tpu.vector_store %arg5[%c0_6, %c0_7], %7 {strides = array<i32>} : memref<256x128xf32, #tpu.memory_space<vmem>>, vector<256x128xf32>,
    return
  }
  func.func @transform_0(%arg0: i32, %arg1: i32, %arg2: i32) -> (i32, i32) {
    %c0_i32 = arith.constant 0 : i32
    return %arg0, %arg2 : i32, i32
  }
  func.func @transform_1(%arg0: i32, %arg1: i32, %arg2: i32) -> (i32, i32) {
    %c0_i32 = arith.constant 0 : i32
    return %arg2, %arg1 : i32, i32
  }
  func.func @transform_2(%arg0: i32, %arg1: i32, %arg2: i32) -> (i32, i32) {
    %c0_i32 = arith.constant 0 : i32
    return %arg0, %arg1 : i32, i32
  }
}

module attributes {stable_mosaic.version = 11 : i64} {
  func.func @_matmul_kernel(%arg0: i32, %arg1: i32, %arg2: i32, %arg3: memref<64x256xbf16, #tpu.memory_space<vmem>>, %arg4: memref<256x128xbf16, #tpu.memory_space<vmem>>, %arg5: memref<64x128xf32, #tpu.memory_space<vmem>>) attributes {dimension_semantics = [#tpu.dimension_semantics<parallel>, #tpu.dimension_semantics<parallel>, #tpu.dimension_semantics<arbitrary>], iteration_bounds = array<i64: 1, 1, 1>, scalar_prefetch = 0 : i64, scratch_operands = 0 : i64, tpu.core_type = #tpu.core_type<tc>, window_params = [{transform_indices = @transform_0, window_bounds = array<i64: 64, 256>}, {transform_indices = @transform_1, window_bounds = array<i64: 256, 128>}, {transform_indices = @transform_2, window_bounds = array<i64: 64, 128>}]} {
    %c0_i32 = arith.constant 0 : i32
    %0 = arith.cmpi eq, %arg2, %c0_i32 : i32
    %1 = arith.extui %0 : i1 to i32
    %c0_i32_0 = arith.constant 0 : i32
    %2 = arith.cmpi ne, %1, %c0_i32_0 : i32
    scf.if %2 {
      %cst_8 = arith.constant 0.000000e+00 : f32
      %9 = vector.broadcast %cst_8 : f32 to vector<64x128xf32>
      %c0_9 = arith.constant 0 : index
      %c0_10 = arith.constant 0 : index
      %10 = vector.load %arg5[%c0_9, %c0_10] : memref<64x128xf32, #tpu.memory_space<vmem>>, vector<64x128xf32>
      tpu.vector_store %arg5[%c0_9, %c0_10], %9 {strides = array<i32>} : memref<64x128xf32, #tpu.memory_space<vmem>>, vector<64x128xf32>,
    } else {
    }
    %c0 = arith.constant 0 : index
    %c0_1 = arith.constant 0 : index
    %3 = vector.load %arg5[%c0, %c0_1] : memref<64x128xf32, #tpu.memory_space<vmem>>, vector<64x128xf32>
    %c0_2 = arith.constant 0 : index
    %c0_3 = arith.constant 0 : index
    %4 = vector.load %arg3[%c0_2, %c0_3] : memref<64x256xbf16, #tpu.memory_space<vmem>>, vector<64x256xbf16>
    %c0_4 = arith.constant 0 : index
    %c0_5 = arith.constant 0 : index
    %5 = vector.load %arg4[%c0_4, %c0_5] : memref<256x128xbf16, #tpu.memory_space<vmem>>, vector<256x128xbf16>
    %cst = arith.constant dense<0.000000e+00> : vector<64x128xf32>
    %6 = tpu.matmul %4, %5, %cst {dimension_numbers = #tpu.dot_dimension_numbers<[1], [0], [0], [1], [0, 0, 1, 1], [], []>} : vector<64x256xbf16>, vector<256x128xbf16>, vector<64x128xf32> -> vector<64x128xf32>
    %7 = arith.addf %3, %6 : vector<64x128xf32>
    %c0_6 = arith.constant 0 : index
    %c0_7 = arith.constant 0 : index
    %8 = vector.load %arg5[%c0_6, %c0_7] : memref<64x128xf32, #tpu.memory_space<vmem>>, vector<64x128xf32>
    tpu.vector_store %arg5[%c0_6, %c0_7], %7 {strides = array<i32>} : memref<64x128xf32, #tpu.memory_space<vmem>>, vector<64x128xf32>,
    return
  }
  func.func @transform_0(%arg0: i32, %arg1: i32, %arg2: i32) -> (i32, i32) {
    %c0_i32 = arith.constant 0 : i32
    return %arg0, %arg2 : i32, i32
  }
  func.func @transform_1(%arg0: i32, %arg1: i32, %arg2: i32) -> (i32, i32) {
    %c0_i32 = arith.constant 0 : i32
    return %arg2, %arg1 : i32, i32
  }
  func.func @transform_2(%arg0: i32, %arg1: i32, %arg2: i32) -> (i32, i32) {
    %c0_i32 = arith.constant 0 : i32
    return %arg0, %arg1 : i32, i32
  }
}

module attributes {stable_mosaic.version = 11 : i64} {
  func.func @_matmul_kernel(%arg0: i32, %arg1: i32, %arg2: i32, %arg3: memref<16x256xbf16, #tpu.memory_space<vmem>>, %arg4: memref<256x128xbf16, #tpu.memory_space<vmem>>, %arg5: memref<16x128xf32, #tpu.memory_space<vmem>>) attributes {dimension_semantics = [#tpu.dimension_semantics<parallel>, #tpu.dimension_semantics<parallel>, #tpu.dimension_semantics<arbitrary>], iteration_bounds = array<i64: 1, 1, 2>, scalar_prefetch = 0 : i64, scratch_operands = 0 : i64, tpu.core_type = #tpu.core_type<tc>, window_params = [{transform_indices = @transform_0, window_bounds = array<i64: 16, 256>}, {transform_indices = @transform_1, window_bounds = array<i64: 256, 128>}, {transform_indices = @transform_2, window_bounds = array<i64: 16, 128>}]} {
    %c0_i32 = arith.constant 0 : i32
    %0 = arith.cmpi eq, %arg2, %c0_i32 : i32
    %1 = arith.extui %0 : i1 to i32
    %c0_i32_0 = arith.constant 0 : i32
    %2 = arith.cmpi ne, %1, %c0_i32_0 : i32
    scf.if %2 {
      %cst_8 = arith.constant 0.000000e+00 : f32
      %9 = vector.broadcast %cst_8 : f32 to vector<16x128xf32>
      %c0_9 = arith.constant 0 : index
      %c0_10 = arith.constant 0 : index
      %10 = vector.load %arg5[%c0_9, %c0_10] : memref<16x128xf32, #tpu.memory_space<vmem>>, vector<16x128xf32>
      tpu.vector_store %arg5[%c0_9, %c0_10], %9 {strides = array<i32>} : memref<16x128xf32, #tpu.memory_space<vmem>>, vector<16x128xf32>,
    } else {
    }
    %c0 = arith.constant 0 : index
    %c0_1 = arith.constant 0 : index
    %3 = vector.load %arg5[%c0, %c0_1] : memref<16x128xf32, #tpu.memory_space<vmem>>, vector<16x128xf32>
    %c0_2 = arith.constant 0 : index
    %c0_3 = arith.constant 0 : index
    %4 = vector.load %arg3[%c0_2, %c0_3] : memref<16x256xbf16, #tpu.memory_space<vmem>>, vector<16x256xbf16>
    %c0_4 = arith.constant 0 : index
    %c0_5 = arith.constant 0 : index
    %5 = vector.load %arg4[%c0_4, %c0_5] : memref<256x128xbf16, #tpu.memory_space<vmem>>, vector<256x128xbf16>
    %cst = arith.constant dense<0.000000e+00> : vector<16x128xf32>
    %6 = tpu.matmul %4, %5, %cst {dimension_numbers = #tpu.dot_dimension_numbers<[1], [0], [0], [1], [0, 0, 1, 1], [], []>} : vector<16x256xbf16>, vector<256x128xbf16>, vector<16x128xf32> -> vector<16x128xf32>
    %7 = arith.addf %3, %6 : vector<16x128xf32>
    %c0_6 = arith.constant 0 : index
    %c0_7 = arith.constant 0 : index
    %8 = vector.load %arg5[%c0_6, %c0_7] : memref<16x128xf32, #tpu.memory_space<vmem>>, vector<16x128xf32>
    tpu.vector_store %arg5[%c0_6, %c0_7], %7 {strides = array<i32>} : memref<16x128xf32, #tpu.memory_space<vmem>>, vector<16x128xf32>,
    return
  }
  func.func @transform_0(%arg0: i32, %arg1: i32, %arg2: i32) -> (i32, i32) {
    %c0_i32 = arith.constant 0 : i32
    return %arg0, %arg2 : i32, i32
  }
  func.func @transform_1(%arg0: i32, %arg1: i32, %arg2: i32) -> (i32, i32) {
    %c0_i32 = arith.constant 0 : i32
    return %arg2, %arg1 : i32, i32
  }
  func.func @transform_2(%arg0: i32, %arg1: i32, %arg2: i32) -> (i32, i32) {
    %c0_i32 = arith.constant 0 : i32
    return %arg0, %arg1 : i32, i32
  }
}

module attributes {stable_mosaic.version = 11 : i64} {
  func.func @_matmul_kernel(%arg0: i32, %arg1: i32, %arg2: i32, %arg3: memref<16x256xbf16, #tpu.memory_space<vmem>>, %arg4: memref<256x256xbf16, #tpu.memory_space<vmem>>, %arg5: memref<16x256xf32, #tpu.memory_space<vmem>>) attributes {dimension_semantics = [#tpu.dimension_semantics<parallel>, #tpu.dimension_semantics<parallel>, #tpu.dimension_semantics<arbitrary>], iteration_bounds = array<i64: 1, 2, 4>, scalar_prefetch = 0 : i64, scratch_operands = 0 : i64, tpu.core_type = #tpu.core_type<tc>, window_params = [{transform_indices = @transform_0, window_bounds = array<i64: 16, 256>}, {transform_indices = @transform_1, window_bounds = array<i64: 256, 256>}, {transform_indices = @transform_2, window_bounds = array<i64: 16, 256>}]} {
    %c0_i32 = arith.constant 0 : i32
    %0 = arith.cmpi eq, %arg2, %c0_i32 : i32
    %1 = arith.extui %0 : i1 to i32
    %c0_i32_0 = arith.constant 0 : i32
    %2 = arith.cmpi ne, %1, %c0_i32_0 : i32
    scf.if %2 {
      %cst_8 = arith.constant 0.000000e+00 : f32
      %9 = vector.broadcast %cst_8 : f32 to vector<16x256xf32>
      %c0_9 = arith.constant 0 : index
      %c0_10 = arith.constant 0 : index
      %10 = vector.load %arg5[%c0_9, %c0_10] : memref<16x256xf32, #tpu.memory_space<vmem>>, vector<16x256xf32>
      tpu.vector_store %arg5[%c0_9, %c0_10], %9 {strides = array<i32>} : memref<16x256xf32, #tpu.memory_space<vmem>>, vector<16x256xf32>,
    } else {
    }
    %c0 = arith.constant 0 : index
    %c0_1 = arith.constant 0 : index
    %3 = vector.load %arg5[%c0, %c0_1] : memref<16x256xf32, #tpu.memory_space<vmem>>, vector<16x256xf32>
    %c0_2 = arith.constant 0 : index
    %c0_3 = arith.constant 0 : index
    %4 = vector.load %arg3[%c0_2, %c0_3] : memref<16x256xbf16, #tpu.memory_space<vmem>>, vector<16x256xbf16>
    %c0_4 = arith.constant 0 : index
    %c0_5 = arith.constant 0 : index
    %5 = vector.load %arg4[%c0_4, %c0_5] : memref<256x256xbf16, #tpu.memory_space<vmem>>, vector<256x256xbf16>
    %cst = arith.constant dense<0.000000e+00> : vector<16x256xf32>
    %6 = tpu.matmul %4, %5, %cst {dimension_numbers = #tpu.dot_dimension_numbers<[1], [0], [0], [1], [0, 0, 1, 1], [], []>} : vector<16x256xbf16>, vector<256x256xbf16>, vector<16x256xf32> -> vector<16x256xf32>
    %7 = arith.addf %3, %6 : vector<16x256xf32>
    %c0_6 = arith.constant 0 : index
    %c0_7 = arith.constant 0 : index
    %8 = vector.load %arg5[%c0_6, %c0_7] : memref<16x256xf32, #tpu.memory_space<vmem>>, vector<16x256xf32>
    tpu.vector_store %arg5[%c0_6, %c0_7], %7 {strides = array<i32>} : memref<16x256xf32, #tpu.memory_space<vmem>>, vector<16x256xf32>,
    return
  }
  func.func @transform_0(%arg0: i32, %arg1: i32, %arg2: i32) -> (i32, i32) {
    %c0_i32 = arith.constant 0 : i32
    return %arg0, %arg2 : i32, i32
  }
  func.func @transform_1(%arg0: i32, %arg1: i32, %arg2: i32) -> (i32, i32) {
    %c0_i32 = arith.constant 0 : i32
    return %arg2, %arg1 : i32, i32
  }
  func.func @transform_2(%arg0: i32, %arg1: i32, %arg2: i32) -> (i32, i32) {
    %c0_i32 = arith.constant 0 : i32
    return %arg0, %arg1 : i32, i32
  }
}

module attributes {stable_mosaic.version = 11 : i64} {
  func.func @_matmul_kernel(%arg0: i32, %arg1: i32, %arg2: i32, %arg3: memref<16x256xbf16, #tpu.memory_space<vmem>>, %arg4: memref<256x256xbf16, #tpu.memory_space<vmem>>, %arg5: memref<16x256xf32, #tpu.memory_space<vmem>>) attributes {dimension_semantics = [#tpu.dimension_semantics<parallel>, #tpu.dimension_semantics<parallel>, #tpu.dimension_semantics<arbitrary>], iteration_bounds = array<i64: 1, 2, 16>, scalar_prefetch = 0 : i64, scratch_operands = 0 : i64, tpu.core_type = #tpu.core_type<tc>, window_params = [{transform_indices = @transform_0, window_bounds = array<i64: 16, 256>}, {transform_indices = @transform_1, window_bounds = array<i64: 256, 256>}, {transform_indices = @transform_2, window_bounds = array<i64: 16, 256>}]} {
    %c0_i32 = arith.constant 0 : i32
    %0 = arith.cmpi eq, %arg2, %c0_i32 : i32
    %1 = arith.extui %0 : i1 to i32
    %c0_i32_0 = arith.constant 0 : i32
    %2 = arith.cmpi ne, %1, %c0_i32_0 : i32
    scf.if %2 {
      %cst_8 = arith.constant 0.000000e+00 : f32
      %9 = vector.broadcast %cst_8 : f32 to vector<16x256xf32>
      %c0_9 = arith.constant 0 : index
      %c0_10 = arith.constant 0 : index
      %10 = vector.load %arg5[%c0_9, %c0_10] : memref<16x256xf32, #tpu.memory_space<vmem>>, vector<16x256xf32>
      tpu.vector_store %arg5[%c0_9, %c0_10], %9 {strides = array<i32>} : memref<16x256xf32, #tpu.memory_space<vmem>>, vector<16x256xf32>,
    } else {
    }
    %c0 = arith.constant 0 : index
    %c0_1 = arith.constant 0 : index
    %3 = vector.load %arg5[%c0, %c0_1] : memref<16x256xf32, #tpu.memory_space<vmem>>, vector<16x256xf32>
    %c0_2 = arith.constant 0 : index
    %c0_3 = arith.constant 0 : index
    %4 = vector.load %arg3[%c0_2, %c0_3] : memref<16x256xbf16, #tpu.memory_space<vmem>>, vector<16x256xbf16>
    %c0_4 = arith.constant 0 : index
    %c0_5 = arith.constant 0 : index
    %5 = vector.load %arg4[%c0_4, %c0_5] : memref<256x256xbf16, #tpu.memory_space<vmem>>, vector<256x256xbf16>
    %cst = arith.constant dense<0.000000e+00> : vector<16x256xf32>
    %6 = tpu.matmul %4, %5, %cst {dimension_numbers = #tpu.dot_dimension_numbers<[1], [0], [0], [1], [0, 0, 1, 1], [], []>} : vector<16x256xbf16>, vector<256x256xbf16>, vector<16x256xf32> -> vector<16x256xf32>
    %7 = arith.addf %3, %6 : vector<16x256xf32>
    %c0_6 = arith.constant 0 : index
    %c0_7 = arith.constant 0 : index
    %8 = vector.load %arg5[%c0_6, %c0_7] : memref<16x256xf32, #tpu.memory_space<vmem>>, vector<16x256xf32>
    tpu.vector_store %arg5[%c0_6, %c0_7], %7 {strides = array<i32>} : memref<16x256xf32, #tpu.memory_space<vmem>>, vector<16x256xf32>,
    return
  }
  func.func @transform_0(%arg0: i32, %arg1: i32, %arg2: i32) -> (i32, i32) {
    %c0_i32 = arith.constant 0 : i32
    return %arg0, %arg2 : i32, i32
  }
  func.func @transform_1(%arg0: i32, %arg1: i32, %arg2: i32) -> (i32, i32) {
    %c0_i32 = arith.constant 0 : i32
    return %arg2, %arg1 : i32, i32
  }
  func.func @transform_2(%arg0: i32, %arg1: i32, %arg2: i32) -> (i32, i32) {
    %c0_i32 = arith.constant 0 : i32
    return %arg0, %arg1 : i32, i32
  }
}

module attributes {stable_mosaic.version = 11 : i64} {
  func.func @_matmul_kernel(%arg0: i32, %arg1: i32, %arg2: i32, %arg3: memref<16x256xbf16, #tpu.memory_space<vmem>>, %arg4: memref<256x256xbf16, #tpu.memory_space<vmem>>, %arg5: memref<16x256xf32, #tpu.memory_space<vmem>>) attributes {dimension_semantics = [#tpu.dimension_semantics<parallel>, #tpu.dimension_semantics<parallel>, #tpu.dimension_semantics<arbitrary>], iteration_bounds = array<i64: 1, 2, 18>, scalar_prefetch = 0 : i64, scratch_operands = 0 : i64, tpu.core_type = #tpu.core_type<tc>, window_params = [{transform_indices = @transform_0, window_bounds = array<i64: 16, 256>}, {transform_indices = @transform_1, window_bounds = array<i64: 256, 256>}, {transform_indices = @transform_2, window_bounds = array<i64: 16, 256>}]} {
    %c0_i32 = arith.constant 0 : i32
    %0 = arith.cmpi eq, %arg2, %c0_i32 : i32
    %1 = arith.extui %0 : i1 to i32
    %c0_i32_0 = arith.constant 0 : i32
    %2 = arith.cmpi ne, %1, %c0_i32_0 : i32
    scf.if %2 {
      %cst_8 = arith.constant 0.000000e+00 : f32
      %9 = vector.broadcast %cst_8 : f32 to vector<16x256xf32>
      %c0_9 = arith.constant 0 : index
      %c0_10 = arith.constant 0 : index
      %10 = vector.load %arg5[%c0_9, %c0_10] : memref<16x256xf32, #tpu.memory_space<vmem>>, vector<16x256xf32>
      tpu.vector_store %arg5[%c0_9, %c0_10], %9 {strides = array<i32>} : memref<16x256xf32, #tpu.memory_space<vmem>>, vector<16x256xf32>,
    } else {
    }
    %c0 = arith.constant 0 : index
    %c0_1 = arith.constant 0 : index
    %3 = vector.load %arg5[%c0, %c0_1] : memref<16x256xf32, #tpu.memory_space<vmem>>, vector<16x256xf32>
    %c0_2 = arith.constant 0 : index
    %c0_3 = arith.constant 0 : index
    %4 = vector.load %arg3[%c0_2, %c0_3] : memref<16x256xbf16, #tpu.memory_space<vmem>>, vector<16x256xbf16>
    %c0_4 = arith.constant 0 : index
    %c0_5 = arith.constant 0 : index
    %5 = vector.load %arg4[%c0_4, %c0_5] : memref<256x256xbf16, #tpu.memory_space<vmem>>, vector<256x256xbf16>
    %cst = arith.constant dense<0.000000e+00> : vector<16x256xf32>
    %6 = tpu.matmul %4, %5, %cst {dimension_numbers = #tpu.dot_dimension_numbers<[1], [0], [0], [1], [0, 0, 1, 1], [], []>} : vector<16x256xbf16>, vector<256x256xbf16>, vector<16x256xf32> -> vector<16x256xf32>
    %7 = arith.addf %3, %6 : vector<16x256xf32>
    %c0_6 = arith.constant 0 : index
    %c0_7 = arith.constant 0 : index
    %8 = vector.load %arg5[%c0_6, %c0_7] : memref<16x256xf32, #tpu.memory_space<vmem>>, vector<16x256xf32>
    tpu.vector_store %arg5[%c0_6, %c0_7], %7 {strides = array<i32>} : memref<16x256xf32, #tpu.memory_space<vmem>>, vector<16x256xf32>,
    return
  }
  func.func @transform_0(%arg0: i32, %arg1: i32, %arg2: i32) -> (i32, i32) {
    %c0_i32 = arith.constant 0 : i32
    return %arg0, %arg2 : i32, i32
  }
  func.func @transform_1(%arg0: i32, %arg1: i32, %arg2: i32) -> (i32, i32) {
    %c0_i32 = arith.constant 0 : i32
    return %arg2, %arg1 : i32, i32
  }
  func.func @transform_2(%arg0: i32, %arg1: i32, %arg2: i32) -> (i32, i32) {
    %c0_i32 = arith.constant 0 : i32
    return %arg0, %arg1 : i32, i32
  }
}

module attributes {stable_mosaic.version = 11 : i64} {
  func.func @lift_kernel(%arg0: i32, %arg1: memref<16x68xf32, #tpu.memory_space<vmem>>, %arg2: memref<16x256xf32, #tpu.memory_space<vmem>>) attributes {dimension_semantics = [#tpu.dimension_semantics<parallel>], iteration_bounds = array<i64: 1>, scalar_prefetch = 0 : i64, scratch_operands = 0 : i64, tpu.core_type = #tpu.core_type<tc>, window_params = [{transform_indices = @transform_0, window_bounds = array<i64: 16, 68>}, {transform_indices = @transform_1, window_bounds = array<i64: 16, 256>}]} {
    %c0 = arith.constant 0 : index
    %c0_0 = arith.constant 0 : index
    %0 = vector.load %arg1[%c0, %c0_0] : memref<16x68xf32, #tpu.memory_space<vmem>>, vector<16x68xf32>
    %1 = vector.extract_strided_slice %0 {offsets = [0, 0], sizes = [16, 4], strides = [1, 1]} : vector<16x68xf32> to vector<16x4xf32>
    %cst = arith.constant dense<0xFF800000> : vector<16xf32>
    %2 = vector.multi_reduction <maximumf>, %1, %cst [1] : vector<16x4xf32> to vector<16xf32>
    %3 = vector.shape_cast %2 : vector<16xf32> to vector<16x1xf32>
    %4 = vector.broadcast %3 : vector<16x1xf32> to vector<16x4xf32>
    %5 = arith.subf %1, %4 : vector<16x4xf32>
    %6 = math.exp %5 : vector<16x4xf32>
    %cst_1 = arith.constant dense<0.000000e+00> : vector<16xf32>
    %7 = vector.multi_reduction <add>, %6, %cst_1 [1] : vector<16x4xf32> to vector<16xf32>
    %8 = vector.shape_cast %7 : vector<16xf32> to vector<16x1xf32>
    %9 = vector.broadcast %8 : vector<16x1xf32> to vector<16x4xf32>
    %10 = arith.divf %6, %9 : vector<16x4xf32>
    %11 = vector.extract_strided_slice %0 {offsets = [0, 4], sizes = [16, 64], strides = [1, 1]} : vector<16x68xf32> to vector<16x64xf32>
    %12 = vector.extract_strided_slice %10 {offsets = [0, 0], sizes = [16, 1], strides = [1, 1]} : vector<16x4xf32> to vector<16x1xf32>
    %13 = vector.broadcast %12 : vector<16x1xf32> to vector<16x64xf32>
    %14 = arith.mulf %13, %11 : vector<16x64xf32>
    %15 = vector.extract_strided_slice %10 {offsets = [0, 1], sizes = [16, 1], strides = [1, 1]} : vector<16x4xf32> to vector<16x1xf32>
    %16 = vector.broadcast %15 : vector<16x1xf32> to vector<16x64xf32>
    %17 = arith.mulf %16, %11 : vector<16x64xf32>
    %18 = vector.extract_strided_slice %10 {offsets = [0, 2], sizes = [16, 1], strides = [1, 1]} : vector<16x4xf32> to vector<16x1xf32>
    %19 = vector.broadcast %18 : vector<16x1xf32> to vector<16x64xf32>
    %20 = arith.mulf %19, %11 : vector<16x64xf32>
    %21 = vector.extract_strided_slice %10 {offsets = [0, 3], sizes = [16, 1], strides = [1, 1]} : vector<16x4xf32> to vector<16x1xf32>
    %22 = vector.broadcast %21 : vector<16x1xf32> to vector<16x64xf32>
    %23 = arith.mulf %22, %11 : vector<16x64xf32>
    %24 = tpu.concatenate %14, %17, %20, %23 in 1 : vector<16x64xf32>, vector<16x64xf32>, vector<16x64xf32>, vector<16x64xf32> -> vector<16x256xf32>
    %c0_2 = arith.constant 0 : index
    %c0_3 = arith.constant 0 : index
    %25 = vector.load %arg2[%c0_2, %c0_3] : memref<16x256xf32, #tpu.memory_space<vmem>>, vector<16x256xf32>
    tpu.vector_store %arg2[%c0_2, %c0_3], %24 {strides = array<i32>} : memref<16x256xf32, #tpu.memory_space<vmem>>, vector<16x256xf32>,
    return
  }
  func.func @transform_0(%arg0: i32) -> (i32, i32) {
    %c0_i32 = arith.constant 0 : i32
    %c0_i32_0 = arith.constant 0 : i32
    return %arg0, %c0_i32 : i32, i32
  }
  func.func @transform_1(%arg0: i32) -> (i32, i32) {
    %c0_i32 = arith.constant 0 : i32
    %c0_i32_0 = arith.constant 0 : i32
    return %arg0, %c0_i32 : i32, i32
  }
}

module attributes {stable_mosaic.version = 11 : i64} {
  func.func @_scatter_kernel(%arg0: i32, %arg1: i32, %arg2: memref<64x1xi32, #tpu.memory_space<vmem>>, %arg3: memref<64x128xbf16, #tpu.memory_space<vmem>>, %arg4: memref<128x128xf32, #tpu.memory_space<vmem>>) attributes {dimension_semantics = [#tpu.dimension_semantics<parallel>, #tpu.dimension_semantics<arbitrary>], iteration_bounds = array<i64: 1, 1>, scalar_prefetch = 0 : i64, scratch_operands = 0 : i64, tpu.core_type = #tpu.core_type<tc>, window_params = [{transform_indices = @transform_0, window_bounds = array<i64: 64, 1>}, {transform_indices = @transform_1, window_bounds = array<i64: 64, 128>}, {transform_indices = @transform_2, window_bounds = array<i64: 128, 128>}]} {
    %c0_i32 = arith.constant 0 : i32
    %0 = arith.cmpi eq, %arg1, %c0_i32 : i32
    %1 = arith.extui %0 : i1 to i32
    %c0_i32_0 = arith.constant 0 : i32
    %2 = arith.cmpi ne, %1, %c0_i32_0 : i32
    scf.if %2 {
      %cst_8 = arith.constant 0.000000e+00 : f32
      %18 = vector.broadcast %cst_8 : f32 to vector<128x128xf32>
      %c0_9 = arith.constant 0 : index
      %c0_10 = arith.constant 0 : index
      %19 = vector.load %arg4[%c0_9, %c0_10] : memref<128x128xf32, #tpu.memory_space<vmem>>, vector<128x128xf32>
      tpu.vector_store %arg4[%c0_9, %c0_10], %18 {strides = array<i32>} : memref<128x128xf32, #tpu.memory_space<vmem>>, vector<128x128xf32>,
    } else {
    }
    %c0 = arith.constant 0 : index
    %c0_1 = arith.constant 0 : index
    %3 = vector.load %arg2[%c0, %c0_1] : memref<64x1xi32, #tpu.memory_space<vmem>>, vector<64x1xi32>
    %c128_i32 = arith.constant 128 : i32
    %4 = arith.muli %arg0, %c128_i32 : i32
    %5 = vector.broadcast %4 : i32 to vector<64x1xi32>
    %6 = arith.subi %3, %5 : vector<64x1xi32>
    %7 = tpu.iota {dimensions = array<i32: 1>} : vector<64x128xi32>
    %8 = vector.broadcast %6 : vector<64x1xi32> to vector<64x128xi32>
    %9 = arith.cmpi eq, %7, %8 : vector<64x128xi32>
    %10 = arith.extui %9 : vector<64x128xi1> to vector<64x128xi32>
    %11 = arith.sitofp %10 : vector<64x128xi32> to vector<64x128xf32>
    %12 = arith.truncf %11 : vector<64x128xf32> to vector<64x128xbf16>
    %c0_2 = arith.constant 0 : index
    %c0_3 = arith.constant 0 : index
    %13 = vector.load %arg4[%c0_2, %c0_3] : memref<128x128xf32, #tpu.memory_space<vmem>>, vector<128x128xf32>
    %c0_4 = arith.constant 0 : index
    %c0_5 = arith.constant 0 : index
    %14 = vector.load %arg3[%c0_4, %c0_5] : memref<64x128xbf16, #tpu.memory_space<vmem>>, vector<64x128xbf16>
    %cst = arith.constant dense<0.000000e+00> : vector<128x128xf32>
    %15 = tpu.matmul %12, %14, %cst {dimension_numbers = #tpu.dot_dimension_numbers<[0], [0], [1], [1], [0, 1, 1, 1], [], []>} : vector<64x128xbf16>, vector<64x128xbf16>, vector<128x128xf32> -> vector<128x128xf32>
    %16 = arith.addf %13, %15 : vector<128x128xf32>
    %c0_6 = arith.constant 0 : index
    %c0_7 = arith.constant 0 : index
    %17 = vector.load %arg4[%c0_6, %c0_7] : memref<128x128xf32, #tpu.memory_space<vmem>>, vector<128x128xf32>
    tpu.vector_store %arg4[%c0_6, %c0_7], %16 {strides = array<i32>} : memref<128x128xf32, #tpu.memory_space<vmem>>, vector<128x128xf32>,
    return
  }
  func.func @transform_0(%arg0: i32, %arg1: i32) -> (i32, i32) {
    %c0_i32 = arith.constant 0 : i32
    %c0_i32_0 = arith.constant 0 : i32
    return %arg1, %c0_i32 : i32, i32
  }
  func.func @transform_1(%arg0: i32, %arg1: i32) -> (i32, i32) {
    %c0_i32 = arith.constant 0 : i32
    %c0_i32_0 = arith.constant 0 : i32
    return %arg1, %c0_i32 : i32, i32
  }
  func.func @transform_2(%arg0: i32, %arg1: i32) -> (i32, i32) {
    %c0_i32 = arith.constant 0 : i32
    %c0_i32_0 = arith.constant 0 : i32
    return %arg0, %c0_i32 : i32, i32
  }
}

module attributes {stable_mosaic.version = 11 : i64} {
  func.func @_matmul_kernel(%arg0: i32, %arg1: i32, %arg2: i32, %arg3: memref<16x256xbf16, #tpu.memory_space<vmem>>, %arg4: memref<256x128xbf16, #tpu.memory_space<vmem>>, %arg5: memref<16x128xf32, #tpu.memory_space<vmem>>) attributes {dimension_semantics = [#tpu.dimension_semantics<parallel>, #tpu.dimension_semantics<parallel>, #tpu.dimension_semantics<arbitrary>], iteration_bounds = array<i64: 1, 1, 13>, scalar_prefetch = 0 : i64, scratch_operands = 0 : i64, tpu.core_type = #tpu.core_type<tc>, window_params = [{transform_indices = @transform_0, window_bounds = array<i64: 16, 256>}, {transform_indices = @transform_1, window_bounds = array<i64: 256, 128>}, {transform_indices = @transform_2, window_bounds = array<i64: 16, 128>}]} {
    %c0_i32 = arith.constant 0 : i32
    %0 = arith.cmpi eq, %arg2, %c0_i32 : i32
    %1 = arith.extui %0 : i1 to i32
    %c0_i32_0 = arith.constant 0 : i32
    %2 = arith.cmpi ne, %1, %c0_i32_0 : i32
    scf.if %2 {
      %cst_8 = arith.constant 0.000000e+00 : f32
      %9 = vector.broadcast %cst_8 : f32 to vector<16x128xf32>
      %c0_9 = arith.constant 0 : index
      %c0_10 = arith.constant 0 : index
      %10 = vector.load %arg5[%c0_9, %c0_10] : memref<16x128xf32, #tpu.memory_space<vmem>>, vector<16x128xf32>
      tpu.vector_store %arg5[%c0_9, %c0_10], %9 {strides = array<i32>} : memref<16x128xf32, #tpu.memory_space<vmem>>, vector<16x128xf32>,
    } else {
    }
    %c0 = arith.constant 0 : index
    %c0_1 = arith.constant 0 : index
    %3 = vector.load %arg5[%c0, %c0_1] : memref<16x128xf32, #tpu.memory_space<vmem>>, vector<16x128xf32>
    %c0_2 = arith.constant 0 : index
    %c0_3 = arith.constant 0 : index
    %4 = vector.load %arg3[%c0_2, %c0_3] : memref<16x256xbf16, #tpu.memory_space<vmem>>, vector<16x256xbf16>
    %c0_4 = arith.constant 0 : index
    %c0_5 = arith.constant 0 : index
    %5 = vector.load %arg4[%c0_4, %c0_5] : memref<256x128xbf16, #tpu.memory_space<vmem>>, vector<256x128xbf16>
    %cst = arith.constant dense<0.000000e+00> : vector<16x128xf32>
    %6 = tpu.matmul %4, %5, %cst {dimension_numbers = #tpu.dot_dimension_numbers<[1], [0], [0], [1], [0, 0, 1, 1], [], []>} : vector<16x256xbf16>, vector<256x128xbf16>, vector<16x128xf32> -> vector<16x128xf32>
    %7 = arith.addf %3, %6 : vector<16x128xf32>
    %c0_6 = arith.constant 0 : index
    %c0_7 = arith.constant 0 : index
    %8 = vector.load %arg5[%c0_6, %c0_7] : memref<16x128xf32, #tpu.memory_space<vmem>>, vector<16x128xf32>
    tpu.vector_store %arg5[%c0_6, %c0_7], %7 {strides = array<i32>} : memref<16x128xf32, #tpu.memory_space<vmem>>, vector<16x128xf32>,
    return
  }
  func.func @transform_0(%arg0: i32, %arg1: i32, %arg2: i32) -> (i32, i32) {
    %c0_i32 = arith.constant 0 : i32
    return %arg0, %arg2 : i32, i32
  }
  func.func @transform_1(%arg0: i32, %arg1: i32, %arg2: i32) -> (i32, i32) {
    %c0_i32 = arith.constant 0 : i32
    return %arg2, %arg1 : i32, i32
  }
  func.func @transform_2(%arg0: i32, %arg1: i32, %arg2: i32) -> (i32, i32) {
    %c0_i32 = arith.constant 0 : i32
    return %arg0, %arg1 : i32, i32
  }
}

module attributes {stable_mosaic.version = 11 : i64} {
  func.func @_matmul_kernel(%arg0: i32, %arg1: i32, %arg2: i32, %arg3: memref<16x256xbf16, #tpu.memory_space<vmem>>, %arg4: memref<256x128xbf16, #tpu.memory_space<vmem>>, %arg5: memref<16x128xf32, #tpu.memory_space<vmem>>) attributes {dimension_semantics = [#tpu.dimension_semantics<parallel>, #tpu.dimension_semantics<parallel>, #tpu.dimension_semantics<arbitrary>], iteration_bounds = array<i64: 1, 1, 3>, scalar_prefetch = 0 : i64, scratch_operands = 0 : i64, tpu.core_type = #tpu.core_type<tc>, window_params = [{transform_indices = @transform_0, window_bounds = array<i64: 16, 256>}, {transform_indices = @transform_1, window_bounds = array<i64: 256, 128>}, {transform_indices = @transform_2, window_bounds = array<i64: 16, 128>}]} {
    %c0_i32 = arith.constant 0 : i32
    %0 = arith.cmpi eq, %arg2, %c0_i32 : i32
    %1 = arith.extui %0 : i1 to i32
    %c0_i32_0 = arith.constant 0 : i32
    %2 = arith.cmpi ne, %1, %c0_i32_0 : i32
    scf.if %2 {
      %cst_8 = arith.constant 0.000000e+00 : f32
      %9 = vector.broadcast %cst_8 : f32 to vector<16x128xf32>
      %c0_9 = arith.constant 0 : index
      %c0_10 = arith.constant 0 : index
      %10 = vector.load %arg5[%c0_9, %c0_10] : memref<16x128xf32, #tpu.memory_space<vmem>>, vector<16x128xf32>
      tpu.vector_store %arg5[%c0_9, %c0_10], %9 {strides = array<i32>} : memref<16x128xf32, #tpu.memory_space<vmem>>, vector<16x128xf32>,
    } else {
    }
    %c0 = arith.constant 0 : index
    %c0_1 = arith.constant 0 : index
    %3 = vector.load %arg5[%c0, %c0_1] : memref<16x128xf32, #tpu.memory_space<vmem>>, vector<16x128xf32>
    %c0_2 = arith.constant 0 : index
    %c0_3 = arith.constant 0 : index
    %4 = vector.load %arg3[%c0_2, %c0_3] : memref<16x256xbf16, #tpu.memory_space<vmem>>, vector<16x256xbf16>
    %c0_4 = arith.constant 0 : index
    %c0_5 = arith.constant 0 : index
    %5 = vector.load %arg4[%c0_4, %c0_5] : memref<256x128xbf16, #tpu.memory_space<vmem>>, vector<256x128xbf16>
    %cst = arith.constant dense<0.000000e+00> : vector<16x128xf32>
    %6 = tpu.matmul %4, %5, %cst {dimension_numbers = #tpu.dot_dimension_numbers<[1], [0], [0], [1], [0, 0, 1, 1], [], []>} : vector<16x256xbf16>, vector<256x128xbf16>, vector<16x128xf32> -> vector<16x128xf32>
    %7 = arith.addf %3, %6 : vector<16x128xf32>
    %c0_6 = arith.constant 0 : index
    %c0_7 = arith.constant 0 : index
    %8 = vector.load %arg5[%c0_6, %c0_7] : memref<16x128xf32, #tpu.memory_space<vmem>>, vector<16x128xf32>
    tpu.vector_store %arg5[%c0_6, %c0_7], %7 {strides = array<i32>} : memref<16x128xf32, #tpu.memory_space<vmem>>, vector<16x128xf32>,
    return
  }
  func.func @transform_0(%arg0: i32, %arg1: i32, %arg2: i32) -> (i32, i32) {
    %c0_i32 = arith.constant 0 : i32
    return %arg0, %arg2 : i32, i32
  }
  func.func @transform_1(%arg0: i32, %arg1: i32, %arg2: i32) -> (i32, i32) {
    %c0_i32 = arith.constant 0 : i32
    return %arg2, %arg1 : i32, i32
  }
  func.func @transform_2(%arg0: i32, %arg1: i32, %arg2: i32) -> (i32, i32) {
    %c0_i32 = arith.constant 0 : i32
    return %arg0, %arg1 : i32, i32
  }
}

module attributes {stable_mosaic.version = 11 : i64} {
  func.func @_matmul_kernel(%arg0: i32, %arg1: i32, %arg2: i32, %arg3: memref<16x256xbf16, #tpu.memory_space<vmem>>, %arg4: memref<256x128xbf16, #tpu.memory_space<vmem>>, %arg5: memref<16x128xf32, #tpu.memory_space<vmem>>) attributes {dimension_semantics = [#tpu.dimension_semantics<parallel>, #tpu.dimension_semantics<parallel>, #tpu.dimension_semantics<arbitrary>], iteration_bounds = array<i64: 1, 1, 5>, scalar_prefetch = 0 : i64, scratch_operands = 0 : i64, tpu.core_type = #tpu.core_type<tc>, window_params = [{transform_indices = @transform_0, window_bounds = array<i64: 16, 256>}, {transform_indices = @transform_1, window_bounds = array<i64: 256, 128>}, {transform_indices = @transform_2, window_bounds = array<i64: 16, 128>}]} {
    %c0_i32 = arith.constant 0 : i32
    %0 = arith.cmpi eq, %arg2, %c0_i32 : i32
    %1 = arith.extui %0 : i1 to i32
    %c0_i32_0 = arith.constant 0 : i32
    %2 = arith.cmpi ne, %1, %c0_i32_0 : i32
    scf.if %2 {
      %cst_8 = arith.constant 0.000000e+00 : f32
      %9 = vector.broadcast %cst_8 : f32 to vector<16x128xf32>
      %c0_9 = arith.constant 0 : index
      %c0_10 = arith.constant 0 : index
      %10 = vector.load %arg5[%c0_9, %c0_10] : memref<16x128xf32, #tpu.memory_space<vmem>>, vector<16x128xf32>
      tpu.vector_store %arg5[%c0_9, %c0_10], %9 {strides = array<i32>} : memref<16x128xf32, #tpu.memory_space<vmem>>, vector<16x128xf32>,
    } else {
    }
    %c0 = arith.constant 0 : index
    %c0_1 = arith.constant 0 : index
    %3 = vector.load %arg5[%c0, %c0_1] : memref<16x128xf32, #tpu.memory_space<vmem>>, vector<16x128xf32>
    %c0_2 = arith.constant 0 : index
    %c0_3 = arith.constant 0 : index
    %4 = vector.load %arg3[%c0_2, %c0_3] : memref<16x256xbf16, #tpu.memory_space<vmem>>, vector<16x256xbf16>
    %c0_4 = arith.constant 0 : index
    %c0_5 = arith.constant 0 : index
    %5 = vector.load %arg4[%c0_4, %c0_5] : memref<256x128xbf16, #tpu.memory_space<vmem>>, vector<256x128xbf16>
    %cst = arith.constant dense<0.000000e+00> : vector<16x128xf32>
    %6 = tpu.matmul %4, %5, %cst {dimension_numbers = #tpu.dot_dimension_numbers<[1], [0], [0], [1], [0, 0, 1, 1], [], []>} : vector<16x256xbf16>, vector<256x128xbf16>, vector<16x128xf32> -> vector<16x128xf32>
    %7 = arith.addf %3, %6 : vector<16x128xf32>
    %c0_6 = arith.constant 0 : index
    %c0_7 = arith.constant 0 : index
    %8 = vector.load %arg5[%c0_6, %c0_7] : memref<16x128xf32, #tpu.memory_space<vmem>>, vector<16x128xf32>
    tpu.vector_store %arg5[%c0_6, %c0_7], %7 {strides = array<i32>} : memref<16x128xf32, #tpu.memory_space<vmem>>, vector<16x128xf32>,
    return
  }
  func.func @transform_0(%arg0: i32, %arg1: i32, %arg2: i32) -> (i32, i32) {
    %c0_i32 = arith.constant 0 : i32
    return %arg0, %arg2 : i32, i32
  }
  func.func @transform_1(%arg0: i32, %arg1: i32, %arg2: i32) -> (i32, i32) {
    %c0_i32 = arith.constant 0 : i32
    return %arg2, %arg1 : i32, i32
  }
  func.func @transform_2(%arg0: i32, %arg1: i32, %arg2: i32) -> (i32, i32) {
    %c0_i32 = arith.constant 0 : i32
    return %arg0, %arg1 : i32, i32
  }
}

module attributes {stable_mosaic.version = 11 : i64} {
  func.func @_matmul_kernel(%arg0: i32, %arg1: i32, %arg2: i32, %arg3: memref<16x128xbf16, #tpu.memory_space<vmem>>, %arg4: memref<128x128xbf16, #tpu.memory_space<vmem>>, %arg5: memref<16x128xf32, #tpu.memory_space<vmem>>) attributes {dimension_semantics = [#tpu.dimension_semantics<parallel>, #tpu.dimension_semantics<parallel>, #tpu.dimension_semantics<arbitrary>], iteration_bounds = array<i64: 1, 1, 1>, scalar_prefetch = 0 : i64, scratch_operands = 0 : i64, tpu.core_type = #tpu.core_type<tc>, window_params = [{transform_indices = @transform_0, window_bounds = array<i64: 16, 128>}, {transform_indices = @transform_1, window_bounds = array<i64: 128, 128>}, {transform_indices = @transform_2, window_bounds = array<i64: 16, 128>}]} {
    %c0_i32 = arith.constant 0 : i32
    %0 = arith.cmpi eq, %arg2, %c0_i32 : i32
    %1 = arith.extui %0 : i1 to i32
    %c0_i32_0 = arith.constant 0 : i32
    %2 = arith.cmpi ne, %1, %c0_i32_0 : i32
    scf.if %2 {
      %cst_8 = arith.constant 0.000000e+00 : f32
      %9 = vector.broadcast %cst_8 : f32 to vector<16x128xf32>
      %c0_9 = arith.constant 0 : index
      %c0_10 = arith.constant 0 : index
      %10 = vector.load %arg5[%c0_9, %c0_10] : memref<16x128xf32, #tpu.memory_space<vmem>>, vector<16x128xf32>
      tpu.vector_store %arg5[%c0_9, %c0_10], %9 {strides = array<i32>} : memref<16x128xf32, #tpu.memory_space<vmem>>, vector<16x128xf32>,
    } else {
    }
    %c0 = arith.constant 0 : index
    %c0_1 = arith.constant 0 : index
    %3 = vector.load %arg5[%c0, %c0_1] : memref<16x128xf32, #tpu.memory_space<vmem>>, vector<16x128xf32>
    %c0_2 = arith.constant 0 : index
    %c0_3 = arith.constant 0 : index
    %4 = vector.load %arg3[%c0_2, %c0_3] : memref<16x128xbf16, #tpu.memory_space<vmem>>, vector<16x128xbf16>
    %c0_4 = arith.constant 0 : index
    %c0_5 = arith.constant 0 : index
    %5 = vector.load %arg4[%c0_4, %c0_5] : memref<128x128xbf16, #tpu.memory_space<vmem>>, vector<128x128xbf16>
    %cst = arith.constant dense<0.000000e+00> : vector<16x128xf32>
    %6 = tpu.matmul %4, %5, %cst {dimension_numbers = #tpu.dot_dimension_numbers<[1], [0], [0], [1], [0, 0, 1, 1], [], []>} : vector<16x128xbf16>, vector<128x128xbf16>, vector<16x128xf32> -> vector<16x128xf32>
    %7 = arith.addf %3, %6 : vector<16x128xf32>
    %c0_6 = arith.constant 0 : index
    %c0_7 = arith.constant 0 : index
    %8 = vector.load %arg5[%c0_6, %c0_7] : memref<16x128xf32, #tpu.memory_space<vmem>>, vector<16x128xf32>
    tpu.vector_store %arg5[%c0_6, %c0_7], %7 {strides = array<i32>} : memref<16x128xf32, #tpu.memory_space<vmem>>, vector<16x128xf32>,
    return
  }
  func.func @transform_0(%arg0: i32, %arg1: i32, %arg2: i32) -> (i32, i32) {
    %c0_i32 = arith.constant 0 : i32
    return %arg0, %arg2 : i32, i32
  }
  func.func @transform_1(%arg0: i32, %arg1: i32, %arg2: i32) -> (i32, i32) {
    %c0_i32 = arith.constant 0 : i32
    return %arg2, %arg1 : i32, i32
  }
  func.func @transform_2(%arg0: i32, %arg1: i32, %arg2: i32) -> (i32, i32) {
    %c0_i32 = arith.constant 0 : i32
    return %arg0, %arg1 : i32, i32
  }
}

module attributes {stable_mosaic.version = 11 : i64} {
  func.func @_matmul_kernel(%arg0: i32, %arg1: i32, %arg2: i32, %arg3: memref<16x256xbf16, #tpu.memory_space<vmem>>, %arg4: memref<256x256xbf16, #tpu.memory_space<vmem>>, %arg5: memref<16x256xf32, #tpu.memory_space<vmem>>) attributes {dimension_semantics = [#tpu.dimension_semantics<parallel>, #tpu.dimension_semantics<parallel>, #tpu.dimension_semantics<arbitrary>], iteration_bounds = array<i64: 1, 1, 5>, scalar_prefetch = 0 : i64, scratch_operands = 0 : i64, tpu.core_type = #tpu.core_type<tc>, window_params = [{transform_indices = @transform_0, window_bounds = array<i64: 16, 256>}, {transform_indices = @transform_1, window_bounds = array<i64: 256, 256>}, {transform_indices = @transform_2, window_bounds = array<i64: 16, 256>}]} {
    %c0_i32 = arith.constant 0 : i32
    %0 = arith.cmpi eq, %arg2, %c0_i32 : i32
    %1 = arith.extui %0 : i1 to i32
    %c0_i32_0 = arith.constant 0 : i32
    %2 = arith.cmpi ne, %1, %c0_i32_0 : i32
    scf.if %2 {
      %cst_8 = arith.constant 0.000000e+00 : f32
      %9 = vector.broadcast %cst_8 : f32 to vector<16x256xf32>
      %c0_9 = arith.constant 0 : index
      %c0_10 = arith.constant 0 : index
      %10 = vector.load %arg5[%c0_9, %c0_10] : memref<16x256xf32, #tpu.memory_space<vmem>>, vector<16x256xf32>
      tpu.vector_store %arg5[%c0_9, %c0_10], %9 {strides = array<i32>} : memref<16x256xf32, #tpu.memory_space<vmem>>, vector<16x256xf32>,
    } else {
    }
    %c0 = arith.constant 0 : index
    %c0_1 = arith.constant 0 : index
    %3 = vector.load %arg5[%c0, %c0_1] : memref<16x256xf32, #tpu.memory_space<vmem>>, vector<16x256xf32>
    %c0_2 = arith.constant 0 : index
    %c0_3 = arith.constant 0 : index
    %4 = vector.load %arg3[%c0_2, %c0_3] : memref<16x256xbf16, #tpu.memory_space<vmem>>, vector<16x256xbf16>
    %c0_4 = arith.constant 0 : index
    %c0_5 = arith.constant 0 : index
    %5 = vector.load %arg4[%c0_4, %c0_5] : memref<256x256xbf16, #tpu.memory_space<vmem>>, vector<256x256xbf16>
    %cst = arith.constant dense<0.000000e+00> : vector<16x256xf32>
    %6 = tpu.matmul %4, %5, %cst {dimension_numbers = #tpu.dot_dimension_numbers<[1], [0], [0], [1], [0, 0, 1, 1], [], []>} : vector<16x256xbf16>, vector<256x256xbf16>, vector<16x256xf32> -> vector<16x256xf32>
    %7 = arith.addf %3, %6 : vector<16x256xf32>
    %c0_6 = arith.constant 0 : index
    %c0_7 = arith.constant 0 : index
    %8 = vector.load %arg5[%c0_6, %c0_7] : memref<16x256xf32, #tpu.memory_space<vmem>>, vector<16x256xf32>
    tpu.vector_store %arg5[%c0_6, %c0_7], %7 {strides = array<i32>} : memref<16x256xf32, #tpu.memory_space<vmem>>, vector<16x256xf32>,
    return
  }
  func.func @transform_0(%arg0: i32, %arg1: i32, %arg2: i32) -> (i32, i32) {
    %c0_i32 = arith.constant 0 : i32
    return %arg0, %arg2 : i32, i32
  }
  func.func @transform_1(%arg0: i32, %arg1: i32, %arg2: i32) -> (i32, i32) {
    %c0_i32 = arith.constant 0 : i32
    return %arg2, %arg1 : i32, i32
  }
  func.func @transform_2(%arg0: i32, %arg1: i32, %arg2: i32) -> (i32, i32) {
    %c0_i32 = arith.constant 0 : i32
    return %arg0, %arg1 : i32, i32
  }
}

module attributes {stable_mosaic.version = 11 : i64} {
  func.func @_matmul_kernel(%arg0: i32, %arg1: i32, %arg2: i32, %arg3: memref<16x256xbf16, #tpu.memory_space<vmem>>, %arg4: memref<256x256xbf16, #tpu.memory_space<vmem>>, %arg5: memref<16x256xf32, #tpu.memory_space<vmem>>) attributes {dimension_semantics = [#tpu.dimension_semantics<parallel>, #tpu.dimension_semantics<parallel>, #tpu.dimension_semantics<arbitrary>], iteration_bounds = array<i64: 1, 1, 9>, scalar_prefetch = 0 : i64, scratch_operands = 0 : i64, tpu.core_type = #tpu.core_type<tc>, window_params = [{transform_indices = @transform_0, window_bounds = array<i64: 16, 256>}, {transform_indices = @transform_1, window_bounds = array<i64: 256, 256>}, {transform_indices = @transform_2, window_bounds = array<i64: 16, 256>}]} {
    %c0_i32 = arith.constant 0 : i32
    %0 = arith.cmpi eq, %arg2, %c0_i32 : i32
    %1 = arith.extui %0 : i1 to i32
    %c0_i32_0 = arith.constant 0 : i32
    %2 = arith.cmpi ne, %1, %c0_i32_0 : i32
    scf.if %2 {
      %cst_8 = arith.constant 0.000000e+00 : f32
      %9 = vector.broadcast %cst_8 : f32 to vector<16x256xf32>
      %c0_9 = arith.constant 0 : index
      %c0_10 = arith.constant 0 : index
      %10 = vector.load %arg5[%c0_9, %c0_10] : memref<16x256xf32, #tpu.memory_space<vmem>>, vector<16x256xf32>
      tpu.vector_store %arg5[%c0_9, %c0_10], %9 {strides = array<i32>} : memref<16x256xf32, #tpu.memory_space<vmem>>, vector<16x256xf32>,
    } else {
    }
    %c0 = arith.constant 0 : index
    %c0_1 = arith.constant 0 : index
    %3 = vector.load %arg5[%c0, %c0_1] : memref<16x256xf32, #tpu.memory_space<vmem>>, vector<16x256xf32>
    %c0_2 = arith.constant 0 : index
    %c0_3 = arith.constant 0 : index
    %4 = vector.load %arg3[%c0_2, %c0_3] : memref<16x256xbf16, #tpu.memory_space<vmem>>, vector<16x256xbf16>
    %c0_4 = arith.constant 0 : index
    %c0_5 = arith.constant 0 : index
    %5 = vector.load %arg4[%c0_4, %c0_5] : memref<256x256xbf16, #tpu.memory_space<vmem>>, vector<256x256xbf16>
    %cst = arith.constant dense<0.000000e+00> : vector<16x256xf32>
    %6 = tpu.matmul %4, %5, %cst {dimension_numbers = #tpu.dot_dimension_numbers<[1], [0], [0], [1], [0, 0, 1, 1], [], []>} : vector<16x256xbf16>, vector<256x256xbf16>, vector<16x256xf32> -> vector<16x256xf32>
    %7 = arith.addf %3, %6 : vector<16x256xf32>
    %c0_6 = arith.constant 0 : index
    %c0_7 = arith.constant 0 : index
    %8 = vector.load %arg5[%c0_6, %c0_7] : memref<16x256xf32, #tpu.memory_space<vmem>>, vector<16x256xf32>
    tpu.vector_store %arg5[%c0_6, %c0_7], %7 {strides = array<i32>} : memref<16x256xf32, #tpu.memory_space<vmem>>, vector<16x256xf32>,
    return
  }
  func.func @transform_0(%arg0: i32, %arg1: i32, %arg2: i32) -> (i32, i32) {
    %c0_i32 = arith.constant 0 : i32
    return %arg0, %arg2 : i32, i32
  }
  func.func @transform_1(%arg0: i32, %arg1: i32, %arg2: i32) -> (i32, i32) {
    %c0_i32 = arith.constant 0 : i32
    return %arg2, %arg1 : i32, i32
  }
  func.func @transform_2(%arg0: i32, %arg1: i32, %arg2: i32) -> (i32, i32) {
    %c0_i32 = arith.constant 0 : i32
    return %arg0, %arg1 : i32, i32
  }
}

module attributes {stable_mosaic.version = 11 : i64} {
  func.func @_matmul_kernel(%arg0: i32, %arg1: i32, %arg2: i32, %arg3: memref<16x128xbf16, #tpu.memory_space<vmem>>, %arg4: memref<128x256xbf16, #tpu.memory_space<vmem>>, %arg5: memref<16x256xf32, #tpu.memory_space<vmem>>) attributes {dimension_semantics = [#tpu.dimension_semantics<parallel>, #tpu.dimension_semantics<parallel>, #tpu.dimension_semantics<arbitrary>], iteration_bounds = array<i64: 1, 1, 1>, scalar_prefetch = 0 : i64, scratch_operands = 0 : i64, tpu.core_type = #tpu.core_type<tc>, window_params = [{transform_indices = @transform_0, window_bounds = array<i64: 16, 128>}, {transform_indices = @transform_1, window_bounds = array<i64: 128, 256>}, {transform_indices = @transform_2, window_bounds = array<i64: 16, 256>}]} {
    %c0_i32 = arith.constant 0 : i32
    %0 = arith.cmpi eq, %arg2, %c0_i32 : i32
    %1 = arith.extui %0 : i1 to i32
    %c0_i32_0 = arith.constant 0 : i32
    %2 = arith.cmpi ne, %1, %c0_i32_0 : i32
    scf.if %2 {
      %cst_8 = arith.constant 0.000000e+00 : f32
      %9 = vector.broadcast %cst_8 : f32 to vector<16x256xf32>
      %c0_9 = arith.constant 0 : index
      %c0_10 = arith.constant 0 : index
      %10 = vector.load %arg5[%c0_9, %c0_10] : memref<16x256xf32, #tpu.memory_space<vmem>>, vector<16x256xf32>
      tpu.vector_store %arg5[%c0_9, %c0_10], %9 {strides = array<i32>} : memref<16x256xf32, #tpu.memory_space<vmem>>, vector<16x256xf32>,
    } else {
    }
    %c0 = arith.constant 0 : index
    %c0_1 = arith.constant 0 : index
    %3 = vector.load %arg5[%c0, %c0_1] : memref<16x256xf32, #tpu.memory_space<vmem>>, vector<16x256xf32>
    %c0_2 = arith.constant 0 : index
    %c0_3 = arith.constant 0 : index
    %4 = vector.load %arg3[%c0_2, %c0_3] : memref<16x128xbf16, #tpu.memory_space<vmem>>, vector<16x128xbf16>
    %c0_4 = arith.constant 0 : index
    %c0_5 = arith.constant 0 : index
    %5 = vector.load %arg4[%c0_4, %c0_5] : memref<128x256xbf16, #tpu.memory_space<vmem>>, vector<128x256xbf16>
    %cst = arith.constant dense<0.000000e+00> : vector<16x256xf32>
    %6 = tpu.matmul %4, %5, %cst {dimension_numbers = #tpu.dot_dimension_numbers<[1], [0], [0], [1], [0, 0, 1, 1], [], []>} : vector<16x128xbf16>, vector<128x256xbf16>, vector<16x256xf32> -> vector<16x256xf32>
    %7 = arith.addf %3, %6 : vector<16x256xf32>
    %c0_6 = arith.constant 0 : index
    %c0_7 = arith.constant 0 : index
    %8 = vector.load %arg5[%c0_6, %c0_7] : memref<16x256xf32, #tpu.memory_space<vmem>>, vector<16x256xf32>
    tpu.vector_store %arg5[%c0_6, %c0_7], %7 {strides = array<i32>} : memref<16x256xf32, #tpu.memory_space<vmem>>, vector<16x256xf32>,
    return
  }
  func.func @transform_0(%arg0: i32, %arg1: i32, %arg2: i32) -> (i32, i32) {
    %c0_i32 = arith.constant 0 : i32
    return %arg0, %arg2 : i32, i32
  }
  func.func @transform_1(%arg0: i32, %arg1: i32, %arg2: i32) -> (i32, i32) {
    %c0_i32 = arith.constant 0 : i32
    return %arg2, %arg1 : i32, i32
  }
  func.func @transform_2(%arg0: i32, %arg1: i32, %arg2: i32) -> (i32, i32) {
    %c0_i32 = arith.constant 0 : i32
    return %arg0, %arg1 : i32, i32
  }
}

module attributes {stable_mosaic.version = 11 : i64} {
  func.func @_matmul_kernel(%arg0: i32, %arg1: i32, %arg2: i32, %arg3: memref<16x256xbf16, #tpu.memory_space<vmem>>, %arg4: memref<256x256xbf16, #tpu.memory_space<vmem>>, %arg5: memref<16x256xf32, #tpu.memory_space<vmem>>) attributes {dimension_semantics = [#tpu.dimension_semantics<parallel>, #tpu.dimension_semantics<parallel>, #tpu.dimension_semantics<arbitrary>], iteration_bounds = array<i64: 1, 1, 12>, scalar_prefetch = 0 : i64, scratch_operands = 0 : i64, tpu.core_type = #tpu.core_type<tc>, window_params = [{transform_indices = @transform_0, window_bounds = array<i64: 16, 256>}, {transform_indices = @transform_1, window_bounds = array<i64: 256, 256>}, {transform_indices = @transform_2, window_bounds = array<i64: 16, 256>}]} {
    %c0_i32 = arith.constant 0 : i32
    %0 = arith.cmpi eq, %arg2, %c0_i32 : i32
    %1 = arith.extui %0 : i1 to i32
    %c0_i32_0 = arith.constant 0 : i32
    %2 = arith.cmpi ne, %1, %c0_i32_0 : i32
    scf.if %2 {
      %cst_8 = arith.constant 0.000000e+00 : f32
      %9 = vector.broadcast %cst_8 : f32 to vector<16x256xf32>
      %c0_9 = arith.constant 0 : index
      %c0_10 = arith.constant 0 : index
      %10 = vector.load %arg5[%c0_9, %c0_10] : memref<16x256xf32, #tpu.memory_space<vmem>>, vector<16x256xf32>
      tpu.vector_store %arg5[%c0_9, %c0_10], %9 {strides = array<i32>} : memref<16x256xf32, #tpu.memory_space<vmem>>, vector<16x256xf32>,
    } else {
    }
    %c0 = arith.constant 0 : index
    %c0_1 = arith.constant 0 : index
    %3 = vector.load %arg5[%c0, %c0_1] : memref<16x256xf32, #tpu.memory_space<vmem>>, vector<16x256xf32>
    %c0_2 = arith.constant 0 : index
    %c0_3 = arith.constant 0 : index
    %4 = vector.load %arg3[%c0_2, %c0_3] : memref<16x256xbf16, #tpu.memory_space<vmem>>, vector<16x256xbf16>
    %c0_4 = arith.constant 0 : index
    %c0_5 = arith.constant 0 : index
    %5 = vector.load %arg4[%c0_4, %c0_5] : memref<256x256xbf16, #tpu.memory_space<vmem>>, vector<256x256xbf16>
    %cst = arith.constant dense<0.000000e+00> : vector<16x256xf32>
    %6 = tpu.matmul %4, %5, %cst {dimension_numbers = #tpu.dot_dimension_numbers<[1], [0], [0], [1], [0, 0, 1, 1], [], []>} : vector<16x256xbf16>, vector<256x256xbf16>, vector<16x256xf32> -> vector<16x256xf32>
    %7 = arith.addf %3, %6 : vector<16x256xf32>
    %c0_6 = arith.constant 0 : index
    %c0_7 = arith.constant 0 : index
    %8 = vector.load %arg5[%c0_6, %c0_7] : memref<16x256xf32, #tpu.memory_space<vmem>>, vector<16x256xf32>
    tpu.vector_store %arg5[%c0_6, %c0_7], %7 {strides = array<i32>} : memref<16x256xf32, #tpu.memory_space<vmem>>, vector<16x256xf32>,
    return
  }
  func.func @transform_0(%arg0: i32, %arg1: i32, %arg2: i32) -> (i32, i32) {
    %c0_i32 = arith.constant 0 : i32
    return %arg0, %arg2 : i32, i32
  }
  func.func @transform_1(%arg0: i32, %arg1: i32, %arg2: i32) -> (i32, i32) {
    %c0_i32 = arith.constant 0 : i32
    return %arg2, %arg1 : i32, i32
  }
  func.func @transform_2(%arg0: i32, %arg1: i32, %arg2: i32) -> (i32, i32) {
    %c0_i32 = arith.constant 0 : i32
    return %arg0, %arg1 : i32, i32
  }
}

module attributes {stable_mosaic.version = 11 : i64} {
  func.func @_matmul_kernel(%arg0: i32, %arg1: i32, %arg2: i32, %arg3: memref<64x256xbf16, #tpu.memory_space<vmem>>, %arg4: memref<256x128xbf16, #tpu.memory_space<vmem>>, %arg5: memref<64x128xf32, #tpu.memory_space<vmem>>) attributes {dimension_semantics = [#tpu.dimension_semantics<parallel>, #tpu.dimension_semantics<parallel>, #tpu.dimension_semantics<arbitrary>], iteration_bounds = array<i64: 1, 1, 9>, scalar_prefetch = 0 : i64, scratch_operands = 0 : i64, tpu.core_type = #tpu.core_type<tc>, window_params = [{transform_indices = @transform_0, window_bounds = array<i64: 64, 256>}, {transform_indices = @transform_1, window_bounds = array<i64: 256, 128>}, {transform_indices = @transform_2, window_bounds = array<i64: 64, 128>}]} {
    %c0_i32 = arith.constant 0 : i32
    %0 = arith.cmpi eq, %arg2, %c0_i32 : i32
    %1 = arith.extui %0 : i1 to i32
    %c0_i32_0 = arith.constant 0 : i32
    %2 = arith.cmpi ne, %1, %c0_i32_0 : i32
    scf.if %2 {
      %cst_8 = arith.constant 0.000000e+00 : f32
      %9 = vector.broadcast %cst_8 : f32 to vector<64x128xf32>
      %c0_9 = arith.constant 0 : index
      %c0_10 = arith.constant 0 : index
      %10 = vector.load %arg5[%c0_9, %c0_10] : memref<64x128xf32, #tpu.memory_space<vmem>>, vector<64x128xf32>
      tpu.vector_store %arg5[%c0_9, %c0_10], %9 {strides = array<i32>} : memref<64x128xf32, #tpu.memory_space<vmem>>, vector<64x128xf32>,
    } else {
    }
    %c0 = arith.constant 0 : index
    %c0_1 = arith.constant 0 : index
    %3 = vector.load %arg5[%c0, %c0_1] : memref<64x128xf32, #tpu.memory_space<vmem>>, vector<64x128xf32>
    %c0_2 = arith.constant 0 : index
    %c0_3 = arith.constant 0 : index
    %4 = vector.load %arg3[%c0_2, %c0_3] : memref<64x256xbf16, #tpu.memory_space<vmem>>, vector<64x256xbf16>
    %c0_4 = arith.constant 0 : index
    %c0_5 = arith.constant 0 : index
    %5 = vector.load %arg4[%c0_4, %c0_5] : memref<256x128xbf16, #tpu.memory_space<vmem>>, vector<256x128xbf16>
    %cst = arith.constant dense<0.000000e+00> : vector<64x128xf32>
    %6 = tpu.matmul %4, %5, %cst {dimension_numbers = #tpu.dot_dimension_numbers<[1], [0], [0], [1], [0, 0, 1, 1], [], []>} : vector<64x256xbf16>, vector<256x128xbf16>, vector<64x128xf32> -> vector<64x128xf32>
    %7 = arith.addf %3, %6 : vector<64x128xf32>
    %c0_6 = arith.constant 0 : index
    %c0_7 = arith.constant 0 : index
    %8 = vector.load %arg5[%c0_6, %c0_7] : memref<64x128xf32, #tpu.memory_space<vmem>>, vector<64x128xf32>
    tpu.vector_store %arg5[%c0_6, %c0_7], %7 {strides = array<i32>} : memref<64x128xf32, #tpu.memory_space<vmem>>, vector<64x128xf32>,
    return
  }
  func.func @transform_0(%arg0: i32, %arg1: i32, %arg2: i32) -> (i32, i32) {
    %c0_i32 = arith.constant 0 : i32
    return %arg0, %arg2 : i32, i32
  }
  func.func @transform_1(%arg0: i32, %arg1: i32, %arg2: i32) -> (i32, i32) {
    %c0_i32 = arith.constant 0 : i32
    return %arg2, %arg1 : i32, i32
  }
  func.func @transform_2(%arg0: i32, %arg1: i32, %arg2: i32) -> (i32, i32) {
    %c0_i32 = arith.constant 0 : i32
    return %arg0, %arg1 : i32, i32
  }
}

module attributes {stable_mosaic.version = 11 : i64} {
  func.func @_matmul_kernel(%arg0: i32, %arg1: i32, %arg2: i32, %arg3: memref<64x128xbf16, #tpu.memory_space<vmem>>, %arg4: memref<128x128xbf16, #tpu.memory_space<vmem>>, %arg5: memref<64x128xf32, #tpu.memory_space<vmem>>) attributes {dimension_semantics = [#tpu.dimension_semantics<parallel>, #tpu.dimension_semantics<parallel>, #tpu.dimension_semantics<arbitrary>], iteration_bounds = array<i64: 1, 1, 1>, scalar_prefetch = 0 : i64, scratch_operands = 0 : i64, tpu.core_type = #tpu.core_type<tc>, window_params = [{transform_indices = @transform_0, window_bounds = array<i64: 64, 128>}, {transform_indices = @transform_1, window_bounds = array<i64: 128, 128>}, {transform_indices = @transform_2, window_bounds = array<i64: 64, 128>}]} {
    %c0_i32 = arith.constant 0 : i32
    %0 = arith.cmpi eq, %arg2, %c0_i32 : i32
    %1 = arith.extui %0 : i1 to i32
    %c0_i32_0 = arith.constant 0 : i32
    %2 = arith.cmpi ne, %1, %c0_i32_0 : i32
    scf.if %2 {
      %cst_8 = arith.constant 0.000000e+00 : f32
      %9 = vector.broadcast %cst_8 : f32 to vector<64x128xf32>
      %c0_9 = arith.constant 0 : index
      %c0_10 = arith.constant 0 : index
      %10 = vector.load %arg5[%c0_9, %c0_10] : memref<64x128xf32, #tpu.memory_space<vmem>>, vector<64x128xf32>
      tpu.vector_store %arg5[%c0_9, %c0_10], %9 {strides = array<i32>} : memref<64x128xf32, #tpu.memory_space<vmem>>, vector<64x128xf32>,
    } else {
    }
    %c0 = arith.constant 0 : index
    %c0_1 = arith.constant 0 : index
    %3 = vector.load %arg5[%c0, %c0_1] : memref<64x128xf32, #tpu.memory_space<vmem>>, vector<64x128xf32>
    %c0_2 = arith.constant 0 : index
    %c0_3 = arith.constant 0 : index
    %4 = vector.load %arg3[%c0_2, %c0_3] : memref<64x128xbf16, #tpu.memory_space<vmem>>, vector<64x128xbf16>
    %c0_4 = arith.constant 0 : index
    %c0_5 = arith.constant 0 : index
    %5 = vector.load %arg4[%c0_4, %c0_5] : memref<128x128xbf16, #tpu.memory_space<vmem>>, vector<128x128xbf16>
    %cst = arith.constant dense<0.000000e+00> : vector<64x128xf32>
    %6 = tpu.matmul %4, %5, %cst {dimension_numbers = #tpu.dot_dimension_numbers<[1], [0], [0], [1], [0, 0, 1, 1], [], []>} : vector<64x128xbf16>, vector<128x128xbf16>, vector<64x128xf32> -> vector<64x128xf32>
    %7 = arith.addf %3, %6 : vector<64x128xf32>
    %c0_6 = arith.constant 0 : index
    %c0_7 = arith.constant 0 : index
    %8 = vector.load %arg5[%c0_6, %c0_7] : memref<64x128xf32, #tpu.memory_space<vmem>>, vector<64x128xf32>
    tpu.vector_store %arg5[%c0_6, %c0_7], %7 {strides = array<i32>} : memref<64x128xf32, #tpu.memory_space<vmem>>, vector<64x128xf32>,
    return
  }
  func.func @transform_0(%arg0: i32, %arg1: i32, %arg2: i32) -> (i32, i32) {
    %c0_i32 = arith.constant 0 : i32
    return %arg0, %arg2 : i32, i32
  }
  func.func @transform_1(%arg0: i32, %arg1: i32, %arg2: i32) -> (i32, i32) {
    %c0_i32 = arith.constant 0 : i32
    return %arg2, %arg1 : i32, i32
  }
  func.func @transform_2(%arg0: i32, %arg1: i32, %arg2: i32) -> (i32, i32) {
    %c0_i32 = arith.constant 0 : i32
    return %arg0, %arg1 : i32, i32
  }
}

</mosaic_0001>

<bundles_post_ra>
// kernel: run.29
= control target key start
LH: loop header
LB: loop body
LE: loop exit
PB: predicated region body
PF: predicated region fallthrough
CT: control target
= control target key end

     0   :  { %s950_s9 = smov 0   ;;  %s952_s10 = smov 0   ;;  %s1066_s0 = inlined_call_operand.vmem [shape: bf16[1024,128], index: 0, kind: input, shape index: {}]   ;;  %s1067_s1 = inlined_call_operand.vmem [shape: bf16[128,128], index: 1, kind: input, shape index: {}]   ;;  %s1068_s2 = inlined_call_operand.vmem [shape: f32[1024,128], index: 2, kind: output, shape index: {}]  }
   0x1   :  { %s954_s11 = smov 0  }
   0x2 LB: > { %s31_s12 = sadd.s32 1, %s929_s10  ;;  %p735_p0 = scmp.ge.s32.totalorder %s933_s11, 1  ;;  %s933_s11 = sphi %s954_s11, %s12_s11   ;;  %s929_s10 = sphi %s952_s10, %s1070_s10   ;;  %s925_s9 = sphi %s950_s9, %s1069_s9  }
   0x3   : > { %p33_p1 = scmp.ge.s32.totalorder %s31_s12, 4  ;;  %p155_p2 = scmp.lt.s32.totalorder %s933_s11, 5 }
   0x5   : > { %s1072_s12 = smov (%p33_p1, %s31_s12), 0  ;;  %p156_p3 = pnand %p735_p0, %p155_p2 }
   0x6   : > { %s736_s21 = sshll.u32 (!%p156_p3), %s925_s9, 5 }
   0x7   : > { %159 = sbr.rel (%p156_p3) target bundleno = 235 (0xeb), region = 28  ;;  %p192_p4 = scmp.lt.s32.totalorder (!%p156_p3), %s736_s21, 127 }
   0xc   : > { %v861_v0 = vld [vmem:[%s1067_s1 + $0x38] sm:$0xff]  ;;  %v860_v1 = vld [vmem:[%s1067_s1 + $0x30] sm:$0xff]  ;;  %v859_v2 = vld [vmem:[%s1067_s1 + $0x28] sm:$0xff]  ;;  %s1074_s21 = smov (!%p192_p4, %s736_s21), 127 }
   0xd   : > { %478 = vmatpush.bf16.msra.mxu0 %v861_v0  ;;  %862 = vmatpush.bf16.msra.mxu1 %v861_v0  ;;  %v858_v3 = vld [vmem:[%s1067_s1 + $0x20] sm:$0xff]  ;;  %v857_v4 = vld [vmem:[%s1067_s1 + $0x18] sm:$0xff]  ;;  %v856_v5 = vld [vmem:[%s1067_s1 + $0x10] sm:$0xff]  ;;  %s737_s28 = sshll.u32 %s1074_s21, 2  ;;  %s739_s6 = sshll.u32 %s1074_s21, 3 }
   0xe   : > { %863 = vmatpush.bf16.msra.mxu2 %v861_v0  ;;  %864 = vmatpush.bf16.msra.mxu3 %v861_v0  ;;  %v855_v6 = vld [vmem:[%s1067_s1 + $0x8] sm:$0xff]  ;;  %v854_v7 = vld [vmem:[%s1067_s1] sm:$0xff]  ;;  %s1001_s5 = scalar_lea.vmem %s1066_s0, %s737_s28  ;;  %s1023_s9 = scalar_lea.vmem %s1068_s2, %s739_s6 }
   0xf   : > { %v838_v8 = vld [vmem:[%s1001_s5] sm:$0xff]  ;;  %v839_v12 = vld [vmem:[%s1001_s5 + $0x8] sm:$0xff]  ;;  %v840_v16 = vld [vmem:[%s1001_s5 + $0x10] sm:$0xff] }
  0x10   : > { %v842_v9 = vld [vmem:[%s1001_s5 + $0x20] sm:$0xff]  ;;  %v843_v13 = vld [vmem:[%s1001_s5 + $0x28] sm:$0xff]  ;;  %v844_v17 = vld [vmem:[%s1001_s5 + $0x30] sm:$0xff] }
  0x11   : > { %479 = vmatpush.bf16.msra.mxu0 %v860_v1  ;;  %865 = vmatpush.bf16.msra.mxu1 %v860_v1  ;;  %v846_v10 = vld [vmem:[%s1001_s5 + $0x40] sm:$0xff]  ;;  %v847_v14 = vld [vmem:[%s1001_s5 + $0x48] sm:$0xff]  ;;  %v848_v18 = vld [vmem:[%s1001_s5 + $0x50] sm:$0xff] }
  0x12   : > { %866 = vmatpush.bf16.msra.mxu2 %v860_v1  ;;  %867 = vmatpush.bf16.msra.mxu3 %v860_v1  ;;  %v850_v11 = vld [vmem:[%s1001_s5 + $0x60] sm:$0xff]  ;;  %v851_v15 = vld [vmem:[%s1001_s5 + $0x68] sm:$0xff]  ;;  %v852_v19 = vld [vmem:[%s1001_s5 + $0x70] sm:$0xff] }
  0x13   : > { %v841_v20 = vld [vmem:[%s1001_s5 + $0x18] sm:$0xff] }
  0x14   : > { %v845_v21 = vld [vmem:[%s1001_s5 + $0x38] sm:$0xff] }
  0x15   : > { %480 = vmatpush.bf16.msra.mxu0 %v859_v2  ;;  %868 = vmatpush.bf16.msra.mxu1 %v859_v2  ;;  %v849_v22 = vld [vmem:[%s1001_s5 + $0x58] sm:$0xff] }
  0x16   : > { %869 = vmatpush.bf16.msra.mxu2 %v859_v2  ;;  %870 = vmatpush.bf16.msra.mxu3 %v859_v2  ;;  %v853_v23 = vld [vmem:[%s1001_s5 + $0x78] sm:$0xff] }
  0x19   : > { %481 = vmatpush.bf16.msra.mxu0 %v858_v3  ;;  %871 = vmatpush.bf16.msra.mxu1 %v858_v3 }
  0x1a   : > { %872 = vmatpush.bf16.msra.mxu2 %v858_v3  ;;  %873 = vmatpush.bf16.msra.mxu3 %v858_v3 }
  0x1d   : > { %482 = vmatpush.bf16.msra.mxu0 %v857_v4  ;;  %874 = vmatpush.bf16.msra.mxu1 %v857_v4 }
  0x1e   : > { %875 = vmatpush.bf16.msra.mxu2 %v857_v4  ;;  %876 = vmatpush.bf16.msra.mxu3 %v857_v4 }
  0x21   : > { %483 = vmatpush.bf16.msra.mxu0 %v856_v5  ;;  %877 = vmatpush.bf16.msra.mxu1 %v856_v5 }
  0x22   : > { %878 = vmatpush.bf16.msra.mxu2 %v856_v5  ;;  %879 = vmatpush.bf16.msra.mxu3 %v856_v5 }
  0x25   : > { %484 = vmatpush.bf16.msra.mxu0 %v855_v6  ;;  %880 = vmatpush.bf16.msra.mxu1 %v855_v6 }
  0x26   : > { %881 = vmatpush.bf16.msra.mxu2 %v855_v6  ;;  %882 = vmatpush.bf16.msra.mxu3 %v855_v6 }
  0x29   : > { %485 = vmatpush.bf16.msra.mxu0 %v854_v7  ;;  %883 = vmatpush.bf16.msra.mxu1 %v854_v7 }
  0x2a   : > { %884 = vmatpush.bf16.msra.mxu2 %v854_v7  ;;  %885 = vmatpush.bf16.msra.mxu3 %v854_v7 }
  0x2c   : > { %486 = vmatmul.bf16.vlgmr.msra.gmra.mxu0 %v838_v8  ;;  %506 = vmatmul.bf16.vlgmr.msra.gmra.mxu1 %v842_v9 }
  0x2d   : > { %526 = vmatmul.bf16.vlgmr.msra.gmra.mxu2 %v846_v10  ;;  %546 = vmatmul.bf16.vlgmr.msra.gmra.mxu3 %v850_v11 }
  0x3c   : > { %491 = vmatmul.bf16.gmra.mxu0 %v839_v12  ;;  %511 = vmatmul.bf16.gmra.mxu1 %v843_v13 }
  0x3d   : > { %531 = vmatmul.bf16.gmra.mxu2 %v847_v14  ;;  %551 = vmatmul.bf16.gmra.mxu3 %v851_v15 }
  0x4c   : > { %496 = vmatmul.bf16.gmra.mxu0 %v840_v16  ;;  %516 = vmatmul.bf16.gmra.mxu1 %v844_v17 }
  0x4d   : > { %536 = vmatmul.bf16.gmra.mxu2 %v848_v18  ;;  %556 = vmatmul.bf16.gmra.mxu3 %v852_v19 }
  0x5c   : > { %501 = vmatmul.bf16.gmra.mxu0 %v841_v20  ;;  %521 = vmatmul.bf16.gmra.mxu1 %v845_v21 }
  0x5d   : > { %541 = vmatmul.bf16.gmra.mxu2 %v849_v22  ;;  %561 = vmatmul.bf16.gmra.mxu3 %v853_v23 }
  0xa9   : > { %v487_v24 = vpop.f32.mrf.mxu0  ;;  %v507_v25 = vpop.f32.mrf.mxu1 }
  0xaa   : > { %599 = vst [vmem:[%s1023_s9] sm:$0xff] %v487_v24 }
  0xab   : > { %607 = vst [vmem:[%s1023_s9 + $0x40] sm:$0xff] %v507_v25 }
  0xb0   : > { %v527_v26 = vpop.f32.mrf.mxu2  ;;  %v547_v27 = vpop.f32.mrf.mxu3 }
  0xb1   : > { %v489_v28 = vpop.f32.mrf.mxu0  ;;  %v509_v29 = vpop.f32.mrf.mxu1  ;;  %615 = vst [vmem:[%s1023_s9 + $0x80] sm:$0xff] %v527_v26 }
  0xb2   : > { %623 = vst [vmem:[%s1023_s9 + $0xc0] sm:$0xff] %v547_v27 }
  0xb3   : > { %600 = vst [vmem:[%s1023_s9 + $0x8] sm:$0xff] %v489_v28 }
  0xb4   : > { %608 = vst [vmem:[%s1023_s9 + $0x48] sm:$0xff] %v509_v29 }
  0xb8   : > { %v529_v30 = vpop.f32.mrf.mxu2  ;;  %v549_v31 = vpop.f32.mrf.mxu3 }
  0xb9   : > { %v492_v32 = vpop.f32.mrf.mxu0  ;;  %v512_v33 = vpop.f32.mrf.mxu1  ;;  %616 = vst [vmem:[%s1023_s9 + $0x88] sm:$0xff] %v529_v30 }
  0xba   : > { %624 = vst [vmem:[%s1023_s9 + $0xc8] sm:$0xff] %v549_v31 }
  0xbb   : > { %601 = vst [vmem:[%s1023_s9 + $0x10] sm:$0xff] %v492_v32 }
  0xbc   : > { %609 = vst [vmem:[%s1023_s9 + $0x50] sm:$0xff] %v512_v33 }
  0xc0   : > { %v532_v34 = vpop.f32.mrf.mxu2  ;;  %v552_v35 = vpop.f32.mrf.mxu3 }
  0xc1   : > { %v494_v36 = vpop.f32.mrf.mxu0  ;;  %v514_v37 = vpop.f32.mrf.mxu1  ;;  %617 = vst [vmem:[%s1023_s9 + $0x90] sm:$0xff] %v532_v34 }
  0xc2   : > { %625 = vst [vmem:[%s1023_s9 + $0xd0] sm:$0xff] %v552_v35 }
  0xc3   : > { %602 = vst [vmem:[%s1023_s9 + $0x18] sm:$0xff] %v494_v36 }
  0xc4   : > { %610 = vst [vmem:[%s1023_s9 + $0x58] sm:$0xff] %v514_v37 }
  0xc8   : > { %v534_v38 = vpop.f32.mrf.mxu2  ;;  %v554_v39 = vpop.f32.mrf.mxu3 }
  0xc9   : > { %v497_v40 = vpop.f32.mrf.mxu0  ;;  %v517_v41 = vpop.f32.mrf.mxu1  ;;  %618 = vst [vmem:[%s1023_s9 + $0x98] sm:$0xff] %v534_v38 }
  0xca   : > { %626 = vst [vmem:[%s1023_s9 + $0xd8] sm:$0xff] %v554_v39 }
  0xcb   : > { %603 = vst [vmem:[%s1023_s9 + $0x20] sm:$0xff] %v497_v40 }
  0xcc   : > { %611 = vst [vmem:[%s1023_s9 + $0x60] sm:$0xff] %v517_v41 }
  0xd0   : > { %v537_v42 = vpop.f32.mrf.mxu2  ;;  %v557_v43 = vpop.f32.mrf.mxu3 }
  0xd1   : > { %v499_v44 = vpop.f32.mrf.mxu0  ;;  %v519_v45 = vpop.f32.mrf.mxu1  ;;  %619 = vst [vmem:[%s1023_s9 + $0xa0] sm:$0xff] %v537_v42 }
  0xd2   : > { %627 = vst [vmem:[%s1023_s9 + $0xe0] sm:$0xff] %v557_v43 }
  0xd3   : > { %604 = vst [vmem:[%s1023_s9 + $0x28] sm:$0xff] %v499_v44 }
  0xd4   : > { %612 = vst [vmem:[%s1023_s9 + $0x68] sm:$0xff] %v519_v45 }
  0xd8   : > { %v539_v46 = vpop.f32.mrf.mxu2  ;;  %v559_v47 = vpop.f32.mrf.mxu3 }
  0xd9   : > { %v502_v48 = vpop.f32.mrf.mxu0  ;;  %v522_v49 = vpop.f32.mrf.mxu1  ;;  %620 = vst [vmem:[%s1023_s9 + $0xa8] sm:$0xff] %v539_v46 }
  0xda   : > { %628 = vst [vmem:[%s1023_s9 + $0xe8] sm:$0xff] %v559_v47 }
  0xdb   : > { %605 = vst [vmem:[%s1023_s9 + $0x30] sm:$0xff] %v502_v48 }
  0xdc   : > { %613 = vst [vmem:[%s1023_s9 + $0x70] sm:$0xff] %v522_v49 }
  0xe0   : > { %v542_v50 = vpop.f32.mrf.mxu2  ;;  %v562_v51 = vpop.f32.mrf.mxu3 }
  0xe1   : > { %v504_v52 = vpop.f32.mrf.mxu0  ;;  %v524_v53 = vpop.f32.mrf.mxu1  ;;  %621 = vst [vmem:[%s1023_s9 + $0xb0] sm:$0xff] %v542_v50 }
  0xe2   : > { %629 = vst [vmem:[%s1023_s9 + $0xf0] sm:$0xff] %v562_v51 }
  0xe3   : > { %606 = vst [vmem:[%s1023_s9 + $0x38] sm:$0xff] %v504_v52 }
  0xe4   : > { %614 = vst [vmem:[%s1023_s9 + $0x78] sm:$0xff] %v524_v53 }
  0xe8   : > { %v544_v54 = vpop.f32.mrf.mxu2  ;;  %v564_v55 = vpop.f32.mrf.mxu3 }
  0xe9   : > { %622 = vst [vmem:[%s1023_s9 + $0xb8] sm:$0xff] %v544_v54 }
  0xea   : > { %630 = vst [vmem:[%s1023_s9 + $0xf8] sm:$0xff] %v564_v55 }
  0xeb PF: > { %s12_s11 = sadd.s32 1, %s933_s11   ;;  %s1069_s9 = smov %s929_s10 }
  0xec   : > { %p9_p5 = scmp.ge.s32.totalorder %s12_s11, 6   ;;  %s1070_s10 = smov %s1072_s12 }
  0xee   :  { %11 = sbr.rel (!%p9_p5) target bundleno = 2 (0x2), region = 65 }

// kernel: run.30
= control target key start
LH: loop header
LB: loop body
LE: loop exit
PB: predicated region body
PF: predicated region fallthrough
CT: control target
= control target key end

     0   :  { %s1470_s9 = smov 0   ;;  %s1472_s10 = smov 0   ;;  %s1976_s0 = inlined_call_operand.vmem [shape: bf16[256,512], index: 0, kind: input, shape index: {}]   ;;  %s1977_s1 = inlined_call_operand.vmem [shape: bf16[512,128], index: 1, kind: input, shape index: {}]   ;;  %s1978_s2 = inlined_call_operand.vmem [shape: f32[256,128], index: 2, kind: output, shape index: {}]  }
   0x1   :  { %s1474_s11 = smov 0   ;;  %s1476_s12 = smov 0  }
   0x2   :  { %s1478_s13 = smov 0  }
   0x3 LB: > { %s24_s14 = sadd.s32 1, %s1448_s12  ;;  %p47_p1 = scmp.ne.s32.totalorder %s1440_s10, %s1436_s9  ;;  %s1452_s13 = sphi %s1478_s13, %s12_s13   ;;  %s1448_s12 = sphi %s1476_s12, %s1982_s12   ;;  %s1444_s11 = sphi %s1474_s11, %s1981_s11   ;;  %s1440_s10 = sphi %s1472_s10, %s1980_s10   ;;  %s1436_s9 = sphi %s1470_s9, %s1979_s9  }
   0x4   : > { %p25_p0 = scmp.ge.s32.totalorder %s24_s14, 2  ;;  %p48_p2 = scmp.eq.s32.totalorder %s1452_s13, 0 }
   0x5   : > { %s40_s16 = sadd.s32 1, %s1440_s10  ;;  %p1103_p5 = scmp.ge.s32.totalorder %s1452_s13, 2 }
   0x6   : > { %s1984_s14 = smov (%p25_p0, %s24_s14), 0  ;;  %p49_p3 = por %p48_p2, %p47_p1 }
   0x7   : > { %s36_s15 = ssub.s32 %s1448_s12, %s1984_s14  ;;  %129 = sbr.rel (%p1103_p5) target bundleno = 48 (0x30), region = 16 }
   0x8   : > { %p38_p4 = scmp.eq.s32.totalorder %s36_s15, 0 }
   0xa   : > { %s1505_s17 = scalar_select %p38_p4, %s1440_s10, %s40_s16  }
   0xc   : > { %132 = sbr.rel (!%p49_p3) target bundleno = 48 (0x30), region = 20  ;;  %s134_s18 = sand.u32 (%p49_p3), 1, %s1440_s10  }
   0xd   : > { %s1308_s19 = sshll.u32 (%p49_p3), %s1448_s12, 3  ;;  %s1104_s20 = sshll.u32 (%p49_p3), %s134_s18, 8 }
   0xe   : > { %s1513_s23 = scalar_lea.vmem (%p49_p3), %s1976_s0, %s1308_s19  ;;  %s1518_s24 = scalar_lea.vmem (%p49_p3), [#allocation2], %s1104_s20 }
   0xf   : > { %v233_v0 = vld [vmem:[%s1513_s23] sm:$0xff] (%p49_p3)  ;;  %v235_v1 = vld [vmem:[%s1513_s23 + $0x10] sm:$0xff] (%p49_p3) }
  0x10   : > { %v237_v2 = vld [vmem:[%s1513_s23 + $0x20] sm:$0xff] (%p49_p3)  ;;  %234 = vst [vmem:[%s1518_s24] sm:$0xff] (%p49_p3), %v233_v0  ;;  %v239_v3 = vld [vmem:[%s1513_s23 + $0x30] sm:$0xff] (%p49_p3) }
  0x11   : > { %236 = vst [vmem:[%s1518_s24 + $0x8] sm:$0xff] %v235_v1  ;;  %v241_v4 = vld [vmem:[%s1513_s23 + $0x40] sm:$0xff]  ;;  %v243_v5 = vld [vmem:[%s1513_s23 + $0x50] sm:$0xff] }
  0x12   : > { %238 = vst [vmem:[%s1518_s24 + $0x10] sm:$0xff] %v237_v2  ;;  %v245_v6 = vld [vmem:[%s1513_s23 + $0x60] sm:$0xff]  ;;  %v247_v7 = vld [vmem:[%s1513_s23 + $0x70] sm:$0xff] }
  0x13   : > { %240 = vst [vmem:[%s1518_s24 + $0x18] sm:$0xff] %v239_v3  ;;  %v249_v8 = vld [vmem:[%s1513_s23 + $0x80] sm:$0xff]  ;;  %v251_v9 = vld [vmem:[%s1513_s23 + $0x90] sm:$0xff] }
  0x14   : > { %242 = vst [vmem:[%s1518_s24 + $0x20] sm:$0xff] %v241_v4  ;;  %v253_v10 = vld [vmem:[%s1513_s23 + $0xa0] sm:$0xff]  ;;  %v255_v11 = vld [vmem:[%s1513_s23 + $0xb0] sm:$0xff] }
  0x15   : > { %244 = vst [vmem:[%s1518_s24 + $0x28] sm:$0xff] %v243_v5  ;;  %v257_v12 = vld [vmem:[%s1513_s23 + $0xc0] sm:$0xff]  ;;  %v259_v13 = vld [vmem:[%s1513_s23 + $0xd0] sm:$0xff] }
  0x16   : > { %246 = vst [vmem:[%s1518_s24 + $0x30] sm:$0xff] %v245_v6  ;;  %v261_v14 = vld [vmem:[%s1513_s23 + $0xe0] sm:$0xff]  ;;  %v263_v15 = vld [vmem:[%s1513_s23 + $0xf0] sm:$0xff] }
  0x17   : > { %248 = vst [vmem:[%s1518_s24 + $0x38] sm:$0xff] %v247_v7  ;;  %v265_v16 = vld [vmem:[%s1513_s23 + $0x100] sm:$0xff]  ;;  %v267_v17 = vld [vmem:[%s1513_s23 + $0x110] sm:$0xff] }
  0x18   : > { %250 = vst [vmem:[%s1518_s24 + $0x40] sm:$0xff] %v249_v8  ;;  %v269_v18 = vld [vmem:[%s1513_s23 + $0x120] sm:$0xff]  ;;  %v271_v19 = vld [vmem:[%s1513_s23 + $0x130] sm:$0xff] }
  0x19   : > { %252 = vst [vmem:[%s1518_s24 + $0x48] sm:$0xff] %v251_v9  ;;  %v273_v20 = vld [vmem:[%s1513_s23 + $0x140] sm:$0xff]  ;;  %v275_v21 = vld [vmem:[%s1513_s23 + $0x150] sm:$0xff] }
  0x1a   : > { %254 = vst [vmem:[%s1518_s24 + $0x50] sm:$0xff] %v253_v10  ;;  %v277_v22 = vld [vmem:[%s1513_s23 + $0x160] sm:$0xff]  ;;  %v279_v23 = vld [vmem:[%s1513_s23 + $0x170] sm:$0xff] }
  0x1b   : > { %256 = vst [vmem:[%s1518_s24 + $0x58] sm:$0xff] %v255_v11  ;;  %v281_v24 = vld [vmem:[%s1513_s23 + $0x180] sm:$0xff]  ;;  %v283_v25 = vld [vmem:[%s1513_s23 + $0x190] sm:$0xff] }
  0x1c   : > { %258 = vst [vmem:[%s1518_s24 + $0x60] sm:$0xff] %v257_v12  ;;  %v285_v26 = vld [vmem:[%s1513_s23 + $0x1a0] sm:$0xff]  ;;  %v287_v27 = vld [vmem:[%s1513_s23 + $0x1b0] sm:$0xff] }
  0x1d   : > { %260 = vst [vmem:[%s1518_s24 + $0x68] sm:$0xff] %v259_v13  ;;  %v289_v28 = vld [vmem:[%s1513_s23 + $0x1c0] sm:$0xff]  ;;  %v291_v29 = vld [vmem:[%s1513_s23 + $0x1d0] sm:$0xff] }
  0x1e   : > { %262 = vst [vmem:[%s1518_s24 + $0x70] sm:$0xff] %v261_v14  ;;  %v293_v30 = vld [vmem:[%s1513_s23 + $0x1e0] sm:$0xff]  ;;  %v295_v31 = vld [vmem:[%s1513_s23 + $0x1f0] sm:$0xff] }
  0x1f   : > { %264 = vst [vmem:[%s1518_s24 + $0x78] sm:$0xff] %v263_v15 }
  0x20   : > { %266 = vst [vmem:[%s1518_s24 + $0x80] sm:$0xff] %v265_v16 }
  0x21   : > { %268 = vst [vmem:[%s1518_s24 + $0x88] sm:$0xff] %v267_v17 }
  0x22   : > { %270 = vst [vmem:[%s1518_s24 + $0x90] sm:$0xff] %v269_v18 }
  0x23   : > { %272 = vst [vmem:[%s1518_s24 + $0x98] sm:$0xff] %v271_v19 }
  0x24   : > { %274 = vst [vmem:[%s1518_s24 + $0xa0] sm:$0xff] %v273_v20 }
  0x25   : > { %276 = vst [vmem:[%s1518_s24 + $0xa8] sm:$0xff] %v275_v21 }
  0x26   : > { %278 = vst [vmem:[%s1518_s24 + $0xb0] sm:$0xff] %v277_v22 }
  0x27   : > { %280 = vst [vmem:[%s1518_s24 + $0xb8] sm:$0xff] %v279_v23 }
  0x28   : > { %282 = vst [vmem:[%s1518_s24 + $0xc0] sm:$0xff] %v281_v24 }
  0x29   : > { %284 = vst [vmem:[%s1518_s24 + $0xc8] sm:$0xff] %v283_v25 }
  0x2a   : > { %286 = vst [vmem:[%s1518_s24 + $0xd0] sm:$0xff] %v285_v26 }
  0x2b   : > { %288 = vst [vmem:[%s1518_s24 + $0xd8] sm:$0xff] %v287_v27 }
  0x2c   : > { %290 = vst [vmem:[%s1518_s24 + $0xe0] sm:$0xff] %v289_v28 }
  0x2d   : > { %292 = vst [vmem:[%s1518_s24 + $0xe8] sm:$0xff] %v291_v29 }
  0x2e   : > { %294 = vst [vmem:[%s1518_s24 + $0xf0] sm:$0xff] %v293_v30 }
  0x2f   : > { %296 = vst [vmem:[%s1518_s24 + $0xf8] sm:$0xff] %v295_v31 }
  0x30 PF: > { %p1107_p6 = scmp.ge.s32.totalorder %s1452_s13, 1  ;;  %p313_p7 = scmp.lt.s32.totalorder %s1452_s13, 3 }
  0x32   : > { %p314_p8 = pnand %p1107_p6, %p313_p7 }
  0x33   : > { %s320_s25 = sand.u32 (!%p314_p8), 1, %s1436_s9   ;;  %s1109_s26 = sshll.u32 (!%p314_p8), %s1444_s11, 5 }
  0x34   : > { %317 = sbr.rel (%p314_p8) target bundleno = 385 (0x181), region = 62  ;;  %s1108_s27 = sshll.u32 (!%p314_p8), %s320_s25, 8 }
  0x35   : > { %p355_p9 = scmp.lt.s32.totalorder (!%p314_p8), %s1109_s26, 63  ;;  %s1590_s4 = scalar_lea.vmem (!%p314_p8), [#allocation2], %s1108_s27 }
  0x36   : > { %p1111_p10 = scmp.ne.s32.totalorder (!%p314_p8), %s1444_s11, 0 }
  0x39   : > { %s1986_s26 = smov (!%p355_p9, %s1109_s26), 63  ;;  %375 = sbr.rel (%p1111_p10) target bundleno = 95 (0x5f), region = 70 }
  0x3a   : > { %s1110_s28 = sshll.u32 %s1986_s26, 2 }
  0x3b   : > { %s1588_s3 = scalar_lea.vmem %s1977_s1, %s1110_s28 }
  0x3e   : > { %v1454_v32 = vmov 0.0  }
  0x3f   : > { %376 = vst [vmem:[%s1978_s2] sm:$0xff] %v1454_v32 }
  0x40   : > { %377 = vst [vmem:[%s1978_s2 + $0x8] sm:$0xff] %v1454_v32 }
  0x41   : > { %378 = vst [vmem:[%s1978_s2 + $0x10] sm:$0xff] %v1454_v32 }
  0x42   : > { %379 = vst [vmem:[%s1978_s2 + $0x18] sm:$0xff] %v1454_v32 }
  0x43   : > { %380 = vst [vmem:[%s1978_s2 + $0x20] sm:$0xff] %v1454_v32 }
  0x44   : > { %381 = vst [vmem:[%s1978_s2 + $0x28] sm:$0xff] %v1454_v32 }
  0x45   : > { %382 = vst [vmem:[%s1978_s2 + $0x30] sm:$0xff] %v1454_v32 }
  0x46   : > { %383 = vst [vmem:[%s1978_s2 + $0x38] sm:$0xff] %v1454_v32 }
  0x47   : > { %384 = vst [vmem:[%s1978_s2 + $0x40] sm:$0xff] %v1454_v32 }
  0x48   : > { %385 = vst [vmem:[%s1978_s2 + $0x48] sm:$0xff] %v1454_v32 }
  0x49   : > { %386 = vst [vmem:[%s1978_s2 + $0x50] sm:$0xff] %v1454_v32 }
  0x4a   : > { %387 = vst [vmem:[%s1978_s2 + $0x58] sm:$0xff] %v1454_v32 }
  0x4b   : > { %388 = vst [vmem:[%s1978_s2 + $0x60] sm:$0xff] %v1454_v32 }
  0x4c   : > { %389 = vst [vmem:[%s1978_s2 + $0x68] sm:$0xff] %v1454_v32 }
  0x4d   : > { %390 = vst [vmem:[%s1978_s2 + $0x70] sm:$0xff] %v1454_v32 }
  0x4e   : > { %391 = vst [vmem:[%s1978_s2 + $0x78] sm:$0xff] %v1454_v32 }
  0x4f   : > { %392 = vst [vmem:[%s1978_s2 + $0x80] sm:$0xff] %v1454_v32 }
  0x50   : > { %393 = vst [vmem:[%s1978_s2 + $0x88] sm:$0xff] %v1454_v32 }
  0x51   : > { %394 = vst [vmem:[%s1978_s2 + $0x90] sm:$0xff] %v1454_v32 }
  0x52   : > { %395 = vst [vmem:[%s1978_s2 + $0x98] sm:$0xff] %v1454_v32 }
  0x53   : > { %396 = vst [vmem:[%s1978_s2 + $0xa0] sm:$0xff] %v1454_v32 }
  0x54   : > { %397 = vst [vmem:[%s1978_s2 + $0xa8] sm:$0xff] %v1454_v32 }
  0x55   : > { %398 = vst [vmem:[%s1978_s2 + $0xb0] sm:$0xff] %v1454_v32 }
  0x56   : > { %399 = vst [vmem:[%s1978_s2 + $0xb8] sm:$0xff] %v1454_v32 }
  0x57   : > { %400 = vst [vmem:[%s1978_s2 + $0xc0] sm:$0xff] %v1454_v32 }
  0x58   : > { %401 = vst [vmem:[%s1978_s2 + $0xc8] sm:$0xff] %v1454_v32 }
  0x59   : > { %402 = vst [vmem:[%s1978_s2 + $0xd0] sm:$0xff] %v1454_v32 }
  0x5a   : > { %403 = vst [vmem:[%s1978_s2 + $0xd8] sm:$0xff] %v1454_v32 }
  0x5b   : > { %404 = vst [vmem:[%s1978_s2 + $0xe0] sm:$0xff] %v1454_v32 }
  0x5c   : > { %405 = vst [vmem:[%s1978_s2 + $0xe8] sm:$0xff] %v1454_v32 }
  0x5d   : > { %406 = vst [vmem:[%s1978_s2 + $0xf0] sm:$0xff] %v1454_v32 }
  0x5e   : > { %407 = vst [vmem:[%s1978_s2 + $0xf8] sm:$0xff] %v1454_v32 }
  0x5f PF: > { %v1348_v33 = vld [vmem:[%s1588_s3 + $0x38] sm:$0xff]  ;;  %v1347_v35 = vld [vmem:[%s1588_s3 + $0x30] sm:$0xff]  ;;  %v1346_v37 = vld [vmem:[%s1588_s3 + $0x28] sm:$0xff] }
  0x60   : > { %v1356_v34 = vld [vmem:[%s1588_s3 + $0x78] sm:$0xff]  ;;  %760 = vmatpush.bf16.msra.mxu0 %v1348_v33  ;;  %1357 = vmatpush.bf16.msra.mxu2 %v1348_v33  ;;  %v1355_v36 = vld [vmem:[%s1588_s3 + $0x70] sm:$0xff]  ;;  %v1354_v38 = vld [vmem:[%s1588_s3 + $0x68] sm:$0xff] }
  0x61   : > { %849 = vmatpush.bf16.msra.mxu1 %v1356_v34  ;;  %1365 = vmatpush.bf16.msra.mxu3 %v1356_v34  ;;  %v1345_v39 = vld [vmem:[%s1588_s3 + $0x20] sm:$0xff]  ;;  %v1344_v41 = vld [vmem:[%s1588_s3 + $0x18] sm:$0xff]  ;;  %v1343_v43 = vld [vmem:[%s1588_s3 + $0x10] sm:$0xff] }
  0x62   : > { %v1353_v40 = vld [vmem:[%s1588_s3 + $0x60] sm:$0xff]  ;;  %v1352_v42 = vld [vmem:[%s1588_s3 + $0x58] sm:$0xff]  ;;  %v1351_v44 = vld [vmem:[%s1588_s3 + $0x50] sm:$0xff] }
  0x63   : > { %v1342_v45 = vld [vmem:[%s1588_s3 + $0x8] sm:$0xff]  ;;  %v1341_v47 = vld [vmem:[%s1588_s3] sm:$0xff]  ;;  %v1122_v61 = vld [vmem:[%s1590_s4 + $0x10] sm:$0xf] }
  0x64   : > { %761 = vmatpush.bf16.msra.mxu0 %v1347_v35  ;;  %1358 = vmatpush.bf16.msra.mxu2 %v1347_v35  ;;  %v1350_v46 = vld [vmem:[%s1588_s3 + $0x48] sm:$0xff]  ;;  %v1349_v48 = vld [vmem:[%s1588_s3 + $0x40] sm:$0xff]  ;;  %v1312_v62 = vld [vmem:[%s1590_s4 + $0x14] sm:$0xf0] }
  0x65   : > { %850 = vmatpush.bf16.msra.mxu1 %v1355_v36  ;;  %1366 = vmatpush.bf16.msra.mxu3 %v1355_v36  ;;  %v1114_v49 = vld [vmem:[%s1590_s4] sm:$0xf]  ;;  %v1310_v50 = vld [vmem:[%s1590_s4 + $0x4] sm:$0xf0]  ;;  %v1309_v53 = vld [vmem:[%s1590_s4 + $0x4] sm:$0xf]  ;;  %v1123_v5 = vor.u32 %v1312_v62, %v1122_v61 }
  0x66   : > { %v1178_v51 = vld [vmem:[%s1590_s4 + $0x80] sm:$0xf]  ;;  %v1326_v52 = vld [vmem:[%s1590_s4 + $0x84] sm:$0xf0]  ;;  %v1116_v54 = vld [vmem:[%s1590_s4 + $0x8] sm:$0xf0]  ;;  %v1115_v57 = vor.u32 %v1310_v50, %v1114_v49 }
  0x67   : > { %v1325_v55 = vld [vmem:[%s1590_s4 + $0x84] sm:$0xf]  ;;  %v1180_v56 = vld [vmem:[%s1590_s4 + $0x88] sm:$0xf0]  ;;  %v1179_v58 = vor.u32 %v1326_v52, %v1178_v51  ;;  %v1119_v59 = vor.u32 %v1309_v53, %v1116_v54  ;;  %v1186_v63 = vld [vmem:[%s1590_s4 + $0x90] sm:$0xf] }
  0x68   : > { %762 = vmatpush.bf16.msra.mxu0 %v1346_v37  ;;  %1359 = vmatpush.bf16.msra.mxu2 %v1346_v37  ;;  %v1183_v60 = vor.u32 %v1325_v55, %v1180_v56  ;;  %v1328_v0 = vld [vmem:[%s1590_s4 + $0x94] sm:$0xf0]  ;;  %v1311_v1 = vld [vmem:[%s1590_s4 + $0x14] sm:$0xf]  ;;  %v1124_v2 = vld [vmem:[%s1590_s4 + $0x18] sm:$0xf0] }
  0x69   : > { %851 = vmatpush.bf16.msra.mxu1 %v1354_v38  ;;  %1367 = vmatpush.bf16.msra.mxu3 %v1354_v38  ;;  %v1327_v3 = vld [vmem:[%s1590_s4 + $0x94] sm:$0xf]  ;;  %v1188_v4 = vld [vmem:[%s1590_s4 + $0x98] sm:$0xf0]  ;;  %v1187_v6 = vor.u32 %v1328_v0, %v1186_v63  ;;  %v1127_v7 = vor.u32 %v1311_v1, %v1124_v2  ;;  %v1130_v9 = vld [vmem:[%s1590_s4 + $0x20] sm:$0xf] }
  0x6a   : > { %v1191_v8 = vor.u32 %v1327_v3, %v1188_v4  ;;  %v1314_v10 = vld [vmem:[%s1590_s4 + $0x24] sm:$0xf0]  ;;  %v1194_v11 = vld [vmem:[%s1590_s4 + $0xa0] sm:$0xf]  ;;  %v1313_v13 = vld [vmem:[%s1590_s4 + $0x24] sm:$0xf] }
  0x6b   : > { %v1330_v12 = vld [vmem:[%s1590_s4 + $0xa4] sm:$0xf0]  ;;  %v1132_v14 = vld [vmem:[%s1590_s4 + $0x28] sm:$0xf0]  ;;  %v1329_v15 = vld [vmem:[%s1590_s4 + $0xa4] sm:$0xf]  ;;  %v1131_v17 = vor.u32 %v1314_v10, %v1130_v9 }
  0x6c   : > { %763 = vmatpush.bf16.msra.mxu0 %v1345_v39  ;;  %1360 = vmatpush.bf16.msra.mxu2 %v1345_v39  ;;  %v1196_v16 = vld [vmem:[%s1590_s4 + $0xa8] sm:$0xf0]  ;;  %v1195_v18 = vor.u32 %v1330_v12, %v1194_v11  ;;  %v1135_v19 = vor.u32 %v1313_v13, %v1132_v14  ;;  %v1138_v21 = vld [vmem:[%s1590_s4 + $0x30] sm:$0xf]  ;;  %v1316_v22 = vld [vmem:[%s1590_s4 + $0x34] sm:$0xf0] }
  0x6d   : > { %852 = vmatpush.bf16.msra.mxu1 %v1353_v40  ;;  %1368 = vmatpush.bf16.msra.mxu3 %v1353_v40  ;;  %v1199_v20 = vor.u32 %v1329_v15, %v1196_v16  ;;  %v1202_v23 = vld [vmem:[%s1590_s4 + $0xb0] sm:$0xf]  ;;  %v1332_v24 = vld [vmem:[%s1590_s4 + $0xb4] sm:$0xf0]  ;;  %v1315_v25 = vld [vmem:[%s1590_s4 + $0x34] sm:$0xf]  ;;  %v1139_v29 = vor.u32 %v1316_v22, %v1138_v21 }
  0x6e   : > { %v1140_v26 = vld [vmem:[%s1590_s4 + $0x38] sm:$0xf0]  ;;  %v1331_v27 = vld [vmem:[%s1590_s4 + $0xb4] sm:$0xf]  ;;  %v1203_v30 = vor.u32 %v1332_v24, %v1202_v23  ;;  %v1146_v33 = vld [vmem:[%s1590_s4 + $0x40] sm:$0xf] }
  0x6f   : > { %v1204_v28 = vld [vmem:[%s1590_s4 + $0xb8] sm:$0xf0]  ;;  %v1143_v31 = vor.u32 %v1315_v25, %v1140_v26  ;;  %v1318_v34 = vld [vmem:[%s1590_s4 + $0x44] sm:$0xf0]  ;;  %v1210_v35 = vld [vmem:[%s1590_s4 + $0xc0] sm:$0xf] }
  0x70   : > { %764 = vmatpush.bf16.msra.mxu0 %v1344_v41  ;;  %1361 = vmatpush.bf16.msra.mxu2 %v1344_v41  ;;  %v1207_v32 = vor.u32 %v1331_v27, %v1204_v28  ;;  %v1334_v36 = vld [vmem:[%s1590_s4 + $0xc4] sm:$0xf0]  ;;  %v1317_v37 = vld [vmem:[%s1590_s4 + $0x44] sm:$0xf]  ;;  %v1148_v38 = vld [vmem:[%s1590_s4 + $0x48] sm:$0xf0]  ;;  %v1147_v41 = vor.u32 %v1318_v34, %v1146_v33 }
  0x71   : > { %853 = vmatpush.bf16.msra.mxu1 %v1352_v42  ;;  %1369 = vmatpush.bf16.msra.mxu3 %v1352_v42  ;;  %v1333_v39 = vld [vmem:[%s1590_s4 + $0xc4] sm:$0xf]  ;;  %v1212_v40 = vld [vmem:[%s1590_s4 + $0xc8] sm:$0xf0]  ;;  %v1211_v42 = vor.u32 %v1334_v36, %v1210_v35  ;;  %v1319_v49 = vld [vmem:[%s1590_s4 + $0x54] sm:$0xf] }
  0x72   : > { %v1156_v50 = vld [vmem:[%s1590_s4 + $0x58] sm:$0xf0]  ;;  %v1335_v51 = vld [vmem:[%s1590_s4 + $0xd4] sm:$0xf]  ;;  %v1321_v61 = vld [vmem:[%s1590_s4 + $0x64] sm:$0xf] }
  0x73   : > { %v1220_v52 = vld [vmem:[%s1590_s4 + $0xd8] sm:$0xf0]  ;;  %v1159_v55 = vor.u32 %v1319_v49, %v1156_v50  ;;  %v1164_v62 = vld [vmem:[%s1590_s4 + $0x68] sm:$0xf0]  ;;  %v1337_v63 = vld [vmem:[%s1590_s4 + $0xe4] sm:$0xf] }
  0x74   : > { %765 = vmatpush.bf16.msra.mxu0 %v1343_v43  ;;  %1362 = vmatpush.bf16.msra.mxu2 %v1343_v43  ;;  %v1151_v43 = vor.u32 %v1317_v37, %v1148_v38  ;;  %v1223_v56 = vor.u32 %v1335_v51, %v1220_v52  ;;  %v1228_v0 = vld [vmem:[%s1590_s4 + $0xe8] sm:$0xf0]  ;;  %v1167_v3 = vor.u32 %v1321_v61, %v1164_v62  ;;  %v1323_v9 = vld [vmem:[%s1590_s4 + $0x74] sm:$0xf]  ;;  %v1172_v10 = vld [vmem:[%s1590_s4 + $0x78] sm:$0xf0] }
  0x75   : > { %854 = vmatpush.bf16.msra.mxu1 %v1351_v44  ;;  %1370 = vmatpush.bf16.msra.mxu3 %v1351_v44  ;;  %v1215_v44 = vor.u32 %v1333_v39, %v1212_v40  ;;  %v1231_v4 = vor.u32 %v1337_v63, %v1228_v0  ;;  %v1339_v11 = vld [vmem:[%s1590_s4 + $0xf4] sm:$0xf]  ;;  %v1236_v12 = vld [vmem:[%s1590_s4 + $0xf8] sm:$0xf0]  ;;  %v1175_v15 = vor.u32 %v1323_v9, %v1172_v10  ;;  %v424_v23 = vld [vmem:[%s1978_s2 + $0x80] sm:$0xff] }
  0x76   : > { %v1239_v16 = vor.u32 %v1339_v11, %v1236_v12  ;;  %v409_v27 = vld [vmem:[%s1978_s2 + $0x8] sm:$0xff]  ;;  %v410_v37 = vld [vmem:[%s1978_s2 + $0x10] sm:$0xff]  ;;  %v428_v63 = vld [vmem:[%s1978_s2 + $0xa0] sm:$0xff] }
  0x77   : > { %v425_v33 = vld [vmem:[%s1978_s2 + $0x88] sm:$0xff] }
  0x78   : > { %766 = vmatpush.bf16.msra.mxu0 %v1342_v45  ;;  %1363 = vmatpush.bf16.msra.mxu2 %v1342_v45  ;;  %v1154_v45 = vld [vmem:[%s1590_s4 + $0x50] sm:$0xf]  ;;  %v429_v9 = vld [vmem:[%s1978_s2 + $0xa8] sm:$0xff] }
  0x79   : > { %855 = vmatpush.bf16.msra.mxu1 %v1350_v46  ;;  %1371 = vmatpush.bf16.msra.mxu3 %v1350_v46  ;;  %v1320_v46 = vld [vmem:[%s1590_s4 + $0x54] sm:$0xf0] }
  0x7a   : > { %v1155_v53 = vor.u32 %v1320_v46, %v1154_v45 }
  0x7c   : > { %767 = vmatpush.bf16.msra.mxu0 %v1341_v47  ;;  %1364 = vmatpush.bf16.msra.mxu2 %v1341_v47  ;;  %v1218_v47 = vld [vmem:[%s1590_s4 + $0xd0] sm:$0xf] }
  0x7d   : > { %856 = vmatpush.bf16.msra.mxu1 %v1349_v48  ;;  %1372 = vmatpush.bf16.msra.mxu3 %v1349_v48  ;;  %v1336_v48 = vld [vmem:[%s1590_s4 + $0xd4] sm:$0xf0] }
  0x7e   : > { %v1219_v54 = vor.u32 %v1336_v48, %v1218_v47  ;;  %v411_v47 = vld [vmem:[%s1978_s2 + $0x18] sm:$0xff] }
  0x7f   : > { %768 = vmatmul.bf16.vlgmr.msra.gmra.mxu0 %v1115_v57  ;;  %808 = vmatmul.bf16.vlgmr.msra.gmra.mxu2 %v1179_v58  ;;  %v1162_v57 = vld [vmem:[%s1590_s4 + $0x60] sm:$0xf]  ;;  %v1322_v58 = vld [vmem:[%s1590_s4 + $0x64] sm:$0xf0] }
  0x80   : > { %857 = vmatmul.bf16.vlgmr.msra.gmra.mxu1 %v1119_v59  ;;  %897 = vmatmul.bf16.vlgmr.msra.gmra.mxu3 %v1183_v60  ;;  %v1226_v59 = vld [vmem:[%s1590_s4 + $0xe0] sm:$0xf]  ;;  %v1338_v60 = vld [vmem:[%s1590_s4 + $0xe4] sm:$0xf0]  ;;  %v1163_v1 = vor.u32 %v1322_v58, %v1162_v57 }
  0x81   : > { %v1227_v2 = vor.u32 %v1338_v60, %v1226_v59  ;;  %v412_v57 = vld [vmem:[%s1978_s2 + $0x20] sm:$0xff] }
  0x8f   : > { %773 = vmatmul.bf16.gmra.mxu0 %v1123_v5  ;;  %813 = vmatmul.bf16.gmra.mxu2 %v1187_v6  ;;  %v1170_v5 = vld [vmem:[%s1590_s4 + $0x70] sm:$0xf]  ;;  %v1324_v6 = vld [vmem:[%s1590_s4 + $0x74] sm:$0xf0] }
  0x90   : > { %862 = vmatmul.bf16.gmra.mxu1 %v1127_v7  ;;  %902 = vmatmul.bf16.gmra.mxu3 %v1191_v8  ;;  %v1234_v7 = vld [vmem:[%s1590_s4 + $0xf0] sm:$0xf]  ;;  %v1340_v8 = vld [vmem:[%s1590_s4 + $0xf4] sm:$0xf0]  ;;  %v1171_v13 = vor.u32 %v1324_v6, %v1170_v5 }
  0x91   : > { %v1235_v14 = vor.u32 %v1340_v8, %v1234_v7 }
  0x9f   : > { %778 = vmatmul.bf16.gmra.mxu0 %v1131_v17  ;;  %818 = vmatmul.bf16.gmra.mxu2 %v1195_v18  ;;  %v408_v18 = vld [vmem:[%s1978_s2] sm:$0xff] }
  0xa0   : > { %867 = vmatmul.bf16.gmra.mxu1 %v1135_v19  ;;  %907 = vmatmul.bf16.gmra.mxu3 %v1199_v20 }
  0xaf   : > { %783 = vmatmul.bf16.gmra.mxu0 %v1139_v29  ;;  %823 = vmatmul.bf16.gmra.mxu2 %v1203_v30 }
  0xb0   : > { %872 = vmatmul.bf16.gmra.mxu1 %v1143_v31  ;;  %912 = vmatmul.bf16.gmra.mxu3 %v1207_v32 }
  0xbf   : > { %788 = vmatmul.bf16.gmra.mxu0 %v1147_v41  ;;  %828 = vmatmul.bf16.gmra.mxu2 %v1211_v42 }
  0xc0   : > { %877 = vmatmul.bf16.gmra.mxu1 %v1151_v43  ;;  %917 = vmatmul.bf16.gmra.mxu3 %v1215_v44  ;;  %v426_v43 = vld [vmem:[%s1978_s2 + $0x90] sm:$0xff] }
  0xcf   : > { %793 = vmatmul.bf16.gmra.mxu0 %v1155_v53  ;;  %833 = vmatmul.bf16.gmra.mxu2 %v1219_v54  ;;  %v427_v53 = vld [vmem:[%s1978_s2 + $0x98] sm:$0xff] }
  0xd0   : > { %882 = vmatmul.bf16.gmra.mxu1 %v1159_v55  ;;  %922 = vmatmul.bf16.gmra.mxu3 %v1223_v56 }
  0xdf   : > { %798 = vmatmul.bf16.gmra.mxu0 %v1163_v1  ;;  %838 = vmatmul.bf16.gmra.mxu2 %v1227_v2 }
  0xe0   : > { %887 = vmatmul.bf16.gmra.mxu1 %v1167_v3  ;;  %927 = vmatmul.bf16.gmra.mxu3 %v1231_v4  ;;  %v413_v3 = vld [vmem:[%s1978_s2 + $0x28] sm:$0xff] }
  0xef   : > { %803 = vmatmul.bf16.gmra.mxu0 %v1171_v13  ;;  %843 = vmatmul.bf16.gmra.mxu2 %v1235_v14  ;;  %v414_v13 = vld [vmem:[%s1978_s2 + $0x30] sm:$0xff] }
  0xf0   : > { %892 = vmatmul.bf16.gmra.mxu1 %v1175_v15  ;;  %932 = vmatmul.bf16.gmra.mxu3 %v1239_v16 }
  0xfc   : > { %v769_v17 = vpop.f32.mrf.mxu0 }
  0xfd   : > { %v858_v19 = vpop.f32.mrf.mxu1 }
  0xfe   : > { %v859_v20 = vadd.f32 %v858_v19, %v769_v17  ;;  %v430_v19 = vld [vmem:[%s1978_s2 + $0xb0] sm:$0xff] }
 0x100   : > { %v938_v21 = vadd.f32 %v859_v20, %v408_v18 }
 0x102   : > { %970 = vst [vmem:[%s1978_s2] sm:$0xff] %v938_v21  ;;  %v809_v22 = vpop.f32.mrf.mxu2 }
 0x103   : > { %v898_v24 = vpop.f32.mrf.mxu3 }
 0x104   : > { %v899_v25 = vadd.f32 %v898_v24, %v809_v22  ;;  %v771_v26 = vpop.f32.mrf.mxu0 }
 0x105   : > { %v860_v28 = vpop.f32.mrf.mxu1 }
 0x106   : > { %v954_v29 = vadd.f32 %v899_v25, %v424_v23  ;;  %v861_v30 = vadd.f32 %v860_v28, %v771_v26  ;;  %v415_v23 = vld [vmem:[%s1978_s2 + $0x38] sm:$0xff] }
 0x108   : > { %986 = vst [vmem:[%s1978_s2 + $0x80] sm:$0xff] %v954_v29  ;;  %v939_v31 = vadd.f32 %v861_v30, %v409_v27  ;;  %v431_v29 = vld [vmem:[%s1978_s2 + $0xb8] sm:$0xff] }
 0x10a   : > { %971 = vst [vmem:[%s1978_s2 + $0x8] sm:$0xff] %v939_v31  ;;  %v811_v32 = vpop.f32.mrf.mxu2 }
 0x10b   : > { %v900_v34 = vpop.f32.mrf.mxu3 }
 0x10c   : > { %v901_v35 = vadd.f32 %v900_v34, %v811_v32  ;;  %v774_v36 = vpop.f32.mrf.mxu0 }
 0x10d   : > { %v863_v38 = vpop.f32.mrf.mxu1 }
 0x10e   : > { %v955_v39 = vadd.f32 %v901_v35, %v425_v33  ;;  %v864_v40 = vadd.f32 %v863_v38, %v774_v36  ;;  %v416_v33 = vld [vmem:[%s1978_s2 + $0x40] sm:$0xff] }
 0x110   : > { %987 = vst [vmem:[%s1978_s2 + $0x88] sm:$0xff] %v955_v39  ;;  %v940_v41 = vadd.f32 %v864_v40, %v410_v37  ;;  %v432_v39 = vld [vmem:[%s1978_s2 + $0xc0] sm:$0xff] }
 0x112   : > { %972 = vst [vmem:[%s1978_s2 + $0x10] sm:$0xff] %v940_v41  ;;  %v814_v42 = vpop.f32.mrf.mxu2 }
 0x113   : > { %v903_v44 = vpop.f32.mrf.mxu3 }
 0x114   : > { %v904_v45 = vadd.f32 %v903_v44, %v814_v42  ;;  %v776_v46 = vpop.f32.mrf.mxu0 }
 0x115   : > { %v865_v48 = vpop.f32.mrf.mxu1 }
 0x116   : > { %v956_v49 = vadd.f32 %v904_v45, %v426_v43  ;;  %v866_v50 = vadd.f32 %v865_v48, %v776_v46  ;;  %v417_v43 = vld [vmem:[%s1978_s2 + $0x48] sm:$0xff] }
 0x118   : > { %988 = vst [vmem:[%s1978_s2 + $0x90] sm:$0xff] %v956_v49  ;;  %v941_v51 = vadd.f32 %v866_v50, %v411_v47  ;;  %v433_v49 = vld [vmem:[%s1978_s2 + $0xc8] sm:$0xff] }
 0x11a   : > { %973 = vst [vmem:[%s1978_s2 + $0x18] sm:$0xff] %v941_v51  ;;  %v816_v52 = vpop.f32.mrf.mxu2 }
 0x11b   : > { %v905_v54 = vpop.f32.mrf.mxu3 }
 0x11c   : > { %v906_v55 = vadd.f32 %v905_v54, %v816_v52  ;;  %v779_v56 = vpop.f32.mrf.mxu0 }
 0x11d   : > { %v868_v58 = vpop.f32.mrf.mxu1 }
 0x11e   : > { %v957_v59 = vadd.f32 %v906_v55, %v427_v53  ;;  %v869_v60 = vadd.f32 %v868_v58, %v779_v56  ;;  %v418_v53 = vld [vmem:[%s1978_s2 + $0x50] sm:$0xff] }
 0x120   : > { %989 = vst [vmem:[%s1978_s2 + $0x98] sm:$0xff] %v957_v59  ;;  %v942_v61 = vadd.f32 %v869_v60, %v412_v57  ;;  %v434_v59 = vld [vmem:[%s1978_s2 + $0xd0] sm:$0xff] }
 0x122   : > { %974 = vst [vmem:[%s1978_s2 + $0x20] sm:$0xff] %v942_v61  ;;  %v819_v62 = vpop.f32.mrf.mxu2 }
 0x123   : > { %v908_v0 = vpop.f32.mrf.mxu3 }
 0x124   : > { %v909_v1 = vadd.f32 %v908_v0, %v819_v62  ;;  %v781_v2 = vpop.f32.mrf.mxu0 }
 0x125   : > { %v870_v4 = vpop.f32.mrf.mxu1 }
 0x126   : > { %v958_v5 = vadd.f32 %v909_v1, %v428_v63  ;;  %v871_v6 = vadd.f32 %v870_v4, %v781_v2  ;;  %v419_v63 = vld [vmem:[%s1978_s2 + $0x58] sm:$0xff] }
 0x128   : > { %990 = vst [vmem:[%s1978_s2 + $0xa0] sm:$0xff] %v958_v5  ;;  %v943_v7 = vadd.f32 %v871_v6, %v413_v3  ;;  %v435_v5 = vld [vmem:[%s1978_s2 + $0xd8] sm:$0xff] }
 0x12a   : > { %975 = vst [vmem:[%s1978_s2 + $0x28] sm:$0xff] %v943_v7  ;;  %v821_v8 = vpop.f32.mrf.mxu2 }
 0x12b   : > { %v910_v10 = vpop.f32.mrf.mxu3 }
 0x12c   : > { %v911_v11 = vadd.f32 %v910_v10, %v821_v8  ;;  %v784_v12 = vpop.f32.mrf.mxu0 }
 0x12d   : > { %v873_v14 = vpop.f32.mrf.mxu1 }
 0x12e   : > { %v959_v15 = vadd.f32 %v911_v11, %v429_v9  ;;  %v874_v16 = vadd.f32 %v873_v14, %v784_v12  ;;  %v420_v9 = vld [vmem:[%s1978_s2 + $0x60] sm:$0xff] }
 0x130   : > { %991 = vst [vmem:[%s1978_s2 + $0xa8] sm:$0xff] %v959_v15  ;;  %v944_v17 = vadd.f32 %v874_v16, %v414_v13  ;;  %v436_v15 = vld [vmem:[%s1978_s2 + $0xe0] sm:$0xff] }
 0x132   : > { %976 = vst [vmem:[%s1978_s2 + $0x30] sm:$0xff] %v944_v17  ;;  %v824_v18 = vpop.f32.mrf.mxu2 }
 0x133   : > { %v913_v20 = vpop.f32.mrf.mxu3 }
 0x134   : > { %v914_v21 = vadd.f32 %v913_v20, %v824_v18  ;;  %v786_v22 = vpop.f32.mrf.mxu0 }
 0x135   : > { %v875_v24 = vpop.f32.mrf.mxu1 }
 0x136   : > { %v960_v25 = vadd.f32 %v914_v21, %v430_v19  ;;  %v876_v26 = vadd.f32 %v875_v24, %v786_v22  ;;  %v421_v19 = vld [vmem:[%s1978_s2 + $0x68] sm:$0xff] }
 0x138   : > { %992 = vst [vmem:[%s1978_s2 + $0xb0] sm:$0xff] %v960_v25  ;;  %v945_v27 = vadd.f32 %v876_v26, %v415_v23  ;;  %v437_v25 = vld [vmem:[%s1978_s2 + $0xe8] sm:$0xff] }
 0x13a   : > { %977 = vst [vmem:[%s1978_s2 + $0x38] sm:$0xff] %v945_v27  ;;  %v826_v28 = vpop.f32.mrf.mxu2 }
 0x13b   : > { %v915_v30 = vpop.f32.mrf.mxu3 }
 0x13c   : > { %v916_v31 = vadd.f32 %v915_v30, %v826_v28  ;;  %v789_v32 = vpop.f32.mrf.mxu0 }
 0x13d   : > { %v878_v34 = vpop.f32.mrf.mxu1 }
 0x13e   : > { %v961_v35 = vadd.f32 %v916_v31, %v431_v29  ;;  %v879_v36 = vadd.f32 %v878_v34, %v789_v32  ;;  %v422_v29 = vld [vmem:[%s1978_s2 + $0x70] sm:$0xff] }
 0x140   : > { %993 = vst [vmem:[%s1978_s2 + $0xb8] sm:$0xff] %v961_v35  ;;  %v946_v37 = vadd.f32 %v879_v36, %v416_v33  ;;  %v438_v35 = vld [vmem:[%s1978_s2 + $0xf0] sm:$0xff] }
 0x142   : > { %978 = vst [vmem:[%s1978_s2 + $0x40] sm:$0xff] %v946_v37  ;;  %v829_v38 = vpop.f32.mrf.mxu2 }
 0x143   : > { %v918_v40 = vpop.f32.mrf.mxu3 }
 0x144   : > { %v919_v41 = vadd.f32 %v918_v40, %v829_v38  ;;  %v791_v42 = vpop.f32.mrf.mxu0 }
 0x145   : > { %v880_v44 = vpop.f32.mrf.mxu1 }
 0x146   : > { %v962_v45 = vadd.f32 %v919_v41, %v432_v39  ;;  %v881_v46 = vadd.f32 %v880_v44, %v791_v42  ;;  %v423_v39 = vld [vmem:[%s1978_s2 + $0x78] sm:$0xff] }
 0x148   : > { %994 = vst [vmem:[%s1978_s2 + $0xc0] sm:$0xff] %v962_v45  ;;  %v947_v47 = vadd.f32 %v881_v46, %v417_v43  ;;  %v439_v45 = vld [vmem:[%s1978_s2 + $0xf8] sm:$0xff] }
 0x14a   : > { %979 = vst [vmem:[%s1978_s2 + $0x48] sm:$0xff] %v947_v47  ;;  %v831_v48 = vpop.f32.mrf.mxu2 }
 0x14b   : > { %v920_v50 = vpop.f32.mrf.mxu3 }
 0x14c   : > { %v921_v51 = vadd.f32 %v920_v50, %v831_v48  ;;  %v794_v52 = vpop.f32.mrf.mxu0 }
 0x14d   : > { %v883_v54 = vpop.f32.mrf.mxu1 }
 0x14e   : > { %v963_v55 = vadd.f32 %v921_v51, %v433_v49  ;;  %v884_v56 = vadd.f32 %v883_v54, %v794_v52 }
 0x150   : > { %995 = vst [vmem:[%s1978_s2 + $0xc8] sm:$0xff] %v963_v55  ;;  %v948_v57 = vadd.f32 %v884_v56, %v418_v53 }
 0x152   : > { %980 = vst [vmem:[%s1978_s2 + $0x50] sm:$0xff] %v948_v57  ;;  %v834_v58 = vpop.f32.mrf.mxu2 }
 0x153   : > { %v923_v60 = vpop.f32.mrf.mxu3 }
 0x154   : > { %v924_v61 = vadd.f32 %v923_v60, %v834_v58  ;;  %v796_v62 = vpop.f32.mrf.mxu0 }
 0x155   : > { %v885_v0 = vpop.f32.mrf.mxu1 }
 0x156   : > { %v964_v1 = vadd.f32 %v924_v61, %v434_v59  ;;  %v886_v2 = vadd.f32 %v885_v0, %v796_v62 }
 0x158   : > { %996 = vst [vmem:[%s1978_s2 + $0xd0] sm:$0xff] %v964_v1  ;;  %v949_v3 = vadd.f32 %v886_v2, %v419_v63 }
 0x15a   : > { %981 = vst [vmem:[%s1978_s2 + $0x58] sm:$0xff] %v949_v3  ;;  %v836_v4 = vpop.f32.mrf.mxu2 }
 0x15b   : > { %v925_v6 = vpop.f32.mrf.mxu3 }
 0x15c   : > { %v926_v7 = vadd.f32 %v925_v6, %v836_v4  ;;  %v799_v8 = vpop.f32.mrf.mxu0 }
 0x15d   : > { %v888_v10 = vpop.f32.mrf.mxu1 }
 0x15e   : > { %v965_v11 = vadd.f32 %v926_v7, %v435_v5  ;;  %v889_v12 = vadd.f32 %v888_v10, %v799_v8 }
 0x160   : > { %997 = vst [vmem:[%s1978_s2 + $0xd8] sm:$0xff] %v965_v11  ;;  %v950_v13 = vadd.f32 %v889_v12, %v420_v9 }
 0x162   : > { %982 = vst [vmem:[%s1978_s2 + $0x60] sm:$0xff] %v950_v13  ;;  %v839_v14 = vpop.f32.mrf.mxu2 }
 0x163   : > { %v928_v16 = vpop.f32.mrf.mxu3 }
 0x164   : > { %v929_v17 = vadd.f32 %v928_v16, %v839_v14  ;;  %v801_v18 = vpop.f32.mrf.mxu0 }
 0x165   : > { %v890_v20 = vpop.f32.mrf.mxu1 }
 0x166   : > { %v966_v21 = vadd.f32 %v929_v17, %v436_v15  ;;  %v891_v22 = vadd.f32 %v890_v20, %v801_v18 }
 0x168   : > { %998 = vst [vmem:[%s1978_s2 + $0xe0] sm:$0xff] %v966_v21  ;;  %v951_v23 = vadd.f32 %v891_v22, %v421_v19 }
 0x16a   : > { %983 = vst [vmem:[%s1978_s2 + $0x68] sm:$0xff] %v951_v23  ;;  %v841_v24 = vpop.f32.mrf.mxu2 }
 0x16b   : > { %v930_v26 = vpop.f32.mrf.mxu3 }
 0x16c   : > { %v931_v27 = vadd.f32 %v930_v26, %v841_v24  ;;  %v804_v28 = vpop.f32.mrf.mxu0 }
 0x16d   : > { %v893_v30 = vpop.f32.mrf.mxu1 }
 0x16e   : > { %v967_v31 = vadd.f32 %v931_v27, %v437_v25  ;;  %v894_v32 = vadd.f32 %v893_v30, %v804_v28 }
 0x170   : > { %999 = vst [vmem:[%s1978_s2 + $0xe8] sm:$0xff] %v967_v31  ;;  %v952_v33 = vadd.f32 %v894_v32, %v422_v29 }
 0x172   : > { %984 = vst [vmem:[%s1978_s2 + $0x70] sm:$0xff] %v952_v33  ;;  %v844_v34 = vpop.f32.mrf.mxu2 }
 0x173   : > { %v933_v36 = vpop.f32.mrf.mxu3 }
 0x174   : > { %v934_v37 = vadd.f32 %v933_v36, %v844_v34  ;;  %v806_v38 = vpop.f32.mrf.mxu0 }
 0x175   : > { %v895_v40 = vpop.f32.mrf.mxu1 }
 0x176   : > { %v968_v41 = vadd.f32 %v934_v37, %v438_v35  ;;  %v896_v42 = vadd.f32 %v895_v40, %v806_v38 }
 0x178   : > { %1000 = vst [vmem:[%s1978_s2 + $0xf0] sm:$0xff] %v968_v41  ;;  %v953_v43 = vadd.f32 %v896_v42, %v423_v39 }
 0x17a   : > { %985 = vst [vmem:[%s1978_s2 + $0x78] sm:$0xff] %v953_v43  ;;  %v846_v44 = vpop.f32.mrf.mxu2 }
 0x17b   : > { %v935_v46 = vpop.f32.mrf.mxu3 }
 0x17c   : > { %v936_v47 = vadd.f32 %v935_v46, %v846_v44 }
 0x17e   : > { %v969_v48 = vadd.f32 %v936_v47, %v439_v45 }
 0x180   : > { %1001 = vst [vmem:[%s1978_s2 + $0xf8] sm:$0xff] %v969_v48 }
 0x181 PF: > { %s12_s13 = sadd.s32 1, %s1452_s13   ;;  %s1979_s9 = smov %s1440_s10 }
 0x182   : > { %p9_p11 = scmp.ge.s32.totalorder %s12_s13, 4   ;;  %s1980_s10 = smov %s1505_s17 }
 0x183   : > { %s1981_s11 = smov %s1448_s12  ;;  %s1982_s12 = smov %s1984_s14 }
 0x184   :  { %11 = sbr.rel (!%p9_p11) target bundleno = 3 (0x3), region = 108 }

// kernel: run.31
= control target key start
LH: loop header
LB: loop body
LE: loop exit
PB: predicated region body
PF: predicated region fallthrough
CT: control target
= control target key end

     0   :  { %s557_s1 = inlined_call_operand.vmem [shape: bf16[256,128], index: 1, kind: input, shape index: {}]   ;;  %s558_s0 = inlined_call_operand.vmem [shape: bf16[64,256], index: 0, kind: input, shape index: {}]   ;;  %s559_s2 = inlined_call_operand.vmem [shape: f32[64,128], index: 2, kind: output, shape index: {}]  }
   0x1   :  { %v396_v0 = vld [vmem:[%s557_s1 + $0x38] sm:$0xff]  ;;  %v395_v2 = vld [vmem:[%s557_s1 + $0x30] sm:$0xff]  ;;  %v394_v4 = vld [vmem:[%s557_s1 + $0x28] sm:$0xff] }
   0x2   :  { %v404_v1 = vld [vmem:[%s557_s1 + $0x78] sm:$0xff]  ;;  %207 = vmatpush.bf16.msra.mxu0 %v396_v0  ;;  %405 = vmatpush.bf16.msra.mxu2 %v396_v0  ;;  %v403_v3 = vld [vmem:[%s557_s1 + $0x70] sm:$0xff]  ;;  %v402_v5 = vld [vmem:[%s557_s1 + $0x68] sm:$0xff] }
   0x3   :  { %236 = vmatpush.bf16.msra.mxu1 %v404_v1  ;;  %413 = vmatpush.bf16.msra.mxu3 %v404_v1  ;;  %v393_v6 = vld [vmem:[%s557_s1 + $0x20] sm:$0xff]  ;;  %v392_v8 = vld [vmem:[%s557_s1 + $0x18] sm:$0xff]  ;;  %v391_v10 = vld [vmem:[%s557_s1 + $0x10] sm:$0xff] }
   0x4   :  { %v401_v7 = vld [vmem:[%s557_s1 + $0x60] sm:$0xff]  ;;  %v400_v9 = vld [vmem:[%s557_s1 + $0x58] sm:$0xff]  ;;  %v399_v11 = vld [vmem:[%s557_s1 + $0x50] sm:$0xff] }
   0x5   :  { %v390_v12 = vld [vmem:[%s557_s1 + $0x8] sm:$0xff]  ;;  %v389_v14 = vld [vmem:[%s557_s1] sm:$0xff]  ;;  %v295_v28 = vld [vmem:[%s558_s0 + $0x10] sm:$0xf] }
   0x6   :  { %208 = vmatpush.bf16.msra.mxu0 %v395_v2  ;;  %406 = vmatpush.bf16.msra.mxu2 %v395_v2  ;;  %v398_v13 = vld [vmem:[%s557_s1 + $0x48] sm:$0xff]  ;;  %v397_v15 = vld [vmem:[%s557_s1 + $0x40] sm:$0xff]  ;;  %v384_v29 = vld [vmem:[%s558_s0 + $0x14] sm:$0xf0] }
   0x7   :  { %237 = vmatpush.bf16.msra.mxu1 %v403_v3  ;;  %414 = vmatpush.bf16.msra.mxu3 %v403_v3  ;;  %v287_v16 = vld [vmem:[%s558_s0] sm:$0xf]  ;;  %v382_v17 = vld [vmem:[%s558_s0 + $0x4] sm:$0xf0]  ;;  %v381_v20 = vld [vmem:[%s558_s0 + $0x4] sm:$0xf]  ;;  %v296_v36 = vor.u32 %v384_v29, %v295_v28 }
   0x8   :  { %v303_v18 = vld [vmem:[%s558_s0 + $0x20] sm:$0xf]  ;;  %v386_v19 = vld [vmem:[%s558_s0 + $0x24] sm:$0xf0]  ;;  %v289_v21 = vld [vmem:[%s558_s0 + $0x8] sm:$0xf0]  ;;  %v288_v24 = vor.u32 %v382_v17, %v287_v16 }
   0x9   :  { %v385_v22 = vld [vmem:[%s558_s0 + $0x24] sm:$0xf]  ;;  %v305_v23 = vld [vmem:[%s558_s0 + $0x28] sm:$0xf0]  ;;  %v304_v25 = vor.u32 %v386_v19, %v303_v18  ;;  %v292_v26 = vor.u32 %v381_v20, %v289_v21  ;;  %v311_v30 = vld [vmem:[%s558_s0 + $0x30] sm:$0xf] }
   0xa   :  { %209 = vmatpush.bf16.msra.mxu0 %v394_v4  ;;  %407 = vmatpush.bf16.msra.mxu2 %v394_v4  ;;  %v308_v27 = vor.u32 %v385_v22, %v305_v23  ;;  %v388_v31 = vld [vmem:[%s558_s0 + $0x34] sm:$0xf0]  ;;  %v383_v32 = vld [vmem:[%s558_s0 + $0x14] sm:$0xf]  ;;  %v297_v33 = vld [vmem:[%s558_s0 + $0x18] sm:$0xf0] }
   0xb   :  { %238 = vmatpush.bf16.msra.mxu1 %v402_v5  ;;  %415 = vmatpush.bf16.msra.mxu3 %v402_v5  ;;  %v387_v34 = vld [vmem:[%s558_s0 + $0x34] sm:$0xf]  ;;  %v313_v35 = vld [vmem:[%s558_s0 + $0x38] sm:$0xf0]  ;;  %v312_v37 = vor.u32 %v388_v31, %v311_v30  ;;  %v300_v38 = vor.u32 %v383_v32, %v297_v33 }
   0xc   :  { %v316_v39 = vor.u32 %v387_v34, %v313_v35 }
   0xe   :  { %210 = vmatpush.bf16.msra.mxu0 %v393_v6  ;;  %408 = vmatpush.bf16.msra.mxu2 %v393_v6 }
   0xf   :  { %239 = vmatpush.bf16.msra.mxu1 %v401_v7  ;;  %416 = vmatpush.bf16.msra.mxu3 %v401_v7 }
  0x12   :  { %211 = vmatpush.bf16.msra.mxu0 %v392_v8  ;;  %409 = vmatpush.bf16.msra.mxu2 %v392_v8 }
  0x13   :  { %240 = vmatpush.bf16.msra.mxu1 %v400_v9  ;;  %417 = vmatpush.bf16.msra.mxu3 %v400_v9 }
  0x16   :  { %212 = vmatpush.bf16.msra.mxu0 %v391_v10  ;;  %410 = vmatpush.bf16.msra.mxu2 %v391_v10 }
  0x17   :  { %241 = vmatpush.bf16.msra.mxu1 %v399_v11  ;;  %418 = vmatpush.bf16.msra.mxu3 %v399_v11 }
  0x1a   :  { %213 = vmatpush.bf16.msra.mxu0 %v390_v12  ;;  %411 = vmatpush.bf16.msra.mxu2 %v390_v12 }
  0x1b   :  { %242 = vmatpush.bf16.msra.mxu1 %v398_v13  ;;  %419 = vmatpush.bf16.msra.mxu3 %v398_v13 }
  0x1e   :  { %214 = vmatpush.bf16.msra.mxu0 %v389_v14  ;;  %412 = vmatpush.bf16.msra.mxu2 %v389_v14 }
  0x1f   :  { %243 = vmatpush.bf16.msra.mxu1 %v397_v15  ;;  %420 = vmatpush.bf16.msra.mxu3 %v397_v15 }
  0x21   :  { %215 = vmatmul.bf16.vlgmr.msra.gmra.mxu0 %v288_v24  ;;  %225 = vmatmul.bf16.vlgmr.msra.gmra.mxu2 %v304_v25 }
  0x22   :  { %244 = vmatmul.bf16.vlgmr.msra.gmra.mxu1 %v292_v26  ;;  %254 = vmatmul.bf16.vlgmr.msra.gmra.mxu3 %v308_v27 }
  0x31   :  { %220 = vmatmul.bf16.gmra.mxu0 %v296_v36  ;;  %230 = vmatmul.bf16.gmra.mxu2 %v312_v37 }
  0x32   :  { %249 = vmatmul.bf16.gmra.mxu1 %v300_v38  ;;  %259 = vmatmul.bf16.gmra.mxu3 %v316_v39 }
  0x9e   :  { %v216_v40 = vpop.f32.mrf.mxu0 }
  0x9f   :  { %v245_v41 = vpop.f32.mrf.mxu1 }
  0xa0   :  { %v246_v42 = vadd.f32 %v245_v41, %v216_v40 }
  0xa2   :  { %273 = vst [vmem:[%s559_s2] sm:$0xff] %v246_v42 }
  0xa4   :  { %v226_v43 = vpop.f32.mrf.mxu2 }
  0xa5   :  { %v255_v44 = vpop.f32.mrf.mxu3 }
  0xa6   :  { %v256_v45 = vadd.f32 %v255_v44, %v226_v43  ;;  %v218_v46 = vpop.f32.mrf.mxu0 }
  0xa7   :  { %v247_v47 = vpop.f32.mrf.mxu1 }
  0xa8   :  { %v248_v48 = vadd.f32 %v247_v47, %v218_v46  ;;  %277 = vst [vmem:[%s559_s2 + $0x20] sm:$0xff] %v256_v45 }
  0xaa   :  { %274 = vst [vmem:[%s559_s2 + $0x8] sm:$0xff] %v248_v48 }
  0xac   :  { %v228_v49 = vpop.f32.mrf.mxu2 }
  0xad   :  { %v257_v50 = vpop.f32.mrf.mxu3 }
  0xae   :  { %v258_v51 = vadd.f32 %v257_v50, %v228_v49  ;;  %v221_v52 = vpop.f32.mrf.mxu0 }
  0xaf   :  { %v250_v53 = vpop.f32.mrf.mxu1 }
  0xb0   :  { %v251_v54 = vadd.f32 %v250_v53, %v221_v52  ;;  %278 = vst [vmem:[%s559_s2 + $0x28] sm:$0xff] %v258_v51 }
  0xb2   :  { %275 = vst [vmem:[%s559_s2 + $0x10] sm:$0xff] %v251_v54 }
  0xb4   :  { %v231_v55 = vpop.f32.mrf.mxu2 }
  0xb5   :  { %v260_v56 = vpop.f32.mrf.mxu3 }
  0xb6   :  { %v261_v57 = vadd.f32 %v260_v56, %v231_v55  ;;  %v223_v58 = vpop.f32.mrf.mxu0 }
  0xb7   :  { %v252_v59 = vpop.f32.mrf.mxu1 }
  0xb8   :  { %v253_v60 = vadd.f32 %v252_v59, %v223_v58  ;;  %279 = vst [vmem:[%s559_s2 + $0x30] sm:$0xff] %v261_v57 }
  0xba   :  { %276 = vst [vmem:[%s559_s2 + $0x18] sm:$0xff] %v253_v60 }
  0xbc   :  { %v233_v61 = vpop.f32.mrf.mxu2 }
  0xbd   :  { %v262_v62 = vpop.f32.mrf.mxu3 }
  0xbe   :  { %v263_v63 = vadd.f32 %v262_v62, %v233_v61 }
  0xc0   :  { %280 = vst [vmem:[%s559_s2 + $0x38] sm:$0xff] %v263_v63 }

// kernel: run.32
= control target key start
LH: loop header
LB: loop body
LE: loop exit
PB: predicated region body
PF: predicated region fallthrough
CT: control target
= control target key end

     0   :  { %s734_s9 = smov 0   ;;  %s736_s10 = smov 0   ;;  %s842_s0 = inlined_call_operand.vmem [shape: bf16[16,512], index: 0, kind: input, shape index: {}]   ;;  %s843_s1 = inlined_call_operand.vmem [shape: bf16[512,128], index: 1, kind: input, shape index: {}]   ;;  %s844_s2 = inlined_call_operand.vmem [shape: f32[16,128], index: 2, kind: output, shape index: {}]  }
   0x1   :  { %s738_s11 = smov 0   ;;  %s740_s12 = smov 0  }
   0x2   :  { %s742_s13 = smov 0  }
   0x3 LB: > { %s24_s14 = sadd.s32 1, %s712_s12  ;;  %p47_p1 = scmp.ne.s32.totalorder %s704_s10, %s700_s9  ;;  %s716_s13 = sphi %s742_s13, %s12_s13   ;;  %s712_s12 = sphi %s740_s12, %s848_s12   ;;  %s708_s11 = sphi %s738_s11, %s847_s11   ;;  %s704_s10 = sphi %s736_s10, %s846_s10   ;;  %s700_s9 = sphi %s734_s9, %s845_s9  }
   0x4   : > { %p25_p0 = scmp.ge.s32.totalorder %s24_s14, 2  ;;  %p48_p2 = scmp.eq.s32.totalorder %s716_s13, 0 }
   0x5   : > { %s40_s16 = sadd.s32 1, %s704_s10  ;;  %p533_p5 = scmp.ge.s32.totalorder %s716_s13, 2 }
   0x6   : > { %s850_s14 = smov (%p25_p0, %s24_s14), 0  ;;  %p49_p3 = por %p48_p2, %p47_p1 }
   0x7   : > { %s36_s15 = ssub.s32 %s712_s12, %s850_s14  ;;  %129 = sbr.rel (%p533_p5) target bundleno = 18 (0x12), region = 16 }
   0x8   : > { %p38_p4 = scmp.eq.s32.totalorder %s36_s15, 0 }
   0xa   : > { %s769_s17 = scalar_select %p38_p4, %s704_s10, %s40_s16  }
   0xc   : > { %132 = sbr.rel (!%p49_p3) target bundleno = 18 (0x12), region = 20  ;;  %s134_s18 = sand.u32 (%p49_p3), 1, %s704_s10  }
   0xd   : > { %s618_s19 = sshll.u32 (%p49_p3), %s712_s12, 3  ;;  %s534_s20 = sshll.u32 (%p49_p3), %s134_s18, 4 }
   0xe   : > { %s142_s23 = scalar_lea.vmem (%p49_p3), %s842_s0, %s618_s19  ;;  %s136_s24 = scalar_lea.vmem (%p49_p3), [#allocation2], %s534_s20 }
   0xf   : > { %v173_v0 = vld [vmem:[%s142_s23] sm:$0xff] (%p49_p3)  ;;  %v175_v1 = vld [vmem:[%s142_s23 + $0x10] sm:$0xff] (%p49_p3) }
  0x10   : > { %174 = vst [vmem:[%s136_s24] sm:$0xff] (%p49_p3), %v173_v0 }
  0x11   : > { %176 = vst [vmem:[%s136_s24 + $0x8] sm:$0xff] %v175_v1 }
  0x12 PF: > { %p537_p6 = scmp.ge.s32.totalorder %s716_s13, 1  ;;  %p193_p7 = scmp.lt.s32.totalorder %s716_s13, 3 }
  0x14   : > { %p194_p8 = pnand %p537_p6, %p193_p7 }
  0x15   : > { %s200_s25 = sand.u32 (!%p194_p8), 1, %s700_s9   ;;  %s539_s26 = sshll.u32 (!%p194_p8), %s708_s11, 5 }
  0x16   : > { %197 = sbr.rel (%p194_p8) target bundleno = 207 (0xcf), region = 62  ;;  %s538_s27 = sshll.u32 (!%p194_p8), %s200_s25, 4 }
  0x17   : > { %p235_p9 = scmp.lt.s32.totalorder (!%p194_p8), %s539_s26, 63  ;;  %s786_s4 = scalar_lea.vmem (!%p194_p8), [#allocation2], %s538_s27 }
  0x18   : > { %p541_p10 = scmp.ne.s32.totalorder (!%p194_p8), %s708_s11, 0 }
  0x1b   : > { %s852_s26 = smov (!%p235_p9, %s539_s26), 63  ;;  %255 = sbr.rel (%p541_p10) target bundleno = 35 (0x23), region = 70 }
  0x1c   : > { %s540_s28 = sshll.u32 %s852_s26, 2 }
  0x1d   : > { %s784_s3 = scalar_lea.vmem %s843_s1, %s540_s28 }
  0x20   : > { %v718_v2 = vmov 0.0  }
  0x21   : > { %256 = vst [vmem:[%s844_s2] sm:$0xff] %v718_v2 }
  0x22   : > { %257 = vst [vmem:[%s844_s2 + $0x8] sm:$0xff] %v718_v2 }
  0x23 PF: > { %v628_v3 = vld [vmem:[%s784_s3 + $0x38] sm:$0xff]  ;;  %v627_v5 = vld [vmem:[%s784_s3 + $0x30] sm:$0xff]  ;;  %v626_v7 = vld [vmem:[%s784_s3 + $0x28] sm:$0xff] }
  0x24   : > { %v636_v4 = vld [vmem:[%s784_s3 + $0x78] sm:$0xff]  ;;  %400 = vmatpush.bf16.msra.mxu0 %v628_v3  ;;  %v635_v6 = vld [vmem:[%s784_s3 + $0x70] sm:$0xff]  ;;  %v634_v8 = vld [vmem:[%s784_s3 + $0x68] sm:$0xff] }
  0x25   : > { %414 = vmatpush.bf16.msra.mxu1 %v636_v4  ;;  %v625_v9 = vld [vmem:[%s784_s3 + $0x20] sm:$0xff]  ;;  %v624_v11 = vld [vmem:[%s784_s3 + $0x18] sm:$0xff]  ;;  %v623_v13 = vld [vmem:[%s784_s3 + $0x10] sm:$0xff] }
  0x26   : > { %v633_v10 = vld [vmem:[%s784_s3 + $0x60] sm:$0xff]  ;;  %v632_v12 = vld [vmem:[%s784_s3 + $0x58] sm:$0xff]  ;;  %v631_v14 = vld [vmem:[%s784_s3 + $0x50] sm:$0xff] }
  0x27   : > { %v622_v15 = vld [vmem:[%s784_s3 + $0x8] sm:$0xff]  ;;  %v621_v17 = vld [vmem:[%s784_s3] sm:$0xff] }
  0x28   : > { %401 = vmatpush.bf16.msra.mxu0 %v627_v5  ;;  %v630_v16 = vld [vmem:[%s784_s3 + $0x48] sm:$0xff]  ;;  %v629_v18 = vld [vmem:[%s784_s3 + $0x40] sm:$0xff] }
  0x29   : > { %415 = vmatpush.bf16.msra.mxu1 %v635_v6  ;;  %v544_v19 = vld [vmem:[%s786_s4] sm:$0xf]  ;;  %v620_v20 = vld [vmem:[%s786_s4 + $0x4] sm:$0xf0]  ;;  %v619_v21 = vld [vmem:[%s786_s4 + $0x4] sm:$0xf] }
  0x2a   : > { %v546_v22 = vld [vmem:[%s786_s4 + $0x8] sm:$0xf0]  ;;  %v545_v23 = vor.u32 %v620_v20, %v544_v19  ;;  %v258_v26 = vld [vmem:[%s844_s2] sm:$0xff] }
  0x2b   : > { %v549_v24 = vor.u32 %v619_v21, %v546_v22  ;;  %v259_v31 = vld [vmem:[%s844_s2 + $0x8] sm:$0xff] }
  0x2c   : > { %402 = vmatpush.bf16.msra.mxu0 %v626_v7 }
  0x2d   : > { %416 = vmatpush.bf16.msra.mxu1 %v634_v8 }
  0x30   : > { %403 = vmatpush.bf16.msra.mxu0 %v625_v9 }
  0x31   : > { %417 = vmatpush.bf16.msra.mxu1 %v633_v10 }
  0x34   : > { %404 = vmatpush.bf16.msra.mxu0 %v624_v11 }
  0x35   : > { %418 = vmatpush.bf16.msra.mxu1 %v632_v12 }
  0x38   : > { %405 = vmatpush.bf16.msra.mxu0 %v623_v13 }
  0x39   : > { %419 = vmatpush.bf16.msra.mxu1 %v631_v14 }
  0x3c   : > { %406 = vmatpush.bf16.msra.mxu0 %v622_v15 }
  0x3d   : > { %420 = vmatpush.bf16.msra.mxu1 %v630_v16 }
  0x40   : > { %407 = vmatpush.bf16.msra.mxu0 %v621_v17 }
  0x41   : > { %421 = vmatpush.bf16.msra.mxu1 %v629_v18 }
  0x43   : > { %408 = vmatmul.bf16.vlgmr.msra.gmra.mxu0 %v545_v23 }
  0x44   : > { %422 = vmatmul.bf16.vlgmr.msra.gmra.mxu1 %v549_v24 }
  0xc0   : > { %v409_v25 = vpop.f32.mrf.mxu0 }
  0xc1   : > { %v423_v27 = vpop.f32.mrf.mxu1 }
  0xc2   : > { %v424_v28 = vadd.f32 %v423_v27, %v409_v25 }
  0xc4   : > { %v428_v29 = vadd.f32 %v424_v28, %v258_v26 }
  0xc6   : > { %430 = vst [vmem:[%s844_s2] sm:$0xff] %v428_v29 }
  0xc8   : > { %v411_v30 = vpop.f32.mrf.mxu0 }
  0xc9   : > { %v425_v32 = vpop.f32.mrf.mxu1 }
  0xca   : > { %v426_v33 = vadd.f32 %v425_v32, %v411_v30 }
  0xcc   : > { %v429_v34 = vadd.f32 %v426_v33, %v259_v31 }
  0xce   : > { %431 = vst [vmem:[%s844_s2 + $0x8] sm:$0xff] %v429_v34 }
  0xcf PF: > { %s12_s13 = sadd.s32 1, %s716_s13   ;;  %s845_s9 = smov %s704_s10 }
  0xd0   : > { %p9_p11 = scmp.ge.s32.totalorder %s12_s13, 4   ;;  %s846_s10 = smov %s769_s17 }
  0xd1   : > { %s847_s11 = smov %s712_s12  ;;  %s848_s12 = smov %s850_s14 }
  0xd2   :  { %11 = sbr.rel (!%p9_p11) target bundleno = 3 (0x3), region = 108 }

// kernel: run.33
= control target key start
LH: loop header
LB: loop body
LE: loop exit
PB: predicated region body
PF: predicated region fallthrough
CT: control target
= control target key end

     0   :  { %s1197_s9 = smov 0   ;;  %s1199_s10 = smov 0   ;;  %s1514_s0 = inlined_call_operand.vmem [shape: bf16[16,1024], index: 0, kind: input, shape index: {}]   ;;  %s1515_s1 = inlined_call_operand.vmem [shape: bf16[1024,512], index: 1, kind: input, shape index: {}]   ;;  %s1516_s2 = inlined_call_operand.vmem [shape: f32[16,512], index: 2, kind: output, shape index: {}]  }
   0x1   :  { %s1201_s11 = smov 0   ;;  %s1203_s12 = smov 0  }
   0x2   :  { %s1205_s13 = smov 0   ;;  %s1207_s14 = smov 0  }
   0x3   :  { %s1209_s15 = smov 0   ;;  %s1211_s16 = smov 0  }
   0x4   :  { %s1213_s17 = smov 0   ;;  %s1215_s18 = smov 0  }
   0x5   :  { %s1217_s19 = smov 0  }
   0x6 LB: > { %s809_s20 = sadd.s32 4294967295, %s1179_s19   ;;  %s24_s21 = sadd.s32 1, %s1171_s17  ;;  %s1179_s19 = sphi %s1217_s19, %s12_s19   ;;  %s1175_s18 = sphi %s1215_s18, %s1535_s18   ;;  %s1171_s17 = sphi %s1213_s17, %s1534_s17   ;;  %s1167_s16 = sphi %s1211_s16, %s1533_s16   ;;  %s1163_s15 = sphi %s1209_s15, %s1532_s15   ;;  %s1159_s14 = sphi %s1207_s14, %s1531_s14   ;;  %s1155_s13 = sphi %s1205_s13, %s1530_s13   ;;  %s1151_s12 = sphi %s1203_s12, %s1529_s12   ;;  %s1147_s11 = sphi %s1201_s11, %s1528_s11   ;;  %s1143_s10 = sphi %s1199_s10, %s1527_s10   ;;  %s1139_s9 = sphi %s1197_s9, %s1526_s9  }
   0x7   : > { %p25_p0 = scmp.ge.s32.totalorder %s24_s21, 4  ;;  %s27_s22 = sadd.s32 1, %s1175_s18 }
   0x8   : > { %s40_s23 = sadd.s32 1, %s1159_s14  ;;  %p47_p1 = scmp.ne.s32.totalorder %s1159_s14, %s1155_s13 }
   0x9   : > { %s1537_s21 = smov (%p25_p0, %s24_s21), 0  ;;  %s1539_s22 = smov (!%p25_p0, %s27_s22), %s1175_s18 }
   0xa   : > { %1519 = sst [smem:[#allocation5_spill]] %s1537_s21  ;;  %s36_s24 = ssub.s32 %s1171_s17, %s1537_s21 }
   0xb   : > { %p48_p2 = scmp.eq.s32.totalorder %s1179_s19, 0  ;;  %p29_p3 = scmp.ge.s32.totalorder %s1539_s22, 2 }
   0xc   : > { %p38_p4 = scmp.eq.s32.totalorder %s36_s24, 0  ;;  %s68_s26 = sadd.s32 1, %s1151_s12 }
   0xd   : > { %p1264_p5 = por %p48_p2, %p47_p1  ;;  %s1541_s22 = smov (%p29_p3, %s1539_s22), 0 }
   0xe   : > { %1521 = sst [smem:[#allocation6_spill]] %s1541_s22  ;;  %s64_s28 = ssub.s32 %s1175_s18, %s1541_s22 }
   0xf   : > { %s1272_s27 = scalar_select %p38_p4, %s1159_s14, %s40_s23  }
  0x10   : > { %p75_p6 = scmp.ne.s32.totalorder %s1151_s12, %s1147_s11  ;;  %s65_s29 = sor.u32 %s64_s28, %s36_s24 }
  0x11   : > { %p94_p7 = scmp.eq.s32.totalorder %s64_s28, 0  ;;  %p66_p8 = scmp.eq.s32.totalorder %s65_s29, 0 }
  0x12   : > { %p1278_p9 = por %p75_p6, %p48_p2  ;;  %s96_s3 = sadd.s32 1, %s1143_s10 }
  0x13   : > { %p106_p10 = scmp.ne.s32.totalorder %s1143_s10, %s1139_s9  ;;  %p107_p11 = scmp.eq.s32.totalorder %s809_s20, 7 }
  0x14   : > { %s1286_s4 = scalar_select %p66_p8, %s1151_s12, %s68_s26  }
  0x15   : > { %s1289_s5 = scalar_select %p94_p7, %s1143_s10, %s96_s3  }
  0x16   : > { %p1291_p12 = por %p107_p11, %p106_p10  ;;  %p812_p13 = scmp.ge.s32.totalorder %s1179_s19, 8 }
  0x18   : > { %129 = sbr.rel (%p812_p13) target bundleno = 74 (0x4a), region = 16 }
  0x1d   : > { %132 = sbr.rel (!%p1264_p5) target bundleno = 35 (0x23), region = 20  ;;  %s134_s7 = sand.u32 (%p1264_p5), 1, %s1159_s14  }
  0x1e   : > { %s967_s8 = sshll.u32 (%p1264_p5), %s1171_s17, 3  ;;  %s813_s23 = sshll.u32 (%p1264_p5), %s134_s7, 4 }
  0x1f   : > { %s142_s28 = scalar_lea.vmem (%p1264_p5), %s1514_s0, %s967_s8  ;;  %s136_s20 = scalar_lea.vmem (%p1264_p5), [#allocation2], %s813_s23 }
  0x20   : > { %v173_v0 = vld [vmem:[%s142_s28] sm:$0xff] (%p1264_p5) }
  0x21   : > { %v175_v1 = vld [vmem:[%s142_s28 + $0x20] sm:$0xff] (%p1264_p5)  ;;  %174 = vst [vmem:[%s136_s20] sm:$0xff] (%p1264_p5), %v173_v0 }
  0x22   : > { %176 = vst [vmem:[%s136_s20 + $0x8] sm:$0xff] %v175_v1 }
  0x23 PF: > { %182 = sbr.rel (!%p1278_p9) target bundleno = 74 (0x4a), region = 58  ;;  %s184_s25 = sand.u32 (%p1278_p9), 1, %s1151_s12  }
  0x24   : > { %s818_s29 = sshll.u32 (%p1278_p9), %s1175_s18, 1  ;;  %s816_s3 = sshll.u32 (%p1278_p9), %s184_s25, 8 }
  0x25   : > { %s968_s7 = sshll.u32 (%p1278_p9), %s1171_s17, 7  ;;  %s1316_s30 = scalar_lea.vmem (%p1278_p9), [#allocation3], %s816_s3 }
  0x26   : > { %s190_s22 = sadd.s32 (%p1278_p9), %s968_s7, %s818_s29 }
  0x27   : > { %s820_s21 = sshll.u32 (%p1278_p9), %s190_s22, 2 }
  0x28   : > { %s1311_s26 = scalar_lea.vmem %s1515_s1, %s820_s21 }
  0x29   : > { %v283_v2 = vld [vmem:[%s1311_s26] sm:$0xff]  ;;  %v285_v3 = vld [vmem:[%s1311_s26 + $0x10] sm:$0xff] }
  0x2a   : > { %v287_v4 = vld [vmem:[%s1311_s26 + $0x20] sm:$0xff]  ;;  %284 = vst [vmem:[%s1316_s30] sm:$0xff] %v283_v2  ;;  %v289_v5 = vld [vmem:[%s1311_s26 + $0x30] sm:$0xff] }
  0x2b   : > { %286 = vst [vmem:[%s1316_s30 + $0x8] sm:$0xff] %v285_v3  ;;  %v291_v6 = vld [vmem:[%s1311_s26 + $0x40] sm:$0xff]  ;;  %v293_v7 = vld [vmem:[%s1311_s26 + $0x50] sm:$0xff] }
  0x2c   : > { %288 = vst [vmem:[%s1316_s30 + $0x10] sm:$0xff] %v287_v4  ;;  %v295_v8 = vld [vmem:[%s1311_s26 + $0x60] sm:$0xff]  ;;  %v297_v9 = vld [vmem:[%s1311_s26 + $0x70] sm:$0xff] }
  0x2d   : > { %290 = vst [vmem:[%s1316_s30 + $0x18] sm:$0xff] %v289_v5  ;;  %v299_v10 = vld [vmem:[%s1311_s26 + $0x80] sm:$0xff]  ;;  %v301_v11 = vld [vmem:[%s1311_s26 + $0x90] sm:$0xff] }
  0x2e   : > { %292 = vst [vmem:[%s1316_s30 + $0x20] sm:$0xff] %v291_v6  ;;  %v303_v12 = vld [vmem:[%s1311_s26 + $0xa0] sm:$0xff]  ;;  %v305_v13 = vld [vmem:[%s1311_s26 + $0xb0] sm:$0xff] }
  0x2f   : > { %294 = vst [vmem:[%s1316_s30 + $0x28] sm:$0xff] %v293_v7  ;;  %v307_v14 = vld [vmem:[%s1311_s26 + $0xc0] sm:$0xff]  ;;  %v309_v15 = vld [vmem:[%s1311_s26 + $0xd0] sm:$0xff] }
  0x30   : > { %296 = vst [vmem:[%s1316_s30 + $0x30] sm:$0xff] %v295_v8  ;;  %v311_v16 = vld [vmem:[%s1311_s26 + $0xe0] sm:$0xff]  ;;  %v313_v17 = vld [vmem:[%s1311_s26 + $0xf0] sm:$0xff] }
  0x31   : > { %298 = vst [vmem:[%s1316_s30 + $0x38] sm:$0xff] %v297_v9  ;;  %v315_v18 = vld [vmem:[%s1311_s26 + $0x100] sm:$0xff]  ;;  %v317_v19 = vld [vmem:[%s1311_s26 + $0x110] sm:$0xff] }
  0x32   : > { %300 = vst [vmem:[%s1316_s30 + $0x40] sm:$0xff] %v299_v10  ;;  %v319_v20 = vld [vmem:[%s1311_s26 + $0x120] sm:$0xff]  ;;  %v321_v21 = vld [vmem:[%s1311_s26 + $0x130] sm:$0xff] }
  0x33   : > { %302 = vst [vmem:[%s1316_s30 + $0x48] sm:$0xff] %v301_v11  ;;  %v323_v22 = vld [vmem:[%s1311_s26 + $0x140] sm:$0xff]  ;;  %v325_v23 = vld [vmem:[%s1311_s26 + $0x150] sm:$0xff] }
  0x34   : > { %304 = vst [vmem:[%s1316_s30 + $0x50] sm:$0xff] %v303_v12  ;;  %v327_v24 = vld [vmem:[%s1311_s26 + $0x160] sm:$0xff]  ;;  %v329_v25 = vld [vmem:[%s1311_s26 + $0x170] sm:$0xff] }
  0x35   : > { %306 = vst [vmem:[%s1316_s30 + $0x58] sm:$0xff] %v305_v13  ;;  %v331_v26 = vld [vmem:[%s1311_s26 + $0x180] sm:$0xff]  ;;  %v333_v27 = vld [vmem:[%s1311_s26 + $0x190] sm:$0xff] }
  0x36   : > { %308 = vst [vmem:[%s1316_s30 + $0x60] sm:$0xff] %v307_v14  ;;  %v335_v28 = vld [vmem:[%s1311_s26 + $0x1a0] sm:$0xff]  ;;  %v337_v29 = vld [vmem:[%s1311_s26 + $0x1b0] sm:$0xff] }
  0x37   : > { %310 = vst [vmem:[%s1316_s30 + $0x68] sm:$0xff] %v309_v15  ;;  %v339_v30 = vld [vmem:[%s1311_s26 + $0x1c0] sm:$0xff]  ;;  %v341_v31 = vld [vmem:[%s1311_s26 + $0x1d0] sm:$0xff] }
  0x38   : > { %312 = vst [vmem:[%s1316_s30 + $0x70] sm:$0xff] %v311_v16  ;;  %v343_v32 = vld [vmem:[%s1311_s26 + $0x1e0] sm:$0xff]  ;;  %v345_v33 = vld [vmem:[%s1311_s26 + $0x1f0] sm:$0xff] }
  0x39   : > { %314 = vst [vmem:[%s1316_s30 + $0x78] sm:$0xff] %v313_v17 }
  0x3a   : > { %316 = vst [vmem:[%s1316_s30 + $0x80] sm:$0xff] %v315_v18 }
  0x3b   : > { %318 = vst [vmem:[%s1316_s30 + $0x88] sm:$0xff] %v317_v19 }
  0x3c   : > { %320 = vst [vmem:[%s1316_s30 + $0x90] sm:$0xff] %v319_v20 }
  0x3d   : > { %322 = vst [vmem:[%s1316_s30 + $0x98] sm:$0xff] %v321_v21 }
  0x3e   : > { %324 = vst [vmem:[%s1316_s30 + $0xa0] sm:$0xff] %v323_v22 }
  0x3f   : > { %326 = vst [vmem:[%s1316_s30 + $0xa8] sm:$0xff] %v325_v23 }
  0x40   : > { %328 = vst [vmem:[%s1316_s30 + $0xb0] sm:$0xff] %v327_v24 }
  0x41   : > { %330 = vst [vmem:[%s1316_s30 + $0xb8] sm:$0xff] %v329_v25 }
  0x42   : > { %332 = vst [vmem:[%s1316_s30 + $0xc0] sm:$0xff] %v331_v26 }
  0x43   : > { %334 = vst [vmem:[%s1316_s30 + $0xc8] sm:$0xff] %v333_v27 }
  0x44   : > { %336 = vst [vmem:[%s1316_s30 + $0xd0] sm:$0xff] %v335_v28 }
  0x45   : > { %338 = vst [vmem:[%s1316_s30 + $0xd8] sm:$0xff] %v337_v29 }
  0x46   : > { %340 = vst [vmem:[%s1316_s30 + $0xe0] sm:$0xff] %v339_v30 }
  0x47   : > { %342 = vst [vmem:[%s1316_s30 + $0xe8] sm:$0xff] %v341_v31 }
  0x48   : > { %344 = vst [vmem:[%s1316_s30 + $0xf0] sm:$0xff] %v343_v32 }
  0x49   : > { %346 = vst [vmem:[%s1316_s30 + $0xf8] sm:$0xff] %v345_v33 }
  0x4a PF: > { %p821_p0 = scmp.ge.s32.totalorder %s1179_s19, 1  ;;  %p351_p1 = scmp.lt.s32.totalorder %s1179_s19, 9 }
  0x4c   : > { %p352_p2 = pnand %p821_p0, %p351_p1 }
  0x4d   : > { %s358_s21 = sand.u32 (!%p352_p2), 1, %s1155_s13   ;;  %s365_s22 = sand.u32 (!%p352_p2), 1, %s1147_s11  }
  0x4e   : > { %355 = sbr.rel (%p352_p2) target bundleno = 283 (0x11b), region = 96  ;;  %s822_s23 = sshll.u32 (!%p352_p2), %s358_s21, 4 }
  0x4f   : > { %s823_s28 = sshll.u32 (!%p352_p2), %s365_s22, 8  ;;  %s386_s20 = sand.u32 (!%p352_p2), 1, %s1139_s9  }
  0x50   : > { %s824_s25 = sshll.u32 (!%p352_p2), %s386_s20, 5  ;;  %s1384_s29 = scalar_lea.vmem (!%p352_p2), [#allocation2], %s822_s23 }
  0x51   : > { %s1386_s3 = scalar_lea.vmem (!%p352_p2), [#allocation3], %s823_s28  ;;  %s1388_s7 = scalar_lea.vmem (!%p352_p2), [#allocation4], %s824_s25 }
  0x52   : > { %p825_p3 = scmp.ne.s32.totalorder (!%p352_p2), %s1163_s15, 0 }
  0x54   : > { %398 = sbr.rel (%p825_p3) target bundleno = 94 (0x5e), region = 108 }
  0x59   : > { %v1181_v34 = vmov 0.0  }
  0x5a   : > { %399 = vst [vmem:[%s1388_s7] sm:$0xff] %v1181_v34 }
  0x5b   : > { %400 = vst [vmem:[%s1388_s7 + $0x8] sm:$0xff] %v1181_v34 }
  0x5c   : > { %401 = vst [vmem:[%s1388_s7 + $0x10] sm:$0xff] %v1181_v34 }
  0x5d   : > { %402 = vst [vmem:[%s1388_s7 + $0x18] sm:$0xff] %v1181_v34 }
  0x5e PF: > { %v892_v35 = vld [vmem:[%s1386_s3 + $0x70] sm:$0xf]  ;;  %v986_v36 = vld [vmem:[%s1386_s3 + $0x74] sm:$0xf0]  ;;  %v985_v40 = vld [vmem:[%s1386_s3 + $0x74] sm:$0xf] }
  0x5f   : > { %v956_v37 = vld [vmem:[%s1386_s3 + $0xf0] sm:$0xf]  ;;  %v893_v38 = vor.u32 %v986_v36, %v892_v35  ;;  %v1002_v39 = vld [vmem:[%s1386_s3 + $0xf4] sm:$0xf0]  ;;  %v894_v41 = vld [vmem:[%s1386_s3 + $0x78] sm:$0xf0] }
  0x60   : > { %v957_v42 = vor.u32 %v1002_v39, %v956_v37  ;;  %v897_v43 = vor.u32 %v985_v40, %v894_v41  ;;  %v1001_v44 = vld [vmem:[%s1386_s3 + $0xf4] sm:$0xf]  ;;  %v958_v45 = vld [vmem:[%s1386_s3 + $0xf8] sm:$0xf0]  ;;  %v884_v46 = vld [vmem:[%s1386_s3 + $0x60] sm:$0xf] }
  0x61   : > { %611 = vmatpush.bf16.msra.mxu0 %v893_v38  ;;  %v961_v47 = vor.u32 %v1001_v44, %v958_v45  ;;  %v984_v48 = vld [vmem:[%s1386_s3 + $0x64] sm:$0xf0]  ;;  %v948_v49 = vld [vmem:[%s1386_s3 + $0xe0] sm:$0xf]  ;;  %v983_v53 = vld [vmem:[%s1386_s3 + $0x64] sm:$0xf] }
  0x62   : > { %v1000_v50 = vld [vmem:[%s1386_s3 + $0xe4] sm:$0xf0]  ;;  %625 = vmatpush.bf16.msra.mxu1 %v957_v42  ;;  %639 = vmatpush.bf16.msra.mxu2 %v897_v43  ;;  %v885_v51 = vor.u32 %v984_v48, %v884_v46  ;;  %v886_v54 = vld [vmem:[%s1386_s3 + $0x68] sm:$0xf0]  ;;  %v999_v55 = vld [vmem:[%s1386_s3 + $0xe4] sm:$0xf] }
  0x63   : > { %v949_v52 = vor.u32 %v1000_v50, %v948_v49  ;;  %653 = vmatpush.bf16.msra.mxu3 %v961_v47  ;;  %v889_v56 = vor.u32 %v983_v53, %v886_v54  ;;  %v950_v57 = vld [vmem:[%s1386_s3 + $0xe8] sm:$0xf0]  ;;  %v876_v58 = vld [vmem:[%s1386_s3 + $0x50] sm:$0xf]  ;;  %v982_v59 = vld [vmem:[%s1386_s3 + $0x54] sm:$0xf0] }
  0x64   : > { %v953_v60 = vor.u32 %v999_v55, %v950_v57  ;;  %v940_v61 = vld [vmem:[%s1386_s3 + $0xd0] sm:$0xf]  ;;  %v998_v62 = vld [vmem:[%s1386_s3 + $0xd4] sm:$0xf0]  ;;  %v981_v63 = vld [vmem:[%s1386_s3 + $0x54] sm:$0xf]  ;;  %v877_v0 = vor.u32 %v982_v59, %v876_v58 }
  0x65   : > { %612 = vmatpush.bf16.msra.mxu0 %v885_v51  ;;  %v878_v1 = vld [vmem:[%s1386_s3 + $0x58] sm:$0xf0]  ;;  %v997_v2 = vld [vmem:[%s1386_s3 + $0xd4] sm:$0xf]  ;;  %v941_v4 = vor.u32 %v998_v62, %v940_v61  ;;  %v868_v6 = vld [vmem:[%s1386_s3 + $0x40] sm:$0xf] }
  0x66   : > { %v942_v3 = vld [vmem:[%s1386_s3 + $0xd8] sm:$0xf0]  ;;  %626 = vmatpush.bf16.msra.mxu1 %v949_v52  ;;  %640 = vmatpush.bf16.msra.mxu2 %v889_v56  ;;  %v881_v5 = vor.u32 %v981_v63, %v878_v1  ;;  %v980_v7 = vld [vmem:[%s1386_s3 + $0x44] sm:$0xf0]  ;;  %v932_v8 = vld [vmem:[%s1386_s3 + $0xc0] sm:$0xf] }
  0x67   : > { %654 = vmatpush.bf16.msra.mxu3 %v953_v60  ;;  %v945_v9 = vor.u32 %v997_v2, %v942_v3  ;;  %v996_v10 = vld [vmem:[%s1386_s3 + $0xc4] sm:$0xf0]  ;;  %v979_v11 = vld [vmem:[%s1386_s3 + $0x44] sm:$0xf]  ;;  %v870_v12 = vld [vmem:[%s1386_s3 + $0x48] sm:$0xf0]  ;;  %v869_v15 = vor.u32 %v980_v7, %v868_v6 }
  0x68   : > { %v995_v13 = vld [vmem:[%s1386_s3 + $0xc4] sm:$0xf]  ;;  %v934_v14 = vld [vmem:[%s1386_s3 + $0xc8] sm:$0xf0]  ;;  %v933_v16 = vor.u32 %v996_v10, %v932_v8  ;;  %v873_v17 = vor.u32 %v979_v11, %v870_v12  ;;  %v860_v18 = vld [vmem:[%s1386_s3 + $0x30] sm:$0xf] }
  0x69   : > { %613 = vmatpush.bf16.msra.mxu0 %v877_v0  ;;  %v978_v19 = vld [vmem:[%s1386_s3 + $0x34] sm:$0xf0]  ;;  %v924_v20 = vld [vmem:[%s1386_s3 + $0xb0] sm:$0xf]  ;;  %v937_v21 = vor.u32 %v995_v13, %v934_v14  ;;  %v977_v23 = vld [vmem:[%s1386_s3 + $0x34] sm:$0xf] }
  0x6a   : > { %627 = vmatpush.bf16.msra.mxu1 %v941_v4  ;;  %641 = vmatpush.bf16.msra.mxu2 %v881_v5  ;;  %v994_v22 = vld [vmem:[%s1386_s3 + $0xb4] sm:$0xf0]  ;;  %v862_v24 = vld [vmem:[%s1386_s3 + $0x38] sm:$0xf0]  ;;  %v993_v25 = vld [vmem:[%s1386_s3 + $0xb4] sm:$0xf]  ;;  %v861_v27 = vor.u32 %v978_v19, %v860_v18 }
  0x6b   : > { %655 = vmatpush.bf16.msra.mxu3 %v945_v9  ;;  %v926_v26 = vld [vmem:[%s1386_s3 + $0xb8] sm:$0xf0]  ;;  %v925_v28 = vor.u32 %v994_v22, %v924_v20  ;;  %v865_v29 = vor.u32 %v977_v23, %v862_v24  ;;  %v852_v30 = vld [vmem:[%s1386_s3 + $0x20] sm:$0xf]  ;;  %v976_v31 = vld [vmem:[%s1386_s3 + $0x24] sm:$0xf0] }
  0x6c   : > { %v916_v32 = vld [vmem:[%s1386_s3 + $0xa0] sm:$0xf]  ;;  %v929_v33 = vor.u32 %v993_v25, %v926_v26  ;;  %v992_v34 = vld [vmem:[%s1386_s3 + $0xa4] sm:$0xf0]  ;;  %v975_v35 = vld [vmem:[%s1386_s3 + $0x24] sm:$0xf]  ;;  %v853_v39 = vor.u32 %v976_v31, %v852_v30 }
  0x6d   : > { %614 = vmatpush.bf16.msra.mxu0 %v869_v15  ;;  %v854_v36 = vld [vmem:[%s1386_s3 + $0x28] sm:$0xf0]  ;;  %v991_v37 = vld [vmem:[%s1386_s3 + $0xa4] sm:$0xf]  ;;  %v917_v40 = vor.u32 %v992_v34, %v916_v32  ;;  %v844_v42 = vld [vmem:[%s1386_s3 + $0x10] sm:$0xf] }
  0x6e   : > { %628 = vmatpush.bf16.msra.mxu1 %v933_v16  ;;  %642 = vmatpush.bf16.msra.mxu2 %v873_v17  ;;  %v918_v38 = vld [vmem:[%s1386_s3 + $0xa8] sm:$0xf0]  ;;  %v857_v41 = vor.u32 %v975_v35, %v854_v36  ;;  %v974_v43 = vld [vmem:[%s1386_s3 + $0x14] sm:$0xf0]  ;;  %v908_v44 = vld [vmem:[%s1386_s3 + $0x90] sm:$0xf] }
  0x6f   : > { %656 = vmatpush.bf16.msra.mxu3 %v937_v21  ;;  %v921_v45 = vor.u32 %v991_v37, %v918_v38  ;;  %v990_v46 = vld [vmem:[%s1386_s3 + $0x94] sm:$0xf0]  ;;  %v973_v47 = vld [vmem:[%s1386_s3 + $0x14] sm:$0xf]  ;;  %v846_v48 = vld [vmem:[%s1386_s3 + $0x18] sm:$0xf0]  ;;  %v845_v51 = vor.u32 %v974_v43, %v844_v42 }
  0x70   : > { %v989_v49 = vld [vmem:[%s1386_s3 + $0x94] sm:$0xf]  ;;  %v910_v50 = vld [vmem:[%s1386_s3 + $0x98] sm:$0xf0]  ;;  %v909_v52 = vor.u32 %v990_v46, %v908_v44  ;;  %v849_v53 = vor.u32 %v973_v47, %v846_v48  ;;  %v836_v54 = vld [vmem:[%s1386_s3] sm:$0xf] }
  0x71   : > { %615 = vmatpush.bf16.msra.mxu0 %v861_v27  ;;  %v972_v55 = vld [vmem:[%s1386_s3 + $0x4] sm:$0xf0]  ;;  %v900_v56 = vld [vmem:[%s1386_s3 + $0x80] sm:$0xf]  ;;  %v913_v57 = vor.u32 %v989_v49, %v910_v50  ;;  %v971_v59 = vld [vmem:[%s1386_s3 + $0x4] sm:$0xf] }
  0x72   : > { %629 = vmatpush.bf16.msra.mxu1 %v925_v28  ;;  %643 = vmatpush.bf16.msra.mxu2 %v865_v29  ;;  %v988_v58 = vld [vmem:[%s1386_s3 + $0x84] sm:$0xf0]  ;;  %v838_v60 = vld [vmem:[%s1386_s3 + $0x8] sm:$0xf0]  ;;  %v987_v61 = vld [vmem:[%s1386_s3 + $0x84] sm:$0xf]  ;;  %v837_v63 = vor.u32 %v972_v55, %v836_v54 }
  0x73   : > { %657 = vmatpush.bf16.msra.mxu3 %v929_v33  ;;  %v902_v62 = vld [vmem:[%s1386_s3 + $0x88] sm:$0xf0]  ;;  %v828_v0 = vld [vmem:[%s1384_s29] sm:$0xf]  ;;  %v970_v1 = vld [vmem:[%s1384_s29 + $0x4] sm:$0xf0]  ;;  %v901_v2 = vor.u32 %v988_v58, %v900_v56  ;;  %v841_v3 = vor.u32 %v971_v59, %v838_v60 }
  0x74   : > { %v969_v4 = vld [vmem:[%s1384_s29 + $0x4] sm:$0xf]  ;;  %v830_v5 = vld [vmem:[%s1384_s29 + $0x8] sm:$0xf0]  ;;  %v905_v6 = vor.u32 %v987_v61, %v902_v62  ;;  %v829_v7 = vor.u32 %v970_v1, %v828_v0  ;;  %s1003_s9 = sshll.u32 (%p1291_p12), %s1167_s16, 4 }
  0x75   : > { %616 = vmatpush.bf16.msra.mxu0 %v853_v39  ;;  %v833_v8 = vor.u32 %v969_v4, %v830_v5  ;;  %v403_v10 = vld [vmem:[%s1388_s7] sm:$0xff]  ;;  %v404_v15 = vld [vmem:[%s1388_s7 + $0x8] sm:$0xff]  ;;  %v405_v19 = vld [vmem:[%s1388_s7 + $0x10] sm:$0xff]  ;;  %s687_s15 = scalar_lea.vmem (%p1291_p12), %s1516_s2, %s1003_s9 }
  0x76   : > { %630 = vmatpush.bf16.msra.mxu1 %v917_v40  ;;  %644 = vmatpush.bf16.msra.mxu2 %v857_v41  ;;  %v406_v25 = vld [vmem:[%s1388_s7 + $0x18] sm:$0xff] }
  0x77   : > { %658 = vmatpush.bf16.msra.mxu3 %v921_v45 }
  0x79   : > { %617 = vmatpush.bf16.msra.mxu0 %v845_v51 }
  0x7a   : > { %631 = vmatpush.bf16.msra.mxu1 %v909_v52  ;;  %645 = vmatpush.bf16.msra.mxu2 %v849_v53 }
  0x7b   : > { %659 = vmatpush.bf16.msra.mxu3 %v913_v57 }
  0x7d   : > { %618 = vmatpush.bf16.msra.mxu0 %v837_v63 }
  0x7e   : > { %632 = vmatpush.bf16.msra.mxu1 %v901_v2  ;;  %646 = vmatpush.bf16.msra.mxu2 %v841_v3 }
  0x7f   : > { %660 = vmatpush.bf16.msra.mxu3 %v905_v6 }
  0x80   : > { %619 = vmatmul.bf16.vlgmr.msra.gmra.mxu0 %v829_v7 }
  0x81   : > { %633 = vmatmul.bf16.vlgmr.msra.gmra.mxu1 %v833_v8  ;;  %647 = vmatmul.bf16.vlgmr.msra.gmra.mxu2 %v829_v7 }
  0x82   : > { %661 = vmatmul.bf16.vlgmr.msra.gmra.mxu3 %v833_v8 }
  0xfd   : > { %v620_v9 = vpop.f32.mrf.mxu0 }
  0xfe   : > { %v634_v11 = vpop.f32.mrf.mxu1 }
  0xff   : > { %v635_v12 = vadd.f32 %v634_v11, %v620_v9 }
 0x101   : > { %v667_v13 = vadd.f32 %v635_v12, %v403_v10 }
 0x103   : > { %671 = vst [vmem:[%s1388_s7] sm:$0xff] %v667_v13 }
 0x104   : > { %v648_v14 = vpop.f32.mrf.mxu2 }
 0x105   : > { %v662_v16 = vpop.f32.mrf.mxu3  ;;  %v622_v17 = vpop.f32.mrf.mxu0 }
 0x106   : > { %v663_v18 = vadd.f32 %v662_v16, %v648_v14  ;;  %v636_v20 = vpop.f32.mrf.mxu1 }
 0x107   : > { %v637_v21 = vadd.f32 %v636_v20, %v622_v17 }
 0x108   : > { %v668_v22 = vadd.f32 %v663_v18, %v404_v15 }
 0x109   : > { %v669_v23 = vadd.f32 %v637_v21, %v405_v19 }
 0x10a   : > { %672 = vst [vmem:[%s1388_s7 + $0x8] sm:$0xff] %v668_v22  ;;  %v700_v29 = vld [vmem:[%s1388_s7] sm:$0xff] (%p1291_p12) }
 0x10b   : > { %673 = vst [vmem:[%s1388_s7 + $0x10] sm:$0xff] %v669_v23 }
 0x10c   : > { %v650_v24 = vpop.f32.mrf.mxu2  ;;  %701 = vst [vmem:[%s687_s15] sm:$0xff] (%p1291_p12), %v700_v29 }
 0x10d   : > { %v664_v26 = vpop.f32.mrf.mxu3 }
 0x10e   : > { %v665_v27 = vadd.f32 %v664_v26, %v650_v24  ;;  %681 = sbr.rel (!%p1291_p12) target bundleno = 283 (0x11b), region = 112 }
 0x110   : > { %v670_v28 = vadd.f32 %v665_v27, %v406_v25 }
 0x111   : > { %v702_v30 = vld [vmem:[%s1388_s7 + $0x8] sm:$0xff] (%p1291_p12) }
 0x112   : > { %674 = vst [vmem:[%s1388_s7 + $0x18] sm:$0xff] %v670_v28  ;;  %v704_v31 = vld [vmem:[%s1388_s7 + $0x10] sm:$0xff] (%p1291_p12) }
 0x113   : > { %703 = vst [vmem:[%s687_s15 + $0x8] sm:$0xff] %v702_v30 }
 0x114   : > { %705 = vst [vmem:[%s687_s15 + $0x20] sm:$0xff] %v704_v31 }
 0x119   : > { %v706_v32 = vld [vmem:[%s1388_s7 + $0x18] sm:$0xff] }
 0x11a   : > { %707 = vst [vmem:[%s687_s15 + $0x28] sm:$0xff] %v706_v32 }
 0x11b PF: > { %s12_s19 = sadd.s32 1, %s1179_s19   ;;  %s1524_s6 = sld [smem:[#allocation5_spill]] }
 0x11c   : > { %p9_p4 = scmp.ge.s32.totalorder %s12_s19, 10   ;;  %s1525_s24 = sld [smem:[#allocation6_spill]] }
 0x11d   : > { %s1526_s9 = smov %s1143_s10  ;;  %s1527_s10 = smov %s1289_s5 }
 0x11e   : > { %s1528_s11 = smov %s1151_s12  ;;  %s1529_s12 = smov %s1286_s4 }
 0x11f   : > { %s1530_s13 = smov %s1159_s14  ;;  %s1531_s14 = smov %s1272_s27 }
 0x120   : > { %s1532_s15 = smov %s1171_s17  ;;  %s1533_s16 = smov %s1175_s18 }
 0x121   : > { %s1534_s17 = smov %s1524_s6  ;;  %11 = sbr.rel (!%p9_p4) target bundleno = 6 (0x6), region = 174 }
 0x122   : > { %s1535_s18 = smov %s1525_s24 }

// kernel: run.34
= control target key start
LH: loop header
LB: loop body
LE: loop exit
PB: predicated region body
PF: predicated region fallthrough
CT: control target
= control target key end

     0   :  { %s1197_s9 = smov 0   ;;  %s1199_s10 = smov 0   ;;  %s1514_s0 = inlined_call_operand.vmem [shape: bf16[16,4096], index: 0, kind: input, shape index: {}]   ;;  %s1515_s1 = inlined_call_operand.vmem [shape: bf16[4096,512], index: 1, kind: input, shape index: {}]   ;;  %s1516_s2 = inlined_call_operand.vmem [shape: f32[16,512], index: 2, kind: output, shape index: {}]  }
   0x1   :  { %s1201_s11 = smov 0   ;;  %s1203_s12 = smov 0  }
   0x2   :  { %s1205_s13 = smov 0   ;;  %s1207_s14 = smov 0  }
   0x3   :  { %s1209_s15 = smov 0   ;;  %s1211_s16 = smov 0  }
   0x4   :  { %s1213_s17 = smov 0   ;;  %s1215_s18 = smov 0  }
   0x5   :  { %s1217_s19 = smov 0  }
   0x6 LB: > { %s809_s20 = sadd.s32 4294967295, %s1179_s19   ;;  %s24_s21 = sadd.s32 1, %s1171_s17  ;;  %s1179_s19 = sphi %s1217_s19, %s12_s19   ;;  %s1175_s18 = sphi %s1215_s18, %s1535_s18   ;;  %s1171_s17 = sphi %s1213_s17, %s1534_s17   ;;  %s1167_s16 = sphi %s1211_s16, %s1533_s16   ;;  %s1163_s15 = sphi %s1209_s15, %s1532_s15   ;;  %s1159_s14 = sphi %s1207_s14, %s1531_s14   ;;  %s1155_s13 = sphi %s1205_s13, %s1530_s13   ;;  %s1151_s12 = sphi %s1203_s12, %s1529_s12   ;;  %s1147_s11 = sphi %s1201_s11, %s1528_s11   ;;  %s1143_s10 = sphi %s1199_s10, %s1527_s10   ;;  %s1139_s9 = sphi %s1197_s9, %s1526_s9  }
   0x7   : > { %p25_p0 = scmp.ge.s32.totalorder %s24_s21, 16  ;;  %s27_s22 = sadd.s32 1, %s1175_s18 }
   0x8   : > { %s40_s23 = sadd.s32 1, %s1159_s14  ;;  %p47_p1 = scmp.ne.s32.totalorder %s1159_s14, %s1155_s13 }
   0x9   : > { %s1537_s21 = smov (%p25_p0, %s24_s21), 0  ;;  %s1539_s22 = smov (!%p25_p0, %s27_s22), %s1175_s18 }
   0xa   : > { %1519 = sst [smem:[#allocation5_spill]] %s1537_s21  ;;  %s36_s24 = ssub.s32 %s1171_s17, %s1537_s21 }
   0xb   : > { %p48_p2 = scmp.eq.s32.totalorder %s1179_s19, 0  ;;  %p29_p3 = scmp.ge.s32.totalorder %s1539_s22, 2 }
   0xc   : > { %p38_p4 = scmp.eq.s32.totalorder %s36_s24, 0  ;;  %s68_s26 = sadd.s32 1, %s1151_s12 }
   0xd   : > { %p1264_p5 = por %p48_p2, %p47_p1  ;;  %s1541_s22 = smov (%p29_p3, %s1539_s22), 0 }
   0xe   : > { %1521 = sst [smem:[#allocation6_spill]] %s1541_s22  ;;  %s64_s28 = ssub.s32 %s1175_s18, %s1541_s22 }
   0xf   : > { %s1272_s27 = scalar_select %p38_p4, %s1159_s14, %s40_s23  }
  0x10   : > { %p75_p6 = scmp.ne.s32.totalorder %s1151_s12, %s1147_s11  ;;  %s65_s29 = sor.u32 %s64_s28, %s36_s24 }
  0x11   : > { %p94_p7 = scmp.eq.s32.totalorder %s64_s28, 0  ;;  %p66_p8 = scmp.eq.s32.totalorder %s65_s29, 0 }
  0x12   : > { %p1278_p9 = por %p75_p6, %p48_p2  ;;  %s96_s3 = sadd.s32 1, %s1143_s10 }
  0x13   : > { %p106_p10 = scmp.ne.s32.totalorder %s1143_s10, %s1139_s9  ;;  %p107_p11 = scmp.eq.s32.totalorder %s809_s20, 31 }
  0x14   : > { %s1286_s4 = scalar_select %p66_p8, %s1151_s12, %s68_s26  }
  0x15   : > { %s1289_s5 = scalar_select %p94_p7, %s1143_s10, %s96_s3  }
  0x16   : > { %p1291_p12 = por %p107_p11, %p106_p10  ;;  %p812_p13 = scmp.ge.s32.totalorder %s1179_s19, 32 }
  0x18   : > { %129 = sbr.rel (%p812_p13) target bundleno = 74 (0x4a), region = 16 }
  0x1d   : > { %132 = sbr.rel (!%p1264_p5) target bundleno = 35 (0x23), region = 20  ;;  %s134_s7 = sand.u32 (%p1264_p5), 1, %s1159_s14  }
  0x1e   : > { %s967_s8 = sshll.u32 (%p1264_p5), %s1171_s17, 3  ;;  %s813_s23 = sshll.u32 (%p1264_p5), %s134_s7, 4 }
  0x1f   : > { %s142_s28 = scalar_lea.vmem (%p1264_p5), %s1514_s0, %s967_s8  ;;  %s136_s20 = scalar_lea.vmem (%p1264_p5), [#allocation2], %s813_s23 }
  0x20   : > { %v173_v0 = vld [vmem:[%s142_s28] sm:$0xff] (%p1264_p5) }
  0x21   : > { %v175_v1 = vld [vmem:[%s142_s28 + $0x80] sm:$0xff] (%p1264_p5)  ;;  %174 = vst [vmem:[%s136_s20] sm:$0xff] (%p1264_p5), %v173_v0 }
  0x22   : > { %176 = vst [vmem:[%s136_s20 + $0x8] sm:$0xff] %v175_v1 }
  0x23 PF: > { %182 = sbr.rel (!%p1278_p9) target bundleno = 74 (0x4a), region = 58  ;;  %s184_s25 = sand.u32 (%p1278_p9), 1, %s1151_s12  }
  0x24   : > { %s818_s29 = sshll.u32 (%p1278_p9), %s1175_s18, 1  ;;  %s816_s3 = sshll.u32 (%p1278_p9), %s184_s25, 8 }
  0x25   : > { %s968_s7 = sshll.u32 (%p1278_p9), %s1171_s17, 7  ;;  %s1316_s30 = scalar_lea.vmem (%p1278_p9), [#allocation3], %s816_s3 }
  0x26   : > { %s190_s22 = sadd.s32 (%p1278_p9), %s968_s7, %s818_s29 }
  0x27   : > { %s820_s21 = sshll.u32 (%p1278_p9), %s190_s22, 2 }
  0x28   : > { %s1311_s26 = scalar_lea.vmem %s1515_s1, %s820_s21 }
  0x29   : > { %v283_v2 = vld [vmem:[%s1311_s26] sm:$0xff]  ;;  %v285_v3 = vld [vmem:[%s1311_s26 + $0x10] sm:$0xff] }
  0x2a   : > { %v287_v4 = vld [vmem:[%s1311_s26 + $0x20] sm:$0xff]  ;;  %284 = vst [vmem:[%s1316_s30] sm:$0xff] %v283_v2  ;;  %v289_v5 = vld [vmem:[%s1311_s26 + $0x30] sm:$0xff] }
  0x2b   : > { %286 = vst [vmem:[%s1316_s30 + $0x8] sm:$0xff] %v285_v3  ;;  %v291_v6 = vld [vmem:[%s1311_s26 + $0x40] sm:$0xff]  ;;  %v293_v7 = vld [vmem:[%s1311_s26 + $0x50] sm:$0xff] }
  0x2c   : > { %288 = vst [vmem:[%s1316_s30 + $0x10] sm:$0xff] %v287_v4  ;;  %v295_v8 = vld [vmem:[%s1311_s26 + $0x60] sm:$0xff]  ;;  %v297_v9 = vld [vmem:[%s1311_s26 + $0x70] sm:$0xff] }
  0x2d   : > { %290 = vst [vmem:[%s1316_s30 + $0x18] sm:$0xff] %v289_v5  ;;  %v299_v10 = vld [vmem:[%s1311_s26 + $0x80] sm:$0xff]  ;;  %v301_v11 = vld [vmem:[%s1311_s26 + $0x90] sm:$0xff] }
  0x2e   : > { %292 = vst [vmem:[%s1316_s30 + $0x20] sm:$0xff] %v291_v6  ;;  %v303_v12 = vld [vmem:[%s1311_s26 + $0xa0] sm:$0xff]  ;;  %v305_v13 = vld [vmem:[%s1311_s26 + $0xb0] sm:$0xff] }
  0x2f   : > { %294 = vst [vmem:[%s1316_s30 + $0x28] sm:$0xff] %v293_v7  ;;  %v307_v14 = vld [vmem:[%s1311_s26 + $0xc0] sm:$0xff]  ;;  %v309_v15 = vld [vmem:[%s1311_s26 + $0xd0] sm:$0xff] }
  0x30   : > { %296 = vst [vmem:[%s1316_s30 + $0x30] sm:$0xff] %v295_v8  ;;  %v311_v16 = vld [vmem:[%s1311_s26 + $0xe0] sm:$0xff]  ;;  %v313_v17 = vld [vmem:[%s1311_s26 + $0xf0] sm:$0xff] }
  0x31   : > { %298 = vst [vmem:[%s1316_s30 + $0x38] sm:$0xff] %v297_v9  ;;  %v315_v18 = vld [vmem:[%s1311_s26 + $0x100] sm:$0xff]  ;;  %v317_v19 = vld [vmem:[%s1311_s26 + $0x110] sm:$0xff] }
  0x32   : > { %300 = vst [vmem:[%s1316_s30 + $0x40] sm:$0xff] %v299_v10  ;;  %v319_v20 = vld [vmem:[%s1311_s26 + $0x120] sm:$0xff]  ;;  %v321_v21 = vld [vmem:[%s1311_s26 + $0x130] sm:$0xff] }
  0x33   : > { %302 = vst [vmem:[%s1316_s30 + $0x48] sm:$0xff] %v301_v11  ;;  %v323_v22 = vld [vmem:[%s1311_s26 + $0x140] sm:$0xff]  ;;  %v325_v23 = vld [vmem:[%s1311_s26 + $0x150] sm:$0xff] }
  0x34   : > { %304 = vst [vmem:[%s1316_s30 + $0x50] sm:$0xff] %v303_v12  ;;  %v327_v24 = vld [vmem:[%s1311_s26 + $0x160] sm:$0xff]  ;;  %v329_v25 = vld [vmem:[%s1311_s26 + $0x170] sm:$0xff] }
  0x35   : > { %306 = vst [vmem:[%s1316_s30 + $0x58] sm:$0xff] %v305_v13  ;;  %v331_v26 = vld [vmem:[%s1311_s26 + $0x180] sm:$0xff]  ;;  %v333_v27 = vld [vmem:[%s1311_s26 + $0x190] sm:$0xff] }
  0x36   : > { %308 = vst [vmem:[%s1316_s30 + $0x60] sm:$0xff] %v307_v14  ;;  %v335_v28 = vld [vmem:[%s1311_s26 + $0x1a0] sm:$0xff]  ;;  %v337_v29 = vld [vmem:[%s1311_s26 + $0x1b0] sm:$0xff] }
  0x37   : > { %310 = vst [vmem:[%s1316_s30 + $0x68] sm:$0xff] %v309_v15  ;;  %v339_v30 = vld [vmem:[%s1311_s26 + $0x1c0] sm:$0xff]  ;;  %v341_v31 = vld [vmem:[%s1311_s26 + $0x1d0] sm:$0xff] }
  0x38   : > { %312 = vst [vmem:[%s1316_s30 + $0x70] sm:$0xff] %v311_v16  ;;  %v343_v32 = vld [vmem:[%s1311_s26 + $0x1e0] sm:$0xff]  ;;  %v345_v33 = vld [vmem:[%s1311_s26 + $0x1f0] sm:$0xff] }
  0x39   : > { %314 = vst [vmem:[%s1316_s30 + $0x78] sm:$0xff] %v313_v17 }
  0x3a   : > { %316 = vst [vmem:[%s1316_s30 + $0x80] sm:$0xff] %v315_v18 }
  0x3b   : > { %318 = vst [vmem:[%s1316_s30 + $0x88] sm:$0xff] %v317_v19 }
  0x3c   : > { %320 = vst [vmem:[%s1316_s30 + $0x90] sm:$0xff] %v319_v20 }
  0x3d   : > { %322 = vst [vmem:[%s1316_s30 + $0x98] sm:$0xff] %v321_v21 }
  0x3e   : > { %324 = vst [vmem:[%s1316_s30 + $0xa0] sm:$0xff] %v323_v22 }
  0x3f   : > { %326 = vst [vmem:[%s1316_s30 + $0xa8] sm:$0xff] %v325_v23 }
  0x40   : > { %328 = vst [vmem:[%s1316_s30 + $0xb0] sm:$0xff] %v327_v24 }
  0x41   : > { %330 = vst [vmem:[%s1316_s30 + $0xb8] sm:$0xff] %v329_v25 }
  0x42   : > { %332 = vst [vmem:[%s1316_s30 + $0xc0] sm:$0xff] %v331_v26 }
  0x43   : > { %334 = vst [vmem:[%s1316_s30 + $0xc8] sm:$0xff] %v333_v27 }
  0x44   : > { %336 = vst [vmem:[%s1316_s30 + $0xd0] sm:$0xff] %v335_v28 }
  0x45   : > { %338 = vst [vmem:[%s1316_s30 + $0xd8] sm:$0xff] %v337_v29 }
  0x46   : > { %340 = vst [vmem:[%s1316_s30 + $0xe0] sm:$0xff] %v339_v30 }
  0x47   : > { %342 = vst [vmem:[%s1316_s30 + $0xe8] sm:$0xff] %v341_v31 }
  0x48   : > { %344 = vst [vmem:[%s1316_s30 + $0xf0] sm:$0xff] %v343_v32 }
  0x49   : > { %346 = vst [vmem:[%s1316_s30 + $0xf8] sm:$0xff] %v345_v33 }
  0x4a PF: > { %p821_p0 = scmp.ge.s32.totalorder %s1179_s19, 1  ;;  %p351_p1 = scmp.lt.s32.totalorder %s1179_s19, 33 }
  0x4c   : > { %p352_p2 = pnand %p821_p0, %p351_p1 }
  0x4d   : > { %s358_s21 = sand.u32 (!%p352_p2), 1, %s1155_s13   ;;  %s365_s22 = sand.u32 (!%p352_p2), 1, %s1147_s11  }
  0x4e   : > { %355 = sbr.rel (%p352_p2) target bundleno = 283 (0x11b), region = 96  ;;  %s822_s23 = sshll.u32 (!%p352_p2), %s358_s21, 4 }
  0x4f   : > { %s823_s28 = sshll.u32 (!%p352_p2), %s365_s22, 8  ;;  %s386_s20 = sand.u32 (!%p352_p2), 1, %s1139_s9  }
  0x50   : > { %s824_s25 = sshll.u32 (!%p352_p2), %s386_s20, 5  ;;  %s1384_s29 = scalar_lea.vmem (!%p352_p2), [#allocation2], %s822_s23 }
  0x51   : > { %s1386_s3 = scalar_lea.vmem (!%p352_p2), [#allocation3], %s823_s28  ;;  %s1388_s7 = scalar_lea.vmem (!%p352_p2), [#allocation4], %s824_s25 }
  0x52   : > { %p825_p3 = scmp.ne.s32.totalorder (!%p352_p2), %s1163_s15, 0 }
  0x54   : > { %398 = sbr.rel (%p825_p3) target bundleno = 94 (0x5e), region = 108 }
  0x59   : > { %v1181_v34 = vmov 0.0  }
  0x5a   : > { %399 = vst [vmem:[%s1388_s7] sm:$0xff] %v1181_v34 }
  0x5b   : > { %400 = vst [vmem:[%s1388_s7 + $0x8] sm:$0xff] %v1181_v34 }
  0x5c   : > { %401 = vst [vmem:[%s1388_s7 + $0x10] sm:$0xff] %v1181_v34 }
  0x5d   : > { %402 = vst [vmem:[%s1388_s7 + $0x18] sm:$0xff] %v1181_v34 }
  0x5e PF: > { %v892_v35 = vld [vmem:[%s1386_s3 + $0x70] sm:$0xf]  ;;  %v986_v36 = vld [vmem:[%s1386_s3 + $0x74] sm:$0xf0]  ;;  %v985_v40 = vld [vmem:[%s1386_s3 + $0x74] sm:$0xf] }
  0x5f   : > { %v956_v37 = vld [vmem:[%s1386_s3 + $0xf0] sm:$0xf]  ;;  %v893_v38 = vor.u32 %v986_v36, %v892_v35  ;;  %v1002_v39 = vld [vmem:[%s1386_s3 + $0xf4] sm:$0xf0]  ;;  %v894_v41 = vld [vmem:[%s1386_s3 + $0x78] sm:$0xf0] }
  0x60   : > { %v957_v42 = vor.u32 %v1002_v39, %v956_v37  ;;  %v897_v43 = vor.u32 %v985_v40, %v894_v41  ;;  %v1001_v44 = vld [vmem:[%s1386_s3 + $0xf4] sm:$0xf]  ;;  %v958_v45 = vld [vmem:[%s1386_s3 + $0xf8] sm:$0xf0]  ;;  %v884_v46 = vld [vmem:[%s1386_s3 + $0x60] sm:$0xf] }
  0x61   : > { %611 = vmatpush.bf16.msra.mxu0 %v893_v38  ;;  %v961_v47 = vor.u32 %v1001_v44, %v958_v45  ;;  %v984_v48 = vld [vmem:[%s1386_s3 + $0x64] sm:$0xf0]  ;;  %v948_v49 = vld [vmem:[%s1386_s3 + $0xe0] sm:$0xf]  ;;  %v983_v53 = vld [vmem:[%s1386_s3 + $0x64] sm:$0xf] }
  0x62   : > { %v1000_v50 = vld [vmem:[%s1386_s3 + $0xe4] sm:$0xf0]  ;;  %625 = vmatpush.bf16.msra.mxu1 %v957_v42  ;;  %639 = vmatpush.bf16.msra.mxu2 %v897_v43  ;;  %v885_v51 = vor.u32 %v984_v48, %v884_v46  ;;  %v886_v54 = vld [vmem:[%s1386_s3 + $0x68] sm:$0xf0]  ;;  %v999_v55 = vld [vmem:[%s1386_s3 + $0xe4] sm:$0xf] }
  0x63   : > { %v949_v52 = vor.u32 %v1000_v50, %v948_v49  ;;  %653 = vmatpush.bf16.msra.mxu3 %v961_v47  ;;  %v889_v56 = vor.u32 %v983_v53, %v886_v54  ;;  %v950_v57 = vld [vmem:[%s1386_s3 + $0xe8] sm:$0xf0]  ;;  %v876_v58 = vld [vmem:[%s1386_s3 + $0x50] sm:$0xf]  ;;  %v982_v59 = vld [vmem:[%s1386_s3 + $0x54] sm:$0xf0] }
  0x64   : > { %v953_v60 = vor.u32 %v999_v55, %v950_v57  ;;  %v940_v61 = vld [vmem:[%s1386_s3 + $0xd0] sm:$0xf]  ;;  %v998_v62 = vld [vmem:[%s1386_s3 + $0xd4] sm:$0xf0]  ;;  %v981_v63 = vld [vmem:[%s1386_s3 + $0x54] sm:$0xf]  ;;  %v877_v0 = vor.u32 %v982_v59, %v876_v58 }
  0x65   : > { %612 = vmatpush.bf16.msra.mxu0 %v885_v51  ;;  %v878_v1 = vld [vmem:[%s1386_s3 + $0x58] sm:$0xf0]  ;;  %v997_v2 = vld [vmem:[%s1386_s3 + $0xd4] sm:$0xf]  ;;  %v941_v4 = vor.u32 %v998_v62, %v940_v61  ;;  %v868_v6 = vld [vmem:[%s1386_s3 + $0x40] sm:$0xf] }
  0x66   : > { %v942_v3 = vld [vmem:[%s1386_s3 + $0xd8] sm:$0xf0]  ;;  %626 = vmatpush.bf16.msra.mxu1 %v949_v52  ;;  %640 = vmatpush.bf16.msra.mxu2 %v889_v56  ;;  %v881_v5 = vor.u32 %v981_v63, %v878_v1  ;;  %v980_v7 = vld [vmem:[%s1386_s3 + $0x44] sm:$0xf0]  ;;  %v932_v8 = vld [vmem:[%s1386_s3 + $0xc0] sm:$0xf] }
  0x67   : > { %654 = vmatpush.bf16.msra.mxu3 %v953_v60  ;;  %v945_v9 = vor.u32 %v997_v2, %v942_v3  ;;  %v996_v10 = vld [vmem:[%s1386_s3 + $0xc4] sm:$0xf0]  ;;  %v979_v11 = vld [vmem:[%s1386_s3 + $0x44] sm:$0xf]  ;;  %v870_v12 = vld [vmem:[%s1386_s3 + $0x48] sm:$0xf0]  ;;  %v869_v15 = vor.u32 %v980_v7, %v868_v6 }
  0x68   : > { %v995_v13 = vld [vmem:[%s1386_s3 + $0xc4] sm:$0xf]  ;;  %v934_v14 = vld [vmem:[%s1386_s3 + $0xc8] sm:$0xf0]  ;;  %v933_v16 = vor.u32 %v996_v10, %v932_v8  ;;  %v873_v17 = vor.u32 %v979_v11, %v870_v12  ;;  %v860_v18 = vld [vmem:[%s1386_s3 + $0x30] sm:$0xf] }
  0x69   : > { %613 = vmatpush.bf16.msra.mxu0 %v877_v0  ;;  %v978_v19 = vld [vmem:[%s1386_s3 + $0x34] sm:$0xf0]  ;;  %v924_v20 = vld [vmem:[%s1386_s3 + $0xb0] sm:$0xf]  ;;  %v937_v21 = vor.u32 %v995_v13, %v934_v14  ;;  %v977_v23 = vld [vmem:[%s1386_s3 + $0x34] sm:$0xf] }
  0x6a   : > { %627 = vmatpush.bf16.msra.mxu1 %v941_v4  ;;  %641 = vmatpush.bf16.msra.mxu2 %v881_v5  ;;  %v994_v22 = vld [vmem:[%s1386_s3 + $0xb4] sm:$0xf0]  ;;  %v862_v24 = vld [vmem:[%s1386_s3 + $0x38] sm:$0xf0]  ;;  %v993_v25 = vld [vmem:[%s1386_s3 + $0xb4] sm:$0xf]  ;;  %v861_v27 = vor.u32 %v978_v19, %v860_v18 }
  0x6b   : > { %655 = vmatpush.bf16.msra.mxu3 %v945_v9  ;;  %v926_v26 = vld [vmem:[%s1386_s3 + $0xb8] sm:$0xf0]  ;;  %v925_v28 = vor.u32 %v994_v22, %v924_v20  ;;  %v865_v29 = vor.u32 %v977_v23, %v862_v24  ;;  %v852_v30 = vld [vmem:[%s1386_s3 + $0x20] sm:$0xf]  ;;  %v976_v31 = vld [vmem:[%s1386_s3 + $0x24] sm:$0xf0] }
  0x6c   : > { %v916_v32 = vld [vmem:[%s1386_s3 + $0xa0] sm:$0xf]  ;;  %v929_v33 = vor.u32 %v993_v25, %v926_v26  ;;  %v992_v34 = vld [vmem:[%s1386_s3 + $0xa4] sm:$0xf0]  ;;  %v975_v35 = vld [vmem:[%s1386_s3 + $0x24] sm:$0xf]  ;;  %v853_v39 = vor.u32 %v976_v31, %v852_v30 }
  0x6d   : > { %614 = vmatpush.bf16.msra.mxu0 %v869_v15  ;;  %v854_v36 = vld [vmem:[%s1386_s3 + $0x28] sm:$0xf0]  ;;  %v991_v37 = vld [vmem:[%s1386_s3 + $0xa4] sm:$0xf]  ;;  %v917_v40 = vor.u32 %v992_v34, %v916_v32  ;;  %v844_v42 = vld [vmem:[%s1386_s3 + $0x10] sm:$0xf] }
  0x6e   : > { %628 = vmatpush.bf16.msra.mxu1 %v933_v16  ;;  %642 = vmatpush.bf16.msra.mxu2 %v873_v17  ;;  %v918_v38 = vld [vmem:[%s1386_s3 + $0xa8] sm:$0xf0]  ;;  %v857_v41 = vor.u32 %v975_v35, %v854_v36  ;;  %v974_v43 = vld [vmem:[%s1386_s3 + $0x14] sm:$0xf0]  ;;  %v908_v44 = vld [vmem:[%s1386_s3 + $0x90] sm:$0xf] }
  0x6f   : > { %656 = vmatpush.bf16.msra.mxu3 %v937_v21  ;;  %v921_v45 = vor.u32 %v991_v37, %v918_v38  ;;  %v990_v46 = vld [vmem:[%s1386_s3 + $0x94] sm:$0xf0]  ;;  %v973_v47 = vld [vmem:[%s1386_s3 + $0x14] sm:$0xf]  ;;  %v846_v48 = vld [vmem:[%s1386_s3 + $0x18] sm:$0xf0]  ;;  %v845_v51 = vor.u32 %v974_v43, %v844_v42 }
  0x70   : > { %v989_v49 = vld [vmem:[%s1386_s3 + $0x94] sm:$0xf]  ;;  %v910_v50 = vld [vmem:[%s1386_s3 + $0x98] sm:$0xf0]  ;;  %v909_v52 = vor.u32 %v990_v46, %v908_v44  ;;  %v849_v53 = vor.u32 %v973_v47, %v846_v48  ;;  %v836_v54 = vld [vmem:[%s1386_s3] sm:$0xf] }
  0x71   : > { %615 = vmatpush.bf16.msra.mxu0 %v861_v27  ;;  %v972_v55 = vld [vmem:[%s1386_s3 + $0x4] sm:$0xf0]  ;;  %v900_v56 = vld [vmem:[%s1386_s3 + $0x80] sm:$0xf]  ;;  %v913_v57 = vor.u32 %v989_v49, %v910_v50  ;;  %v971_v59 = vld [vmem:[%s1386_s3 + $0x4] sm:$0xf] }
  0x72   : > { %629 = vmatpush.bf16.msra.mxu1 %v925_v28  ;;  %643 = vmatpush.bf16.msra.mxu2 %v865_v29  ;;  %v988_v58 = vld [vmem:[%s1386_s3 + $0x84] sm:$0xf0]  ;;  %v838_v60 = vld [vmem:[%s1386_s3 + $0x8] sm:$0xf0]  ;;  %v987_v61 = vld [vmem:[%s1386_s3 + $0x84] sm:$0xf]  ;;  %v837_v63 = vor.u32 %v972_v55, %v836_v54 }
  0x73   : > { %657 = vmatpush.bf16.msra.mxu3 %v929_v33  ;;  %v902_v62 = vld [vmem:[%s1386_s3 + $0x88] sm:$0xf0]  ;;  %v828_v0 = vld [vmem:[%s1384_s29] sm:$0xf]  ;;  %v970_v1 = vld [vmem:[%s1384_s29 + $0x4] sm:$0xf0]  ;;  %v901_v2 = vor.u32 %v988_v58, %v900_v56  ;;  %v841_v3 = vor.u32 %v971_v59, %v838_v60 }
  0x74   : > { %v969_v4 = vld [vmem:[%s1384_s29 + $0x4] sm:$0xf]  ;;  %v830_v5 = vld [vmem:[%s1384_s29 + $0x8] sm:$0xf0]  ;;  %v905_v6 = vor.u32 %v987_v61, %v902_v62  ;;  %v829_v7 = vor.u32 %v970_v1, %v828_v0  ;;  %s1003_s9 = sshll.u32 (%p1291_p12), %s1167_s16, 4 }
  0x75   : > { %616 = vmatpush.bf16.msra.mxu0 %v853_v39  ;;  %v833_v8 = vor.u32 %v969_v4, %v830_v5  ;;  %v403_v10 = vld [vmem:[%s1388_s7] sm:$0xff]  ;;  %v404_v15 = vld [vmem:[%s1388_s7 + $0x8] sm:$0xff]  ;;  %v405_v19 = vld [vmem:[%s1388_s7 + $0x10] sm:$0xff]  ;;  %s687_s15 = scalar_lea.vmem (%p1291_p12), %s1516_s2, %s1003_s9 }
  0x76   : > { %630 = vmatpush.bf16.msra.mxu1 %v917_v40  ;;  %644 = vmatpush.bf16.msra.mxu2 %v857_v41  ;;  %v406_v25 = vld [vmem:[%s1388_s7 + $0x18] sm:$0xff] }
  0x77   : > { %658 = vmatpush.bf16.msra.mxu3 %v921_v45 }
  0x79   : > { %617 = vmatpush.bf16.msra.mxu0 %v845_v51 }
  0x7a   : > { %631 = vmatpush.bf16.msra.mxu1 %v909_v52  ;;  %645 = vmatpush.bf16.msra.mxu2 %v849_v53 }
  0x7b   : > { %659 = vmatpush.bf16.msra.mxu3 %v913_v57 }
  0x7d   : > { %618 = vmatpush.bf16.msra.mxu0 %v837_v63 }
  0x7e   : > { %632 = vmatpush.bf16.msra.mxu1 %v901_v2  ;;  %646 = vmatpush.bf16.msra.mxu2 %v841_v3 }
  0x7f   : > { %660 = vmatpush.bf16.msra.mxu3 %v905_v6 }
  0x80   : > { %619 = vmatmul.bf16.vlgmr.msra.gmra.mxu0 %v829_v7 }
  0x81   : > { %633 = vmatmul.bf16.vlgmr.msra.gmra.mxu1 %v833_v8  ;;  %647 = vmatmul.bf16.vlgmr.msra.gmra.mxu2 %v829_v7 }
  0x82   : > { %661 = vmatmul.bf16.vlgmr.msra.gmra.mxu3 %v833_v8 }
  0xfd   : > { %v620_v9 = vpop.f32.mrf.mxu0 }
  0xfe   : > { %v634_v11 = vpop.f32.mrf.mxu1 }
  0xff   : > { %v635_v12 = vadd.f32 %v634_v11, %v620_v9 }
 0x101   : > { %v667_v13 = vadd.f32 %v635_v12, %v403_v10 }
 0x103   : > { %671 = vst [vmem:[%s1388_s7] sm:$0xff] %v667_v13 }
 0x104   : > { %v648_v14 = vpop.f32.mrf.mxu2 }
 0x105   : > { %v662_v16 = vpop.f32.mrf.mxu3  ;;  %v622_v17 = vpop.f32.mrf.mxu0 }
 0x106   : > { %v663_v18 = vadd.f32 %v662_v16, %v648_v14  ;;  %v636_v20 = vpop.f32.mrf.mxu1 }
 0x107   : > { %v637_v21 = vadd.f32 %v636_v20, %v622_v17 }
 0x108   : > { %v668_v22 = vadd.f32 %v663_v18, %v404_v15 }
 0x109   : > { %v669_v23 = vadd.f32 %v637_v21, %v405_v19 }
 0x10a   : > { %672 = vst [vmem:[%s1388_s7 + $0x8] sm:$0xff] %v668_v22  ;;  %v700_v29 = vld [vmem:[%s1388_s7] sm:$0xff] (%p1291_p12) }
 0x10b   : > { %673 = vst [vmem:[%s1388_s7 + $0x10] sm:$0xff] %v669_v23 }
 0x10c   : > { %v650_v24 = vpop.f32.mrf.mxu2  ;;  %701 = vst [vmem:[%s687_s15] sm:$0xff] (%p1291_p12), %v700_v29 }
 0x10d   : > { %v664_v26 = vpop.f32.mrf.mxu3 }
 0x10e   : > { %v665_v27 = vadd.f32 %v664_v26, %v650_v24  ;;  %681 = sbr.rel (!%p1291_p12) target bundleno = 283 (0x11b), region = 112 }
 0x110   : > { %v670_v28 = vadd.f32 %v665_v27, %v406_v25 }
 0x111   : > { %v702_v30 = vld [vmem:[%s1388_s7 + $0x8] sm:$0xff] (%p1291_p12) }
 0x112   : > { %674 = vst [vmem:[%s1388_s7 + $0x18] sm:$0xff] %v670_v28  ;;  %v704_v31 = vld [vmem:[%s1388_s7 + $0x10] sm:$0xff] (%p1291_p12) }
 0x113   : > { %703 = vst [vmem:[%s687_s15 + $0x8] sm:$0xff] %v702_v30 }
 0x114   : > { %705 = vst [vmem:[%s687_s15 + $0x20] sm:$0xff] %v704_v31 }
 0x119   : > { %v706_v32 = vld [vmem:[%s1388_s7 + $0x18] sm:$0xff] }
 0x11a   : > { %707 = vst [vmem:[%s687_s15 + $0x28] sm:$0xff] %v706_v32 }
 0x11b PF: > { %s12_s19 = sadd.s32 1, %s1179_s19   ;;  %s1524_s6 = sld [smem:[#allocation5_spill]] }
 0x11c   : > { %p9_p4 = scmp.ge.s32.totalorder %s12_s19, 34   ;;  %s1525_s24 = sld [smem:[#allocation6_spill]] }
 0x11d   : > { %s1526_s9 = smov %s1143_s10  ;;  %s1527_s10 = smov %s1289_s5 }
 0x11e   : > { %s1528_s11 = smov %s1151_s12  ;;  %s1529_s12 = smov %s1286_s4 }
 0x11f   : > { %s1530_s13 = smov %s1159_s14  ;;  %s1531_s14 = smov %s1272_s27 }
 0x120   : > { %s1532_s15 = smov %s1171_s17  ;;  %s1533_s16 = smov %s1175_s18 }
 0x121   : > { %s1534_s17 = smov %s1524_s6  ;;  %11 = sbr.rel (!%p9_p4) target bundleno = 6 (0x6), region = 174 }
 0x122   : > { %s1535_s18 = smov %s1525_s24 }

// kernel: run.35
= control target key start
LH: loop header
LB: loop body
LE: loop exit
PB: predicated region body
PF: predicated region fallthrough
CT: control target
= control target key end

     0   :  { %s1197_s9 = smov 0   ;;  %s1199_s10 = smov 0   ;;  %s1514_s0 = inlined_call_operand.vmem [shape: bf16[16,4608], index: 0, kind: input, shape index: {}]   ;;  %s1515_s1 = inlined_call_operand.vmem [shape: bf16[4608,512], index: 1, kind: input, shape index: {}]   ;;  %s1516_s2 = inlined_call_operand.vmem [shape: f32[16,512], index: 2, kind: output, shape index: {}]  }
   0x1   :  { %s1201_s11 = smov 0   ;;  %s1203_s12 = smov 0  }
   0x2   :  { %s1205_s13 = smov 0   ;;  %s1207_s14 = smov 0  }
   0x3   :  { %s1209_s15 = smov 0   ;;  %s1211_s16 = smov 0  }
   0x4   :  { %s1213_s17 = smov 0   ;;  %s1215_s18 = smov 0  }
   0x5   :  { %s1217_s19 = smov 0  }
   0x6 LB: > { %s809_s20 = sadd.s32 4294967295, %s1179_s19   ;;  %s24_s21 = sadd.s32 1, %s1171_s17  ;;  %s1179_s19 = sphi %s1217_s19, %s12_s19   ;;  %s1175_s18 = sphi %s1215_s18, %s1535_s18   ;;  %s1171_s17 = sphi %s1213_s17, %s1534_s17   ;;  %s1167_s16 = sphi %s1211_s16, %s1533_s16   ;;  %s1163_s15 = sphi %s1209_s15, %s1532_s15   ;;  %s1159_s14 = sphi %s1207_s14, %s1531_s14   ;;  %s1155_s13 = sphi %s1205_s13, %s1530_s13   ;;  %s1151_s12 = sphi %s1203_s12, %s1529_s12   ;;  %s1147_s11 = sphi %s1201_s11, %s1528_s11   ;;  %s1143_s10 = sphi %s1199_s10, %s1527_s10   ;;  %s1139_s9 = sphi %s1197_s9, %s1526_s9  }
   0x7   : > { %p25_p0 = scmp.ge.s32.totalorder %s24_s21, 18  ;;  %s27_s22 = sadd.s32 1, %s1175_s18 }
   0x8   : > { %s40_s23 = sadd.s32 1, %s1159_s14  ;;  %p47_p1 = scmp.ne.s32.totalorder %s1159_s14, %s1155_s13 }
   0x9   : > { %s1537_s21 = smov (%p25_p0, %s24_s21), 0  ;;  %s1539_s22 = smov (!%p25_p0, %s27_s22), %s1175_s18 }
   0xa   : > { %1519 = sst [smem:[#allocation5_spill]] %s1537_s21  ;;  %s36_s24 = ssub.s32 %s1171_s17, %s1537_s21 }
   0xb   : > { %p48_p2 = scmp.eq.s32.totalorder %s1179_s19, 0  ;;  %p29_p3 = scmp.ge.s32.totalorder %s1539_s22, 2 }
   0xc   : > { %p38_p4 = scmp.eq.s32.totalorder %s36_s24, 0  ;;  %s68_s26 = sadd.s32 1, %s1151_s12 }
   0xd   : > { %p1264_p5 = por %p48_p2, %p47_p1  ;;  %s1541_s22 = smov (%p29_p3, %s1539_s22), 0 }
   0xe   : > { %1521 = sst [smem:[#allocation6_spill]] %s1541_s22  ;;  %s64_s28 = ssub.s32 %s1175_s18, %s1541_s22 }
   0xf   : > { %s1272_s27 = scalar_select %p38_p4, %s1159_s14, %s40_s23  }
  0x10   : > { %p75_p6 = scmp.ne.s32.totalorder %s1151_s12, %s1147_s11  ;;  %s65_s29 = sor.u32 %s64_s28, %s36_s24 }
  0x11   : > { %p94_p7 = scmp.eq.s32.totalorder %s64_s28, 0  ;;  %p66_p8 = scmp.eq.s32.totalorder %s65_s29, 0 }
  0x12   : > { %p1278_p9 = por %p75_p6, %p48_p2  ;;  %s96_s3 = sadd.s32 1, %s1143_s10 }
  0x13   : > { %p106_p10 = scmp.ne.s32.totalorder %s1143_s10, %s1139_s9  ;;  %p107_p11 = scmp.eq.s32.totalorder %s809_s20, 35 }
  0x14   : > { %s1286_s4 = scalar_select %p66_p8, %s1151_s12, %s68_s26  }
  0x15   : > { %s1289_s5 = scalar_select %p94_p7, %s1143_s10, %s96_s3  }
  0x16   : > { %p1291_p12 = por %p107_p11, %p106_p10  ;;  %p812_p13 = scmp.ge.s32.totalorder %s1179_s19, 36 }
  0x18   : > { %129 = sbr.rel (%p812_p13) target bundleno = 74 (0x4a), region = 16 }
  0x1d   : > { %132 = sbr.rel (!%p1264_p5) target bundleno = 35 (0x23), region = 20  ;;  %s134_s7 = sand.u32 (%p1264_p5), 1, %s1159_s14  }
  0x1e   : > { %s967_s8 = sshll.u32 (%p1264_p5), %s1171_s17, 3  ;;  %s813_s23 = sshll.u32 (%p1264_p5), %s134_s7, 4 }
  0x1f   : > { %s142_s28 = scalar_lea.vmem (%p1264_p5), %s1514_s0, %s967_s8  ;;  %s136_s20 = scalar_lea.vmem (%p1264_p5), [#allocation2], %s813_s23 }
  0x20   : > { %v173_v0 = vld [vmem:[%s142_s28] sm:$0xff] (%p1264_p5)  ;;  %v175_v1 = vld [vmem:[%s142_s28 + $0x90] sm:$0xff] (%p1264_p5) }
  0x21   : > { %174 = vst [vmem:[%s136_s20] sm:$0xff] (%p1264_p5), %v173_v0 }
  0x22   : > { %176 = vst [vmem:[%s136_s20 + $0x8] sm:$0xff] %v175_v1 }
  0x23 PF: > { %182 = sbr.rel (!%p1278_p9) target bundleno = 74 (0x4a), region = 58  ;;  %s184_s25 = sand.u32 (%p1278_p9), 1, %s1151_s12  }
  0x24   : > { %s818_s29 = sshll.u32 (%p1278_p9), %s1175_s18, 1  ;;  %s816_s3 = sshll.u32 (%p1278_p9), %s184_s25, 8 }
  0x25   : > { %s968_s7 = sshll.u32 (%p1278_p9), %s1171_s17, 7  ;;  %s1316_s30 = scalar_lea.vmem (%p1278_p9), [#allocation3], %s816_s3 }
  0x26   : > { %s190_s22 = sadd.s32 (%p1278_p9), %s968_s7, %s818_s29 }
  0x27   : > { %s820_s21 = sshll.u32 (%p1278_p9), %s190_s22, 2 }
  0x28   : > { %s1311_s26 = scalar_lea.vmem %s1515_s1, %s820_s21 }
  0x29   : > { %v283_v2 = vld [vmem:[%s1311_s26] sm:$0xff]  ;;  %v285_v3 = vld [vmem:[%s1311_s26 + $0x10] sm:$0xff] }
  0x2a   : > { %v287_v4 = vld [vmem:[%s1311_s26 + $0x20] sm:$0xff]  ;;  %284 = vst [vmem:[%s1316_s30] sm:$0xff] %v283_v2  ;;  %v289_v5 = vld [vmem:[%s1311_s26 + $0x30] sm:$0xff] }
  0x2b   : > { %286 = vst [vmem:[%s1316_s30 + $0x8] sm:$0xff] %v285_v3  ;;  %v291_v6 = vld [vmem:[%s1311_s26 + $0x40] sm:$0xff]  ;;  %v293_v7 = vld [vmem:[%s1311_s26 + $0x50] sm:$0xff] }
  0x2c   : > { %288 = vst [vmem:[%s1316_s30 + $0x10] sm:$0xff] %v287_v4  ;;  %v295_v8 = vld [vmem:[%s1311_s26 + $0x60] sm:$0xff]  ;;  %v297_v9 = vld [vmem:[%s1311_s26 + $0x70] sm:$0xff] }
  0x2d   : > { %290 = vst [vmem:[%s1316_s30 + $0x18] sm:$0xff] %v289_v5  ;;  %v299_v10 = vld [vmem:[%s1311_s26 + $0x80] sm:$0xff]  ;;  %v301_v11 = vld [vmem:[%s1311_s26 + $0x90] sm:$0xff] }
  0x2e   : > { %292 = vst [vmem:[%s1316_s30 + $0x20] sm:$0xff] %v291_v6  ;;  %v303_v12 = vld [vmem:[%s1311_s26 + $0xa0] sm:$0xff]  ;;  %v305_v13 = vld [vmem:[%s1311_s26 + $0xb0] sm:$0xff] }
  0x2f   : > { %294 = vst [vmem:[%s1316_s30 + $0x28] sm:$0xff] %v293_v7  ;;  %v307_v14 = vld [vmem:[%s1311_s26 + $0xc0] sm:$0xff]  ;;  %v309_v15 = vld [vmem:[%s1311_s26 + $0xd0] sm:$0xff] }
  0x30   : > { %296 = vst [vmem:[%s1316_s30 + $0x30] sm:$0xff] %v295_v8  ;;  %v311_v16 = vld [vmem:[%s1311_s26 + $0xe0] sm:$0xff]  ;;  %v313_v17 = vld [vmem:[%s1311_s26 + $0xf0] sm:$0xff] }
  0x31   : > { %298 = vst [vmem:[%s1316_s30 + $0x38] sm:$0xff] %v297_v9  ;;  %v315_v18 = vld [vmem:[%s1311_s26 + $0x100] sm:$0xff]  ;;  %v317_v19 = vld [vmem:[%s1311_s26 + $0x110] sm:$0xff] }
  0x32   : > { %300 = vst [vmem:[%s1316_s30 + $0x40] sm:$0xff] %v299_v10  ;;  %v319_v20 = vld [vmem:[%s1311_s26 + $0x120] sm:$0xff]  ;;  %v321_v21 = vld [vmem:[%s1311_s26 + $0x130] sm:$0xff] }
  0x33   : > { %302 = vst [vmem:[%s1316_s30 + $0x48] sm:$0xff] %v301_v11  ;;  %v323_v22 = vld [vmem:[%s1311_s26 + $0x140] sm:$0xff]  ;;  %v325_v23 = vld [vmem:[%s1311_s26 + $0x150] sm:$0xff] }
  0x34   : > { %304 = vst [vmem:[%s1316_s30 + $0x50] sm:$0xff] %v303_v12  ;;  %v327_v24 = vld [vmem:[%s1311_s26 + $0x160] sm:$0xff]  ;;  %v329_v25 = vld [vmem:[%s1311_s26 + $0x170] sm:$0xff] }
  0x35   : > { %306 = vst [vmem:[%s1316_s30 + $0x58] sm:$0xff] %v305_v13  ;;  %v331_v26 = vld [vmem:[%s1311_s26 + $0x180] sm:$0xff]  ;;  %v333_v27 = vld [vmem:[%s1311_s26 + $0x190] sm:$0xff] }
  0x36   : > { %308 = vst [vmem:[%s1316_s30 + $0x60] sm:$0xff] %v307_v14  ;;  %v335_v28 = vld [vmem:[%s1311_s26 + $0x1a0] sm:$0xff]  ;;  %v337_v29 = vld [vmem:[%s1311_s26 + $0x1b0] sm:$0xff] }
  0x37   : > { %310 = vst [vmem:[%s1316_s30 + $0x68] sm:$0xff] %v309_v15  ;;  %v339_v30 = vld [vmem:[%s1311_s26 + $0x1c0] sm:$0xff]  ;;  %v341_v31 = vld [vmem:[%s1311_s26 + $0x1d0] sm:$0xff] }
  0x38   : > { %312 = vst [vmem:[%s1316_s30 + $0x70] sm:$0xff] %v311_v16  ;;  %v343_v32 = vld [vmem:[%s1311_s26 + $0x1e0] sm:$0xff]  ;;  %v345_v33 = vld [vmem:[%s1311_s26 + $0x1f0] sm:$0xff] }
  0x39   : > { %314 = vst [vmem:[%s1316_s30 + $0x78] sm:$0xff] %v313_v17 }
  0x3a   : > { %316 = vst [vmem:[%s1316_s30 + $0x80] sm:$0xff] %v315_v18 }
  0x3b   : > { %318 = vst [vmem:[%s1316_s30 + $0x88] sm:$0xff] %v317_v19 }
  0x3c   : > { %320 = vst [vmem:[%s1316_s30 + $0x90] sm:$0xff] %v319_v20 }
  0x3d   : > { %322 = vst [vmem:[%s1316_s30 + $0x98] sm:$0xff] %v321_v21 }
  0x3e   : > { %324 = vst [vmem:[%s1316_s30 + $0xa0] sm:$0xff] %v323_v22 }
  0x3f   : > { %326 = vst [vmem:[%s1316_s30 + $0xa8] sm:$0xff] %v325_v23 }
  0x40   : > { %328 = vst [vmem:[%s1316_s30 + $0xb0] sm:$0xff] %v327_v24 }
  0x41   : > { %330 = vst [vmem:[%s1316_s30 + $0xb8] sm:$0xff] %v329_v25 }
  0x42   : > { %332 = vst [vmem:[%s1316_s30 + $0xc0] sm:$0xff] %v331_v26 }
  0x43   : > { %334 = vst [vmem:[%s1316_s30 + $0xc8] sm:$0xff] %v333_v27 }
  0x44   : > { %336 = vst [vmem:[%s1316_s30 + $0xd0] sm:$0xff] %v335_v28 }
  0x45   : > { %338 = vst [vmem:[%s1316_s30 + $0xd8] sm:$0xff] %v337_v29 }
  0x46   : > { %340 = vst [vmem:[%s1316_s30 + $0xe0] sm:$0xff] %v339_v30 }
  0x47   : > { %342 = vst [vmem:[%s1316_s30 + $0xe8] sm:$0xff] %v341_v31 }
  0x48   : > { %344 = vst [vmem:[%s1316_s30 + $0xf0] sm:$0xff] %v343_v32 }
  0x49   : > { %346 = vst [vmem:[%s1316_s30 + $0xf8] sm:$0xff] %v345_v33 }
  0x4a PF: > { %p821_p0 = scmp.ge.s32.totalorder %s1179_s19, 1  ;;  %p351_p1 = scmp.lt.s32.totalorder %s1179_s19, 37 }
  0x4c   : > { %p352_p2 = pnand %p821_p0, %p351_p1 }
  0x4d   : > { %s358_s21 = sand.u32 (!%p352_p2), 1, %s1155_s13   ;;  %s365_s22 = sand.u32 (!%p352_p2), 1, %s1147_s11  }
  0x4e   : > { %355 = sbr.rel (%p352_p2) target bundleno = 283 (0x11b), region = 96  ;;  %s822_s23 = sshll.u32 (!%p352_p2), %s358_s21, 4 }
  0x4f   : > { %s823_s28 = sshll.u32 (!%p352_p2), %s365_s22, 8  ;;  %s386_s20 = sand.u32 (!%p352_p2), 1, %s1139_s9  }
  0x50   : > { %s824_s25 = sshll.u32 (!%p352_p2), %s386_s20, 5  ;;  %s1384_s29 = scalar_lea.vmem (!%p352_p2), [#allocation2], %s822_s23 }
  0x51   : > { %s1386_s3 = scalar_lea.vmem (!%p352_p2), [#allocation3], %s823_s28  ;;  %s1388_s7 = scalar_lea.vmem (!%p352_p2), [#allocation4], %s824_s25 }
  0x52   : > { %p825_p3 = scmp.ne.s32.totalorder (!%p352_p2), %s1163_s15, 0 }
  0x54   : > { %398 = sbr.rel (%p825_p3) target bundleno = 94 (0x5e), region = 108 }
  0x59   : > { %v1181_v34 = vmov 0.0  }
  0x5a   : > { %399 = vst [vmem:[%s1388_s7] sm:$0xff] %v1181_v34 }
  0x5b   : > { %400 = vst [vmem:[%s1388_s7 + $0x8] sm:$0xff] %v1181_v34 }
  0x5c   : > { %401 = vst [vmem:[%s1388_s7 + $0x10] sm:$0xff] %v1181_v34 }
  0x5d   : > { %402 = vst [vmem:[%s1388_s7 + $0x18] sm:$0xff] %v1181_v34 }
  0x5e PF: > { %v892_v35 = vld [vmem:[%s1386_s3 + $0x70] sm:$0xf]  ;;  %v986_v36 = vld [vmem:[%s1386_s3 + $0x74] sm:$0xf0]  ;;  %v985_v40 = vld [vmem:[%s1386_s3 + $0x74] sm:$0xf] }
  0x5f   : > { %v956_v37 = vld [vmem:[%s1386_s3 + $0xf0] sm:$0xf]  ;;  %v893_v38 = vor.u32 %v986_v36, %v892_v35  ;;  %v1002_v39 = vld [vmem:[%s1386_s3 + $0xf4] sm:$0xf0]  ;;  %v894_v41 = vld [vmem:[%s1386_s3 + $0x78] sm:$0xf0] }
  0x60   : > { %v957_v42 = vor.u32 %v1002_v39, %v956_v37  ;;  %v897_v43 = vor.u32 %v985_v40, %v894_v41  ;;  %v1001_v44 = vld [vmem:[%s1386_s3 + $0xf4] sm:$0xf]  ;;  %v958_v45 = vld [vmem:[%s1386_s3 + $0xf8] sm:$0xf0]  ;;  %v884_v46 = vld [vmem:[%s1386_s3 + $0x60] sm:$0xf] }
  0x61   : > { %611 = vmatpush.bf16.msra.mxu0 %v893_v38  ;;  %v961_v47 = vor.u32 %v1001_v44, %v958_v45  ;;  %v984_v48 = vld [vmem:[%s1386_s3 + $0x64] sm:$0xf0]  ;;  %v948_v49 = vld [vmem:[%s1386_s3 + $0xe0] sm:$0xf]  ;;  %v983_v53 = vld [vmem:[%s1386_s3 + $0x64] sm:$0xf] }
  0x62   : > { %v1000_v50 = vld [vmem:[%s1386_s3 + $0xe4] sm:$0xf0]  ;;  %625 = vmatpush.bf16.msra.mxu1 %v957_v42  ;;  %639 = vmatpush.bf16.msra.mxu2 %v897_v43  ;;  %v885_v51 = vor.u32 %v984_v48, %v884_v46  ;;  %v886_v54 = vld [vmem:[%s1386_s3 + $0x68] sm:$0xf0]  ;;  %v999_v55 = vld [vmem:[%s1386_s3 + $0xe4] sm:$0xf] }
  0x63   : > { %v949_v52 = vor.u32 %v1000_v50, %v948_v49  ;;  %653 = vmatpush.bf16.msra.mxu3 %v961_v47  ;;  %v889_v56 = vor.u32 %v983_v53, %v886_v54  ;;  %v950_v57 = vld [vmem:[%s1386_s3 + $0xe8] sm:$0xf0]  ;;  %v876_v58 = vld [vmem:[%s1386_s3 + $0x50] sm:$0xf]  ;;  %v982_v59 = vld [vmem:[%s1386_s3 + $0x54] sm:$0xf0] }
  0x64   : > { %v953_v60 = vor.u32 %v999_v55, %v950_v57  ;;  %v940_v61 = vld [vmem:[%s1386_s3 + $0xd0] sm:$0xf]  ;;  %v998_v62 = vld [vmem:[%s1386_s3 + $0xd4] sm:$0xf0]  ;;  %v981_v63 = vld [vmem:[%s1386_s3 + $0x54] sm:$0xf]  ;;  %v877_v0 = vor.u32 %v982_v59, %v876_v58 }
  0x65   : > { %612 = vmatpush.bf16.msra.mxu0 %v885_v51  ;;  %v878_v1 = vld [vmem:[%s1386_s3 + $0x58] sm:$0xf0]  ;;  %v997_v2 = vld [vmem:[%s1386_s3 + $0xd4] sm:$0xf]  ;;  %v941_v4 = vor.u32 %v998_v62, %v940_v61  ;;  %v868_v6 = vld [vmem:[%s1386_s3 + $0x40] sm:$0xf] }
  0x66   : > { %v942_v3 = vld [vmem:[%s1386_s3 + $0xd8] sm:$0xf0]  ;;  %626 = vmatpush.bf16.msra.mxu1 %v949_v52  ;;  %640 = vmatpush.bf16.msra.mxu2 %v889_v56  ;;  %v881_v5 = vor.u32 %v981_v63, %v878_v1  ;;  %v980_v7 = vld [vmem:[%s1386_s3 + $0x44] sm:$0xf0]  ;;  %v932_v8 = vld [vmem:[%s1386_s3 + $0xc0] sm:$0xf] }
  0x67   : > { %654 = vmatpush.bf16.msra.mxu3 %v953_v60  ;;  %v945_v9 = vor.u32 %v997_v2, %v942_v3  ;;  %v996_v10 = vld [vmem:[%s1386_s3 + $0xc4] sm:$0xf0]  ;;  %v979_v11 = vld [vmem:[%s1386_s3 + $0x44] sm:$0xf]  ;;  %v870_v12 = vld [vmem:[%s1386_s3 + $0x48] sm:$0xf0]  ;;  %v869_v15 = vor.u32 %v980_v7, %v868_v6 }
  0x68   : > { %v995_v13 = vld [vmem:[%s1386_s3 + $0xc4] sm:$0xf]  ;;  %v934_v14 = vld [vmem:[%s1386_s3 + $0xc8] sm:$0xf0]  ;;  %v933_v16 = vor.u32 %v996_v10, %v932_v8  ;;  %v873_v17 = vor.u32 %v979_v11, %v870_v12  ;;  %v860_v18 = vld [vmem:[%s1386_s3 + $0x30] sm:$0xf] }
  0x69   : > { %613 = vmatpush.bf16.msra.mxu0 %v877_v0  ;;  %v978_v19 = vld [vmem:[%s1386_s3 + $0x34] sm:$0xf0]  ;;  %v924_v20 = vld [vmem:[%s1386_s3 + $0xb0] sm:$0xf]  ;;  %v937_v21 = vor.u32 %v995_v13, %v934_v14  ;;  %v977_v23 = vld [vmem:[%s1386_s3 + $0x34] sm:$0xf] }
  0x6a   : > { %627 = vmatpush.bf16.msra.mxu1 %v941_v4  ;;  %641 = vmatpush.bf16.msra.mxu2 %v881_v5  ;;  %v994_v22 = vld [vmem:[%s1386_s3 + $0xb4] sm:$0xf0]  ;;  %v862_v24 = vld [vmem:[%s1386_s3 + $0x38] sm:$0xf0]  ;;  %v993_v25 = vld [vmem:[%s1386_s3 + $0xb4] sm:$0xf]  ;;  %v861_v27 = vor.u32 %v978_v19, %v860_v18 }
  0x6b   : > { %655 = vmatpush.bf16.msra.mxu3 %v945_v9  ;;  %v926_v26 = vld [vmem:[%s1386_s3 + $0xb8] sm:$0xf0]  ;;  %v925_v28 = vor.u32 %v994_v22, %v924_v20  ;;  %v865_v29 = vor.u32 %v977_v23, %v862_v24  ;;  %v852_v30 = vld [vmem:[%s1386_s3 + $0x20] sm:$0xf]  ;;  %v976_v31 = vld [vmem:[%s1386_s3 + $0x24] sm:$0xf0] }
  0x6c   : > { %v916_v32 = vld [vmem:[%s1386_s3 + $0xa0] sm:$0xf]  ;;  %v929_v33 = vor.u32 %v993_v25, %v926_v26  ;;  %v992_v34 = vld [vmem:[%s1386_s3 + $0xa4] sm:$0xf0]  ;;  %v975_v35 = vld [vmem:[%s1386_s3 + $0x24] sm:$0xf]  ;;  %v853_v39 = vor.u32 %v976_v31, %v852_v30 }
  0x6d   : > { %614 = vmatpush.bf16.msra.mxu0 %v869_v15  ;;  %v854_v36 = vld [vmem:[%s1386_s3 + $0x28] sm:$0xf0]  ;;  %v991_v37 = vld [vmem:[%s1386_s3 + $0xa4] sm:$0xf]  ;;  %v917_v40 = vor.u32 %v992_v34, %v916_v32  ;;  %v844_v42 = vld [vmem:[%s1386_s3 + $0x10] sm:$0xf] }
  0x6e   : > { %628 = vmatpush.bf16.msra.mxu1 %v933_v16  ;;  %642 = vmatpush.bf16.msra.mxu2 %v873_v17  ;;  %v918_v38 = vld [vmem:[%s1386_s3 + $0xa8] sm:$0xf0]  ;;  %v857_v41 = vor.u32 %v975_v35, %v854_v36  ;;  %v974_v43 = vld [vmem:[%s1386_s3 + $0x14] sm:$0xf0]  ;;  %v908_v44 = vld [vmem:[%s1386_s3 + $0x90] sm:$0xf] }
  0x6f   : > { %656 = vmatpush.bf16.msra.mxu3 %v937_v21  ;;  %v921_v45 = vor.u32 %v991_v37, %v918_v38  ;;  %v990_v46 = vld [vmem:[%s1386_s3 + $0x94] sm:$0xf0]  ;;  %v973_v47 = vld [vmem:[%s1386_s3 + $0x14] sm:$0xf]  ;;  %v846_v48 = vld [vmem:[%s1386_s3 + $0x18] sm:$0xf0]  ;;  %v845_v51 = vor.u32 %v974_v43, %v844_v42 }
  0x70   : > { %v989_v49 = vld [vmem:[%s1386_s3 + $0x94] sm:$0xf]  ;;  %v910_v50 = vld [vmem:[%s1386_s3 + $0x98] sm:$0xf0]  ;;  %v909_v52 = vor.u32 %v990_v46, %v908_v44  ;;  %v849_v53 = vor.u32 %v973_v47, %v846_v48  ;;  %v836_v54 = vld [vmem:[%s1386_s3] sm:$0xf] }
  0x71   : > { %615 = vmatpush.bf16.msra.mxu0 %v861_v27  ;;  %v972_v55 = vld [vmem:[%s1386_s3 + $0x4] sm:$0xf0]  ;;  %v900_v56 = vld [vmem:[%s1386_s3 + $0x80] sm:$0xf]  ;;  %v913_v57 = vor.u32 %v989_v49, %v910_v50  ;;  %v971_v59 = vld [vmem:[%s1386_s3 + $0x4] sm:$0xf] }
  0x72   : > { %629 = vmatpush.bf16.msra.mxu1 %v925_v28  ;;  %643 = vmatpush.bf16.msra.mxu2 %v865_v29  ;;  %v988_v58 = vld [vmem:[%s1386_s3 + $0x84] sm:$0xf0]  ;;  %v838_v60 = vld [vmem:[%s1386_s3 + $0x8] sm:$0xf0]  ;;  %v987_v61 = vld [vmem:[%s1386_s3 + $0x84] sm:$0xf]  ;;  %v837_v63 = vor.u32 %v972_v55, %v836_v54 }
  0x73   : > { %657 = vmatpush.bf16.msra.mxu3 %v929_v33  ;;  %v902_v62 = vld [vmem:[%s1386_s3 + $0x88] sm:$0xf0]  ;;  %v828_v0 = vld [vmem:[%s1384_s29] sm:$0xf]  ;;  %v970_v1 = vld [vmem:[%s1384_s29 + $0x4] sm:$0xf0]  ;;  %v901_v2 = vor.u32 %v988_v58, %v900_v56  ;;  %v841_v3 = vor.u32 %v971_v59, %v838_v60 }
  0x74   : > { %v969_v4 = vld [vmem:[%s1384_s29 + $0x4] sm:$0xf]  ;;  %v830_v5 = vld [vmem:[%s1384_s29 + $0x8] sm:$0xf0]  ;;  %v905_v6 = vor.u32 %v987_v61, %v902_v62  ;;  %v829_v7 = vor.u32 %v970_v1, %v828_v0  ;;  %s1003_s9 = sshll.u32 (%p1291_p12), %s1167_s16, 4 }
  0x75   : > { %616 = vmatpush.bf16.msra.mxu0 %v853_v39  ;;  %v833_v8 = vor.u32 %v969_v4, %v830_v5  ;;  %v403_v10 = vld [vmem:[%s1388_s7] sm:$0xff]  ;;  %v404_v15 = vld [vmem:[%s1388_s7 + $0x8] sm:$0xff]  ;;  %v405_v19 = vld [vmem:[%s1388_s7 + $0x10] sm:$0xff]  ;;  %s687_s15 = scalar_lea.vmem (%p1291_p12), %s1516_s2, %s1003_s9 }
  0x76   : > { %630 = vmatpush.bf16.msra.mxu1 %v917_v40  ;;  %644 = vmatpush.bf16.msra.mxu2 %v857_v41  ;;  %v406_v25 = vld [vmem:[%s1388_s7 + $0x18] sm:$0xff] }
  0x77   : > { %658 = vmatpush.bf16.msra.mxu3 %v921_v45 }
  0x79   : > { %617 = vmatpush.bf16.msra.mxu0 %v845_v51 }
  0x7a   : > { %631 = vmatpush.bf16.msra.mxu1 %v909_v52  ;;  %645 = vmatpush.bf16.msra.mxu2 %v849_v53 }
  0x7b   : > { %659 = vmatpush.bf16.msra.mxu3 %v913_v57 }
  0x7d   : > { %618 = vmatpush.bf16.msra.mxu0 %v837_v63 }
  0x7e   : > { %632 = vmatpush.bf16.msra.mxu1 %v901_v2  ;;  %646 = vmatpush.bf16.msra.mxu2 %v841_v3 }
  0x7f   : > { %660 = vmatpush.bf16.msra.mxu3 %v905_v6 }
  0x80   : > { %619 = vmatmul.bf16.vlgmr.msra.gmra.mxu0 %v829_v7 }
  0x81   : > { %633 = vmatmul.bf16.vlgmr.msra.gmra.mxu1 %v833_v8  ;;  %647 = vmatmul.bf16.vlgmr.msra.gmra.mxu2 %v829_v7 }
  0x82   : > { %661 = vmatmul.bf16.vlgmr.msra.gmra.mxu3 %v833_v8 }
  0xfd   : > { %v620_v9 = vpop.f32.mrf.mxu0 }
  0xfe   : > { %v634_v11 = vpop.f32.mrf.mxu1 }
  0xff   : > { %v635_v12 = vadd.f32 %v634_v11, %v620_v9 }
 0x101   : > { %v667_v13 = vadd.f32 %v635_v12, %v403_v10 }
 0x103   : > { %671 = vst [vmem:[%s1388_s7] sm:$0xff] %v667_v13 }
 0x104   : > { %v648_v14 = vpop.f32.mrf.mxu2 }
 0x105   : > { %v662_v16 = vpop.f32.mrf.mxu3  ;;  %v622_v17 = vpop.f32.mrf.mxu0 }
 0x106   : > { %v663_v18 = vadd.f32 %v662_v16, %v648_v14  ;;  %v636_v20 = vpop.f32.mrf.mxu1 }
 0x107   : > { %v637_v21 = vadd.f32 %v636_v20, %v622_v17 }
 0x108   : > { %v668_v22 = vadd.f32 %v663_v18, %v404_v15 }
 0x109   : > { %v669_v23 = vadd.f32 %v637_v21, %v405_v19 }
 0x10a   : > { %672 = vst [vmem:[%s1388_s7 + $0x8] sm:$0xff] %v668_v22  ;;  %v700_v29 = vld [vmem:[%s1388_s7] sm:$0xff] (%p1291_p12) }
 0x10b   : > { %673 = vst [vmem:[%s1388_s7 + $0x10] sm:$0xff] %v669_v23 }
 0x10c   : > { %v650_v24 = vpop.f32.mrf.mxu2  ;;  %701 = vst [vmem:[%s687_s15] sm:$0xff] (%p1291_p12), %v700_v29 }
 0x10d   : > { %v664_v26 = vpop.f32.mrf.mxu3 }
 0x10e   : > { %v665_v27 = vadd.f32 %v664_v26, %v650_v24  ;;  %681 = sbr.rel (!%p1291_p12) target bundleno = 283 (0x11b), region = 112 }
 0x110   : > { %v670_v28 = vadd.f32 %v665_v27, %v406_v25 }
 0x111   : > { %v702_v30 = vld [vmem:[%s1388_s7 + $0x8] sm:$0xff] (%p1291_p12) }
 0x112   : > { %674 = vst [vmem:[%s1388_s7 + $0x18] sm:$0xff] %v670_v28  ;;  %v704_v31 = vld [vmem:[%s1388_s7 + $0x10] sm:$0xff] (%p1291_p12) }
 0x113   : > { %703 = vst [vmem:[%s687_s15 + $0x8] sm:$0xff] %v702_v30 }
 0x114   : > { %705 = vst [vmem:[%s687_s15 + $0x20] sm:$0xff] %v704_v31 }
 0x119   : > { %v706_v32 = vld [vmem:[%s1388_s7 + $0x18] sm:$0xff] }
 0x11a   : > { %707 = vst [vmem:[%s687_s15 + $0x28] sm:$0xff] %v706_v32 }
 0x11b PF: > { %s12_s19 = sadd.s32 1, %s1179_s19   ;;  %s1524_s6 = sld [smem:[#allocation5_spill]] }
 0x11c   : > { %p9_p4 = scmp.ge.s32.totalorder %s12_s19, 38   ;;  %s1525_s24 = sld [smem:[#allocation6_spill]] }
 0x11d   : > { %s1526_s9 = smov %s1143_s10  ;;  %s1527_s10 = smov %s1289_s5 }
 0x11e   : > { %s1528_s11 = smov %s1151_s12  ;;  %s1529_s12 = smov %s1286_s4 }
 0x11f   : > { %s1530_s13 = smov %s1159_s14  ;;  %s1531_s14 = smov %s1272_s27 }
 0x120   : > { %s1532_s15 = smov %s1171_s17  ;;  %s1533_s16 = smov %s1175_s18 }
 0x121   : > { %s1534_s17 = smov %s1524_s6  ;;  %11 = sbr.rel (!%p9_p4) target bundleno = 6 (0x6), region = 174 }
 0x122   : > { %s1535_s18 = smov %s1525_s24 }

// kernel: custom-call.22
= control target key start
LH: loop header
LB: loop body
LE: loop exit
PB: predicated region body
PF: predicated region fallthrough
CT: control target
= control target key end

     0   :  { %5 = vsyncpa [#allocation6], 0  ;;  %s911_s0 = inlined_call_operand.vmem [shape: f32[2,3,3], index: 0, kind: input, shape index: {}]   ;;  %s912_s1 = inlined_call_operand.vmem [shape: f32[2,3,3], index: 1, kind: output, shape index: {0}]   ;;  %s913_s2 = inlined_call_operand.hbm [shape: s32[2,3], index: 2, kind: output, shape index: {1}]   ;;  %s914_s3 = inlined_call_operand.vmem [shape: s32[2,3], index: 3, kind: output, shape index: {2}]  }
   0x1   :  { %7 = vsyncpa [#allocation6 + $0x1], 0  ;;  %s735_s12 = smov 0   ;;  %s737_s13 = smov 0  }
   0x2   :  { %s739_s14 = smov 0   ;;  %s741_s15 = smov 0  }
   0x3 LB: > { %s756_s16 = sadd.s32 4294967295, %s708_s15   ;;  %s571_s17 = sadd.s32 4294967294, %s708_s15   ;;  %s708_s15 = sphi %s741_s15, %s920_s15   ;;  %s704_s14 = sphi %s739_s14, %s919_s14   ;;  %s700_s13 = sphi %s737_s13, %s918_s13   ;;  %s696_s12 = sphi %s735_s12, %s917_s12  }
   0x4   : > { %s760_s18 = sadd.s32 1, %s708_s15   ;;  %s17_s19 = sshrl.u32 %s708_s15, 3 }
   0x5   : > { %s18_s20 = sshrl.u32 %s760_s18, 3  ;;  %s22_s21 = sadd.s32 1, %s704_s14 }
   0x6   : > { %s19_s22 = ssub.s32 %s17_s19, %s18_s20  ;;  %p32_p0 = scmp.ne.s32.totalorder %s704_s14, %s700_s13 }
   0x7   : > { %p20_p1 = scmp.eq.s32.totalorder %s19_s22, 0  ;;  %p33_p2 = scmp.eq.s32.totalorder %s756_s16, 1 }
   0x8   : > { %p38_p3 = scmp.ne.s32.totalorder %s700_s13, %s696_s12  ;;  %p39_p4 = scmp.eq.s32.totalorder %s571_s17, 1 }
   0x9   : > { %s771_s23 = scalar_select %p20_p1, %s704_s14, %s22_s21  }
   0xa   : > { %p773_p5 = por %p33_p2, %p32_p0  ;;  %p777_p6 = por %p39_p4, %p38_p3 }
   0xb   : > { %p573_p7 = scmp.ge.s32.totalorder %s708_s15, 2 }
   0xc   : > { %s85_s26 = sand.u32 (!%p573_p7), 1, %s708_s15   ;;  %s575_s27 = sshll.u32 (!%p573_p7), %s708_s15, 2 }
   0xd   : > { %83 = sbr.rel (%p573_p7) target bundleno = 20 (0x14), region = 16  ;;  %s574_s28 = sshll.u32 (!%p573_p7), %s85_s26, 2 }
   0xe   : > { %s89_s4 = scalar_lea.vmem (!%p573_p7), %s911_s0, %s575_s27  ;;  %s87_s5 = scalar_lea.vmem (!%p573_p7), [#allocation1], %s574_s28 }
  0x12   : > { %v106_v0 = vld [vmem:[%s89_s4] sm:$0xf] }
  0x13   : > { %107 = vst [vmem:[%s87_s5] sm:$0xf] %v106_v0 }
  0x14 PF: > { %p576_p8 = scmp.ge.s32.totalorder %s708_s15, 1  ;;  %p124_p9 = scmp.lt.s32.totalorder %s708_s15, 3 }
  0x16   : > { %p125_p10 = pnand %p576_p8, %p124_p9 }
  0x18   : > { %128 = sbr.rel (%p125_p10) target bundleno = 484 (0x1e4), region = 50 }
  0x1d   : > { %s135_s6 = sand.u32 1, %s756_s16   ;;  %s146_s7 = sand.u32 1, %s700_s13   ;;  %v168_v1 = vlaneseq  ;;  %v714_v4 = vmov 0  }
  0x1e   : > { %s793_s8 = sshll.u32 %s135_s6, 2  ;;  %s797_s9 = sshll.u32 %s146_s7, 1 }
  0x1f   : > { %v800_v2 = vshrl.u32 %v168_v1, 7  ;;  %s137_s10 = scalar_lea.vmem [#allocation1], %s793_s8  ;;  %s163_s11 = sand.u32 7, %s756_s16  }
  0x20   : > { %v157_v3 = vld [vmem:[%s137_s10] sm:$0xf]  ;;  %s805_s17 = scalar_lea.vmem [#allocation4], %s163_s11  ;;  %s141_s19 = scalar_lea.vmem [#allocation3], %s793_s8 }
  0x21   : > { %158 = vst [vmem:[#allocation0] sm:$0xf] %v157_v3  ;;  %s148_s20 = scalar_lea.vmem [#allocation5], %s797_s9  ;;  %s154_s21 = scalar_lea.vmem [#allocation8], %s797_s9 }
  0x22   : > { %172 = vst [vmem:[#allocation9] sm:$0xff] %v800_v2  ;;  %s811_s22 = scalar_lea.vmem [#allocation7], %s163_s11  ;;  %s813_s26 = smov 0  }
  0x23   : > { %167 = vst [vmem:[%s805_s17] sm:$0x1] %v714_v4 }
  0x28   : > { %v161_v5 = vld [vmem:[#allocation0] sm:$0xff] }
  0x29   : > { %162 = vst [vmem:[#allocation2] sm:$0xff] %v161_v5 }
  0x2a LB: >> { %vm188_vm0 = vcmp.lt.s32.totalorder %v800_v2, 3  ;;  %v820_v8 = vstv %s712_s26  ;;  %s229_s27 = ssub.s32 128, %s712_s26  ;;  %v235_v39 = vand.u32 127, %v168_v1  ;;  %s241_s28 = scalar_lea.vmem [#allocation2], %s712_s26  ;;  %v238_v42 = vld [vmem:[%s805_s17] ss:$0 sm:$0xff]  ;;  %s712_s26 = sphi %s813_s26, %s178_s26  }
  0x2b   : >> { %vm187_vm1 = vcmp.ge.s32.totalorder %v800_v2, %v820_v8  ;;  %s247_s4 = scalar_lea.vmem [#allocation9], %s712_s26  ;;  %vm267_vm14 = vcmp.gt.s32.totalorder %v800_v2, %v820_v8  ;;  %s178_s26 = sadd.s32 1, %s712_s26  }
  0x2c   : >> { %vm189_vm3 = vmand %vm187_vm1, %vm188_vm0  ;;  %vm236_vm12 = vcmp.eq.s32.totalorder %v235_v39, %v820_v8  ;;  %v249_v44 = vld [vmem:[%s247_s4] ss:$0 sm:$0xff]  ;;  %p175_p11 = scmp.ge.s32.totalorder %s178_s26, 3  }
  0x2d   : > { %s409_s6 = sshrl.u32 (%p175_p11), %s756_s16, 3  ;;  %s415_s26 = sshll.u32 (%p175_p11), %s148_s20, 4  ;;  %s416_s26 = int_to_ptr.vmem [resolvable:$true] %s415_s26 }
  0x2e   : > { %s852_s10 = sshll.u32 (%p175_p11), %s409_s6, 1  ;;  %s363_s6 = scalar_lea.sflag (%p175_p11), [#allocation6], %s146_s7 }
  0x30   : >> { %v183_v6 = vld [vmem:[#allocation2] sm:$0xff]  ;;  %v243_v40 = vld [vmem:[%s241_s28] ss:$0 sm:$0xff] }
  0x31   : >> { %v184_v7 = vand.u32 2147483647, %v183_v6 }
  0x33   : >> { %vm581_vm2 = vcmp.gt.f32.partialorder %v184_v7, -inf }
  0x34   : >> { %vm191_vm4 = vmand %vm189_vm3, %vm581_vm2 }
  0x35   : >> { %v192_v9 = vsel %vm191_vm4, %v800_v2, %v820_v8  ;;  %v193_v10 = vsel %vm191_vm4, %v184_v7, -inf  ;;  %vm284_vm4 = vmand %vm267_vm14, %vm236_vm12 }
  0x36   : >> { %v194_v11 = vrot.slane %v193_v10, 1  ;;  %v195_v12 = vrot.slane %v192_v9, 1 }
  0x38   : >> { %vm196_vm5 = vcmp.ge.f32.partialorder %v194_v11, %v193_v10  ;;  %v199_v13 = vrot.slane %v194_v11, 1  ;;  %v200_v14 = vrot.slane %v195_v12, 1 }
  0x39   : >> { %v197_v15 = vsel %vm196_vm5, %v194_v11, %v193_v10  ;;  %v198_v16 = vsel %vm196_vm5, %v195_v12, %v192_v9  ;;  %vm259_vm5 = vcmp.gt.s32.totalorder %v235_v39, %v820_v8 }
  0x3a   : >> { %vm201_vm6 = vcmp.ge.f32.partialorder %v199_v13, %v197_v15  ;;  %v204_v17 = vrot.slane %v199_v13, 1  ;;  %v205_v18 = vrot.slane %v200_v14, 1 }
  0x3b   : >> { %v202_v19 = vsel %vm201_vm6, %v199_v13, %v197_v15  ;;  %v203_v20 = vsel %vm201_vm6, %v200_v14, %v198_v16 }
  0x3c   : >> { %vm206_vm7 = vcmp.ge.f32.partialorder %v204_v17, %v202_v19  ;;  %v209_v21 = vrot.slane %v204_v17, 1  ;;  %v210_v22 = vrot.slane %v205_v18, 1 }
  0x3d   : >> { %v207_v23 = vsel %vm206_vm7, %v204_v17, %v202_v19  ;;  %v208_v24 = vsel %vm206_vm7, %v205_v18, %v203_v20 }
  0x3e   : >> { %vm211_vm8 = vcmp.ge.f32.partialorder %v209_v21, %v207_v23  ;;  %v214_v25 = vrot.slane %v209_v21, 1  ;;  %v215_v26 = vrot.slane %v210_v22, 1 }
  0x3f   : >> { %v212_v27 = vsel %vm211_vm8, %v209_v21, %v207_v23  ;;  %v213_v28 = vsel %vm211_vm8, %v210_v22, %v208_v24 }
  0x40   : >> { %vm216_vm9 = vcmp.ge.f32.partialorder %v214_v25, %v212_v27  ;;  %v219_v29 = vrot.slane %v214_v25, 1  ;;  %v220_v30 = vrot.slane %v215_v26, 1 }
  0x41   : >> { %v217_v31 = vsel %vm216_vm9, %v214_v25, %v212_v27  ;;  %v218_v32 = vsel %vm216_vm9, %v215_v26, %v213_v28 }
  0x42   : >> { %vm221_vm10 = vcmp.ge.f32.partialorder %v219_v29, %v217_v31  ;;  %v224_v33 = vrot.slane %v219_v29, 1  ;;  %v225_v34 = vrot.slane %v220_v30, 1 }
  0x43   : >> { %v222_v35 = vsel %vm221_vm10, %v219_v29, %v217_v31  ;;  %v223_v36 = vsel %vm221_vm10, %v220_v30, %v218_v32 }
  0x44   : >> { %vm226_vm11 = vcmp.ge.f32.partialorder %v224_v33, %v222_v35 }
  0x45   : >> { %v228_v37 = vsel %vm226_vm11, %v225_v34, %v223_v36 }
  0x46   : >> { %230 = vrot.lane.b32.xlu0 %v228_v37, %s229_s27 }
  0xb8   : >> { %v231_v38 = vpop.permute.xlu0 %230 }
  0xb9   : >> { %590 = vpush %v231_v38 }
  0xea   : >> { %s591_s29 = spop %590 }
  0xeb   : >> { %v237_v41 = vstv %s591_s29  ;;  %s242_s30 = scalar_lea.vmem [#allocation2], %s591_s29  ;;  %s248_s5 = scalar_lea.vmem [#allocation9], %s591_s29 }
  0xec   : >> { %v244_v43 = vld [vmem:[%s242_s30] ss:$0 sm:$0xff]  ;;  %v239_v46 = vsel %vm236_vm12, %v237_v41, %v238_v42 }
  0xed   : >> { %v250_v45 = vld [vmem:[%s248_s5] ss:$0 sm:$0xff]  ;;  %245 = vst [vmem:[%s242_s30] sm:$0x1] %v243_v40  ;;  %vm253_vm13 = vcmp.ne.f32.partialorder %v244_v43, 0.0  ;;  %v260_v62 = vsel %vm259_vm5, %v244_v43, 0.0 }
  0xee   : >> { %246 = vst [vmem:[%s241_s28] sm:$0x1] %v244_v43  ;;  %vm254_vm15 = vmand %vm236_vm12, %vm253_vm13  ;;  %s413_s28 = scalar_lea.hbm (%p175_p11), %s913_s2, %s852_s10 }
  0xef   : >> { %251 = vst [vmem:[%s248_s5] sm:$0x1] %v249_v44  ;;  %v255_v47 = vsel %vm254_vm15, %v244_v43, 1.0  ;;  %s417_s29 = sshll.u32 (%p175_p11), %s413_s28, 4  ;;  %s418_s29 = int_to_ptr.hbm [resolvable:$true] %s417_s29 }
  0xf0   : >> { %252 = vst [vmem:[%s247_s4] sm:$0x1] %v250_v45  ;;  %v268_v48 = vsel %vm267_vm14, %v255_v47, 1.0  ;;  %s656_s11 = sshra.s32 (%p175_p11), %s418_s29, 4  ;;  %s657_s11 = int_to_ptr.hbm [resolvable:$true] %s656_s11 }
  0xf1   : >> { %640 = vrcp.f32 %v268_v48  ;;  %240 = vst [vmem:[%s805_s17] sm:$0x1] %v239_v46  ;;  %v280_v52 = vand.u32 2147483648, %v268_v48  ;;  %v278_v54 = vand.u32 2147483647, %v268_v48  ;;  %vm274_vm1 = vweird.f32 %v268_v48  ;;  %s585_s17 = sshll.u32 (%p175_p11), %s756_s16, 2  ;;  %s658_s16 = scalar_lea.hbm (%p175_p11), %s657_s11, 2 }
  0xf2   : > { %s372_s5 = scalar_lea.vmem (%p175_p11), %s912_s1, %s585_s17  ;;  %p659_p12 = scmp.ne.s32.totalorder (%p175_p11), %s657_s11, %s658_s16 }
  0xf3   : >> { %v281_v56 = vor.u32 1.1754944e-38, %v280_v52  ;;  %vm279_vm3 = vcmp.eq.f32.partialorder %v278_v54, 8.507059e+37  ;;  %s662_s17 = scalar_lea.hbm (%p175_p11), %s913_s2, 2  ;;  %p663_p1 = scmp.lt.s32.totalorder (%p175_p11), %s657_s11, %s913_s2 }
  0xf4   : > { %p660_p13 = pnand (%p175_p11), %p659_p12, %p773_p5  ;;  %p664_p2 = scmp.lt.s32.totalorder (%p175_p11), %s662_s17, %s658_s16 }
  0xf5   : >> { %v264_v58 = vld [vmem:[#allocation2] sm:$0xff] }
  0xf6   : > { %p661_p0 = pneg (%p175_p11), %p660_p13  ;;  %p665_p3 = por (%p175_p11), %p664_p2, %p663_p1 }
  0xf7   : >> { %v641_v49 = vpop.eup %640  ;;  %v291_v4 = vld [vmem:[#allocation9] sm:$0xff] (%p175_p11) }
  0xf8   : >> { %v270_v50 = vmul.f32 %v641_v49, %v268_v48  ;;  %vm275_vm0 = vweird.f32 %v641_v49  ;;  %v348_v1 = vld [vmem:[#allocation4] sm:$0x3] (%p175_p11)  ;;  %p666_p4 = pnand (%p175_p11), %p665_p3, %p661_p0 }
  0xf9   : >> { %vm276_vm2 = vmor %vm274_vm1, %vm275_vm0  ;;  %351 = vst [vmem:[%s148_s20] sm:$0x3] (%p175_p11), %v348_v1 }
  0xfa   : >> { %v271_v51 = vsub.f32 1.0, %v270_v50 }
  0xfc   : >> { %v272_v53 = vmul.f32 %v641_v49, %v271_v51 }
  0xfe   : >> { %v273_v55 = vadd.f32 %v641_v49, %v272_v53 }
 0x100   : >> { %v277_v57 = vsel %vm276_vm2, %v641_v49, %v273_v55 }
 0x101   : >> { %v282_v59 = vsel %vm279_vm3, %v281_v56, %v277_v57 }
 0x102   : >> { %v283_v60 = vmul.f32 %v282_v59, %v264_v58 }
 0x104   : >> { %v285_v61 = vsel %vm284_vm4, %v283_v60, 0.0 }
 0x105   : >> { %286 = vadd.xlane.f32.xlu0 %v285_v61 }
 0x12e   : > { %307 = vxpose.xlu0.b32.start.end [1/1] (short) (narrow) (%p175_p11), %v291_v4, 8 }
 0x178   : >> { %v287_v63 = vpop.xlane.xlu0 %286 }
 0x179   : >> { %v288_v0 = vmul.f32 %v287_v63, %v260_v62  ;;  %177 = sbr.rel (!%p175_p11) target bundleno = 42 (0x2a), region = 202 }
 0x17b   : >> { %v289_v3 = vsub.f32 %v283_v60, %v288_v0 }
 0x17d   : >> { %290 = vst [vmem:[#allocation2] sm:$0xff] %v289_v3 }
 0x184   : > { %v342_v5 = vld [vmem:[#allocation2] sm:$0xf] }
 0x185   : > { %345 = vst [vmem:[%s141_s19] sm:$0xf] %v342_v5 }
 0x18c   : > { %v389_v2 = vld [vmem:[%s141_s19] sm:$0xf] }
 0x18d   : > { %390 = vst [vmem:[%s372_s5] sm:$0xf] %v389_v2 }
 0x18e   : > { %669 = shalt.err (!%p666_p4)
}
 0x18f   : > { %592 = dma.vmem_to_hbm [thread:$0]  (%p773_p5), %s416_s26, 32, %s418_s29, %s363_s6  }
 0x190   : > { %s426_s19 = scalar_lea.vmem (%p773_p5), %s914_s3, %s852_s10 }
 0x1d2   : > { %v323_v6 = vpop.trf.xlu0 }
 0x1d3   : > { %339 = vst [vmem:[%s811_s22] sm:$0x1] %v323_v6 }
 0x1d7   : > { %423 = sbr.rel (!%p773_p5) target bundleno = 484 (0x1e4), region = 96 }
 0x1da   : > { %v354_v7 = vld [vmem:[#allocation7] sm:$0x3] }
 0x1db   : > { %357 = vst [vmem:[%s154_s21] sm:$0x3] %v354_v7 }
 0x1e2   : > { %v443_v8 = vld [vmem:[%s154_s21] sm:$0x3] }
 0x1e3   : > { %444 = vst [vmem:[%s426_s19] sm:$0x3] %v443_v8 }
 0x1e4 PF: > { %s472_s20 = sand.u32 1, %s696_s12   ;;  %p595_p8 = pnand %p573_p7, %p777_p6 }
 0x1e5   : > { %s473_s24 = scalar_lea.sflag [#allocation6], %s472_s20 }
 0x1e6   : > { %p596_p9 = pneg %p595_p8 }
 0x1e8   : > { %691 = dma.done.wait (%p596_p9), %s473_s24, 32  }
 0x1e9   : > { %693 = vsyncadd (%p596_p9), %s473_s24, 4294967264  ;;  %p10_p5 = scmp.ge.s32.totalorder %s760_s18, 4   ;;  %s917_s12 = smov %s700_s13 }
 0x1ea   : > { %s918_s13 = smov %s704_s14  ;;  %s919_s14 = smov %s771_s23 }
 0x1eb   : > { %s920_s15 = smov %s760_s18  ;;  %12 = sbr.rel (!%p10_p5) target bundleno = 3 (0x3), region = 213 }
 0x1f0   :  { %486 = vsyncpa [#allocation6], 1 }
 0x1f1   :  { %488 = vsyncpa [#allocation6 + $0x1], 1 }

// kernel: run.37
= control target key start
LH: loop header
LB: loop body
LE: loop exit
PB: predicated region body
PF: predicated region fallthrough
CT: control target
= control target key end

     0   :  { %vm10_vm0 = vcmask 31744   ;;  %v166_v14 = vmov 1   ;;  %v167_v15 = vmov 0   ;;  %v168_v40 = vmov 3   ;;  %s171_s10 = smov 60   ;;  %s220_s0 = inlined_call_operand.vmem [shape: f32[16,68], index: 0, kind: input, shape index: {}]   ;;  %s221_s1 = inlined_call_operand.vmem [shape: f32[16,256], index: 1, kind: output, shape index: {}]  }
   0x1   :  { %v185_v0 = vld [vmem:[%s220_s0] sm:$0xff]  ;;  %v192_v2 = vld [vmem:[%s220_s0 + $0x8] sm:$0xff]  ;;  %153 = vset.pattern.permute.xlu0 %v166_v14  ;;  %152 = vset.pattern.permute.xlu2 %v167_v15  ;;  %v169_v41 = vmov 2   ;;  %s170_s0 = smov 124   ;;  %vm133_vm9 = vcmask 523264  }
   0x2   :  { %v11_v1 = vsel %vm10_vm0, %v185_v0, -inf  ;;  %v14_v3 = vsel %vm10_vm0, %v192_v2, -inf  ;;  %154 = vset.pattern.permute.xlu1 %v166_v14 }
   0x3   :  { %12 = vmax.xlane.f32.xlu0 %v11_v1 }
   0xb   :  { %15 = vmax.xlane.f32.xlu0 %v14_v3 }
  0x76   :  { %v13_v4 = vpop.xlane.xlu0 %12 }
  0x77   :  { %v17_v5 = vsub.f32 %v185_v0, %v13_v4 }
  0x79   :  { %v19_v6 = vmul.f32 1.442695, %v17_v5 }
  0x7b   :  { %158 = vpow2.f32 %v19_v6 }
  0x7e   :  { %v16_v7 = vpop.xlane.xlu0 %15 }
  0x7f   :  { %v18_v8 = vsub.f32 %v192_v2, %v16_v7 }
  0x81   :  { %v159_v9 = vpop.eup %158  ;;  %v21_v10 = vmul.f32 1.442695, %v18_v8 }
  0x82   :  { %v23_v11 = vsel %vm10_vm0, %v159_v9, 0.0 }
  0x83   :  { %160 = vpow2.f32 %v21_v10  ;;  %24 = vadd.xlane.f32.xlu1 %v23_v11 }
  0x89   :  { %v161_v12 = vpop.eup %160 }
  0x8a   :  { %v26_v13 = vsel %vm10_vm0, %v161_v12, 0.0 }
  0x8b   :  { %27 = vadd.xlane.f32.xlu1 %v26_v13 }
  0xf6   :  { %v25_v16 = vpop.xlane.xlu1 %24 }
  0xf7   :  { %162 = vrcp.f32 %v25_v16  ;;  %v40_v21 = vand.u32 2147483648, %v25_v16  ;;  %v38_v23 = vand.u32 2147483647, %v25_v16  ;;  %vm34_vm2 = vweird.f32 %v25_v16 }
  0xf9   :  { %v41_v26 = vor.u32 1.1754944e-38, %v40_v21  ;;  %vm39_vm4 = vcmp.eq.f32.partialorder %v38_v23, 8.507059e+37 }
  0xfd   :  { %v163_v17 = vpop.eup %162 }
  0xfe   :  { %v30_v18 = vmul.f32 %v163_v17, %v25_v16  ;;  %v28_v19 = vpop.xlane.xlu1 %27  ;;  %vm35_vm1 = vweird.f32 %v163_v17 }
  0xff   :  { %164 = vrcp.f32 %v28_v19  ;;  %vm36_vm3 = vmor %vm34_vm2, %vm35_vm1  ;;  %v55_v32 = vand.u32 2147483648, %v28_v19  ;;  %v53_v34 = vand.u32 2147483647, %v28_v19  ;;  %vm49_vm6 = vweird.f32 %v28_v19 }
 0x100   :  { %v31_v20 = vsub.f32 1.0, %v30_v18 }
 0x101   :  { %v56_v36 = vor.u32 1.1754944e-38, %v55_v32  ;;  %vm54_vm8 = vcmp.eq.f32.partialorder %v53_v34, 8.507059e+37 }
 0x102   :  { %v32_v22 = vmul.f32 %v163_v17, %v31_v20 }
 0x104   :  { %v33_v24 = vadd.f32 %v163_v17, %v32_v22 }
 0x105   :  { %v165_v25 = vpop.eup %164 }
 0x106   :  { %v45_v27 = vmul.f32 %v165_v25, %v28_v19  ;;  %v37_v28 = vsel %vm36_vm3, %v163_v17, %v33_v24  ;;  %vm50_vm5 = vweird.f32 %v165_v25 }
 0x107   :  { %v42_v29 = vsel %vm39_vm4, %v41_v26, %v37_v28  ;;  %vm51_vm7 = vmor %vm49_vm6, %vm50_vm5 }
 0x108   :  { %v46_v30 = vsub.f32 1.0, %v45_v27  ;;  %v43_v31 = vmul.f32 %v159_v9, %v42_v29 }
 0x10a   :  { %v47_v33 = vmul.f32 %v165_v25, %v46_v30  ;;  %72 = vperm.xlu0 %153, %v43_v31   ;;  %61 = vperm.xlu2 %152, %v43_v31  }
 0x10c   :  { %v48_v35 = vadd.f32 %v165_v25, %v47_v33 }
 0x10e   :  { %v52_v37 = vsel %vm51_vm7, %v165_v25, %v48_v35 }
 0x10f   :  { %v57_v38 = vsel %vm54_vm8, %v56_v36, %v52_v37 }
 0x110   :  { %v58_v39 = vmul.f32 %v161_v12, %v57_v38 }
 0x112   :  { %76 = vperm.xlu1 %154, %v58_v39   ;;  %66 = vperm.xlu2 %152, %v58_v39  }
 0x113   :  { %157 = vset.pattern.permute.xlu0 %v168_v40 }
 0x11a   :  { %155 = vset.pattern.permute.xlu2 %v169_v41 }
 0x11b   :  { %82 = vperm.xlu2 %155, %v43_v31  }
 0x123   :  { %86 = vperm.xlu2 %155, %v58_v39  }
 0x12b   :  { %156 = vset.pattern.permute.xlu2 %v168_v40 }
 0x12c   :  { %92 = vperm.xlu2 %156, %v43_v31  }
 0x134   :  { %96 = vperm.xlu2 %156, %v58_v39  }
 0x164   :  { %v62_v42 = vpop.permute.xlu2 %61 }
 0x165   :  { %v69_v43 = vmul.f32 %v62_v42, %v185_v0 }
 0x167   :  { %103 = vrot.lane.b32.xlu1 %v69_v43, %s170_s0 }
 0x16c   :  { %v67_v44 = vpop.permute.xlu2 %66 }
 0x16d   :  { %v70_v45 = vmul.f32 %v67_v44, %v192_v2 }
 0x16f   :  { %105 = vrot.lane.b32.xlu2 %v70_v45, %s170_s0 }
 0x175   :  { %v83_v46 = vpop.permute.xlu2 %82 }
 0x176   :  { %v89_v47 = vmul.f32 %v83_v46, %v185_v0 }
 0x178   :  { %119 = vrot.lane.b32.xlu2 %v89_v47, %s170_s0 }
 0x17c   :  { %v73_v48 = vpop.permute.xlu0 %72 }
 0x17d   :  { %v79_v49 = vmul.f32 %v73_v48, %v185_v0  ;;  %v87_v50 = vpop.permute.xlu2 %86 }
 0x17e   :  { %v90_v52 = vmul.f32 %v87_v50, %v192_v2 }
 0x17f   :  { %111 = vrot.lane.b32.xlu1 %v79_v49, %s171_s10 }
 0x184   :  { %v77_v51 = vpop.permute.xlu1 %76 }
 0x185   :  { %v80_v53 = vmul.f32 %v77_v51, %v192_v2 }
 0x186   :  { %v93_v54 = vpop.permute.xlu2 %92 }
 0x187   :  { %113 = vrot.lane.b32.xlu0 %v80_v53, %s171_s10  ;;  %121 = vrot.lane.b32.xlu1 %v90_v52, %s170_s0  ;;  %v99_v55 = vmul.f32 %v93_v54, %v185_v0 }
 0x18e   :  { %v97_v56 = vpop.permute.xlu2 %96 }
 0x18f   :  { %v100_v57 = vmul.f32 %v97_v56, %v192_v2  ;;  %127 = vrot.lane.b32.xlu0 %v99_v55, %s171_s10 }
 0x191   :  { %129 = vrot.lane.b32.xlu2 %v100_v57, %s171_s10 }
 0x1c9   :  { %v106_v58 = vpop.permute.xlu2 %105 }
 0x1d2   :  { %v120_v60 = vpop.permute.xlu2 %119 }
 0x1d9   :  { %v104_v59 = vpop.permute.xlu1 %103 }
 0x1eb   :  { %v130_v63 = vpop.permute.xlu2 %129 }
 0x1f1   :  { %v112_v61 = vpop.permute.xlu1 %111 }
 0x1f2   :  { %v134_v62 = vsel %vm133_vm9, %v104_v59, %v112_v61 }
 0x1f3   :  { %138 = vst [vmem:[%s221_s1] sm:$0xff] %v134_v62 }
 0x1f9   :  { %v122_v1 = vpop.permute.xlu1 %121  ;;  %v114_v3 = vpop.permute.xlu0 %113 }
 0x1fa   :  { %v137_v4 = vsel %vm133_vm9, %v122_v1, %v130_v63  ;;  %v135_v0 = vsel %vm133_vm9, %v106_v58, %v114_v3 }
 0x1fb   :  { %141 = vst [vmem:[%s221_s1 + $0x18] sm:$0xff] %v137_v4 }
 0x1fc   :  { %140 = vst [vmem:[%s221_s1 + $0x10] sm:$0xff] %v135_v0 }
 0x201   :  { %v128_v2 = vpop.permute.xlu0 %127 }
 0x202   :  { %v136_v5 = vsel %vm133_vm9, %v120_v60, %v128_v2 }
 0x203   :  { %139 = vst [vmem:[%s221_s1 + $0x8] sm:$0xff] %v136_v5 }

// kernel: custom-call.24
= control target key start
LH: loop header
LB: loop body
LE: loop exit
PB: predicated region body
PF: predicated region fallthrough
CT: control target
= control target key end

     0   :  { %s373_s6 = smov 0   ;;  %s375_s7 = smov 0   ;;  %s422_s0 = inlined_call_operand.vmem [shape: f32[2,1,3,3], index: 0, kind: input, shape index: {}]   ;;  %s423_s1 = inlined_call_operand.vmem [shape: f32[2,1,3,3], index: 1, kind: output, shape index: {}]  }
   0x1   :  { %s377_s8 = smov 0  }
   0x2 LB: > { %s299_s9 = sadd.s32 4294967295, %s360_s8   ;;  %s33_s10 = sadd.s32 1, %s356_s7  ;;  %s360_s8 = sphi %s377_s8, %s7_s8   ;;  %s356_s7 = sphi %s375_s7, %s425_s7   ;;  %s352_s6 = sphi %s373_s6, %s424_s6  }
   0x3   : > { %p35_p0 = scmp.ge.s32.totalorder %s33_s10, 2  ;;  %p301_p1 = scmp.ge.s32.totalorder %s360_s8, 2 }
   0x4   : > { %s49_s11 = sand.u32 (!%p301_p1), 1, %s360_s8   ;;  %s303_s12 = sshll.u32 (!%p301_p1), %s356_s7, 2 }
   0x5   : > { %s427_s10 = smov (%p35_p0, %s33_s10), 0  ;;  %47 = sbr.rel (%p301_p1) target bundleno = 12 (0xc), region = 16 }
   0x6   : > { %s302_s13 = sshll.u32 (!%p301_p1), %s49_s11, 2  ;;  %s56_s16 = scalar_lea.vmem (!%p301_p1), %s422_s0, %s303_s12 }
   0x7   : > { %s51_s17 = scalar_lea.vmem (!%p301_p1), [#allocation1], %s302_s13 }
   0xa   : > { %v73_v0 = vld [vmem:[%s56_s16] sm:$0xf] }
   0xb   : > { %74 = vst [vmem:[%s51_s17] sm:$0xf] %v73_v0 }
   0xc PF: > { %p304_p2 = scmp.ge.s32.totalorder %s360_s8, 1  ;;  %p91_p3 = scmp.lt.s32.totalorder %s360_s8, 3 }
   0xe   : > { %p92_p4 = pnand %p304_p2, %p91_p3 }
  0x10   : > { %95 = sbr.rel (%p92_p4) target bundleno = 437 (0x1b5), region = 50 }
  0x15   : > { %s400_s18 = sand.u32 1, %s299_s9   ;;  %v113_v1 = vlaneseq  ;;  %v362_v20 = vmov -1.0   ;;  %s308_s22 = sshll.u32 %s352_s6, 2 }
  0x16   : > { %s305_s19 = sshll.u32 %s400_s18, 2  ;;  %s206_s25 = scalar_lea.vmem %s423_s1, %s308_s22 }
  0x17   : > { %s104_s20 = scalar_lea.vmem [#allocation1], %s305_s19  ;;  %v114_v3 = vand.u32 127, %v113_v1  ;;  %v117_v4 = vshrl.u32 %v113_v1, 7  ;;  %s108_s21 = scalar_lea.vmem [#allocation3], %s305_s19 }
  0x18   : > { %v111_v2 = vld [vmem:[%s104_s20] sm:$0xf] }
  0x19   : > { %112 = vst [vmem:[#allocation0] sm:$0xf] %v111_v2  ;;  %vm119_vm0 = vcmp.eq.s32.totalorder %v117_v4, %v114_v3  ;;  %vm115_vm1 = vcmp.lt.s32.totalorder %v114_v3, 3  ;;  %vm124_vm2 = vcmp.ge.s32.totalorder %v117_v4, %v114_v3  ;;  %vm151_vm8 = vcmp.eq.s32.totalorder %v114_v3, 0 }
  0x1a   : > { %vm125_vm3 = vmand %vm124_vm2, %vm115_vm1  ;;  %vm148_vm9 = vcmp.eq.s32.totalorder %v114_v3, %v117_v4  ;;  %v152_v21 = vsel %vm151_vm8, 1.0, %v362_v20  ;;  %vm159_vm10 = vcmp.eq.s32.totalorder %v114_v3, 1  ;;  %vm169_vm11 = vcmp.eq.s32.totalorder %v114_v3, 2 }
  0x1b   : > { %v153_v22 = vsel %vm148_vm9, %v152_v21, 0.0 }
  0x20   : > { %v120_v5 = vld [vmem:[#allocation0] sm:$0xff] }
  0x21   : > { %v121_v6 = vsel %vm119_vm0, %v120_v5, 0.0  ;;  %v126_v15 = vsel %vm125_vm3, %v120_v5, 0.0 }
  0x22   : > { %122 = vadd.xlane.f32.xlu0 %v121_v6 }
  0x95   : > { %v123_v7 = vpop.xlane.xlu0 %122 }
  0x96   : > { %336 = vrcp.f32 %v123_v7  ;;  %v138_v11 = vand.u32 2147483648, %v123_v7  ;;  %v136_v13 = vand.u32 2147483647, %v123_v7  ;;  %vm132_vm5 = vweird.f32 %v123_v7 }
  0x98   : > { %v139_v16 = vor.u32 1.1754944e-38, %v138_v11  ;;  %vm137_vm7 = vcmp.eq.f32.partialorder %v136_v13, 8.507059e+37 }
  0x9c   : > { %v337_v8 = vpop.eup %336 }
  0x9d   : > { %v128_v9 = vmul.f32 %v337_v8, %v123_v7  ;;  %vm133_vm4 = vweird.f32 %v337_v8 }
  0x9e   : > { %vm134_vm6 = vmor %vm132_vm5, %vm133_vm4 }
  0x9f   : > { %v129_v10 = vsub.f32 1.0, %v128_v9 }
  0xa1   : > { %v130_v12 = vmul.f32 %v337_v8, %v129_v10 }
  0xa3   : > { %v131_v14 = vadd.f32 %v337_v8, %v130_v12 }
  0xa5   : > { %v135_v17 = vsel %vm134_vm6, %v337_v8, %v131_v14 }
  0xa6   : > { %v140_v18 = vsel %vm137_vm7, %v139_v16, %v135_v17 }
  0xa7   : > { %v141_v19 = vmul.f32 %v140_v18, %v126_v15 }
  0xa9   : > { %142 = vst [vmem:[#allocation4] sm:$0xff] %v141_v19 }
  0xb0   : > { %v155_v23 = vld [vmem:[#allocation4 + $0x1] ss:$0 sm:$0xff]  ;;  %v165_v26 = vld [vmem:[#allocation4 + $0x2] ss:$0 sm:$0xff] }
  0xb1   : > { %v156_v24 = vxor.u32 2147483648, %v155_v23  ;;  %v166_v28 = vxor.u32 2147483648, %v165_v26 }
  0xb3   : > { %v160_v25 = vmul.f32 %v156_v24, %v153_v22 }
  0xb5   : > { %161 = vadd.xlane.f32.xlu0 %v160_v25 }
 0x128   : > { %v162_v27 = vpop.xlane.xlu0 %161 }
 0x129   : > { %v163_v29 = vsel %vm159_vm10, %v162_v27, %v153_v22 }
 0x12a   : > { %v170_v30 = vmul.f32 %v166_v28, %v163_v29 }
 0x12c   : > { %171 = vadd.xlane.f32.xlu1 %v170_v30 }
 0x19f   : > { %v172_v31 = vpop.xlane.xlu1 %171 }
 0x1a0   : > { %v173_v32 = vsel %vm169_vm11, %v172_v31, %v163_v29 }
 0x1a1   : > { %v188_v33 = vmul.f32 %v173_v32, %v140_v18 }
 0x1a3   : > { %v190_v34 = vsel %vm132_vm5, %v173_v32, %v188_v33 }
 0x1a4   : > { %191 = vst [vmem:[#allocation2] sm:$0xff] %v190_v34 }
 0x1ab   : > { %v194_v35 = vld [vmem:[#allocation2] sm:$0xf] }
 0x1ac   : > { %197 = vst [vmem:[%s108_s21] sm:$0xf] %v194_v35 }
 0x1b3   : > { %v223_v36 = vld [vmem:[%s108_s21] sm:$0xf] }
 0x1b4   : > { %224 = vst [vmem:[%s206_s25] sm:$0xf] %v223_v36 }
 0x1b5 PF: > { %s7_s8 = sadd.s32 1, %s360_s8   ;;  %s424_s6 = smov %s356_s7 }
 0x1b6   : > { %p4_p5 = scmp.ge.s32.totalorder %s7_s8, 4   ;;  %s425_s7 = smov %s427_s10 }
 0x1b8   :  { %6 = sbr.rel (!%p4_p5) target bundleno = 2 (0x2), region = 112 }

// kernel: custom-call.23
= control target key start
LH: loop header
LB: loop body
LE: loop exit
PB: predicated region body
PF: predicated region fallthrough
CT: control target
= control target key end

     0   :  { %s372_s6 = smov 0   ;;  %s374_s7 = smov 0   ;;  %s421_s0 = inlined_call_operand.vmem [shape: f32[2,1,3,3], index: 0, kind: input, shape index: {}]   ;;  %s422_s1 = inlined_call_operand.vmem [shape: f32[2,1,3,3], index: 1, kind: output, shape index: {}]  }
   0x1   :  { %s376_s8 = smov 0  }
   0x2 LB: > { %s298_s9 = sadd.s32 4294967295, %s359_s8   ;;  %s33_s10 = sadd.s32 1, %s355_s7  ;;  %s359_s8 = sphi %s376_s8, %s7_s8   ;;  %s355_s7 = sphi %s374_s7, %s424_s7   ;;  %s351_s6 = sphi %s372_s6, %s423_s6  }
   0x3   : > { %p35_p0 = scmp.ge.s32.totalorder %s33_s10, 2  ;;  %p300_p1 = scmp.ge.s32.totalorder %s359_s8, 2 }
   0x4   : > { %s49_s11 = sand.u32 (!%p300_p1), 1, %s359_s8   ;;  %s302_s12 = sshll.u32 (!%p300_p1), %s355_s7, 2 }
   0x5   : > { %s426_s10 = smov (%p35_p0, %s33_s10), 0  ;;  %47 = sbr.rel (%p300_p1) target bundleno = 12 (0xc), region = 16 }
   0x6   : > { %s301_s13 = sshll.u32 (!%p300_p1), %s49_s11, 2  ;;  %s56_s16 = scalar_lea.vmem (!%p300_p1), %s421_s0, %s302_s12 }
   0x7   : > { %s51_s17 = scalar_lea.vmem (!%p300_p1), [#allocation1], %s301_s13 }
   0xa   : > { %v73_v0 = vld [vmem:[%s56_s16] sm:$0xf] }
   0xb   : > { %74 = vst [vmem:[%s51_s17] sm:$0xf] %v73_v0 }
   0xc PF: > { %p303_p2 = scmp.ge.s32.totalorder %s359_s8, 1  ;;  %p91_p3 = scmp.lt.s32.totalorder %s359_s8, 3 }
   0xe   : > { %p92_p4 = pnand %p303_p2, %p91_p3 }
  0x10   : > { %95 = sbr.rel (%p92_p4) target bundleno = 437 (0x1b5), region = 50 }
  0x15   : > { %s399_s18 = sand.u32 1, %s298_s9   ;;  %v113_v1 = vlaneseq  ;;  %v361_v20 = vmov -1.0   ;;  %s307_s22 = sshll.u32 %s351_s6, 2 }
  0x16   : > { %s304_s19 = sshll.u32 %s399_s18, 2  ;;  %s205_s25 = scalar_lea.vmem %s422_s1, %s307_s22 }
  0x17   : > { %s104_s20 = scalar_lea.vmem [#allocation1], %s304_s19  ;;  %v114_v3 = vand.u32 127, %v113_v1  ;;  %v117_v4 = vshrl.u32 %v113_v1, 7  ;;  %s108_s21 = scalar_lea.vmem [#allocation3], %s304_s19 }
  0x18   : > { %v111_v2 = vld [vmem:[%s104_s20] sm:$0xf] }
  0x19   : > { %112 = vst [vmem:[#allocation0] sm:$0xf] %v111_v2  ;;  %vm119_vm0 = vcmp.eq.s32.totalorder %v117_v4, %v114_v3  ;;  %vm115_vm1 = vcmp.lt.s32.totalorder %v114_v3, 3  ;;  %vm124_vm2 = vcmp.le.s32.totalorder %v117_v4, %v114_v3  ;;  %vm151_vm8 = vcmp.eq.s32.totalorder %v114_v3, 2 }
  0x1a   : > { %vm125_vm3 = vmand %vm124_vm2, %vm115_vm1  ;;  %vm148_vm9 = vcmp.eq.s32.totalorder %v114_v3, %v117_v4  ;;  %v152_v21 = vsel %vm151_vm8, 1.0, %v361_v20  ;;  %vm159_vm10 = vcmp.eq.s32.totalorder %v114_v3, 1  ;;  %vm168_vm11 = vcmp.eq.s32.totalorder %v114_v3, 0 }
  0x1b   : > { %v153_v22 = vsel %vm148_vm9, %v152_v21, 0.0 }
  0x20   : > { %v120_v5 = vld [vmem:[#allocation0] sm:$0xff] }
  0x21   : > { %v121_v6 = vsel %vm119_vm0, %v120_v5, 0.0  ;;  %v126_v15 = vsel %vm125_vm3, %v120_v5, 0.0 }
  0x22   : > { %122 = vadd.xlane.f32.xlu0 %v121_v6 }
  0x95   : > { %v123_v7 = vpop.xlane.xlu0 %122 }
  0x96   : > { %335 = vrcp.f32 %v123_v7  ;;  %v138_v11 = vand.u32 2147483648, %v123_v7  ;;  %v136_v13 = vand.u32 2147483647, %v123_v7  ;;  %vm132_vm5 = vweird.f32 %v123_v7 }
  0x98   : > { %v139_v16 = vor.u32 1.1754944e-38, %v138_v11  ;;  %vm137_vm7 = vcmp.eq.f32.partialorder %v136_v13, 8.507059e+37 }
  0x9c   : > { %v336_v8 = vpop.eup %335 }
  0x9d   : > { %v128_v9 = vmul.f32 %v336_v8, %v123_v7  ;;  %vm133_vm4 = vweird.f32 %v336_v8 }
  0x9e   : > { %vm134_vm6 = vmor %vm132_vm5, %vm133_vm4 }
  0x9f   : > { %v129_v10 = vsub.f32 1.0, %v128_v9 }
  0xa1   : > { %v130_v12 = vmul.f32 %v336_v8, %v129_v10 }
  0xa3   : > { %v131_v14 = vadd.f32 %v336_v8, %v130_v12 }
  0xa5   : > { %v135_v17 = vsel %vm134_vm6, %v336_v8, %v131_v14 }
  0xa6   : > { %v140_v18 = vsel %vm137_vm7, %v139_v16, %v135_v17 }
  0xa7   : > { %v141_v19 = vmul.f32 %v140_v18, %v126_v15 }
  0xa9   : > { %142 = vst [vmem:[#allocation4] sm:$0xff] %v141_v19 }
  0xb0   : > { %v155_v23 = vld [vmem:[#allocation4 + $0x1] ss:$0 sm:$0xff]  ;;  %v164_v26 = vld [vmem:[#allocation4] ss:$0 sm:$0xff] }
  0xb1   : > { %v156_v24 = vxor.u32 2147483648, %v155_v23  ;;  %v165_v28 = vxor.u32 2147483648, %v164_v26 }
  0xb3   : > { %v160_v25 = vmul.f32 %v156_v24, %v153_v22 }
  0xb5   : > { %161 = vadd.xlane.f32.xlu0 %v160_v25 }
 0x128   : > { %v162_v27 = vpop.xlane.xlu0 %161 }
 0x129   : > { %v163_v29 = vsel %vm159_vm10, %v162_v27, %v153_v22 }
 0x12a   : > { %v169_v30 = vmul.f32 %v165_v28, %v163_v29 }
 0x12c   : > { %170 = vadd.xlane.f32.xlu1 %v169_v30 }
 0x19f   : > { %v171_v31 = vpop.xlane.xlu1 %170 }
 0x1a0   : > { %v172_v32 = vsel %vm168_vm11, %v171_v31, %v163_v29 }
 0x1a1   : > { %v187_v33 = vmul.f32 %v172_v32, %v140_v18 }
 0x1a3   : > { %v189_v34 = vsel %vm132_vm5, %v172_v32, %v187_v33 }
 0x1a4   : > { %190 = vst [vmem:[#allocation2] sm:$0xff] %v189_v34 }
 0x1ab   : > { %v193_v35 = vld [vmem:[#allocation2] sm:$0xf] }
 0x1ac   : > { %196 = vst [vmem:[%s108_s21] sm:$0xf] %v193_v35 }
 0x1b3   : > { %v222_v36 = vld [vmem:[%s108_s21] sm:$0xf] }
 0x1b4   : > { %223 = vst [vmem:[%s205_s25] sm:$0xf] %v222_v36 }
 0x1b5 PF: > { %s7_s8 = sadd.s32 1, %s359_s8   ;;  %s423_s6 = smov %s355_s7 }
 0x1b6   : > { %p4_p5 = scmp.ge.s32.totalorder %s7_s8, 4   ;;  %s424_s7 = smov %s426_s10 }
 0x1b8   :  { %6 = sbr.rel (!%p4_p5) target bundleno = 2 (0x2), region = 111 }

// kernel: run.38
= control target key start
LH: loop header
LB: loop body
LE: loop exit
PB: predicated region body
PF: predicated region fallthrough
CT: control target
= control target key end

     0   :  { %v331_v0 = vmov 0   ;;  %v50_v9 = vlaneseq  ;;  %v332_v14 = vmov 0.0   ;;  %vm168_vm8 = vcmask 523264   ;;  %s440_s0 = inlined_call_operand.vmem [shape: s32[64,1], index: 0, kind: input, shape index: {}]   ;;  %s441_s1 = inlined_call_operand.vmem [shape: bf16[64,128], index: 1, kind: input, shape index: {}]   ;;  %s442_s2 = inlined_call_operand.vmem [shape: f32[128,128], index: 2, kind: output, shape index: {}]  }
   0x1   :  { %329 = vset.pattern.permute.xlu1 %v331_v0  ;;  %328 = vset.pattern.permute.xlu0 %v331_v0  ;;  %v34_v1 = vld [vmem:[%s440_s0 + $0x10] sm:$0xff]  ;;  %v32_v2 = vld [vmem:[%s440_s0] sm:$0xff]  ;;  %v35_v4 = vld [vmem:[%s440_s0 + $0x18] sm:$0xff] }
   0x2   :  { %59 = vperm.xlu1 %329, %v34_v1   ;;  %53 = vperm.xlu0 %328, %v32_v2   ;;  %v36_v3 = vld [vmem:[%s440_s0 + $0x20] sm:$0xff]  ;;  %v33_v5 = vld [vmem:[%s440_s0 + $0x8] sm:$0xff]  ;;  %v39_v7 = vld [vmem:[%s440_s0 + $0x38] sm:$0xff]  ;;  %v51_v11 = vand.u32 127, %v50_v9 }
   0x3   :  { %330 = vset.pattern.permute.xlu2 %v331_v0  ;;  %v37_v6 = vld [vmem:[%s440_s0 + $0x28] sm:$0xff]  ;;  %v38_v8 = vld [vmem:[%s440_s0 + $0x30] sm:$0xff]  ;;  %v313_v23 = vld [vmem:[%s441_s1 + $0x18] sm:$0xff] }
   0x4   :  { %65 = vperm.xlu2 %330, %v36_v3   ;;  %197 = vmatpush.bf16.msra.mxu0 %v313_v23  ;;  %v312_v24 = vld [vmem:[%s441_s1 + $0x10] sm:$0xff]  ;;  %v311_v26 = vld [vmem:[%s441_s1 + $0x8] sm:$0xff]  ;;  %v310_v27 = vld [vmem:[%s441_s1] sm:$0xff] }
   0x5   :  { %314 = vmatpush.bf16.msra.mxu1 %v313_v23  ;;  %315 = vmatpush.bf16.msra.mxu2 %v313_v23 }
   0x6   :  { %316 = vmatpush.bf16.msra.mxu3 %v313_v23 }
   0x8   :  { %198 = vmatpush.bf16.msra.mxu0 %v312_v24 }
   0x9   :  { %317 = vmatpush.bf16.msra.mxu1 %v312_v24  ;;  %318 = vmatpush.bf16.msra.mxu2 %v312_v24 }
   0xa   :  { %62 = vperm.xlu1 %329, %v35_v4   ;;  %56 = vperm.xlu0 %328, %v33_v5  }
   0xb   :  { %319 = vmatpush.bf16.msra.mxu3 %v312_v24 }
   0xc   :  { %68 = vperm.xlu2 %330, %v37_v6   ;;  %199 = vmatpush.bf16.msra.mxu0 %v311_v26 }
   0xd   :  { %320 = vmatpush.bf16.msra.mxu1 %v311_v26  ;;  %321 = vmatpush.bf16.msra.mxu2 %v311_v26 }
   0xf   :  { %322 = vmatpush.bf16.msra.mxu3 %v311_v26 }
  0x10   :  { %200 = vmatpush.bf16.msra.mxu0 %v310_v27 }
  0x11   :  { %323 = vmatpush.bf16.msra.mxu1 %v310_v27  ;;  %324 = vmatpush.bf16.msra.mxu2 %v310_v27 }
  0x12   :  { %74 = vperm.xlu1 %329, %v39_v7   ;;  %71 = vperm.xlu0 %328, %v38_v8  }
  0x13   :  { %325 = vmatpush.bf16.msra.mxu3 %v310_v27 }
  0x5e   :  { %v66_v21 = vpop.permute.xlu2 %65 }
  0x5f   :  { %vm80_vm4 = vcmp.eq.s32.totalorder %v51_v11, %v66_v21 }
  0x60   :  { %v282_v28 = vsel %vm80_vm4, 1.0, %v332_v14 }
  0x66   :  { %v69_v25 = vpop.permute.xlu2 %68 }
  0x67   :  { %vm81_vm5 = vcmp.eq.s32.totalorder %v51_v11, %v69_v25 }
  0x68   :  { %v283_v29 = vsel %vm81_vm5, 1.0, %v332_v14 }
  0x69   :  { %v102_v30 = vpack.c.bf16 %v283_v29, %v282_v28 }
  0x74   :  { %v54_v10 = vpop.permute.xlu0 %53  ;;  %v60_v13 = vpop.permute.xlu1 %59 }
  0x75   :  { %vm76_vm0 = vcmp.eq.s32.totalorder %v51_v11, %v54_v10  ;;  %vm78_vm2 = vcmp.eq.s32.totalorder %v51_v11, %v60_v13 }
  0x76   :  { %v278_v15 = vsel %vm76_vm0, 1.0, %v332_v14  ;;  %v280_v19 = vsel %vm78_vm2, 1.0, %v332_v14 }
  0x7c   :  { %v57_v12 = vpop.permute.xlu0 %56  ;;  %v63_v18 = vpop.permute.xlu1 %62 }
  0x7d   :  { %vm77_vm1 = vcmp.eq.s32.totalorder %v51_v11, %v57_v12  ;;  %vm79_vm3 = vcmp.eq.s32.totalorder %v51_v11, %v63_v18 }
  0x7e   :  { %v279_v16 = vsel %vm77_vm1, 1.0, %v332_v14  ;;  %v281_v20 = vsel %vm79_vm3, 1.0, %v332_v14 }
  0x7f   :  { %v100_v17 = vpack.c.bf16 %v279_v16, %v278_v15  ;;  %v101_v22 = vpack.c.bf16 %v281_v20, %v280_v19 }
  0x81   :  { %128 = vxpose.xlu2.c.b16.start [1/4] (short) %v100_v17, 128 }
  0x84   :  { %v75_v31 = vpop.permute.xlu1 %74  ;;  %v72_v32 = vpop.permute.xlu0 %71 }
  0x85   :  { %vm83_vm6 = vcmp.eq.s32.totalorder %v51_v11, %v75_v31  ;;  %vm82_vm7 = vcmp.eq.s32.totalorder %v51_v11, %v72_v32 }
  0x86   :  { %v285_v33 = vsel %vm83_vm6, 1.0, %v332_v14  ;;  %v284_v34 = vsel %vm82_vm7, 1.0, %v332_v14 }
  0x87   :  { %v103_v35 = vpack.c.bf16 %v285_v33, %v284_v34 }
  0x91   :  { %129 = vxpose.xlu2.c.b16.cont [2/4] (short) %v101_v22, 128 }
  0xa1   :  { %130 = vxpose.xlu2.c.b16.cont [3/4] (short) %v102_v30, 128 }
  0xb1   :  { %131 = vxpose.xlu2.c.b16.end [4/4] (short) %v103_v35, 128 }
 0x122   :  { %v136_v36 = vpop.trf.xlu2 }
 0x123   :  { %302 = vmatmul.msk.bf16.vlgmr.msra.gmra.mxu0 %vm168_vm8, %v136_v36 }
 0x132   :  { %v137_v37 = vpop.trf.xlu2 }
 0x133   :  { %303 = vmatmul.msk.bf16.gmra.mxu0 %vm168_vm8, %v137_v37 }
 0x142   :  { %v138_v38 = vpop.trf.xlu2 }
 0x143   :  { %304 = vmatmul.msk.bf16.vlgmr.msra.gmra.mxu1 %vm168_vm8, %v138_v38 }
 0x152   :  { %v139_v39 = vpop.trf.xlu2 }
 0x153   :  { %305 = vmatmul.msk.bf16.gmra.mxu1 %vm168_vm8, %v139_v39 }
 0x162   :  { %v140_v40 = vpop.trf.xlu2 }
 0x163   :  { %306 = vmatmul.msk.bf16.vlgmr.msra.gmra.mxu2 %vm168_vm8, %v140_v40 }
 0x172   :  { %v141_v41 = vpop.trf.xlu2 }
 0x173   :  { %307 = vmatmul.msk.bf16.gmra.mxu2 %vm168_vm8, %v141_v41 }
 0x182   :  { %v142_v42 = vpop.trf.xlu2 }
 0x183   :  { %308 = vmatmul.msk.bf16.vlgmr.msra.gmra.mxu3 %vm168_vm8, %v142_v42 }
 0x192   :  { %v143_v43 = vpop.trf.xlu2 }
 0x193   :  { %309 = vmatmul.msk.bf16.gmra.mxu3 %vm168_vm8, %v143_v43 }
 0x1a0   :  { %v202_v44 = vpop.f32.mrf.mxu0 }
 0x1a1   :  { %258 = vst [vmem:[%s442_s2] sm:$0xff] %v202_v44 }
 0x1a8   :  { %v204_v45 = vpop.f32.mrf.mxu0 }
 0x1a9   :  { %259 = vst [vmem:[%s442_s2 + $0x8] sm:$0xff] %v204_v45 }
 0x1b0   :  { %v207_v46 = vpop.f32.mrf.mxu0 }
 0x1b1   :  { %260 = vst [vmem:[%s442_s2 + $0x10] sm:$0xff] %v207_v46 }
 0x1b8   :  { %v209_v47 = vpop.f32.mrf.mxu0 }
 0x1b9   :  { %261 = vst [vmem:[%s442_s2 + $0x18] sm:$0xff] %v209_v47 }
 0x1c0   :  { %v212_v48 = vpop.f32.mrf.mxu1 }
 0x1c1   :  { %262 = vst [vmem:[%s442_s2 + $0x20] sm:$0xff] %v212_v48 }
 0x1c8   :  { %v214_v49 = vpop.f32.mrf.mxu1 }
 0x1c9   :  { %263 = vst [vmem:[%s442_s2 + $0x28] sm:$0xff] %v214_v49 }
 0x1d0   :  { %v217_v50 = vpop.f32.mrf.mxu1 }
 0x1d1   :  { %264 = vst [vmem:[%s442_s2 + $0x30] sm:$0xff] %v217_v50 }
 0x1d8   :  { %v219_v51 = vpop.f32.mrf.mxu1 }
 0x1d9   :  { %265 = vst [vmem:[%s442_s2 + $0x38] sm:$0xff] %v219_v51 }
 0x1e6   :  { %v222_v52 = vpop.f32.mrf.mxu2 }
 0x1e7   :  { %266 = vst [vmem:[%s442_s2 + $0x40] sm:$0xff] %v222_v52 }
 0x1ee   :  { %v224_v53 = vpop.f32.mrf.mxu2 }
 0x1ef   :  { %267 = vst [vmem:[%s442_s2 + $0x48] sm:$0xff] %v224_v53 }
 0x1f6   :  { %v227_v54 = vpop.f32.mrf.mxu2 }
 0x1f7   :  { %268 = vst [vmem:[%s442_s2 + $0x50] sm:$0xff] %v227_v54 }
 0x1fe   :  { %v229_v55 = vpop.f32.mrf.mxu2 }
 0x1ff   :  { %269 = vst [vmem:[%s442_s2 + $0x58] sm:$0xff] %v229_v55 }
 0x206   :  { %v232_v56 = vpop.f32.mrf.mxu3 }
 0x207   :  { %270 = vst [vmem:[%s442_s2 + $0x60] sm:$0xff] %v232_v56 }
 0x20e   :  { %v234_v57 = vpop.f32.mrf.mxu3 }
 0x20f   :  { %271 = vst [vmem:[%s442_s2 + $0x68] sm:$0xff] %v234_v57 }
 0x216   :  { %v237_v58 = vpop.f32.mrf.mxu3 }
 0x217   :  { %272 = vst [vmem:[%s442_s2 + $0x70] sm:$0xff] %v237_v58 }
 0x21e   :  { %v239_v59 = vpop.f32.mrf.mxu3 }
 0x21f   :  { %273 = vst [vmem:[%s442_s2 + $0x78] sm:$0xff] %v239_v59 }

// kernel: run.39
= control target key start
LH: loop header
LB: loop body
LE: loop exit
PB: predicated region body
PF: predicated region fallthrough
CT: control target
= control target key end

     0   :  { %s734_s9 = smov 0   ;;  %s736_s10 = smov 0   ;;  %s842_s0 = inlined_call_operand.vmem [shape: bf16[16,3328], index: 0, kind: input, shape index: {}]   ;;  %s843_s1 = inlined_call_operand.vmem [shape: bf16[3328,128], index: 1, kind: input, shape index: {}]   ;;  %s844_s2 = inlined_call_operand.vmem [shape: f32[16,128], index: 2, kind: output, shape index: {}]  }
   0x1   :  { %s738_s11 = smov 0   ;;  %s740_s12 = smov 0  }
   0x2   :  { %s742_s13 = smov 0  }
   0x3 LB: > { %s24_s14 = sadd.s32 1, %s712_s12  ;;  %p47_p1 = scmp.ne.s32.totalorder %s704_s10, %s700_s9  ;;  %s716_s13 = sphi %s742_s13, %s12_s13   ;;  %s712_s12 = sphi %s740_s12, %s848_s12   ;;  %s708_s11 = sphi %s738_s11, %s847_s11   ;;  %s704_s10 = sphi %s736_s10, %s846_s10   ;;  %s700_s9 = sphi %s734_s9, %s845_s9  }
   0x4   : > { %p25_p0 = scmp.ge.s32.totalorder %s24_s14, 13  ;;  %p48_p2 = scmp.eq.s32.totalorder %s716_s13, 0 }
   0x5   : > { %s40_s16 = sadd.s32 1, %s704_s10  ;;  %p533_p5 = scmp.ge.s32.totalorder %s716_s13, 13 }
   0x6   : > { %s850_s14 = smov (%p25_p0, %s24_s14), 0  ;;  %p49_p3 = por %p48_p2, %p47_p1 }
   0x7   : > { %s36_s15 = ssub.s32 %s712_s12, %s850_s14  ;;  %129 = sbr.rel (%p533_p5) target bundleno = 18 (0x12), region = 16 }
   0x8   : > { %p38_p4 = scmp.eq.s32.totalorder %s36_s15, 0 }
   0xa   : > { %s769_s17 = scalar_select %p38_p4, %s704_s10, %s40_s16  }
   0xc   : > { %132 = sbr.rel (!%p49_p3) target bundleno = 18 (0x12), region = 20  ;;  %s134_s18 = sand.u32 (%p49_p3), 1, %s704_s10  }
   0xd   : > { %s618_s19 = sshll.u32 (%p49_p3), %s712_s12, 3  ;;  %s534_s20 = sshll.u32 (%p49_p3), %s134_s18, 4 }
   0xe   : > { %s142_s23 = scalar_lea.vmem (%p49_p3), %s842_s0, %s618_s19  ;;  %s136_s24 = scalar_lea.vmem (%p49_p3), [#allocation2], %s534_s20 }
   0xf   : > { %v173_v0 = vld [vmem:[%s142_s23] sm:$0xff] (%p49_p3)  ;;  %v175_v1 = vld [vmem:[%s142_s23 + $0x68] sm:$0xff] (%p49_p3) }
  0x10   : > { %174 = vst [vmem:[%s136_s24] sm:$0xff] (%p49_p3), %v173_v0 }
  0x11   : > { %176 = vst [vmem:[%s136_s24 + $0x8] sm:$0xff] %v175_v1 }
  0x12 PF: > { %p537_p6 = scmp.ge.s32.totalorder %s716_s13, 1  ;;  %p193_p7 = scmp.lt.s32.totalorder %s716_s13, 14 }
  0x14   : > { %p194_p8 = pnand %p537_p6, %p193_p7 }
  0x15   : > { %s200_s25 = sand.u32 (!%p194_p8), 1, %s700_s9   ;;  %s539_s26 = sshll.u32 (!%p194_p8), %s708_s11, 5 }
  0x16   : > { %197 = sbr.rel (%p194_p8) target bundleno = 207 (0xcf), region = 62  ;;  %s538_s27 = sshll.u32 (!%p194_p8), %s200_s25, 4 }
  0x17   : > { %p235_p9 = scmp.lt.s32.totalorder (!%p194_p8), %s539_s26, 415  ;;  %s786_s4 = scalar_lea.vmem (!%p194_p8), [#allocation2], %s538_s27 }
  0x18   : > { %p541_p10 = scmp.ne.s32.totalorder (!%p194_p8), %s708_s11, 0 }
  0x1b   : > { %s852_s26 = smov (!%p235_p9, %s539_s26), 415  ;;  %255 = sbr.rel (%p541_p10) target bundleno = 35 (0x23), region = 70 }
  0x1c   : > { %s540_s28 = sshll.u32 %s852_s26, 2 }
  0x1d   : > { %s784_s3 = scalar_lea.vmem %s843_s1, %s540_s28 }
  0x20   : > { %v718_v2 = vmov 0.0  }
  0x21   : > { %256 = vst [vmem:[%s844_s2] sm:$0xff] %v718_v2 }
  0x22   : > { %257 = vst [vmem:[%s844_s2 + $0x8] sm:$0xff] %v718_v2 }
  0x23 PF: > { %v628_v3 = vld [vmem:[%s784_s3 + $0x38] sm:$0xff]  ;;  %v627_v5 = vld [vmem:[%s784_s3 + $0x30] sm:$0xff]  ;;  %v626_v7 = vld [vmem:[%s784_s3 + $0x28] sm:$0xff] }
  0x24   : > { %v636_v4 = vld [vmem:[%s784_s3 + $0x78] sm:$0xff]  ;;  %400 = vmatpush.bf16.msra.mxu0 %v628_v3  ;;  %v635_v6 = vld [vmem:[%s784_s3 + $0x70] sm:$0xff]  ;;  %v634_v8 = vld [vmem:[%s784_s3 + $0x68] sm:$0xff] }
  0x25   : > { %414 = vmatpush.bf16.msra.mxu1 %v636_v4  ;;  %v625_v9 = vld [vmem:[%s784_s3 + $0x20] sm:$0xff]  ;;  %v624_v11 = vld [vmem:[%s784_s3 + $0x18] sm:$0xff]  ;;  %v623_v13 = vld [vmem:[%s784_s3 + $0x10] sm:$0xff] }
  0x26   : > { %v633_v10 = vld [vmem:[%s784_s3 + $0x60] sm:$0xff]  ;;  %v632_v12 = vld [vmem:[%s784_s3 + $0x58] sm:$0xff]  ;;  %v631_v14 = vld [vmem:[%s784_s3 + $0x50] sm:$0xff] }
  0x27   : > { %v622_v15 = vld [vmem:[%s784_s3 + $0x8] sm:$0xff]  ;;  %v621_v17 = vld [vmem:[%s784_s3] sm:$0xff] }
  0x28   : > { %401 = vmatpush.bf16.msra.mxu0 %v627_v5  ;;  %v630_v16 = vld [vmem:[%s784_s3 + $0x48] sm:$0xff]  ;;  %v629_v18 = vld [vmem:[%s784_s3 + $0x40] sm:$0xff] }
  0x29   : > { %415 = vmatpush.bf16.msra.mxu1 %v635_v6  ;;  %v544_v19 = vld [vmem:[%s786_s4] sm:$0xf]  ;;  %v620_v20 = vld [vmem:[%s786_s4 + $0x4] sm:$0xf0]  ;;  %v619_v21 = vld [vmem:[%s786_s4 + $0x4] sm:$0xf] }
  0x2a   : > { %v546_v22 = vld [vmem:[%s786_s4 + $0x8] sm:$0xf0]  ;;  %v545_v23 = vor.u32 %v620_v20, %v544_v19  ;;  %v258_v26 = vld [vmem:[%s844_s2] sm:$0xff] }
  0x2b   : > { %v549_v24 = vor.u32 %v619_v21, %v546_v22  ;;  %v259_v31 = vld [vmem:[%s844_s2 + $0x8] sm:$0xff] }
  0x2c   : > { %402 = vmatpush.bf16.msra.mxu0 %v626_v7 }
  0x2d   : > { %416 = vmatpush.bf16.msra.mxu1 %v634_v8 }
  0x30   : > { %403 = vmatpush.bf16.msra.mxu0 %v625_v9 }
  0x31   : > { %417 = vmatpush.bf16.msra.mxu1 %v633_v10 }
  0x34   : > { %404 = vmatpush.bf16.msra.mxu0 %v624_v11 }
  0x35   : > { %418 = vmatpush.bf16.msra.mxu1 %v632_v12 }
  0x38   : > { %405 = vmatpush.bf16.msra.mxu0 %v623_v13 }
  0x39   : > { %419 = vmatpush.bf16.msra.mxu1 %v631_v14 }
  0x3c   : > { %406 = vmatpush.bf16.msra.mxu0 %v622_v15 }
  0x3d   : > { %420 = vmatpush.bf16.msra.mxu1 %v630_v16 }
  0x40   : > { %407 = vmatpush.bf16.msra.mxu0 %v621_v17 }
  0x41   : > { %421 = vmatpush.bf16.msra.mxu1 %v629_v18 }
  0x43   : > { %408 = vmatmul.bf16.vlgmr.msra.gmra.mxu0 %v545_v23 }
  0x44   : > { %422 = vmatmul.bf16.vlgmr.msra.gmra.mxu1 %v549_v24 }
  0xc0   : > { %v409_v25 = vpop.f32.mrf.mxu0 }
  0xc1   : > { %v423_v27 = vpop.f32.mrf.mxu1 }
  0xc2   : > { %v424_v28 = vadd.f32 %v423_v27, %v409_v25 }
  0xc4   : > { %v428_v29 = vadd.f32 %v424_v28, %v258_v26 }
  0xc6   : > { %430 = vst [vmem:[%s844_s2] sm:$0xff] %v428_v29 }
  0xc8   : > { %v411_v30 = vpop.f32.mrf.mxu0 }
  0xc9   : > { %v425_v32 = vpop.f32.mrf.mxu1 }
  0xca   : > { %v426_v33 = vadd.f32 %v425_v32, %v411_v30 }
  0xcc   : > { %v429_v34 = vadd.f32 %v426_v33, %v259_v31 }
  0xce   : > { %431 = vst [vmem:[%s844_s2 + $0x8] sm:$0xff] %v429_v34 }
  0xcf PF: > { %s12_s13 = sadd.s32 1, %s716_s13   ;;  %s845_s9 = smov %s704_s10 }
  0xd0   : > { %p9_p11 = scmp.ge.s32.totalorder %s12_s13, 15   ;;  %s846_s10 = smov %s769_s17 }
  0xd1   : > { %s847_s11 = smov %s712_s12  ;;  %s848_s12 = smov %s850_s14 }
  0xd2   :  { %11 = sbr.rel (!%p9_p11) target bundleno = 3 (0x3), region = 108 }

// kernel: run.40
= control target key start
LH: loop header
LB: loop body
LE: loop exit
PB: predicated region body
PF: predicated region fallthrough
CT: control target
= control target key end

     0   :  { %s734_s9 = smov 0   ;;  %s736_s10 = smov 0   ;;  %s842_s0 = inlined_call_operand.vmem [shape: bf16[16,768], index: 0, kind: input, shape index: {}]   ;;  %s843_s1 = inlined_call_operand.vmem [shape: bf16[768,128], index: 1, kind: input, shape index: {}]   ;;  %s844_s2 = inlined_call_operand.vmem [shape: f32[16,128], index: 2, kind: output, shape index: {}]  }
   0x1   :  { %s738_s11 = smov 0   ;;  %s740_s12 = smov 0  }
   0x2   :  { %s742_s13 = smov 0  }
   0x3 LB: > { %s24_s14 = sadd.s32 1, %s712_s12  ;;  %p47_p1 = scmp.ne.s32.totalorder %s704_s10, %s700_s9  ;;  %s716_s13 = sphi %s742_s13, %s12_s13   ;;  %s712_s12 = sphi %s740_s12, %s848_s12   ;;  %s708_s11 = sphi %s738_s11, %s847_s11   ;;  %s704_s10 = sphi %s736_s10, %s846_s10   ;;  %s700_s9 = sphi %s734_s9, %s845_s9  }
   0x4   : > { %p25_p0 = scmp.ge.s32.totalorder %s24_s14, 3  ;;  %p48_p2 = scmp.eq.s32.totalorder %s716_s13, 0 }
   0x5   : > { %s40_s16 = sadd.s32 1, %s704_s10  ;;  %p533_p5 = scmp.ge.s32.totalorder %s716_s13, 3 }
   0x6   : > { %s850_s14 = smov (%p25_p0, %s24_s14), 0  ;;  %p49_p3 = por %p48_p2, %p47_p1 }
   0x7   : > { %s36_s15 = ssub.s32 %s712_s12, %s850_s14  ;;  %129 = sbr.rel (%p533_p5) target bundleno = 18 (0x12), region = 16 }
   0x8   : > { %p38_p4 = scmp.eq.s32.totalorder %s36_s15, 0 }
   0xa   : > { %s769_s17 = scalar_select %p38_p4, %s704_s10, %s40_s16  }
   0xc   : > { %132 = sbr.rel (!%p49_p3) target bundleno = 18 (0x12), region = 20  ;;  %s134_s18 = sand.u32 (%p49_p3), 1, %s704_s10  }
   0xd   : > { %s618_s19 = sshll.u32 (%p49_p3), %s712_s12, 3  ;;  %s534_s20 = sshll.u32 (%p49_p3), %s134_s18, 4 }
   0xe   : > { %s142_s23 = scalar_lea.vmem (%p49_p3), %s842_s0, %s618_s19  ;;  %s136_s24 = scalar_lea.vmem (%p49_p3), [#allocation2], %s534_s20 }
   0xf   : > { %v173_v0 = vld [vmem:[%s142_s23] sm:$0xff] (%p49_p3)  ;;  %v175_v1 = vld [vmem:[%s142_s23 + $0x18] sm:$0xff] (%p49_p3) }
  0x10   : > { %174 = vst [vmem:[%s136_s24] sm:$0xff] (%p49_p3), %v173_v0 }
  0x11   : > { %176 = vst [vmem:[%s136_s24 + $0x8] sm:$0xff] %v175_v1 }
  0x12 PF: > { %p537_p6 = scmp.ge.s32.totalorder %s716_s13, 1  ;;  %p193_p7 = scmp.lt.s32.totalorder %s716_s13, 4 }
  0x14   : > { %p194_p8 = pnand %p537_p6, %p193_p7 }
  0x15   : > { %s200_s25 = sand.u32 (!%p194_p8), 1, %s700_s9   ;;  %s539_s26 = sshll.u32 (!%p194_p8), %s708_s11, 5 }
  0x16   : > { %197 = sbr.rel (%p194_p8) target bundleno = 207 (0xcf), region = 62  ;;  %s538_s27 = sshll.u32 (!%p194_p8), %s200_s25, 4 }
  0x17   : > { %p235_p9 = scmp.lt.s32.totalorder (!%p194_p8), %s539_s26, 95  ;;  %s786_s4 = scalar_lea.vmem (!%p194_p8), [#allocation2], %s538_s27 }
  0x18   : > { %p541_p10 = scmp.ne.s32.totalorder (!%p194_p8), %s708_s11, 0 }
  0x1b   : > { %s852_s26 = smov (!%p235_p9, %s539_s26), 95  ;;  %255 = sbr.rel (%p541_p10) target bundleno = 35 (0x23), region = 70 }
  0x1c   : > { %s540_s28 = sshll.u32 %s852_s26, 2 }
  0x1d   : > { %s784_s3 = scalar_lea.vmem %s843_s1, %s540_s28 }
  0x20   : > { %v718_v2 = vmov 0.0  }
  0x21   : > { %256 = vst [vmem:[%s844_s2] sm:$0xff] %v718_v2 }
  0x22   : > { %257 = vst [vmem:[%s844_s2 + $0x8] sm:$0xff] %v718_v2 }
  0x23 PF: > { %v628_v3 = vld [vmem:[%s784_s3 + $0x38] sm:$0xff]  ;;  %v627_v5 = vld [vmem:[%s784_s3 + $0x30] sm:$0xff]  ;;  %v626_v7 = vld [vmem:[%s784_s3 + $0x28] sm:$0xff] }
  0x24   : > { %v636_v4 = vld [vmem:[%s784_s3 + $0x78] sm:$0xff]  ;;  %400 = vmatpush.bf16.msra.mxu0 %v628_v3  ;;  %v635_v6 = vld [vmem:[%s784_s3 + $0x70] sm:$0xff]  ;;  %v634_v8 = vld [vmem:[%s784_s3 + $0x68] sm:$0xff] }
  0x25   : > { %414 = vmatpush.bf16.msra.mxu1 %v636_v4  ;;  %v625_v9 = vld [vmem:[%s784_s3 + $0x20] sm:$0xff]  ;;  %v624_v11 = vld [vmem:[%s784_s3 + $0x18] sm:$0xff]  ;;  %v623_v13 = vld [vmem:[%s784_s3 + $0x10] sm:$0xff] }
  0x26   : > { %v633_v10 = vld [vmem:[%s784_s3 + $0x60] sm:$0xff]  ;;  %v632_v12 = vld [vmem:[%s784_s3 + $0x58] sm:$0xff]  ;;  %v631_v14 = vld [vmem:[%s784_s3 + $0x50] sm:$0xff] }
  0x27   : > { %v622_v15 = vld [vmem:[%s784_s3 + $0x8] sm:$0xff]  ;;  %v621_v17 = vld [vmem:[%s784_s3] sm:$0xff] }
  0x28   : > { %401 = vmatpush.bf16.msra.mxu0 %v627_v5  ;;  %v630_v16 = vld [vmem:[%s784_s3 + $0x48] sm:$0xff]  ;;  %v629_v18 = vld [vmem:[%s784_s3 + $0x40] sm:$0xff] }
  0x29   : > { %415 = vmatpush.bf16.msra.mxu1 %v635_v6  ;;  %v544_v19 = vld [vmem:[%s786_s4] sm:$0xf]  ;;  %v620_v20 = vld [vmem:[%s786_s4 + $0x4] sm:$0xf0]  ;;  %v619_v21 = vld [vmem:[%s786_s4 + $0x4] sm:$0xf] }
  0x2a   : > { %v546_v22 = vld [vmem:[%s786_s4 + $0x8] sm:$0xf0]  ;;  %v545_v23 = vor.u32 %v620_v20, %v544_v19  ;;  %v258_v26 = vld [vmem:[%s844_s2] sm:$0xff] }
  0x2b   : > { %v549_v24 = vor.u32 %v619_v21, %v546_v22  ;;  %v259_v31 = vld [vmem:[%s844_s2 + $0x8] sm:$0xff] }
  0x2c   : > { %402 = vmatpush.bf16.msra.mxu0 %v626_v7 }
  0x2d   : > { %416 = vmatpush.bf16.msra.mxu1 %v634_v8 }
  0x30   : > { %403 = vmatpush.bf16.msra.mxu0 %v625_v9 }
  0x31   : > { %417 = vmatpush.bf16.msra.mxu1 %v633_v10 }
  0x34   : > { %404 = vmatpush.bf16.msra.mxu0 %v624_v11 }
  0x35   : > { %418 = vmatpush.bf16.msra.mxu1 %v632_v12 }
  0x38   : > { %405 = vmatpush.bf16.msra.mxu0 %v623_v13 }
  0x39   : > { %419 = vmatpush.bf16.msra.mxu1 %v631_v14 }
  0x3c   : > { %406 = vmatpush.bf16.msra.mxu0 %v622_v15 }
  0x3d   : > { %420 = vmatpush.bf16.msra.mxu1 %v630_v16 }
  0x40   : > { %407 = vmatpush.bf16.msra.mxu0 %v621_v17 }
  0x41   : > { %421 = vmatpush.bf16.msra.mxu1 %v629_v18 }
  0x43   : > { %408 = vmatmul.bf16.vlgmr.msra.gmra.mxu0 %v545_v23 }
  0x44   : > { %422 = vmatmul.bf16.vlgmr.msra.gmra.mxu1 %v549_v24 }
  0xc0   : > { %v409_v25 = vpop.f32.mrf.mxu0 }
  0xc1   : > { %v423_v27 = vpop.f32.mrf.mxu1 }
  0xc2   : > { %v424_v28 = vadd.f32 %v423_v27, %v409_v25 }
  0xc4   : > { %v428_v29 = vadd.f32 %v424_v28, %v258_v26 }
  0xc6   : > { %430 = vst [vmem:[%s844_s2] sm:$0xff] %v428_v29 }
  0xc8   : > { %v411_v30 = vpop.f32.mrf.mxu0 }
  0xc9   : > { %v425_v32 = vpop.f32.mrf.mxu1 }
  0xca   : > { %v426_v33 = vadd.f32 %v425_v32, %v411_v30 }
  0xcc   : > { %v429_v34 = vadd.f32 %v426_v33, %v259_v31 }
  0xce   : > { %431 = vst [vmem:[%s844_s2 + $0x8] sm:$0xff] %v429_v34 }
  0xcf PF: > { %s12_s13 = sadd.s32 1, %s716_s13   ;;  %s845_s9 = smov %s704_s10 }
  0xd0   : > { %p9_p11 = scmp.ge.s32.totalorder %s12_s13, 5   ;;  %s846_s10 = smov %s769_s17 }
  0xd1   : > { %s847_s11 = smov %s712_s12  ;;  %s848_s12 = smov %s850_s14 }
  0xd2   :  { %11 = sbr.rel (!%p9_p11) target bundleno = 3 (0x3), region = 108 }

// kernel: run.45
= control target key start
LH: loop header
LB: loop body
LE: loop exit
PB: predicated region body
PF: predicated region fallthrough
CT: control target
= control target key end

     0   :  { %s734_s9 = smov 0   ;;  %s736_s10 = smov 0   ;;  %s842_s0 = inlined_call_operand.vmem [shape: bf16[16,1280], index: 0, kind: input, shape index: {}]   ;;  %s843_s1 = inlined_call_operand.vmem [shape: bf16[1280,128], index: 1, kind: input, shape index: {}]   ;;  %s844_s2 = inlined_call_operand.vmem [shape: f32[16,128], index: 2, kind: output, shape index: {}]  }
   0x1   :  { %s738_s11 = smov 0   ;;  %s740_s12 = smov 0  }
   0x2   :  { %s742_s13 = smov 0  }
   0x3 LB: > { %s24_s14 = sadd.s32 1, %s712_s12  ;;  %p47_p1 = scmp.ne.s32.totalorder %s704_s10, %s700_s9  ;;  %s716_s13 = sphi %s742_s13, %s12_s13   ;;  %s712_s12 = sphi %s740_s12, %s848_s12   ;;  %s708_s11 = sphi %s738_s11, %s847_s11   ;;  %s704_s10 = sphi %s736_s10, %s846_s10   ;;  %s700_s9 = sphi %s734_s9, %s845_s9  }
   0x4   : > { %p25_p0 = scmp.ge.s32.totalorder %s24_s14, 5  ;;  %p48_p2 = scmp.eq.s32.totalorder %s716_s13, 0 }
   0x5   : > { %s40_s16 = sadd.s32 1, %s704_s10  ;;  %p533_p5 = scmp.ge.s32.totalorder %s716_s13, 5 }
   0x6   : > { %s850_s14 = smov (%p25_p0, %s24_s14), 0  ;;  %p49_p3 = por %p48_p2, %p47_p1 }
   0x7   : > { %s36_s15 = ssub.s32 %s712_s12, %s850_s14  ;;  %129 = sbr.rel (%p533_p5) target bundleno = 18 (0x12), region = 16 }
   0x8   : > { %p38_p4 = scmp.eq.s32.totalorder %s36_s15, 0 }
   0xa   : > { %s769_s17 = scalar_select %p38_p4, %s704_s10, %s40_s16  }
   0xc   : > { %132 = sbr.rel (!%p49_p3) target bundleno = 18 (0x12), region = 20  ;;  %s134_s18 = sand.u32 (%p49_p3), 1, %s704_s10  }
   0xd   : > { %s618_s19 = sshll.u32 (%p49_p3), %s712_s12, 3  ;;  %s534_s20 = sshll.u32 (%p49_p3), %s134_s18, 4 }
   0xe   : > { %s142_s23 = scalar_lea.vmem (%p49_p3), %s842_s0, %s618_s19  ;;  %s136_s24 = scalar_lea.vmem (%p49_p3), [#allocation2], %s534_s20 }
   0xf   : > { %v173_v0 = vld [vmem:[%s142_s23] sm:$0xff] (%p49_p3)  ;;  %v175_v1 = vld [vmem:[%s142_s23 + $0x28] sm:$0xff] (%p49_p3) }
  0x10   : > { %174 = vst [vmem:[%s136_s24] sm:$0xff] (%p49_p3), %v173_v0 }
  0x11   : > { %176 = vst [vmem:[%s136_s24 + $0x8] sm:$0xff] %v175_v1 }
  0x12 PF: > { %p537_p6 = scmp.ge.s32.totalorder %s716_s13, 1  ;;  %p193_p7 = scmp.lt.s32.totalorder %s716_s13, 6 }
  0x14   : > { %p194_p8 = pnand %p537_p6, %p193_p7 }
  0x15   : > { %s200_s25 = sand.u32 (!%p194_p8), 1, %s700_s9   ;;  %s539_s26 = sshll.u32 (!%p194_p8), %s708_s11, 5 }
  0x16   : > { %197 = sbr.rel (%p194_p8) target bundleno = 207 (0xcf), region = 62  ;;  %s538_s27 = sshll.u32 (!%p194_p8), %s200_s25, 4 }
  0x17   : > { %p235_p9 = scmp.lt.s32.totalorder (!%p194_p8), %s539_s26, 159  ;;  %s786_s4 = scalar_lea.vmem (!%p194_p8), [#allocation2], %s538_s27 }
  0x18   : > { %p541_p10 = scmp.ne.s32.totalorder (!%p194_p8), %s708_s11, 0 }
  0x1b   : > { %s852_s26 = smov (!%p235_p9, %s539_s26), 159  ;;  %255 = sbr.rel (%p541_p10) target bundleno = 35 (0x23), region = 70 }
  0x1c   : > { %s540_s28 = sshll.u32 %s852_s26, 2 }
  0x1d   : > { %s784_s3 = scalar_lea.vmem %s843_s1, %s540_s28 }
  0x20   : > { %v718_v2 = vmov 0.0  }
  0x21   : > { %256 = vst [vmem:[%s844_s2] sm:$0xff] %v718_v2 }
  0x22   : > { %257 = vst [vmem:[%s844_s2 + $0x8] sm:$0xff] %v718_v2 }
  0x23 PF: > { %v628_v3 = vld [vmem:[%s784_s3 + $0x38] sm:$0xff]  ;;  %v627_v5 = vld [vmem:[%s784_s3 + $0x30] sm:$0xff]  ;;  %v626_v7 = vld [vmem:[%s784_s3 + $0x28] sm:$0xff] }
  0x24   : > { %v636_v4 = vld [vmem:[%s784_s3 + $0x78] sm:$0xff]  ;;  %400 = vmatpush.bf16.msra.mxu0 %v628_v3  ;;  %v635_v6 = vld [vmem:[%s784_s3 + $0x70] sm:$0xff]  ;;  %v634_v8 = vld [vmem:[%s784_s3 + $0x68] sm:$0xff] }
  0x25   : > { %414 = vmatpush.bf16.msra.mxu1 %v636_v4  ;;  %v625_v9 = vld [vmem:[%s784_s3 + $0x20] sm:$0xff]  ;;  %v624_v11 = vld [vmem:[%s784_s3 + $0x18] sm:$0xff]  ;;  %v623_v13 = vld [vmem:[%s784_s3 + $0x10] sm:$0xff] }
  0x26   : > { %v633_v10 = vld [vmem:[%s784_s3 + $0x60] sm:$0xff]  ;;  %v632_v12 = vld [vmem:[%s784_s3 + $0x58] sm:$0xff]  ;;  %v631_v14 = vld [vmem:[%s784_s3 + $0x50] sm:$0xff] }
  0x27   : > { %v622_v15 = vld [vmem:[%s784_s3 + $0x8] sm:$0xff]  ;;  %v621_v17 = vld [vmem:[%s784_s3] sm:$0xff] }
  0x28   : > { %401 = vmatpush.bf16.msra.mxu0 %v627_v5  ;;  %v630_v16 = vld [vmem:[%s784_s3 + $0x48] sm:$0xff]  ;;  %v629_v18 = vld [vmem:[%s784_s3 + $0x40] sm:$0xff] }
  0x29   : > { %415 = vmatpush.bf16.msra.mxu1 %v635_v6  ;;  %v544_v19 = vld [vmem:[%s786_s4] sm:$0xf]  ;;  %v620_v20 = vld [vmem:[%s786_s4 + $0x4] sm:$0xf0]  ;;  %v619_v21 = vld [vmem:[%s786_s4 + $0x4] sm:$0xf] }
  0x2a   : > { %v546_v22 = vld [vmem:[%s786_s4 + $0x8] sm:$0xf0]  ;;  %v545_v23 = vor.u32 %v620_v20, %v544_v19  ;;  %v258_v26 = vld [vmem:[%s844_s2] sm:$0xff] }
  0x2b   : > { %v549_v24 = vor.u32 %v619_v21, %v546_v22  ;;  %v259_v31 = vld [vmem:[%s844_s2 + $0x8] sm:$0xff] }
  0x2c   : > { %402 = vmatpush.bf16.msra.mxu0 %v626_v7 }
  0x2d   : > { %416 = vmatpush.bf16.msra.mxu1 %v634_v8 }
  0x30   : > { %403 = vmatpush.bf16.msra.mxu0 %v625_v9 }
  0x31   : > { %417 = vmatpush.bf16.msra.mxu1 %v633_v10 }
  0x34   : > { %404 = vmatpush.bf16.msra.mxu0 %v624_v11 }
  0x35   : > { %418 = vmatpush.bf16.msra.mxu1 %v632_v12 }
  0x38   : > { %405 = vmatpush.bf16.msra.mxu0 %v623_v13 }
  0x39   : > { %419 = vmatpush.bf16.msra.mxu1 %v631_v14 }
  0x3c   : > { %406 = vmatpush.bf16.msra.mxu0 %v622_v15 }
  0x3d   : > { %420 = vmatpush.bf16.msra.mxu1 %v630_v16 }
  0x40   : > { %407 = vmatpush.bf16.msra.mxu0 %v621_v17 }
  0x41   : > { %421 = vmatpush.bf16.msra.mxu1 %v629_v18 }
  0x43   : > { %408 = vmatmul.bf16.vlgmr.msra.gmra.mxu0 %v545_v23 }
  0x44   : > { %422 = vmatmul.bf16.vlgmr.msra.gmra.mxu1 %v549_v24 }
  0xc0   : > { %v409_v25 = vpop.f32.mrf.mxu0 }
  0xc1   : > { %v423_v27 = vpop.f32.mrf.mxu1 }
  0xc2   : > { %v424_v28 = vadd.f32 %v423_v27, %v409_v25 }
  0xc4   : > { %v428_v29 = vadd.f32 %v424_v28, %v258_v26 }
  0xc6   : > { %430 = vst [vmem:[%s844_s2] sm:$0xff] %v428_v29 }
  0xc8   : > { %v411_v30 = vpop.f32.mrf.mxu0 }
  0xc9   : > { %v425_v32 = vpop.f32.mrf.mxu1 }
  0xca   : > { %v426_v33 = vadd.f32 %v425_v32, %v411_v30 }
  0xcc   : > { %v429_v34 = vadd.f32 %v426_v33, %v259_v31 }
  0xce   : > { %431 = vst [vmem:[%s844_s2 + $0x8] sm:$0xff] %v429_v34 }
  0xcf PF: > { %s12_s13 = sadd.s32 1, %s716_s13   ;;  %s845_s9 = smov %s704_s10 }
  0xd0   : > { %p9_p11 = scmp.ge.s32.totalorder %s12_s13, 7   ;;  %s846_s10 = smov %s769_s17 }
  0xd1   : > { %s847_s11 = smov %s712_s12  ;;  %s848_s12 = smov %s850_s14 }
  0xd2   :  { %11 = sbr.rel (!%p9_p11) target bundleno = 3 (0x3), region = 108 }

// kernel: run.46
= control target key start
LH: loop header
LB: loop body
LE: loop exit
PB: predicated region body
PF: predicated region fallthrough
CT: control target
= control target key end

     0   :  { %s207_s1 = inlined_call_operand.vmem [shape: bf16[128,128], index: 1, kind: input, shape index: {}]   ;;  %s208_s0 = inlined_call_operand.vmem [shape: bf16[16,128], index: 0, kind: input, shape index: {}]   ;;  %s209_s2 = inlined_call_operand.vmem [shape: f32[16,128], index: 2, kind: output, shape index: {}]  }
   0x1   :  { %v157_v0 = vld [vmem:[%s207_s1 + $0x38] sm:$0xff]  ;;  %v156_v1 = vld [vmem:[%s207_s1 + $0x30] sm:$0xff]  ;;  %v155_v2 = vld [vmem:[%s207_s1 + $0x28] sm:$0xff] }
   0x2   :  { %91 = vmatpush.bf16.msra.mxu0 %v157_v0  ;;  %v154_v3 = vld [vmem:[%s207_s1 + $0x20] sm:$0xff]  ;;  %v153_v4 = vld [vmem:[%s207_s1 + $0x18] sm:$0xff]  ;;  %v152_v5 = vld [vmem:[%s207_s1 + $0x10] sm:$0xff] }
   0x3   :  { %v151_v6 = vld [vmem:[%s207_s1 + $0x8] sm:$0xff]  ;;  %v150_v7 = vld [vmem:[%s207_s1] sm:$0xff] }
   0x4   :  { %v149_v8 = vld [vmem:[%s208_s0] sm:$0xff] }
   0x6   :  { %92 = vmatpush.bf16.msra.mxu0 %v156_v1 }
   0xa   :  { %93 = vmatpush.bf16.msra.mxu0 %v155_v2 }
   0xe   :  { %94 = vmatpush.bf16.msra.mxu0 %v154_v3 }
  0x12   :  { %95 = vmatpush.bf16.msra.mxu0 %v153_v4 }
  0x16   :  { %96 = vmatpush.bf16.msra.mxu0 %v152_v5 }
  0x1a   :  { %97 = vmatpush.bf16.msra.mxu0 %v151_v6 }
  0x1e   :  { %98 = vmatpush.bf16.msra.mxu0 %v150_v7 }
  0x21   :  { %99 = vmatmul.bf16.vlgmr.msra.gmra.mxu0 %v149_v8 }
  0x9e   :  { %v100_v9 = vpop.f32.mrf.mxu0 }
  0x9f   :  { %107 = vst [vmem:[%s209_s2] sm:$0xff] %v100_v9 }
  0xa6   :  { %v102_v10 = vpop.f32.mrf.mxu0 }
  0xa7   :  { %108 = vst [vmem:[%s209_s2 + $0x8] sm:$0xff] %v102_v10 }

// kernel: run.49
= control target key start
LH: loop header
LB: loop body
LE: loop exit
PB: predicated region body
PF: predicated region fallthrough
CT: control target
= control target key end

     0   :  { %s941_s9 = smov 0   ;;  %s943_s10 = smov 0   ;;  %s1115_s0 = inlined_call_operand.vmem [shape: bf16[16,1280], index: 0, kind: input, shape index: {}]   ;;  %s1116_s1 = inlined_call_operand.vmem [shape: bf16[1280,256], index: 1, kind: input, shape index: {}]   ;;  %s1117_s2 = inlined_call_operand.vmem [shape: f32[16,256], index: 2, kind: output, shape index: {}]  }
   0x1   :  { %s945_s11 = smov 0   ;;  %s947_s12 = smov 0  }
   0x2   :  { %s949_s13 = smov 0  }
   0x3 LB: > { %s24_s14 = sadd.s32 1, %s919_s12  ;;  %p47_p1 = scmp.ne.s32.totalorder %s911_s10, %s907_s9  ;;  %s923_s13 = sphi %s949_s13, %s12_s13   ;;  %s919_s12 = sphi %s947_s12, %s1121_s12   ;;  %s915_s11 = sphi %s945_s11, %s1120_s11   ;;  %s911_s10 = sphi %s943_s10, %s1119_s10   ;;  %s907_s9 = sphi %s941_s9, %s1118_s9  }
   0x4   : > { %p25_p0 = scmp.ge.s32.totalorder %s24_s14, 5  ;;  %p48_p2 = scmp.eq.s32.totalorder %s923_s13, 0 }
   0x5   : > { %s40_s16 = sadd.s32 1, %s911_s10  ;;  %p658_p5 = scmp.ge.s32.totalorder %s923_s13, 5 }
   0x6   : > { %s1123_s14 = smov (%p25_p0, %s24_s14), 0  ;;  %p49_p3 = por %p48_p2, %p47_p1 }
   0x7   : > { %s36_s15 = ssub.s32 %s919_s12, %s1123_s14  ;;  %129 = sbr.rel (%p658_p5) target bundleno = 18 (0x12), region = 16 }
   0x8   : > { %p38_p4 = scmp.eq.s32.totalorder %s36_s15, 0 }
   0xa   : > { %s976_s17 = scalar_select %p38_p4, %s911_s10, %s40_s16  }
   0xc   : > { %132 = sbr.rel (!%p49_p3) target bundleno = 18 (0x12), region = 20  ;;  %s134_s18 = sand.u32 (%p49_p3), 1, %s911_s10  }
   0xd   : > { %s808_s19 = sshll.u32 (%p49_p3), %s919_s12, 3  ;;  %s659_s20 = sshll.u32 (%p49_p3), %s134_s18, 4 }
   0xe   : > { %s142_s23 = scalar_lea.vmem (%p49_p3), %s1115_s0, %s808_s19  ;;  %s136_s24 = scalar_lea.vmem (%p49_p3), [#allocation2], %s659_s20 }
   0xf   : > { %v173_v0 = vld [vmem:[%s142_s23] sm:$0xff] (%p49_p3)  ;;  %v175_v1 = vld [vmem:[%s142_s23 + $0x28] sm:$0xff] (%p49_p3) }
  0x10   : > { %174 = vst [vmem:[%s136_s24] sm:$0xff] (%p49_p3), %v173_v0 }
  0x11   : > { %176 = vst [vmem:[%s136_s24 + $0x8] sm:$0xff] %v175_v1 }
  0x12 PF: > { %p662_p6 = scmp.ge.s32.totalorder %s923_s13, 1  ;;  %p196_p7 = scmp.lt.s32.totalorder %s923_s13, 6 }
  0x14   : > { %p197_p8 = pnand %p662_p6, %p196_p7 }
  0x15   : > { %s203_s25 = sand.u32 (!%p197_p8), 1, %s907_s9   ;;  %s664_s26 = sshll.u32 (!%p197_p8), %s915_s11, 5 }
  0x16   : > { %200 = sbr.rel (%p197_p8) target bundleno = 218 (0xda), region = 62  ;;  %s663_s27 = sshll.u32 (!%p197_p8), %s203_s25, 4 }
  0x17   : > { %p243_p9 = scmp.lt.s32.totalorder (!%p197_p8), %s664_s26, 159  ;;  %s993_s4 = scalar_lea.vmem (!%p197_p8), [#allocation2], %s663_s27 }
  0x18   : > { %p667_p10 = scmp.ne.s32.totalorder (!%p197_p8), %s915_s11, 0 }
  0x1b   : > { %s1125_s26 = smov (!%p243_p9, %s664_s26), 159  ;;  %268 = sbr.rel (%p667_p10) target bundleno = 37 (0x25), region = 70 }
  0x1c   : > { %s809_s28 = sshll.u32 %s1125_s26, 3 }
  0x1d   : > { %s991_s3 = scalar_lea.vmem %s1116_s1, %s809_s28 }
  0x20   : > { %v925_v2 = vmov 0.0  }
  0x21   : > { %269 = vst [vmem:[%s1117_s2] sm:$0xff] %v925_v2 }
  0x22   : > { %270 = vst [vmem:[%s1117_s2 + $0x8] sm:$0xff] %v925_v2 }
  0x23   : > { %271 = vst [vmem:[%s1117_s2 + $0x10] sm:$0xff] %v925_v2 }
  0x24   : > { %272 = vst [vmem:[%s1117_s2 + $0x18] sm:$0xff] %v925_v2 }
  0x25 PF: > { %v734_v3 = vld [vmem:[%s991_s3 + $0x70] sm:$0xf]  ;;  %v827_v4 = vld [vmem:[%s991_s3 + $0x74] sm:$0xf0]  ;;  %v826_v8 = vld [vmem:[%s991_s3 + $0x74] sm:$0xf] }
  0x26   : > { %v798_v5 = vld [vmem:[%s991_s3 + $0xf0] sm:$0xf]  ;;  %v735_v6 = vor.u32 %v827_v4, %v734_v3  ;;  %v843_v7 = vld [vmem:[%s991_s3 + $0xf4] sm:$0xf0]  ;;  %v736_v9 = vld [vmem:[%s991_s3 + $0x78] sm:$0xf0] }
  0x27   : > { %v799_v10 = vor.u32 %v843_v7, %v798_v5  ;;  %v739_v11 = vor.u32 %v826_v8, %v736_v9  ;;  %v842_v12 = vld [vmem:[%s991_s3 + $0xf4] sm:$0xf]  ;;  %v800_v13 = vld [vmem:[%s991_s3 + $0xf8] sm:$0xf0]  ;;  %v726_v14 = vld [vmem:[%s991_s3 + $0x60] sm:$0xf] }
  0x28   : > { %481 = vmatpush.bf16.msra.mxu0 %v735_v6  ;;  %v803_v15 = vor.u32 %v842_v12, %v800_v13  ;;  %v825_v16 = vld [vmem:[%s991_s3 + $0x64] sm:$0xf0]  ;;  %v790_v17 = vld [vmem:[%s991_s3 + $0xe0] sm:$0xf]  ;;  %v824_v21 = vld [vmem:[%s991_s3 + $0x64] sm:$0xf] }
  0x29   : > { %v841_v18 = vld [vmem:[%s991_s3 + $0xe4] sm:$0xf0]  ;;  %495 = vmatpush.bf16.msra.mxu1 %v799_v10  ;;  %509 = vmatpush.bf16.msra.mxu2 %v739_v11  ;;  %v727_v19 = vor.u32 %v825_v16, %v726_v14  ;;  %v728_v22 = vld [vmem:[%s991_s3 + $0x68] sm:$0xf0]  ;;  %v840_v23 = vld [vmem:[%s991_s3 + $0xe4] sm:$0xf] }
  0x2a   : > { %v791_v20 = vor.u32 %v841_v18, %v790_v17  ;;  %523 = vmatpush.bf16.msra.mxu3 %v803_v15  ;;  %v731_v24 = vor.u32 %v824_v21, %v728_v22  ;;  %v792_v25 = vld [vmem:[%s991_s3 + $0xe8] sm:$0xf0]  ;;  %v718_v26 = vld [vmem:[%s991_s3 + $0x50] sm:$0xf]  ;;  %v823_v27 = vld [vmem:[%s991_s3 + $0x54] sm:$0xf0] }
  0x2b   : > { %v795_v28 = vor.u32 %v840_v23, %v792_v25  ;;  %v782_v29 = vld [vmem:[%s991_s3 + $0xd0] sm:$0xf]  ;;  %v839_v30 = vld [vmem:[%s991_s3 + $0xd4] sm:$0xf0]  ;;  %v822_v31 = vld [vmem:[%s991_s3 + $0x54] sm:$0xf]  ;;  %v719_v32 = vor.u32 %v823_v27, %v718_v26 }
  0x2c   : > { %482 = vmatpush.bf16.msra.mxu0 %v727_v19  ;;  %v720_v33 = vld [vmem:[%s991_s3 + $0x58] sm:$0xf0]  ;;  %v838_v34 = vld [vmem:[%s991_s3 + $0xd4] sm:$0xf]  ;;  %v783_v36 = vor.u32 %v839_v30, %v782_v29  ;;  %v710_v38 = vld [vmem:[%s991_s3 + $0x40] sm:$0xf] }
  0x2d   : > { %v784_v35 = vld [vmem:[%s991_s3 + $0xd8] sm:$0xf0]  ;;  %496 = vmatpush.bf16.msra.mxu1 %v791_v20  ;;  %510 = vmatpush.bf16.msra.mxu2 %v731_v24  ;;  %v723_v37 = vor.u32 %v822_v31, %v720_v33  ;;  %v821_v39 = vld [vmem:[%s991_s3 + $0x44] sm:$0xf0]  ;;  %v774_v40 = vld [vmem:[%s991_s3 + $0xc0] sm:$0xf] }
  0x2e   : > { %524 = vmatpush.bf16.msra.mxu3 %v795_v28  ;;  %v787_v41 = vor.u32 %v838_v34, %v784_v35  ;;  %v837_v42 = vld [vmem:[%s991_s3 + $0xc4] sm:$0xf0]  ;;  %v820_v43 = vld [vmem:[%s991_s3 + $0x44] sm:$0xf]  ;;  %v712_v44 = vld [vmem:[%s991_s3 + $0x48] sm:$0xf0]  ;;  %v711_v47 = vor.u32 %v821_v39, %v710_v38 }
  0x2f   : > { %v836_v45 = vld [vmem:[%s991_s3 + $0xc4] sm:$0xf]  ;;  %v776_v46 = vld [vmem:[%s991_s3 + $0xc8] sm:$0xf0]  ;;  %v775_v48 = vor.u32 %v837_v42, %v774_v40  ;;  %v715_v49 = vor.u32 %v820_v43, %v712_v44  ;;  %v702_v50 = vld [vmem:[%s991_s3 + $0x30] sm:$0xf] }
  0x30   : > { %483 = vmatpush.bf16.msra.mxu0 %v719_v32  ;;  %v819_v51 = vld [vmem:[%s991_s3 + $0x34] sm:$0xf0]  ;;  %v766_v52 = vld [vmem:[%s991_s3 + $0xb0] sm:$0xf]  ;;  %v779_v53 = vor.u32 %v836_v45, %v776_v46  ;;  %v818_v55 = vld [vmem:[%s991_s3 + $0x34] sm:$0xf] }
  0x31   : > { %497 = vmatpush.bf16.msra.mxu1 %v783_v36  ;;  %511 = vmatpush.bf16.msra.mxu2 %v723_v37  ;;  %v835_v54 = vld [vmem:[%s991_s3 + $0xb4] sm:$0xf0]  ;;  %v704_v56 = vld [vmem:[%s991_s3 + $0x38] sm:$0xf0]  ;;  %v834_v57 = vld [vmem:[%s991_s3 + $0xb4] sm:$0xf]  ;;  %v703_v59 = vor.u32 %v819_v51, %v702_v50 }
  0x32   : > { %525 = vmatpush.bf16.msra.mxu3 %v787_v41  ;;  %v768_v58 = vld [vmem:[%s991_s3 + $0xb8] sm:$0xf0]  ;;  %v767_v60 = vor.u32 %v835_v54, %v766_v52  ;;  %v707_v61 = vor.u32 %v818_v55, %v704_v56  ;;  %v694_v62 = vld [vmem:[%s991_s3 + $0x20] sm:$0xf]  ;;  %v817_v63 = vld [vmem:[%s991_s3 + $0x24] sm:$0xf0] }
  0x33   : > { %v758_v0 = vld [vmem:[%s991_s3 + $0xa0] sm:$0xf]  ;;  %v771_v1 = vor.u32 %v834_v57, %v768_v58  ;;  %v833_v2 = vld [vmem:[%s991_s3 + $0xa4] sm:$0xf0]  ;;  %v816_v3 = vld [vmem:[%s991_s3 + $0x24] sm:$0xf]  ;;  %v695_v7 = vor.u32 %v817_v63, %v694_v62 }
  0x34   : > { %484 = vmatpush.bf16.msra.mxu0 %v711_v47  ;;  %v696_v4 = vld [vmem:[%s991_s3 + $0x28] sm:$0xf0]  ;;  %v832_v5 = vld [vmem:[%s991_s3 + $0xa4] sm:$0xf]  ;;  %v759_v8 = vor.u32 %v833_v2, %v758_v0  ;;  %v686_v10 = vld [vmem:[%s991_s3 + $0x10] sm:$0xf] }
  0x35   : > { %498 = vmatpush.bf16.msra.mxu1 %v775_v48  ;;  %512 = vmatpush.bf16.msra.mxu2 %v715_v49  ;;  %v760_v6 = vld [vmem:[%s991_s3 + $0xa8] sm:$0xf0]  ;;  %v699_v9 = vor.u32 %v816_v3, %v696_v4  ;;  %v815_v11 = vld [vmem:[%s991_s3 + $0x14] sm:$0xf0]  ;;  %v750_v12 = vld [vmem:[%s991_s3 + $0x90] sm:$0xf] }
  0x36   : > { %526 = vmatpush.bf16.msra.mxu3 %v779_v53  ;;  %v763_v13 = vor.u32 %v832_v5, %v760_v6  ;;  %v831_v14 = vld [vmem:[%s991_s3 + $0x94] sm:$0xf0]  ;;  %v814_v15 = vld [vmem:[%s991_s3 + $0x14] sm:$0xf]  ;;  %v688_v16 = vld [vmem:[%s991_s3 + $0x18] sm:$0xf0]  ;;  %v687_v19 = vor.u32 %v815_v11, %v686_v10 }
  0x37   : > { %v830_v17 = vld [vmem:[%s991_s3 + $0x94] sm:$0xf]  ;;  %v752_v18 = vld [vmem:[%s991_s3 + $0x98] sm:$0xf0]  ;;  %v751_v20 = vor.u32 %v831_v14, %v750_v12  ;;  %v691_v21 = vor.u32 %v814_v15, %v688_v16  ;;  %v678_v22 = vld [vmem:[%s991_s3] sm:$0xf] }
  0x38   : > { %485 = vmatpush.bf16.msra.mxu0 %v703_v59  ;;  %v813_v23 = vld [vmem:[%s991_s3 + $0x4] sm:$0xf0]  ;;  %v742_v24 = vld [vmem:[%s991_s3 + $0x80] sm:$0xf]  ;;  %v755_v25 = vor.u32 %v830_v17, %v752_v18  ;;  %v812_v27 = vld [vmem:[%s991_s3 + $0x4] sm:$0xf] }
  0x39   : > { %499 = vmatpush.bf16.msra.mxu1 %v767_v60  ;;  %513 = vmatpush.bf16.msra.mxu2 %v707_v61  ;;  %v829_v26 = vld [vmem:[%s991_s3 + $0x84] sm:$0xf0]  ;;  %v680_v28 = vld [vmem:[%s991_s3 + $0x8] sm:$0xf0]  ;;  %v828_v29 = vld [vmem:[%s991_s3 + $0x84] sm:$0xf]  ;;  %v679_v31 = vor.u32 %v813_v23, %v678_v22 }
  0x3a   : > { %527 = vmatpush.bf16.msra.mxu3 %v771_v1  ;;  %v744_v30 = vld [vmem:[%s991_s3 + $0x88] sm:$0xf0]  ;;  %v670_v32 = vld [vmem:[%s993_s4] sm:$0xf]  ;;  %v811_v33 = vld [vmem:[%s993_s4 + $0x4] sm:$0xf0]  ;;  %v743_v34 = vor.u32 %v829_v26, %v742_v24  ;;  %v683_v35 = vor.u32 %v812_v27, %v680_v28 }
  0x3b   : > { %v810_v36 = vld [vmem:[%s993_s4 + $0x4] sm:$0xf]  ;;  %v672_v37 = vld [vmem:[%s993_s4 + $0x8] sm:$0xf0]  ;;  %v747_v38 = vor.u32 %v828_v29, %v744_v30  ;;  %v671_v39 = vor.u32 %v811_v33, %v670_v32 }
  0x3c   : > { %486 = vmatpush.bf16.msra.mxu0 %v695_v7  ;;  %v675_v40 = vor.u32 %v810_v36, %v672_v37  ;;  %v273_v42 = vld [vmem:[%s1117_s2] sm:$0xff]  ;;  %v274_v47 = vld [vmem:[%s1117_s2 + $0x8] sm:$0xff]  ;;  %v275_v51 = vld [vmem:[%s1117_s2 + $0x10] sm:$0xff] }
  0x3d   : > { %500 = vmatpush.bf16.msra.mxu1 %v759_v8  ;;  %514 = vmatpush.bf16.msra.mxu2 %v699_v9  ;;  %v276_v57 = vld [vmem:[%s1117_s2 + $0x18] sm:$0xff] }
  0x3e   : > { %528 = vmatpush.bf16.msra.mxu3 %v763_v13 }
  0x40   : > { %487 = vmatpush.bf16.msra.mxu0 %v687_v19 }
  0x41   : > { %501 = vmatpush.bf16.msra.mxu1 %v751_v20  ;;  %515 = vmatpush.bf16.msra.mxu2 %v691_v21 }
  0x42   : > { %529 = vmatpush.bf16.msra.mxu3 %v755_v25 }
  0x44   : > { %488 = vmatpush.bf16.msra.mxu0 %v679_v31 }
  0x45   : > { %502 = vmatpush.bf16.msra.mxu1 %v743_v34  ;;  %516 = vmatpush.bf16.msra.mxu2 %v683_v35 }
  0x46   : > { %530 = vmatpush.bf16.msra.mxu3 %v747_v38 }
  0x47   : > { %489 = vmatmul.bf16.vlgmr.msra.gmra.mxu0 %v671_v39 }
  0x48   : > { %503 = vmatmul.bf16.vlgmr.msra.gmra.mxu1 %v675_v40  ;;  %517 = vmatmul.bf16.vlgmr.msra.gmra.mxu2 %v671_v39 }
  0x49   : > { %531 = vmatmul.bf16.vlgmr.msra.gmra.mxu3 %v675_v40 }
  0xc4   : > { %v490_v41 = vpop.f32.mrf.mxu0 }
  0xc5   : > { %v504_v43 = vpop.f32.mrf.mxu1 }
  0xc6   : > { %v505_v44 = vadd.f32 %v504_v43, %v490_v41 }
  0xc8   : > { %v537_v45 = vadd.f32 %v505_v44, %v273_v42 }
  0xca   : > { %541 = vst [vmem:[%s1117_s2] sm:$0xff] %v537_v45 }
  0xcb   : > { %v518_v46 = vpop.f32.mrf.mxu2 }
  0xcc   : > { %v532_v48 = vpop.f32.mrf.mxu3  ;;  %v492_v49 = vpop.f32.mrf.mxu0 }
  0xcd   : > { %v533_v50 = vadd.f32 %v532_v48, %v518_v46  ;;  %v506_v52 = vpop.f32.mrf.mxu1 }
  0xce   : > { %v507_v53 = vadd.f32 %v506_v52, %v492_v49 }
  0xcf   : > { %v538_v54 = vadd.f32 %v533_v50, %v274_v47 }
  0xd0   : > { %v539_v55 = vadd.f32 %v507_v53, %v275_v51 }
  0xd1   : > { %542 = vst [vmem:[%s1117_s2 + $0x8] sm:$0xff] %v538_v54 }
  0xd2   : > { %543 = vst [vmem:[%s1117_s2 + $0x10] sm:$0xff] %v539_v55 }
  0xd3   : > { %v520_v56 = vpop.f32.mrf.mxu2 }
  0xd4   : > { %v534_v58 = vpop.f32.mrf.mxu3 }
  0xd5   : > { %v535_v59 = vadd.f32 %v534_v58, %v520_v56 }
  0xd7   : > { %v540_v60 = vadd.f32 %v535_v59, %v276_v57 }
  0xd9   : > { %544 = vst [vmem:[%s1117_s2 + $0x18] sm:$0xff] %v540_v60 }
  0xda PF: > { %s12_s13 = sadd.s32 1, %s923_s13   ;;  %s1118_s9 = smov %s911_s10 }
  0xdb   : > { %p9_p11 = scmp.ge.s32.totalorder %s12_s13, 7   ;;  %s1119_s10 = smov %s976_s17 }
  0xdc   : > { %s1120_s11 = smov %s919_s12  ;;  %s1121_s12 = smov %s1123_s14 }
  0xdd   :  { %11 = sbr.rel (!%p9_p11) target bundleno = 3 (0x3), region = 108 }

// kernel: run.50
= control target key start
LH: loop header
LB: loop body
LE: loop exit
PB: predicated region body
PF: predicated region fallthrough
CT: control target
= control target key end

     0   :  { %s941_s9 = smov 0   ;;  %s943_s10 = smov 0   ;;  %s1115_s0 = inlined_call_operand.vmem [shape: bf16[16,2304], index: 0, kind: input, shape index: {}]   ;;  %s1116_s1 = inlined_call_operand.vmem [shape: bf16[2304,256], index: 1, kind: input, shape index: {}]   ;;  %s1117_s2 = inlined_call_operand.vmem [shape: f32[16,256], index: 2, kind: output, shape index: {}]  }
   0x1   :  { %s945_s11 = smov 0   ;;  %s947_s12 = smov 0  }
   0x2   :  { %s949_s13 = smov 0  }
   0x3 LB: > { %s24_s14 = sadd.s32 1, %s919_s12  ;;  %p47_p1 = scmp.ne.s32.totalorder %s911_s10, %s907_s9  ;;  %s923_s13 = sphi %s949_s13, %s12_s13   ;;  %s919_s12 = sphi %s947_s12, %s1121_s12   ;;  %s915_s11 = sphi %s945_s11, %s1120_s11   ;;  %s911_s10 = sphi %s943_s10, %s1119_s10   ;;  %s907_s9 = sphi %s941_s9, %s1118_s9  }
   0x4   : > { %p25_p0 = scmp.ge.s32.totalorder %s24_s14, 9  ;;  %p48_p2 = scmp.eq.s32.totalorder %s923_s13, 0 }
   0x5   : > { %s40_s16 = sadd.s32 1, %s911_s10  ;;  %p658_p5 = scmp.ge.s32.totalorder %s923_s13, 9 }
   0x6   : > { %s1123_s14 = smov (%p25_p0, %s24_s14), 0  ;;  %p49_p3 = por %p48_p2, %p47_p1 }
   0x7   : > { %s36_s15 = ssub.s32 %s919_s12, %s1123_s14  ;;  %129 = sbr.rel (%p658_p5) target bundleno = 18 (0x12), region = 16 }
   0x8   : > { %p38_p4 = scmp.eq.s32.totalorder %s36_s15, 0 }
   0xa   : > { %s976_s17 = scalar_select %p38_p4, %s911_s10, %s40_s16  }
   0xc   : > { %132 = sbr.rel (!%p49_p3) target bundleno = 18 (0x12), region = 20  ;;  %s134_s18 = sand.u32 (%p49_p3), 1, %s911_s10  }
   0xd   : > { %s808_s19 = sshll.u32 (%p49_p3), %s919_s12, 3  ;;  %s659_s20 = sshll.u32 (%p49_p3), %s134_s18, 4 }
   0xe   : > { %s142_s23 = scalar_lea.vmem (%p49_p3), %s1115_s0, %s808_s19  ;;  %s136_s24 = scalar_lea.vmem (%p49_p3), [#allocation2], %s659_s20 }
   0xf   : > { %v173_v0 = vld [vmem:[%s142_s23] sm:$0xff] (%p49_p3)  ;;  %v175_v1 = vld [vmem:[%s142_s23 + $0x48] sm:$0xff] (%p49_p3) }
  0x10   : > { %174 = vst [vmem:[%s136_s24] sm:$0xff] (%p49_p3), %v173_v0 }
  0x11   : > { %176 = vst [vmem:[%s136_s24 + $0x8] sm:$0xff] %v175_v1 }
  0x12 PF: > { %p662_p6 = scmp.ge.s32.totalorder %s923_s13, 1  ;;  %p196_p7 = scmp.lt.s32.totalorder %s923_s13, 10 }
  0x14   : > { %p197_p8 = pnand %p662_p6, %p196_p7 }
  0x15   : > { %s203_s25 = sand.u32 (!%p197_p8), 1, %s907_s9   ;;  %s664_s26 = sshll.u32 (!%p197_p8), %s915_s11, 5 }
  0x16   : > { %200 = sbr.rel (%p197_p8) target bundleno = 218 (0xda), region = 62  ;;  %s663_s27 = sshll.u32 (!%p197_p8), %s203_s25, 4 }
  0x17   : > { %p243_p9 = scmp.lt.s32.totalorder (!%p197_p8), %s664_s26, 287  ;;  %s993_s4 = scalar_lea.vmem (!%p197_p8), [#allocation2], %s663_s27 }
  0x18   : > { %p667_p10 = scmp.ne.s32.totalorder (!%p197_p8), %s915_s11, 0 }
  0x1b   : > { %s1125_s26 = smov (!%p243_p9, %s664_s26), 287  ;;  %268 = sbr.rel (%p667_p10) target bundleno = 37 (0x25), region = 70 }
  0x1c   : > { %s809_s28 = sshll.u32 %s1125_s26, 3 }
  0x1d   : > { %s991_s3 = scalar_lea.vmem %s1116_s1, %s809_s28 }
  0x20   : > { %v925_v2 = vmov 0.0  }
  0x21   : > { %269 = vst [vmem:[%s1117_s2] sm:$0xff] %v925_v2 }
  0x22   : > { %270 = vst [vmem:[%s1117_s2 + $0x8] sm:$0xff] %v925_v2 }
  0x23   : > { %271 = vst [vmem:[%s1117_s2 + $0x10] sm:$0xff] %v925_v2 }
  0x24   : > { %272 = vst [vmem:[%s1117_s2 + $0x18] sm:$0xff] %v925_v2 }
  0x25 PF: > { %v734_v3 = vld [vmem:[%s991_s3 + $0x70] sm:$0xf]  ;;  %v827_v4 = vld [vmem:[%s991_s3 + $0x74] sm:$0xf0]  ;;  %v826_v8 = vld [vmem:[%s991_s3 + $0x74] sm:$0xf] }
  0x26   : > { %v798_v5 = vld [vmem:[%s991_s3 + $0xf0] sm:$0xf]  ;;  %v735_v6 = vor.u32 %v827_v4, %v734_v3  ;;  %v843_v7 = vld [vmem:[%s991_s3 + $0xf4] sm:$0xf0]  ;;  %v736_v9 = vld [vmem:[%s991_s3 + $0x78] sm:$0xf0] }
  0x27   : > { %v799_v10 = vor.u32 %v843_v7, %v798_v5  ;;  %v739_v11 = vor.u32 %v826_v8, %v736_v9  ;;  %v842_v12 = vld [vmem:[%s991_s3 + $0xf4] sm:$0xf]  ;;  %v800_v13 = vld [vmem:[%s991_s3 + $0xf8] sm:$0xf0]  ;;  %v726_v14 = vld [vmem:[%s991_s3 + $0x60] sm:$0xf] }
  0x28   : > { %481 = vmatpush.bf16.msra.mxu0 %v735_v6  ;;  %v803_v15 = vor.u32 %v842_v12, %v800_v13  ;;  %v825_v16 = vld [vmem:[%s991_s3 + $0x64] sm:$0xf0]  ;;  %v790_v17 = vld [vmem:[%s991_s3 + $0xe0] sm:$0xf]  ;;  %v824_v21 = vld [vmem:[%s991_s3 + $0x64] sm:$0xf] }
  0x29   : > { %v841_v18 = vld [vmem:[%s991_s3 + $0xe4] sm:$0xf0]  ;;  %495 = vmatpush.bf16.msra.mxu1 %v799_v10  ;;  %509 = vmatpush.bf16.msra.mxu2 %v739_v11  ;;  %v727_v19 = vor.u32 %v825_v16, %v726_v14  ;;  %v728_v22 = vld [vmem:[%s991_s3 + $0x68] sm:$0xf0]  ;;  %v840_v23 = vld [vmem:[%s991_s3 + $0xe4] sm:$0xf] }
  0x2a   : > { %v791_v20 = vor.u32 %v841_v18, %v790_v17  ;;  %523 = vmatpush.bf16.msra.mxu3 %v803_v15  ;;  %v731_v24 = vor.u32 %v824_v21, %v728_v22  ;;  %v792_v25 = vld [vmem:[%s991_s3 + $0xe8] sm:$0xf0]  ;;  %v718_v26 = vld [vmem:[%s991_s3 + $0x50] sm:$0xf]  ;;  %v823_v27 = vld [vmem:[%s991_s3 + $0x54] sm:$0xf0] }
  0x2b   : > { %v795_v28 = vor.u32 %v840_v23, %v792_v25  ;;  %v782_v29 = vld [vmem:[%s991_s3 + $0xd0] sm:$0xf]  ;;  %v839_v30 = vld [vmem:[%s991_s3 + $0xd4] sm:$0xf0]  ;;  %v822_v31 = vld [vmem:[%s991_s3 + $0x54] sm:$0xf]  ;;  %v719_v32 = vor.u32 %v823_v27, %v718_v26 }
  0x2c   : > { %482 = vmatpush.bf16.msra.mxu0 %v727_v19  ;;  %v720_v33 = vld [vmem:[%s991_s3 + $0x58] sm:$0xf0]  ;;  %v838_v34 = vld [vmem:[%s991_s3 + $0xd4] sm:$0xf]  ;;  %v783_v36 = vor.u32 %v839_v30, %v782_v29  ;;  %v710_v38 = vld [vmem:[%s991_s3 + $0x40] sm:$0xf] }
  0x2d   : > { %v784_v35 = vld [vmem:[%s991_s3 + $0xd8] sm:$0xf0]  ;;  %496 = vmatpush.bf16.msra.mxu1 %v791_v20  ;;  %510 = vmatpush.bf16.msra.mxu2 %v731_v24  ;;  %v723_v37 = vor.u32 %v822_v31, %v720_v33  ;;  %v821_v39 = vld [vmem:[%s991_s3 + $0x44] sm:$0xf0]  ;;  %v774_v40 = vld [vmem:[%s991_s3 + $0xc0] sm:$0xf] }
  0x2e   : > { %524 = vmatpush.bf16.msra.mxu3 %v795_v28  ;;  %v787_v41 = vor.u32 %v838_v34, %v784_v35  ;;  %v837_v42 = vld [vmem:[%s991_s3 + $0xc4] sm:$0xf0]  ;;  %v820_v43 = vld [vmem:[%s991_s3 + $0x44] sm:$0xf]  ;;  %v712_v44 = vld [vmem:[%s991_s3 + $0x48] sm:$0xf0]  ;;  %v711_v47 = vor.u32 %v821_v39, %v710_v38 }
  0x2f   : > { %v836_v45 = vld [vmem:[%s991_s3 + $0xc4] sm:$0xf]  ;;  %v776_v46 = vld [vmem:[%s991_s3 + $0xc8] sm:$0xf0]  ;;  %v775_v48 = vor.u32 %v837_v42, %v774_v40  ;;  %v715_v49 = vor.u32 %v820_v43, %v712_v44  ;;  %v702_v50 = vld [vmem:[%s991_s3 + $0x30] sm:$0xf] }
  0x30   : > { %483 = vmatpush.bf16.msra.mxu0 %v719_v32  ;;  %v819_v51 = vld [vmem:[%s991_s3 + $0x34] sm:$0xf0]  ;;  %v766_v52 = vld [vmem:[%s991_s3 + $0xb0] sm:$0xf]  ;;  %v779_v53 = vor.u32 %v836_v45, %v776_v46  ;;  %v818_v55 = vld [vmem:[%s991_s3 + $0x34] sm:$0xf] }
  0x31   : > { %497 = vmatpush.bf16.msra.mxu1 %v783_v36  ;;  %511 = vmatpush.bf16.msra.mxu2 %v723_v37  ;;  %v835_v54 = vld [vmem:[%s991_s3 + $0xb4] sm:$0xf0]  ;;  %v704_v56 = vld [vmem:[%s991_s3 + $0x38] sm:$0xf0]  ;;  %v834_v57 = vld [vmem:[%s991_s3 + $0xb4] sm:$0xf]  ;;  %v703_v59 = vor.u32 %v819_v51, %v702_v50 }
  0x32   : > { %525 = vmatpush.bf16.msra.mxu3 %v787_v41  ;;  %v768_v58 = vld [vmem:[%s991_s3 + $0xb8] sm:$0xf0]  ;;  %v767_v60 = vor.u32 %v835_v54, %v766_v52  ;;  %v707_v61 = vor.u32 %v818_v55, %v704_v56  ;;  %v694_v62 = vld [vmem:[%s991_s3 + $0x20] sm:$0xf]  ;;  %v817_v63 = vld [vmem:[%s991_s3 + $0x24] sm:$0xf0] }
  0x33   : > { %v758_v0 = vld [vmem:[%s991_s3 + $0xa0] sm:$0xf]  ;;  %v771_v1 = vor.u32 %v834_v57, %v768_v58  ;;  %v833_v2 = vld [vmem:[%s991_s3 + $0xa4] sm:$0xf0]  ;;  %v816_v3 = vld [vmem:[%s991_s3 + $0x24] sm:$0xf]  ;;  %v695_v7 = vor.u32 %v817_v63, %v694_v62 }
  0x34   : > { %484 = vmatpush.bf16.msra.mxu0 %v711_v47  ;;  %v696_v4 = vld [vmem:[%s991_s3 + $0x28] sm:$0xf0]  ;;  %v832_v5 = vld [vmem:[%s991_s3 + $0xa4] sm:$0xf]  ;;  %v759_v8 = vor.u32 %v833_v2, %v758_v0  ;;  %v686_v10 = vld [vmem:[%s991_s3 + $0x10] sm:$0xf] }
  0x35   : > { %498 = vmatpush.bf16.msra.mxu1 %v775_v48  ;;  %512 = vmatpush.bf16.msra.mxu2 %v715_v49  ;;  %v760_v6 = vld [vmem:[%s991_s3 + $0xa8] sm:$0xf0]  ;;  %v699_v9 = vor.u32 %v816_v3, %v696_v4  ;;  %v815_v11 = vld [vmem:[%s991_s3 + $0x14] sm:$0xf0]  ;;  %v750_v12 = vld [vmem:[%s991_s3 + $0x90] sm:$0xf] }
  0x36   : > { %526 = vmatpush.bf16.msra.mxu3 %v779_v53  ;;  %v763_v13 = vor.u32 %v832_v5, %v760_v6  ;;  %v831_v14 = vld [vmem:[%s991_s3 + $0x94] sm:$0xf0]  ;;  %v814_v15 = vld [vmem:[%s991_s3 + $0x14] sm:$0xf]  ;;  %v688_v16 = vld [vmem:[%s991_s3 + $0x18] sm:$0xf0]  ;;  %v687_v19 = vor.u32 %v815_v11, %v686_v10 }
  0x37   : > { %v830_v17 = vld [vmem:[%s991_s3 + $0x94] sm:$0xf]  ;;  %v752_v18 = vld [vmem:[%s991_s3 + $0x98] sm:$0xf0]  ;;  %v751_v20 = vor.u32 %v831_v14, %v750_v12  ;;  %v691_v21 = vor.u32 %v814_v15, %v688_v16  ;;  %v678_v22 = vld [vmem:[%s991_s3] sm:$0xf] }
  0x38   : > { %485 = vmatpush.bf16.msra.mxu0 %v703_v59  ;;  %v813_v23 = vld [vmem:[%s991_s3 + $0x4] sm:$0xf0]  ;;  %v742_v24 = vld [vmem:[%s991_s3 + $0x80] sm:$0xf]  ;;  %v755_v25 = vor.u32 %v830_v17, %v752_v18  ;;  %v812_v27 = vld [vmem:[%s991_s3 + $0x4] sm:$0xf] }
  0x39   : > { %499 = vmatpush.bf16.msra.mxu1 %v767_v60  ;;  %513 = vmatpush.bf16.msra.mxu2 %v707_v61  ;;  %v829_v26 = vld [vmem:[%s991_s3 + $0x84] sm:$0xf0]  ;;  %v680_v28 = vld [vmem:[%s991_s3 + $0x8] sm:$0xf0]  ;;  %v828_v29 = vld [vmem:[%s991_s3 + $0x84] sm:$0xf]  ;;  %v679_v31 = vor.u32 %v813_v23, %v678_v22 }
  0x3a   : > { %527 = vmatpush.bf16.msra.mxu3 %v771_v1  ;;  %v744_v30 = vld [vmem:[%s991_s3 + $0x88] sm:$0xf0]  ;;  %v670_v32 = vld [vmem:[%s993_s4] sm:$0xf]  ;;  %v811_v33 = vld [vmem:[%s993_s4 + $0x4] sm:$0xf0]  ;;  %v743_v34 = vor.u32 %v829_v26, %v742_v24  ;;  %v683_v35 = vor.u32 %v812_v27, %v680_v28 }
  0x3b   : > { %v810_v36 = vld [vmem:[%s993_s4 + $0x4] sm:$0xf]  ;;  %v672_v37 = vld [vmem:[%s993_s4 + $0x8] sm:$0xf0]  ;;  %v747_v38 = vor.u32 %v828_v29, %v744_v30  ;;  %v671_v39 = vor.u32 %v811_v33, %v670_v32 }
  0x3c   : > { %486 = vmatpush.bf16.msra.mxu0 %v695_v7  ;;  %v675_v40 = vor.u32 %v810_v36, %v672_v37  ;;  %v273_v42 = vld [vmem:[%s1117_s2] sm:$0xff]  ;;  %v274_v47 = vld [vmem:[%s1117_s2 + $0x8] sm:$0xff]  ;;  %v275_v51 = vld [vmem:[%s1117_s2 + $0x10] sm:$0xff] }
  0x3d   : > { %500 = vmatpush.bf16.msra.mxu1 %v759_v8  ;;  %514 = vmatpush.bf16.msra.mxu2 %v699_v9  ;;  %v276_v57 = vld [vmem:[%s1117_s2 + $0x18] sm:$0xff] }
  0x3e   : > { %528 = vmatpush.bf16.msra.mxu3 %v763_v13 }
  0x40   : > { %487 = vmatpush.bf16.msra.mxu0 %v687_v19 }
  0x41   : > { %501 = vmatpush.bf16.msra.mxu1 %v751_v20  ;;  %515 = vmatpush.bf16.msra.mxu2 %v691_v21 }
  0x42   : > { %529 = vmatpush.bf16.msra.mxu3 %v755_v25 }
  0x44   : > { %488 = vmatpush.bf16.msra.mxu0 %v679_v31 }
  0x45   : > { %502 = vmatpush.bf16.msra.mxu1 %v743_v34  ;;  %516 = vmatpush.bf16.msra.mxu2 %v683_v35 }
  0x46   : > { %530 = vmatpush.bf16.msra.mxu3 %v747_v38 }
  0x47   : > { %489 = vmatmul.bf16.vlgmr.msra.gmra.mxu0 %v671_v39 }
  0x48   : > { %503 = vmatmul.bf16.vlgmr.msra.gmra.mxu1 %v675_v40  ;;  %517 = vmatmul.bf16.vlgmr.msra.gmra.mxu2 %v671_v39 }
  0x49   : > { %531 = vmatmul.bf16.vlgmr.msra.gmra.mxu3 %v675_v40 }
  0xc4   : > { %v490_v41 = vpop.f32.mrf.mxu0 }
  0xc5   : > { %v504_v43 = vpop.f32.mrf.mxu1 }
  0xc6   : > { %v505_v44 = vadd.f32 %v504_v43, %v490_v41 }
  0xc8   : > { %v537_v45 = vadd.f32 %v505_v44, %v273_v42 }
  0xca   : > { %541 = vst [vmem:[%s1117_s2] sm:$0xff] %v537_v45 }
  0xcb   : > { %v518_v46 = vpop.f32.mrf.mxu2 }
  0xcc   : > { %v532_v48 = vpop.f32.mrf.mxu3  ;;  %v492_v49 = vpop.f32.mrf.mxu0 }
  0xcd   : > { %v533_v50 = vadd.f32 %v532_v48, %v518_v46  ;;  %v506_v52 = vpop.f32.mrf.mxu1 }
  0xce   : > { %v507_v53 = vadd.f32 %v506_v52, %v492_v49 }
  0xcf   : > { %v538_v54 = vadd.f32 %v533_v50, %v274_v47 }
  0xd0   : > { %v539_v55 = vadd.f32 %v507_v53, %v275_v51 }
  0xd1   : > { %542 = vst [vmem:[%s1117_s2 + $0x8] sm:$0xff] %v538_v54 }
  0xd2   : > { %543 = vst [vmem:[%s1117_s2 + $0x10] sm:$0xff] %v539_v55 }
  0xd3   : > { %v520_v56 = vpop.f32.mrf.mxu2 }
  0xd4   : > { %v534_v58 = vpop.f32.mrf.mxu3 }
  0xd5   : > { %v535_v59 = vadd.f32 %v534_v58, %v520_v56 }
  0xd7   : > { %v540_v60 = vadd.f32 %v535_v59, %v276_v57 }
  0xd9   : > { %544 = vst [vmem:[%s1117_s2 + $0x18] sm:$0xff] %v540_v60 }
  0xda PF: > { %s12_s13 = sadd.s32 1, %s923_s13   ;;  %s1118_s9 = smov %s911_s10 }
  0xdb   : > { %p9_p11 = scmp.ge.s32.totalorder %s12_s13, 11   ;;  %s1119_s10 = smov %s976_s17 }
  0xdc   : > { %s1120_s11 = smov %s919_s12  ;;  %s1121_s12 = smov %s1123_s14 }
  0xdd   :  { %11 = sbr.rel (!%p9_p11) target bundleno = 3 (0x3), region = 108 }

// kernel: run.51
= control target key start
LH: loop header
LB: loop body
LE: loop exit
PB: predicated region body
PF: predicated region fallthrough
CT: control target
= control target key end

     0   :  { %s379_s1 = inlined_call_operand.vmem [shape: bf16[128,256], index: 1, kind: input, shape index: {}]   ;;  %s380_s0 = inlined_call_operand.vmem [shape: bf16[16,128], index: 0, kind: input, shape index: {}]   ;;  %s381_s2 = inlined_call_operand.vmem [shape: f32[16,256], index: 2, kind: output, shape index: {}]  }
   0x1   :  { %v229_v0 = vld [vmem:[%s379_s1 + $0x70] sm:$0xf]  ;;  %v251_v1 = vld [vmem:[%s379_s1 + $0x74] sm:$0xf0]  ;;  %v250_v2 = vld [vmem:[%s379_s1 + $0x74] sm:$0xf] }
   0x2   :  { %v230_v3 = vor.u32 %v251_v1, %v229_v0  ;;  %v231_v4 = vld [vmem:[%s379_s1 + $0x78] sm:$0xf0]  ;;  %v221_v5 = vld [vmem:[%s379_s1 + $0x60] sm:$0xf]  ;;  %v249_v6 = vld [vmem:[%s379_s1 + $0x64] sm:$0xf0] }
   0x3   :  { %v234_v7 = vor.u32 %v250_v2, %v231_v4  ;;  %v248_v8 = vld [vmem:[%s379_s1 + $0x64] sm:$0xf]  ;;  %v223_v9 = vld [vmem:[%s379_s1 + $0x68] sm:$0xf0]  ;;  %v222_v10 = vor.u32 %v249_v6, %v221_v5  ;;  %v213_v12 = vld [vmem:[%s379_s1 + $0x50] sm:$0xf] }
   0x4   :  { %127 = vmatpush.bf16.msra.mxu0 %v230_v3  ;;  %v226_v11 = vor.u32 %v248_v8, %v223_v9  ;;  %v247_v13 = vld [vmem:[%s379_s1 + $0x54] sm:$0xf0]  ;;  %v246_v14 = vld [vmem:[%s379_s1 + $0x54] sm:$0xf]  ;;  %v215_v15 = vld [vmem:[%s379_s1 + $0x58] sm:$0xf0] }
   0x5   :  { %141 = vmatpush.bf16.msra.mxu1 %v234_v7  ;;  %v214_v16 = vor.u32 %v247_v13, %v213_v12  ;;  %v218_v17 = vor.u32 %v246_v14, %v215_v15  ;;  %v205_v18 = vld [vmem:[%s379_s1 + $0x40] sm:$0xf]  ;;  %v245_v19 = vld [vmem:[%s379_s1 + $0x44] sm:$0xf0]  ;;  %v244_v20 = vld [vmem:[%s379_s1 + $0x44] sm:$0xf] }
   0x6   :  { %v207_v21 = vld [vmem:[%s379_s1 + $0x48] sm:$0xf0]  ;;  %v206_v22 = vor.u32 %v245_v19, %v205_v18  ;;  %v197_v24 = vld [vmem:[%s379_s1 + $0x30] sm:$0xf]  ;;  %v243_v25 = vld [vmem:[%s379_s1 + $0x34] sm:$0xf0] }
   0x7   :  { %v210_v23 = vor.u32 %v244_v20, %v207_v21  ;;  %v242_v26 = vld [vmem:[%s379_s1 + $0x34] sm:$0xf]  ;;  %v199_v27 = vld [vmem:[%s379_s1 + $0x38] sm:$0xf0]  ;;  %v198_v28 = vor.u32 %v243_v25, %v197_v24  ;;  %v189_v30 = vld [vmem:[%s379_s1 + $0x20] sm:$0xf] }
   0x8   :  { %128 = vmatpush.bf16.msra.mxu0 %v222_v10  ;;  %v202_v29 = vor.u32 %v242_v26, %v199_v27  ;;  %v241_v31 = vld [vmem:[%s379_s1 + $0x24] sm:$0xf0]  ;;  %v240_v32 = vld [vmem:[%s379_s1 + $0x24] sm:$0xf]  ;;  %v191_v33 = vld [vmem:[%s379_s1 + $0x28] sm:$0xf0] }
   0x9   :  { %142 = vmatpush.bf16.msra.mxu1 %v226_v11  ;;  %v190_v34 = vor.u32 %v241_v31, %v189_v30  ;;  %v194_v35 = vor.u32 %v240_v32, %v191_v33  ;;  %v181_v36 = vld [vmem:[%s379_s1 + $0x10] sm:$0xf]  ;;  %v239_v37 = vld [vmem:[%s379_s1 + $0x14] sm:$0xf0]  ;;  %v238_v38 = vld [vmem:[%s379_s1 + $0x14] sm:$0xf] }
   0xa   :  { %v183_v39 = vld [vmem:[%s379_s1 + $0x18] sm:$0xf0]  ;;  %v182_v40 = vor.u32 %v239_v37, %v181_v36  ;;  %v173_v42 = vld [vmem:[%s379_s1] sm:$0xf]  ;;  %v237_v43 = vld [vmem:[%s379_s1 + $0x4] sm:$0xf0] }
   0xb   :  { %v186_v41 = vor.u32 %v238_v38, %v183_v39  ;;  %v236_v44 = vld [vmem:[%s379_s1 + $0x4] sm:$0xf]  ;;  %v175_v45 = vld [vmem:[%s379_s1 + $0x8] sm:$0xf0]  ;;  %v174_v46 = vor.u32 %v237_v43, %v173_v42 }
   0xc   :  { %129 = vmatpush.bf16.msra.mxu0 %v214_v16  ;;  %v178_v47 = vor.u32 %v236_v44, %v175_v45  ;;  %v235_v48 = vld [vmem:[%s380_s0] sm:$0xff] }
   0xd   :  { %143 = vmatpush.bf16.msra.mxu1 %v218_v17 }
  0x10   :  { %130 = vmatpush.bf16.msra.mxu0 %v206_v22 }
  0x11   :  { %144 = vmatpush.bf16.msra.mxu1 %v210_v23 }
  0x14   :  { %131 = vmatpush.bf16.msra.mxu0 %v198_v28 }
  0x15   :  { %145 = vmatpush.bf16.msra.mxu1 %v202_v29 }
  0x18   :  { %132 = vmatpush.bf16.msra.mxu0 %v190_v34 }
  0x19   :  { %146 = vmatpush.bf16.msra.mxu1 %v194_v35 }
  0x1c   :  { %133 = vmatpush.bf16.msra.mxu0 %v182_v40 }
  0x1d   :  { %147 = vmatpush.bf16.msra.mxu1 %v186_v41 }
  0x20   :  { %134 = vmatpush.bf16.msra.mxu0 %v174_v46 }
  0x21   :  { %148 = vmatpush.bf16.msra.mxu1 %v178_v47 }
  0x23   :  { %135 = vmatmul.bf16.vlgmr.msra.gmra.mxu0 %v235_v48 }
  0x24   :  { %149 = vmatmul.bf16.vlgmr.msra.gmra.mxu1 %v235_v48 }
  0xa0   :  { %v136_v49 = vpop.f32.mrf.mxu0 }
  0xa1   :  { %v150_v50 = vpop.f32.mrf.mxu1  ;;  %159 = vst [vmem:[%s381_s2] sm:$0xff] %v136_v49 }
  0xa2   :  { %160 = vst [vmem:[%s381_s2 + $0x8] sm:$0xff] %v150_v50 }
  0xa8   :  { %v138_v51 = vpop.f32.mrf.mxu0 }
  0xa9   :  { %v152_v52 = vpop.f32.mrf.mxu1  ;;  %161 = vst [vmem:[%s381_s2 + $0x10] sm:$0xff] %v138_v51 }
  0xaa   :  { %162 = vst [vmem:[%s381_s2 + $0x18] sm:$0xff] %v152_v52 }

// kernel: run.54
= control target key start
LH: loop header
LB: loop body
LE: loop exit
PB: predicated region body
PF: predicated region fallthrough
CT: control target
= control target key end

     0   :  { %s941_s9 = smov 0   ;;  %s943_s10 = smov 0   ;;  %s1115_s0 = inlined_call_operand.vmem [shape: bf16[16,3072], index: 0, kind: input, shape index: {}]   ;;  %s1116_s1 = inlined_call_operand.vmem [shape: bf16[3072,256], index: 1, kind: input, shape index: {}]   ;;  %s1117_s2 = inlined_call_operand.vmem [shape: f32[16,256], index: 2, kind: output, shape index: {}]  }
   0x1   :  { %s945_s11 = smov 0   ;;  %s947_s12 = smov 0  }
   0x2   :  { %s949_s13 = smov 0  }
   0x3 LB: > { %s24_s14 = sadd.s32 1, %s919_s12  ;;  %p47_p1 = scmp.ne.s32.totalorder %s911_s10, %s907_s9  ;;  %s923_s13 = sphi %s949_s13, %s12_s13   ;;  %s919_s12 = sphi %s947_s12, %s1121_s12   ;;  %s915_s11 = sphi %s945_s11, %s1120_s11   ;;  %s911_s10 = sphi %s943_s10, %s1119_s10   ;;  %s907_s9 = sphi %s941_s9, %s1118_s9  }
   0x4   : > { %p25_p0 = scmp.ge.s32.totalorder %s24_s14, 12  ;;  %p48_p2 = scmp.eq.s32.totalorder %s923_s13, 0 }
   0x5   : > { %s40_s16 = sadd.s32 1, %s911_s10  ;;  %p658_p5 = scmp.ge.s32.totalorder %s923_s13, 12 }
   0x6   : > { %s1123_s14 = smov (%p25_p0, %s24_s14), 0  ;;  %p49_p3 = por %p48_p2, %p47_p1 }
   0x7   : > { %s36_s15 = ssub.s32 %s919_s12, %s1123_s14  ;;  %129 = sbr.rel (%p658_p5) target bundleno = 18 (0x12), region = 16 }
   0x8   : > { %p38_p4 = scmp.eq.s32.totalorder %s36_s15, 0 }
   0xa   : > { %s976_s17 = scalar_select %p38_p4, %s911_s10, %s40_s16  }
   0xc   : > { %132 = sbr.rel (!%p49_p3) target bundleno = 18 (0x12), region = 20  ;;  %s134_s18 = sand.u32 (%p49_p3), 1, %s911_s10  }
   0xd   : > { %s808_s19 = sshll.u32 (%p49_p3), %s919_s12, 3  ;;  %s659_s20 = sshll.u32 (%p49_p3), %s134_s18, 4 }
   0xe   : > { %s142_s23 = scalar_lea.vmem (%p49_p3), %s1115_s0, %s808_s19  ;;  %s136_s24 = scalar_lea.vmem (%p49_p3), [#allocation2], %s659_s20 }
   0xf   : > { %v173_v0 = vld [vmem:[%s142_s23] sm:$0xff] (%p49_p3) }
  0x10   : > { %v175_v1 = vld [vmem:[%s142_s23 + $0x60] sm:$0xff] (%p49_p3)  ;;  %174 = vst [vmem:[%s136_s24] sm:$0xff] (%p49_p3), %v173_v0 }
  0x11   : > { %176 = vst [vmem:[%s136_s24 + $0x8] sm:$0xff] %v175_v1 }
  0x12 PF: > { %p662_p6 = scmp.ge.s32.totalorder %s923_s13, 1  ;;  %p196_p7 = scmp.lt.s32.totalorder %s923_s13, 13 }
  0x14   : > { %p197_p8 = pnand %p662_p6, %p196_p7 }
  0x15   : > { %s203_s25 = sand.u32 (!%p197_p8), 1, %s907_s9   ;;  %s664_s26 = sshll.u32 (!%p197_p8), %s915_s11, 5 }
  0x16   : > { %200 = sbr.rel (%p197_p8) target bundleno = 218 (0xda), region = 62  ;;  %s663_s27 = sshll.u32 (!%p197_p8), %s203_s25, 4 }
  0x17   : > { %p243_p9 = scmp.lt.s32.totalorder (!%p197_p8), %s664_s26, 383  ;;  %s993_s4 = scalar_lea.vmem (!%p197_p8), [#allocation2], %s663_s27 }
  0x18   : > { %p667_p10 = scmp.ne.s32.totalorder (!%p197_p8), %s915_s11, 0 }
  0x1b   : > { %s1125_s26 = smov (!%p243_p9, %s664_s26), 383  ;;  %268 = sbr.rel (%p667_p10) target bundleno = 37 (0x25), region = 70 }
  0x1c   : > { %s809_s28 = sshll.u32 %s1125_s26, 3 }
  0x1d   : > { %s991_s3 = scalar_lea.vmem %s1116_s1, %s809_s28 }
  0x20   : > { %v925_v2 = vmov 0.0  }
  0x21   : > { %269 = vst [vmem:[%s1117_s2] sm:$0xff] %v925_v2 }
  0x22   : > { %270 = vst [vmem:[%s1117_s2 + $0x8] sm:$0xff] %v925_v2 }
  0x23   : > { %271 = vst [vmem:[%s1117_s2 + $0x10] sm:$0xff] %v925_v2 }
  0x24   : > { %272 = vst [vmem:[%s1117_s2 + $0x18] sm:$0xff] %v925_v2 }
  0x25 PF: > { %v734_v3 = vld [vmem:[%s991_s3 + $0x70] sm:$0xf]  ;;  %v827_v4 = vld [vmem:[%s991_s3 + $0x74] sm:$0xf0]  ;;  %v826_v8 = vld [vmem:[%s991_s3 + $0x74] sm:$0xf] }
  0x26   : > { %v798_v5 = vld [vmem:[%s991_s3 + $0xf0] sm:$0xf]  ;;  %v735_v6 = vor.u32 %v827_v4, %v734_v3  ;;  %v843_v7 = vld [vmem:[%s991_s3 + $0xf4] sm:$0xf0]  ;;  %v736_v9 = vld [vmem:[%s991_s3 + $0x78] sm:$0xf0] }
  0x27   : > { %v799_v10 = vor.u32 %v843_v7, %v798_v5  ;;  %v739_v11 = vor.u32 %v826_v8, %v736_v9  ;;  %v842_v12 = vld [vmem:[%s991_s3 + $0xf4] sm:$0xf]  ;;  %v800_v13 = vld [vmem:[%s991_s3 + $0xf8] sm:$0xf0]  ;;  %v726_v14 = vld [vmem:[%s991_s3 + $0x60] sm:$0xf] }
  0x28   : > { %481 = vmatpush.bf16.msra.mxu0 %v735_v6  ;;  %v803_v15 = vor.u32 %v842_v12, %v800_v13  ;;  %v825_v16 = vld [vmem:[%s991_s3 + $0x64] sm:$0xf0]  ;;  %v790_v17 = vld [vmem:[%s991_s3 + $0xe0] sm:$0xf]  ;;  %v824_v21 = vld [vmem:[%s991_s3 + $0x64] sm:$0xf] }
  0x29   : > { %v841_v18 = vld [vmem:[%s991_s3 + $0xe4] sm:$0xf0]  ;;  %495 = vmatpush.bf16.msra.mxu1 %v799_v10  ;;  %509 = vmatpush.bf16.msra.mxu2 %v739_v11  ;;  %v727_v19 = vor.u32 %v825_v16, %v726_v14  ;;  %v728_v22 = vld [vmem:[%s991_s3 + $0x68] sm:$0xf0]  ;;  %v840_v23 = vld [vmem:[%s991_s3 + $0xe4] sm:$0xf] }
  0x2a   : > { %v791_v20 = vor.u32 %v841_v18, %v790_v17  ;;  %523 = vmatpush.bf16.msra.mxu3 %v803_v15  ;;  %v731_v24 = vor.u32 %v824_v21, %v728_v22  ;;  %v792_v25 = vld [vmem:[%s991_s3 + $0xe8] sm:$0xf0]  ;;  %v718_v26 = vld [vmem:[%s991_s3 + $0x50] sm:$0xf]  ;;  %v823_v27 = vld [vmem:[%s991_s3 + $0x54] sm:$0xf0] }
  0x2b   : > { %v795_v28 = vor.u32 %v840_v23, %v792_v25  ;;  %v782_v29 = vld [vmem:[%s991_s3 + $0xd0] sm:$0xf]  ;;  %v839_v30 = vld [vmem:[%s991_s3 + $0xd4] sm:$0xf0]  ;;  %v822_v31 = vld [vmem:[%s991_s3 + $0x54] sm:$0xf]  ;;  %v719_v32 = vor.u32 %v823_v27, %v718_v26 }
  0x2c   : > { %482 = vmatpush.bf16.msra.mxu0 %v727_v19  ;;  %v720_v33 = vld [vmem:[%s991_s3 + $0x58] sm:$0xf0]  ;;  %v838_v34 = vld [vmem:[%s991_s3 + $0xd4] sm:$0xf]  ;;  %v783_v36 = vor.u32 %v839_v30, %v782_v29  ;;  %v710_v38 = vld [vmem:[%s991_s3 + $0x40] sm:$0xf] }
  0x2d   : > { %v784_v35 = vld [vmem:[%s991_s3 + $0xd8] sm:$0xf0]  ;;  %496 = vmatpush.bf16.msra.mxu1 %v791_v20  ;;  %510 = vmatpush.bf16.msra.mxu2 %v731_v24  ;;  %v723_v37 = vor.u32 %v822_v31, %v720_v33  ;;  %v821_v39 = vld [vmem:[%s991_s3 + $0x44] sm:$0xf0]  ;;  %v774_v40 = vld [vmem:[%s991_s3 + $0xc0] sm:$0xf] }
  0x2e   : > { %524 = vmatpush.bf16.msra.mxu3 %v795_v28  ;;  %v787_v41 = vor.u32 %v838_v34, %v784_v35  ;;  %v837_v42 = vld [vmem:[%s991_s3 + $0xc4] sm:$0xf0]  ;;  %v820_v43 = vld [vmem:[%s991_s3 + $0x44] sm:$0xf]  ;;  %v712_v44 = vld [vmem:[%s991_s3 + $0x48] sm:$0xf0]  ;;  %v711_v47 = vor.u32 %v821_v39, %v710_v38 }
  0x2f   : > { %v836_v45 = vld [vmem:[%s991_s3 + $0xc4] sm:$0xf]  ;;  %v776_v46 = vld [vmem:[%s991_s3 + $0xc8] sm:$0xf0]  ;;  %v775_v48 = vor.u32 %v837_v42, %v774_v40  ;;  %v715_v49 = vor.u32 %v820_v43, %v712_v44  ;;  %v702_v50 = vld [vmem:[%s991_s3 + $0x30] sm:$0xf] }
  0x30   : > { %483 = vmatpush.bf16.msra.mxu0 %v719_v32  ;;  %v819_v51 = vld [vmem:[%s991_s3 + $0x34] sm:$0xf0]  ;;  %v766_v52 = vld [vmem:[%s991_s3 + $0xb0] sm:$0xf]  ;;  %v779_v53 = vor.u32 %v836_v45, %v776_v46  ;;  %v818_v55 = vld [vmem:[%s991_s3 + $0x34] sm:$0xf] }
  0x31   : > { %497 = vmatpush.bf16.msra.mxu1 %v783_v36  ;;  %511 = vmatpush.bf16.msra.mxu2 %v723_v37  ;;  %v835_v54 = vld [vmem:[%s991_s3 + $0xb4] sm:$0xf0]  ;;  %v704_v56 = vld [vmem:[%s991_s3 + $0x38] sm:$0xf0]  ;;  %v834_v57 = vld [vmem:[%s991_s3 + $0xb4] sm:$0xf]  ;;  %v703_v59 = vor.u32 %v819_v51, %v702_v50 }
  0x32   : > { %525 = vmatpush.bf16.msra.mxu3 %v787_v41  ;;  %v768_v58 = vld [vmem:[%s991_s3 + $0xb8] sm:$0xf0]  ;;  %v767_v60 = vor.u32 %v835_v54, %v766_v52  ;;  %v707_v61 = vor.u32 %v818_v55, %v704_v56  ;;  %v694_v62 = vld [vmem:[%s991_s3 + $0x20] sm:$0xf]  ;;  %v817_v63 = vld [vmem:[%s991_s3 + $0x24] sm:$0xf0] }
  0x33   : > { %v758_v0 = vld [vmem:[%s991_s3 + $0xa0] sm:$0xf]  ;;  %v771_v1 = vor.u32 %v834_v57, %v768_v58  ;;  %v833_v2 = vld [vmem:[%s991_s3 + $0xa4] sm:$0xf0]  ;;  %v816_v3 = vld [vmem:[%s991_s3 + $0x24] sm:$0xf]  ;;  %v695_v7 = vor.u32 %v817_v63, %v694_v62 }
  0x34   : > { %484 = vmatpush.bf16.msra.mxu0 %v711_v47  ;;  %v696_v4 = vld [vmem:[%s991_s3 + $0x28] sm:$0xf0]  ;;  %v832_v5 = vld [vmem:[%s991_s3 + $0xa4] sm:$0xf]  ;;  %v759_v8 = vor.u32 %v833_v2, %v758_v0  ;;  %v686_v10 = vld [vmem:[%s991_s3 + $0x10] sm:$0xf] }
  0x35   : > { %498 = vmatpush.bf16.msra.mxu1 %v775_v48  ;;  %512 = vmatpush.bf16.msra.mxu2 %v715_v49  ;;  %v760_v6 = vld [vmem:[%s991_s3 + $0xa8] sm:$0xf0]  ;;  %v699_v9 = vor.u32 %v816_v3, %v696_v4  ;;  %v815_v11 = vld [vmem:[%s991_s3 + $0x14] sm:$0xf0]  ;;  %v750_v12 = vld [vmem:[%s991_s3 + $0x90] sm:$0xf] }
  0x36   : > { %526 = vmatpush.bf16.msra.mxu3 %v779_v53  ;;  %v763_v13 = vor.u32 %v832_v5, %v760_v6  ;;  %v831_v14 = vld [vmem:[%s991_s3 + $0x94] sm:$0xf0]  ;;  %v814_v15 = vld [vmem:[%s991_s3 + $0x14] sm:$0xf]  ;;  %v688_v16 = vld [vmem:[%s991_s3 + $0x18] sm:$0xf0]  ;;  %v687_v19 = vor.u32 %v815_v11, %v686_v10 }
  0x37   : > { %v830_v17 = vld [vmem:[%s991_s3 + $0x94] sm:$0xf]  ;;  %v752_v18 = vld [vmem:[%s991_s3 + $0x98] sm:$0xf0]  ;;  %v751_v20 = vor.u32 %v831_v14, %v750_v12  ;;  %v691_v21 = vor.u32 %v814_v15, %v688_v16  ;;  %v678_v22 = vld [vmem:[%s991_s3] sm:$0xf] }
  0x38   : > { %485 = vmatpush.bf16.msra.mxu0 %v703_v59  ;;  %v813_v23 = vld [vmem:[%s991_s3 + $0x4] sm:$0xf0]  ;;  %v742_v24 = vld [vmem:[%s991_s3 + $0x80] sm:$0xf]  ;;  %v755_v25 = vor.u32 %v830_v17, %v752_v18  ;;  %v812_v27 = vld [vmem:[%s991_s3 + $0x4] sm:$0xf] }
  0x39   : > { %499 = vmatpush.bf16.msra.mxu1 %v767_v60  ;;  %513 = vmatpush.bf16.msra.mxu2 %v707_v61  ;;  %v829_v26 = vld [vmem:[%s991_s3 + $0x84] sm:$0xf0]  ;;  %v680_v28 = vld [vmem:[%s991_s3 + $0x8] sm:$0xf0]  ;;  %v828_v29 = vld [vmem:[%s991_s3 + $0x84] sm:$0xf]  ;;  %v679_v31 = vor.u32 %v813_v23, %v678_v22 }
  0x3a   : > { %527 = vmatpush.bf16.msra.mxu3 %v771_v1  ;;  %v744_v30 = vld [vmem:[%s991_s3 + $0x88] sm:$0xf0]  ;;  %v670_v32 = vld [vmem:[%s993_s4] sm:$0xf]  ;;  %v811_v33 = vld [vmem:[%s993_s4 + $0x4] sm:$0xf0]  ;;  %v743_v34 = vor.u32 %v829_v26, %v742_v24  ;;  %v683_v35 = vor.u32 %v812_v27, %v680_v28 }
  0x3b   : > { %v810_v36 = vld [vmem:[%s993_s4 + $0x4] sm:$0xf]  ;;  %v672_v37 = vld [vmem:[%s993_s4 + $0x8] sm:$0xf0]  ;;  %v747_v38 = vor.u32 %v828_v29, %v744_v30  ;;  %v671_v39 = vor.u32 %v811_v33, %v670_v32 }
  0x3c   : > { %486 = vmatpush.bf16.msra.mxu0 %v695_v7  ;;  %v675_v40 = vor.u32 %v810_v36, %v672_v37  ;;  %v273_v42 = vld [vmem:[%s1117_s2] sm:$0xff]  ;;  %v274_v47 = vld [vmem:[%s1117_s2 + $0x8] sm:$0xff]  ;;  %v275_v51 = vld [vmem:[%s1117_s2 + $0x10] sm:$0xff] }
  0x3d   : > { %500 = vmatpush.bf16.msra.mxu1 %v759_v8  ;;  %514 = vmatpush.bf16.msra.mxu2 %v699_v9  ;;  %v276_v57 = vld [vmem:[%s1117_s2 + $0x18] sm:$0xff] }
  0x3e   : > { %528 = vmatpush.bf16.msra.mxu3 %v763_v13 }
  0x40   : > { %487 = vmatpush.bf16.msra.mxu0 %v687_v19 }
  0x41   : > { %501 = vmatpush.bf16.msra.mxu1 %v751_v20  ;;  %515 = vmatpush.bf16.msra.mxu2 %v691_v21 }
  0x42   : > { %529 = vmatpush.bf16.msra.mxu3 %v755_v25 }
  0x44   : > { %488 = vmatpush.bf16.msra.mxu0 %v679_v31 }
  0x45   : > { %502 = vmatpush.bf16.msra.mxu1 %v743_v34  ;;  %516 = vmatpush.bf16.msra.mxu2 %v683_v35 }
  0x46   : > { %530 = vmatpush.bf16.msra.mxu3 %v747_v38 }
  0x47   : > { %489 = vmatmul.bf16.vlgmr.msra.gmra.mxu0 %v671_v39 }
  0x48   : > { %503 = vmatmul.bf16.vlgmr.msra.gmra.mxu1 %v675_v40  ;;  %517 = vmatmul.bf16.vlgmr.msra.gmra.mxu2 %v671_v39 }
  0x49   : > { %531 = vmatmul.bf16.vlgmr.msra.gmra.mxu3 %v675_v40 }
  0xc4   : > { %v490_v41 = vpop.f32.mrf.mxu0 }
  0xc5   : > { %v504_v43 = vpop.f32.mrf.mxu1 }
  0xc6   : > { %v505_v44 = vadd.f32 %v504_v43, %v490_v41 }
  0xc8   : > { %v537_v45 = vadd.f32 %v505_v44, %v273_v42 }
  0xca   : > { %541 = vst [vmem:[%s1117_s2] sm:$0xff] %v537_v45 }
  0xcb   : > { %v518_v46 = vpop.f32.mrf.mxu2 }
  0xcc   : > { %v532_v48 = vpop.f32.mrf.mxu3  ;;  %v492_v49 = vpop.f32.mrf.mxu0 }
  0xcd   : > { %v533_v50 = vadd.f32 %v532_v48, %v518_v46  ;;  %v506_v52 = vpop.f32.mrf.mxu1 }
  0xce   : > { %v507_v53 = vadd.f32 %v506_v52, %v492_v49 }
  0xcf   : > { %v538_v54 = vadd.f32 %v533_v50, %v274_v47 }
  0xd0   : > { %v539_v55 = vadd.f32 %v507_v53, %v275_v51 }
  0xd1   : > { %542 = vst [vmem:[%s1117_s2 + $0x8] sm:$0xff] %v538_v54 }
  0xd2   : > { %543 = vst [vmem:[%s1117_s2 + $0x10] sm:$0xff] %v539_v55 }
  0xd3   : > { %v520_v56 = vpop.f32.mrf.mxu2 }
  0xd4   : > { %v534_v58 = vpop.f32.mrf.mxu3 }
  0xd5   : > { %v535_v59 = vadd.f32 %v534_v58, %v520_v56 }
  0xd7   : > { %v540_v60 = vadd.f32 %v535_v59, %v276_v57 }
  0xd9   : > { %544 = vst [vmem:[%s1117_s2 + $0x18] sm:$0xff] %v540_v60 }
  0xda PF: > { %s12_s13 = sadd.s32 1, %s923_s13   ;;  %s1118_s9 = smov %s911_s10 }
  0xdb   : > { %p9_p11 = scmp.ge.s32.totalorder %s12_s13, 14   ;;  %s1119_s10 = smov %s976_s17 }
  0xdc   : > { %s1120_s11 = smov %s919_s12  ;;  %s1121_s12 = smov %s1123_s14 }
  0xdd   :  { %11 = sbr.rel (!%p9_p11) target bundleno = 3 (0x3), region = 108 }

// kernel: run.56
= control target key start
LH: loop header
LB: loop body
LE: loop exit
PB: predicated region body
PF: predicated region fallthrough
CT: control target
= control target key end

     0   :  { %s894_s9 = smov 0   ;;  %s896_s10 = smov 0   ;;  %s1068_s0 = inlined_call_operand.vmem [shape: bf16[64,2304], index: 0, kind: input, shape index: {}]   ;;  %s1069_s1 = inlined_call_operand.vmem [shape: bf16[2304,128], index: 1, kind: input, shape index: {}]   ;;  %s1070_s2 = inlined_call_operand.vmem [shape: f32[64,128], index: 2, kind: output, shape index: {}]  }
   0x1   :  { %s898_s11 = smov 0   ;;  %s900_s12 = smov 0  }
   0x2   :  { %s902_s13 = smov 0  }
   0x3 LB: > { %s24_s14 = sadd.s32 1, %s872_s12  ;;  %p47_p1 = scmp.ne.s32.totalorder %s864_s10, %s860_s9  ;;  %s876_s13 = sphi %s902_s13, %s12_s13   ;;  %s872_s12 = sphi %s900_s12, %s1074_s12   ;;  %s868_s11 = sphi %s898_s11, %s1073_s11   ;;  %s864_s10 = sphi %s896_s10, %s1072_s10   ;;  %s860_s9 = sphi %s894_s9, %s1071_s9  }
   0x4   : > { %p25_p0 = scmp.ge.s32.totalorder %s24_s14, 9  ;;  %p48_p2 = scmp.eq.s32.totalorder %s876_s13, 0 }
   0x5   : > { %s40_s16 = sadd.s32 1, %s864_s10  ;;  %p647_p5 = scmp.ge.s32.totalorder %s876_s13, 9 }
   0x6   : > { %s1076_s14 = smov (%p25_p0, %s24_s14), 0  ;;  %p49_p3 = por %p48_p2, %p47_p1 }
   0x7   : > { %s36_s15 = ssub.s32 %s872_s12, %s1076_s14  ;;  %129 = sbr.rel (%p647_p5) target bundleno = 24 (0x18), region = 16 }
   0x8   : > { %p38_p4 = scmp.eq.s32.totalorder %s36_s15, 0 }
   0xa   : > { %s929_s17 = scalar_select %p38_p4, %s864_s10, %s40_s16  }
   0xc   : > { %132 = sbr.rel (!%p49_p3) target bundleno = 24 (0x18), region = 20  ;;  %s134_s18 = sand.u32 (%p49_p3), 1, %s864_s10  }
   0xd   : > { %s756_s19 = sshll.u32 (%p49_p3), %s872_s12, 3  ;;  %s648_s20 = sshll.u32 (%p49_p3), %s134_s18, 6 }
   0xe   : > { %s142_s23 = scalar_lea.vmem (%p49_p3), %s1068_s0, %s756_s19  ;;  %s136_s24 = scalar_lea.vmem (%p49_p3), [#allocation2], %s648_s20 }
   0xf   : > { %v185_v0 = vld [vmem:[%s142_s23] sm:$0xff] (%p49_p3)  ;;  %v187_v1 = vld [vmem:[%s142_s23 + $0x48] sm:$0xff] (%p49_p3)  ;;  %v189_v2 = vld [vmem:[%s142_s23 + $0x90] sm:$0xff] (%p49_p3) }
  0x10   : > { %186 = vst [vmem:[%s136_s24] sm:$0xff] (%p49_p3), %v185_v0  ;;  %v191_v3 = vld [vmem:[%s142_s23 + $0xd8] sm:$0xff] (%p49_p3)  ;;  %v193_v4 = vld [vmem:[%s142_s23 + $0x120] sm:$0xff] (%p49_p3)  ;;  %v195_v5 = vld [vmem:[%s142_s23 + $0x168] sm:$0xff] (%p49_p3) }
  0x11   : > { %188 = vst [vmem:[%s136_s24 + $0x8] sm:$0xff] %v187_v1  ;;  %v197_v6 = vld [vmem:[%s142_s23 + $0x1b0] sm:$0xff]  ;;  %v199_v7 = vld [vmem:[%s142_s23 + $0x1f8] sm:$0xff] }
  0x12   : > { %190 = vst [vmem:[%s136_s24 + $0x10] sm:$0xff] %v189_v2 }
  0x13   : > { %192 = vst [vmem:[%s136_s24 + $0x18] sm:$0xff] %v191_v3 }
  0x14   : > { %194 = vst [vmem:[%s136_s24 + $0x20] sm:$0xff] %v193_v4 }
  0x15   : > { %196 = vst [vmem:[%s136_s24 + $0x28] sm:$0xff] %v195_v5 }
  0x16   : > { %198 = vst [vmem:[%s136_s24 + $0x30] sm:$0xff] %v197_v6 }
  0x17   : > { %200 = vst [vmem:[%s136_s24 + $0x38] sm:$0xff] %v199_v7 }
  0x18 PF: > { %p651_p6 = scmp.ge.s32.totalorder %s876_s13, 1  ;;  %p217_p7 = scmp.lt.s32.totalorder %s876_s13, 10 }
  0x1a   : > { %p218_p8 = pnand %p651_p6, %p217_p7 }
  0x1b   : > { %s224_s25 = sand.u32 (!%p218_p8), 1, %s860_s9   ;;  %s653_s26 = sshll.u32 (!%p218_p8), %s868_s11, 5 }
  0x1c   : > { %221 = sbr.rel (%p218_p8) target bundleno = 241 (0xf1), region = 62  ;;  %s652_s27 = sshll.u32 (!%p218_p8), %s224_s25, 6 }
  0x1d   : > { %p259_p9 = scmp.lt.s32.totalorder (!%p218_p8), %s653_s26, 287  ;;  %s946_s4 = scalar_lea.vmem (!%p218_p8), [#allocation2], %s652_s27 }
  0x1e   : > { %p655_p10 = scmp.ne.s32.totalorder (!%p218_p8), %s868_s11, 0 }
  0x21   : > { %s1078_s26 = smov (!%p259_p9, %s653_s26), 287  ;;  %279 = sbr.rel (%p655_p10) target bundleno = 47 (0x2f), region = 70 }
  0x22   : > { %s654_s28 = sshll.u32 %s1078_s26, 2 }
  0x23   : > { %s944_s3 = scalar_lea.vmem %s1069_s1, %s654_s28 }
  0x26   : > { %v878_v8 = vmov 0.0  }
  0x27   : > { %280 = vst [vmem:[%s1070_s2] sm:$0xff] %v878_v8 }
  0x28   : > { %281 = vst [vmem:[%s1070_s2 + $0x8] sm:$0xff] %v878_v8 }
  0x29   : > { %282 = vst [vmem:[%s1070_s2 + $0x10] sm:$0xff] %v878_v8 }
  0x2a   : > { %283 = vst [vmem:[%s1070_s2 + $0x18] sm:$0xff] %v878_v8 }
  0x2b   : > { %284 = vst [vmem:[%s1070_s2 + $0x20] sm:$0xff] %v878_v8 }
  0x2c   : > { %285 = vst [vmem:[%s1070_s2 + $0x28] sm:$0xff] %v878_v8 }
  0x2d   : > { %286 = vst [vmem:[%s1070_s2 + $0x30] sm:$0xff] %v878_v8 }
  0x2e   : > { %287 = vst [vmem:[%s1070_s2 + $0x38] sm:$0xff] %v878_v8 }
  0x2f PF: > { %v772_v9 = vld [vmem:[%s944_s3 + $0x38] sm:$0xff]  ;;  %v771_v11 = vld [vmem:[%s944_s3 + $0x30] sm:$0xff]  ;;  %v770_v13 = vld [vmem:[%s944_s3 + $0x28] sm:$0xff] }
  0x30   : > { %v780_v10 = vld [vmem:[%s944_s3 + $0x78] sm:$0xff]  ;;  %472 = vmatpush.bf16.msra.mxu0 %v772_v9  ;;  %781 = vmatpush.bf16.msra.mxu2 %v772_v9  ;;  %v779_v12 = vld [vmem:[%s944_s3 + $0x70] sm:$0xff]  ;;  %v778_v14 = vld [vmem:[%s944_s3 + $0x68] sm:$0xff] }
  0x31   : > { %501 = vmatpush.bf16.msra.mxu1 %v780_v10  ;;  %789 = vmatpush.bf16.msra.mxu3 %v780_v10  ;;  %v769_v15 = vld [vmem:[%s944_s3 + $0x20] sm:$0xff]  ;;  %v768_v17 = vld [vmem:[%s944_s3 + $0x18] sm:$0xff]  ;;  %v767_v19 = vld [vmem:[%s944_s3 + $0x10] sm:$0xff] }
  0x32   : > { %v777_v16 = vld [vmem:[%s944_s3 + $0x60] sm:$0xff]  ;;  %v776_v18 = vld [vmem:[%s944_s3 + $0x58] sm:$0xff]  ;;  %v775_v20 = vld [vmem:[%s944_s3 + $0x50] sm:$0xff] }
  0x33   : > { %v766_v21 = vld [vmem:[%s944_s3 + $0x8] sm:$0xff]  ;;  %v765_v23 = vld [vmem:[%s944_s3] sm:$0xff]  ;;  %v666_v37 = vld [vmem:[%s946_s4 + $0x10] sm:$0xf] }
  0x34   : > { %473 = vmatpush.bf16.msra.mxu0 %v771_v11  ;;  %782 = vmatpush.bf16.msra.mxu2 %v771_v11  ;;  %v774_v22 = vld [vmem:[%s944_s3 + $0x48] sm:$0xff]  ;;  %v773_v24 = vld [vmem:[%s944_s3 + $0x40] sm:$0xff]  ;;  %v760_v38 = vld [vmem:[%s946_s4 + $0x14] sm:$0xf0] }
  0x35   : > { %502 = vmatpush.bf16.msra.mxu1 %v779_v12  ;;  %790 = vmatpush.bf16.msra.mxu3 %v779_v12  ;;  %v658_v25 = vld [vmem:[%s946_s4] sm:$0xf]  ;;  %v758_v26 = vld [vmem:[%s946_s4 + $0x4] sm:$0xf0]  ;;  %v757_v29 = vld [vmem:[%s946_s4 + $0x4] sm:$0xf]  ;;  %v667_v45 = vor.u32 %v760_v38, %v666_v37 }
  0x36   : > { %v674_v27 = vld [vmem:[%s946_s4 + $0x20] sm:$0xf]  ;;  %v762_v28 = vld [vmem:[%s946_s4 + $0x24] sm:$0xf0]  ;;  %v660_v30 = vld [vmem:[%s946_s4 + $0x8] sm:$0xf0]  ;;  %v659_v33 = vor.u32 %v758_v26, %v658_v25 }
  0x37   : > { %v761_v31 = vld [vmem:[%s946_s4 + $0x24] sm:$0xf]  ;;  %v676_v32 = vld [vmem:[%s946_s4 + $0x28] sm:$0xf0]  ;;  %v675_v34 = vor.u32 %v762_v28, %v674_v27  ;;  %v663_v35 = vor.u32 %v757_v29, %v660_v30  ;;  %v682_v39 = vld [vmem:[%s946_s4 + $0x30] sm:$0xf] }
  0x38   : > { %474 = vmatpush.bf16.msra.mxu0 %v770_v13  ;;  %783 = vmatpush.bf16.msra.mxu2 %v770_v13  ;;  %v679_v36 = vor.u32 %v761_v31, %v676_v32  ;;  %v764_v40 = vld [vmem:[%s946_s4 + $0x34] sm:$0xf0]  ;;  %v759_v41 = vld [vmem:[%s946_s4 + $0x14] sm:$0xf]  ;;  %v668_v42 = vld [vmem:[%s946_s4 + $0x18] sm:$0xf0] }
  0x39   : > { %503 = vmatpush.bf16.msra.mxu1 %v778_v14  ;;  %791 = vmatpush.bf16.msra.mxu3 %v778_v14  ;;  %v763_v43 = vld [vmem:[%s946_s4 + $0x34] sm:$0xf]  ;;  %v684_v44 = vld [vmem:[%s946_s4 + $0x38] sm:$0xf0]  ;;  %v683_v46 = vor.u32 %v764_v40, %v682_v39  ;;  %v671_v47 = vor.u32 %v759_v41, %v668_v42  ;;  %v288_v50 = vld [vmem:[%s1070_s2] sm:$0xff] }
  0x3a   : > { %v687_v48 = vor.u32 %v763_v43, %v684_v44  ;;  %v292_v55 = vld [vmem:[%s1070_s2 + $0x20] sm:$0xff]  ;;  %v289_v59 = vld [vmem:[%s1070_s2 + $0x8] sm:$0xff]  ;;  %v290_v5 = vld [vmem:[%s1070_s2 + $0x10] sm:$0xff] }
  0x3b   : > { %v293_v1 = vld [vmem:[%s1070_s2 + $0x28] sm:$0xff]  ;;  %v294_v11 = vld [vmem:[%s1070_s2 + $0x30] sm:$0xff] }
  0x3c   : > { %475 = vmatpush.bf16.msra.mxu0 %v769_v15  ;;  %784 = vmatpush.bf16.msra.mxu2 %v769_v15  ;;  %v291_v15 = vld [vmem:[%s1070_s2 + $0x18] sm:$0xff] }
  0x3d   : > { %504 = vmatpush.bf16.msra.mxu1 %v777_v16  ;;  %792 = vmatpush.bf16.msra.mxu3 %v777_v16 }
  0x40   : > { %476 = vmatpush.bf16.msra.mxu0 %v768_v17  ;;  %785 = vmatpush.bf16.msra.mxu2 %v768_v17 }
  0x41   : > { %505 = vmatpush.bf16.msra.mxu1 %v776_v18  ;;  %793 = vmatpush.bf16.msra.mxu3 %v776_v18 }
  0x44   : > { %477 = vmatpush.bf16.msra.mxu0 %v767_v19  ;;  %786 = vmatpush.bf16.msra.mxu2 %v767_v19 }
  0x45   : > { %506 = vmatpush.bf16.msra.mxu1 %v775_v20  ;;  %794 = vmatpush.bf16.msra.mxu3 %v775_v20 }
  0x48   : > { %478 = vmatpush.bf16.msra.mxu0 %v766_v21  ;;  %787 = vmatpush.bf16.msra.mxu2 %v766_v21  ;;  %v295_v21 = vld [vmem:[%s1070_s2 + $0x38] sm:$0xff] }
  0x49   : > { %507 = vmatpush.bf16.msra.mxu1 %v774_v22  ;;  %795 = vmatpush.bf16.msra.mxu3 %v774_v22 }
  0x4c   : > { %479 = vmatpush.bf16.msra.mxu0 %v765_v23  ;;  %788 = vmatpush.bf16.msra.mxu2 %v765_v23 }
  0x4d   : > { %508 = vmatpush.bf16.msra.mxu1 %v773_v24  ;;  %796 = vmatpush.bf16.msra.mxu3 %v773_v24 }
  0x4f   : > { %480 = vmatmul.bf16.vlgmr.msra.gmra.mxu0 %v659_v33  ;;  %490 = vmatmul.bf16.vlgmr.msra.gmra.mxu2 %v675_v34 }
  0x50   : > { %509 = vmatmul.bf16.vlgmr.msra.gmra.mxu1 %v663_v35  ;;  %519 = vmatmul.bf16.vlgmr.msra.gmra.mxu3 %v679_v36 }
  0x5f   : > { %485 = vmatmul.bf16.gmra.mxu0 %v667_v45  ;;  %495 = vmatmul.bf16.gmra.mxu2 %v683_v46 }
  0x60   : > { %514 = vmatmul.bf16.gmra.mxu1 %v671_v47  ;;  %524 = vmatmul.bf16.gmra.mxu3 %v687_v48 }
  0xcc   : > { %v481_v49 = vpop.f32.mrf.mxu0 }
  0xcd   : > { %v510_v51 = vpop.f32.mrf.mxu1 }
  0xce   : > { %v511_v52 = vadd.f32 %v510_v51, %v481_v49 }
  0xd0   : > { %v530_v53 = vadd.f32 %v511_v52, %v288_v50 }
  0xd2   : > { %538 = vst [vmem:[%s1070_s2] sm:$0xff] %v530_v53  ;;  %v491_v54 = vpop.f32.mrf.mxu2 }
  0xd3   : > { %v520_v56 = vpop.f32.mrf.mxu3 }
  0xd4   : > { %v521_v57 = vadd.f32 %v520_v56, %v491_v54  ;;  %v483_v58 = vpop.f32.mrf.mxu0 }
  0xd5   : > { %v512_v60 = vpop.f32.mrf.mxu1 }
  0xd6   : > { %v534_v61 = vadd.f32 %v521_v57, %v292_v55  ;;  %v513_v62 = vadd.f32 %v512_v60, %v483_v58 }
  0xd8   : > { %542 = vst [vmem:[%s1070_s2 + $0x20] sm:$0xff] %v534_v61  ;;  %v531_v63 = vadd.f32 %v513_v62, %v289_v59 }
  0xda   : > { %539 = vst [vmem:[%s1070_s2 + $0x8] sm:$0xff] %v531_v63  ;;  %v493_v0 = vpop.f32.mrf.mxu2 }
  0xdb   : > { %v522_v2 = vpop.f32.mrf.mxu3 }
  0xdc   : > { %v523_v3 = vadd.f32 %v522_v2, %v493_v0  ;;  %v486_v4 = vpop.f32.mrf.mxu0 }
  0xdd   : > { %v515_v6 = vpop.f32.mrf.mxu1 }
  0xde   : > { %v535_v7 = vadd.f32 %v523_v3, %v293_v1  ;;  %v516_v8 = vadd.f32 %v515_v6, %v486_v4 }
  0xe0   : > { %543 = vst [vmem:[%s1070_s2 + $0x28] sm:$0xff] %v535_v7  ;;  %v532_v9 = vadd.f32 %v516_v8, %v290_v5 }
  0xe2   : > { %540 = vst [vmem:[%s1070_s2 + $0x10] sm:$0xff] %v532_v9  ;;  %v496_v10 = vpop.f32.mrf.mxu2 }
  0xe3   : > { %v525_v12 = vpop.f32.mrf.mxu3 }
  0xe4   : > { %v526_v13 = vadd.f32 %v525_v12, %v496_v10  ;;  %v488_v14 = vpop.f32.mrf.mxu0 }
  0xe5   : > { %v517_v16 = vpop.f32.mrf.mxu1 }
  0xe6   : > { %v536_v17 = vadd.f32 %v526_v13, %v294_v11  ;;  %v518_v18 = vadd.f32 %v517_v16, %v488_v14 }
  0xe8   : > { %544 = vst [vmem:[%s1070_s2 + $0x30] sm:$0xff] %v536_v17  ;;  %v533_v19 = vadd.f32 %v518_v18, %v291_v15 }
  0xea   : > { %541 = vst [vmem:[%s1070_s2 + $0x18] sm:$0xff] %v533_v19  ;;  %v498_v20 = vpop.f32.mrf.mxu2 }
  0xeb   : > { %v527_v22 = vpop.f32.mrf.mxu3 }
  0xec   : > { %v528_v23 = vadd.f32 %v527_v22, %v498_v20 }
  0xee   : > { %v537_v24 = vadd.f32 %v528_v23, %v295_v21 }
  0xf0   : > { %545 = vst [vmem:[%s1070_s2 + $0x38] sm:$0xff] %v537_v24 }
  0xf1 PF: > { %s12_s13 = sadd.s32 1, %s876_s13   ;;  %s1071_s9 = smov %s864_s10 }
  0xf2   : > { %p9_p11 = scmp.ge.s32.totalorder %s12_s13, 11   ;;  %s1072_s10 = smov %s929_s17 }
  0xf3   : > { %s1073_s11 = smov %s872_s12  ;;  %s1074_s12 = smov %s1076_s14 }
  0xf4   :  { %11 = sbr.rel (!%p9_p11) target bundleno = 3 (0x3), region = 108 }

// kernel: run.57
= control target key start
LH: loop header
LB: loop body
LE: loop exit
PB: predicated region body
PF: predicated region fallthrough
CT: control target
= control target key end

     0   :  { %s336_s1 = inlined_call_operand.vmem [shape: bf16[128,128], index: 1, kind: input, shape index: {}]   ;;  %s337_s0 = inlined_call_operand.vmem [shape: bf16[64,128], index: 0, kind: input, shape index: {}]   ;;  %s338_s2 = inlined_call_operand.vmem [shape: f32[64,128], index: 2, kind: output, shape index: {}]  }
   0x1   :  { %v235_v0 = vld [vmem:[%s336_s1 + $0x38] sm:$0xff]  ;;  %v234_v1 = vld [vmem:[%s336_s1 + $0x30] sm:$0xff]  ;;  %v233_v2 = vld [vmem:[%s336_s1 + $0x28] sm:$0xff] }
   0x2   :  { %127 = vmatpush.bf16.msra.mxu0 %v235_v0  ;;  %236 = vmatpush.bf16.msra.mxu1 %v235_v0  ;;  %v232_v3 = vld [vmem:[%s336_s1 + $0x20] sm:$0xff]  ;;  %v231_v4 = vld [vmem:[%s336_s1 + $0x18] sm:$0xff]  ;;  %v230_v5 = vld [vmem:[%s336_s1 + $0x10] sm:$0xff] }
   0x3   :  { %237 = vmatpush.bf16.msra.mxu2 %v235_v0  ;;  %238 = vmatpush.bf16.msra.mxu3 %v235_v0  ;;  %v229_v6 = vld [vmem:[%s336_s1 + $0x8] sm:$0xff]  ;;  %v228_v7 = vld [vmem:[%s336_s1] sm:$0xff]  ;;  %v226_v10 = vld [vmem:[%s337_s0 + $0x10] sm:$0xff] }
   0x4   :  { %v224_v8 = vld [vmem:[%s337_s0] sm:$0xff]  ;;  %v225_v9 = vld [vmem:[%s337_s0 + $0x8] sm:$0xff]  ;;  %v227_v11 = vld [vmem:[%s337_s0 + $0x18] sm:$0xff] }
   0x6   :  { %128 = vmatpush.bf16.msra.mxu0 %v234_v1  ;;  %239 = vmatpush.bf16.msra.mxu1 %v234_v1 }
   0x7   :  { %240 = vmatpush.bf16.msra.mxu2 %v234_v1  ;;  %241 = vmatpush.bf16.msra.mxu3 %v234_v1 }
   0xa   :  { %129 = vmatpush.bf16.msra.mxu0 %v233_v2  ;;  %242 = vmatpush.bf16.msra.mxu1 %v233_v2 }
   0xb   :  { %243 = vmatpush.bf16.msra.mxu2 %v233_v2  ;;  %244 = vmatpush.bf16.msra.mxu3 %v233_v2 }
   0xe   :  { %130 = vmatpush.bf16.msra.mxu0 %v232_v3  ;;  %245 = vmatpush.bf16.msra.mxu1 %v232_v3 }
   0xf   :  { %246 = vmatpush.bf16.msra.mxu2 %v232_v3  ;;  %247 = vmatpush.bf16.msra.mxu3 %v232_v3 }
  0x12   :  { %131 = vmatpush.bf16.msra.mxu0 %v231_v4  ;;  %248 = vmatpush.bf16.msra.mxu1 %v231_v4 }
  0x13   :  { %249 = vmatpush.bf16.msra.mxu2 %v231_v4  ;;  %250 = vmatpush.bf16.msra.mxu3 %v231_v4 }
  0x16   :  { %132 = vmatpush.bf16.msra.mxu0 %v230_v5  ;;  %251 = vmatpush.bf16.msra.mxu1 %v230_v5 }
  0x17   :  { %252 = vmatpush.bf16.msra.mxu2 %v230_v5  ;;  %253 = vmatpush.bf16.msra.mxu3 %v230_v5 }
  0x1a   :  { %133 = vmatpush.bf16.msra.mxu0 %v229_v6  ;;  %254 = vmatpush.bf16.msra.mxu1 %v229_v6 }
  0x1b   :  { %255 = vmatpush.bf16.msra.mxu2 %v229_v6  ;;  %256 = vmatpush.bf16.msra.mxu3 %v229_v6 }
  0x1e   :  { %134 = vmatpush.bf16.msra.mxu0 %v228_v7  ;;  %257 = vmatpush.bf16.msra.mxu1 %v228_v7 }
  0x1f   :  { %258 = vmatpush.bf16.msra.mxu2 %v228_v7  ;;  %259 = vmatpush.bf16.msra.mxu3 %v228_v7 }
  0x21   :  { %135 = vmatmul.bf16.vlgmr.msra.gmra.mxu0 %v224_v8  ;;  %140 = vmatmul.bf16.vlgmr.msra.gmra.mxu1 %v225_v9 }
  0x22   :  { %145 = vmatmul.bf16.vlgmr.msra.gmra.mxu2 %v226_v10  ;;  %150 = vmatmul.bf16.vlgmr.msra.gmra.mxu3 %v227_v11 }
  0x9e   :  { %v136_v12 = vpop.f32.mrf.mxu0  ;;  %v141_v13 = vpop.f32.mrf.mxu1 }
  0x9f   :  { %164 = vst [vmem:[%s338_s2] sm:$0xff] %v136_v12 }
  0xa0   :  { %166 = vst [vmem:[%s338_s2 + $0x10] sm:$0xff] %v141_v13 }
  0xa5   :  { %v146_v14 = vpop.f32.mrf.mxu2  ;;  %v151_v15 = vpop.f32.mrf.mxu3 }
  0xa6   :  { %v138_v16 = vpop.f32.mrf.mxu0  ;;  %v143_v17 = vpop.f32.mrf.mxu1  ;;  %168 = vst [vmem:[%s338_s2 + $0x20] sm:$0xff] %v146_v14 }
  0xa7   :  { %170 = vst [vmem:[%s338_s2 + $0x30] sm:$0xff] %v151_v15 }
  0xa8   :  { %165 = vst [vmem:[%s338_s2 + $0x8] sm:$0xff] %v138_v16 }
  0xa9   :  { %167 = vst [vmem:[%s338_s2 + $0x18] sm:$0xff] %v143_v17 }
  0xad   :  { %v148_v18 = vpop.f32.mrf.mxu2  ;;  %v153_v19 = vpop.f32.mrf.mxu3 }
  0xae   :  { %169 = vst [vmem:[%s338_s2 + $0x28] sm:$0xff] %v148_v18 }
  0xaf   :  { %171 = vst [vmem:[%s338_s2 + $0x38] sm:$0xff] %v153_v19 }

</bundles_post_ra>
